<compile_context>
chip_gen: v6e
topology: v6e:2x2x1
jax: 0.10.0
libtpu: 0.0.40
codegen_flags: <defaults>
</compile_context>

<pallas_src>
import jax
import jax.numpy as jnp
from jax.experimental import pallas as pl
from jax.experimental.pallas import tpu as pltpu


# ---------------------------------------------------------------------------
# Kernel factory
# ---------------------------------------------------------------------------
def _make_cross_embed_kernel(*, kmax, stride, cin_pad, row_blk, wout):
    s = stride

    def kernel(x_ref, w_ref, b_ref, o_ref):
        # x_ref: (row_blk + max_sy, s*s*cin_pad, Wph) f32   halo'd phase rows for this block
        # w_ref: (Cout, kmax*kmax*cin_pad)        bf16      im2col-packed fused weights
        # b_ref: (Cout, 1)                        f32
        # o_ref: (Cout, row_blk*wout)             f32       lane-dense NC(HW) output block
        cols = []
        for r in range(row_blk):                      # static unroll over output rows
            taps = []
            for gy in range(kmax):
                sy, py = divmod(gy, s)
                for gx in range(kmax):
                    sx, px = divmod(gx, s)
                    c0 = (py * s + px) * cin_pad      # sublane-aligned (cin_pad % 8 == 0)
                    taps.append(x_ref[r + sy, c0:c0 + cin_pad, sx:sx + wout])
            cols.append(jnp.concatenate(taps, axis=0))          # (K, wout)
        patch = jnp.concatenate(cols, axis=1)                   # (K, row_blk*wout)
        acc = jnp.dot(w_ref[...], patch.astype(jnp.bfloat16),   # single MXU matmul, f32 acc
                      preferred_element_type=jnp.float32)       # (Cout, row_blk*wout)
        o_ref[...] = acc + b_ref[...]                           # bias once per block

    return kernel


def _pick_row_blk(hout, wout):
    """Largest-value row block: divisor of Hout with lane-dense (row_blk*Wout % 128 == 0)
    stores and N near ~1024; fall back to the whole image (single block) otherwise."""
    best = None
    for d in range(1, hout + 1):
        if hout % d or (d * wout) % 128 != 0:
            continue
        score = abs(d * wout - 1024)
        if best is None or score < best[0]:
            best = (score, d)
    return best[1] if best is not None else hout


# ---------------------------------------------------------------------------
# Wrapper: one pad + space-to-depth + halo blocking, im2col weight packing, one pallas_call
# ---------------------------------------------------------------------------
def cross_embed_forward(x, conv_params, *, kernel_sizes, stride=2):
    """x: (B, Cin, H, W) f32.  conv_params: list of (w, b) with w (Cout_c, Cin, k, k),
    b (Cout_c,), ordered by ascending kernel size (matching the module)."""
    B, Cin, H, W = x.shape
    s = stride
    ks = sorted(kernel_sizes)
    assert all(k % 2 == s % 2 for k in ks)
    assert H % s == 0 and W % s == 0
    kmax = ks[-1]
    pmax = (kmax - s) // 2
    Hout, Wout = H // s, W // s

    cin_pad = -(-Cin // 8) * 8                  # sublane-aligned channel slices
    Hph = -(-(H + 2 * pmax) // s)               # ceil -> no kmax % stride restriction
    Wph = -(-(W + 2 * pmax) // s)
    Hp, Wp = Hph * s, Wph * s
    P = s * s
    K = kmax * kmax * cin_pad

    # --- single prep pass: channel-pad + spatial-pad + space-to-depth into stride^2 phases ---
    x_pad = jnp.pad(x.astype(jnp.float32),
                    ((0, 0), (0, cin_pad - Cin),
                     (pmax, Hp - H - pmax), (pmax, Wp - W - pmax)))
    phases = (x_pad.reshape(B, cin_pad, Hph, s, Wph, s)
                   .transpose(0, 2, 3, 5, 1, 4)
                   .reshape(B, Hph, P * cin_pad, Wph))

    # --- halo-block the phase rows so per-step input VMEM is O(row_blk), not O(H) ---
    row_blk = _pick_row_blk(Hout, Wout)
    n_row_blocks = Hout // row_blk
    max_sy = (kmax - 1) // s
    rows_per_blk = row_blk + max_sy
    row_idx = (jnp.arange(n_row_blocks)[:, None] * row_blk
               + jnp.arange(rows_per_blk)[None, :])
    phases_blk = phases[:, row_idx]             # (B, n_row_blocks, rows_per_blk, P*cin_pad, Wph)

    # --- im2col weight packing: all convs fused into one (Cout_total, kmax^2*cin_pad) matrix ---
    cout = sum(w.shape[0] for w, _ in conv_params)
    w_big = jnp.zeros((cout, kmax, kmax, cin_pad), jnp.float32)
    biases = []
    off = 0
    for k, (w, b) in zip(ks, conv_params):
        cc = w.shape[0]
        assert w.shape == (cc, Cin, k, k)
        d = (kmax - k) // 2                     # centred window inside the kmax window
        w_big = w_big.at[off:off + cc, d:d + k, d:d + k, :Cin].set(
            jnp.transpose(w, (0, 2, 3, 1)).astype(jnp.float32))
        biases.append(b.astype(jnp.float32))
        off += cc
    w_flat = w_big.reshape(cout, K).astype(jnp.bfloat16)
    bias_col = jnp.concatenate(biases).reshape(cout, 1)

    kernel = _make_cross_embed_kernel(
        kmax=kmax, stride=s, cin_pad=cin_pad, row_blk=row_blk, wout=Wout)

    # --- scheduling hints ---
    flops = 2 * B * Hout * Wout * cout * K
    bytes_accessed = int(phases_blk.size * 4 + w_flat.size * 2 + cout * 4
                         + B * cout * Hout * Wout * 4)
    in_blk = rows_per_blk * P * cin_pad * Wph * 4
    out_blk = cout * row_blk * Wout * 4
    patch_b = K * row_blk * Wout * 6            # f32 patch + bf16 copy
    vmem_est = 2 * (in_blk + w_flat.size * 2 + out_blk) + 2 * patch_b
    vmem_limit = int(min(56 * 1024 * 1024, max(32 * 1024 * 1024, 2 * vmem_est)))

    out_flat = pl.pallas_call(
        kernel,
        out_shape=jax.ShapeDtypeStruct((B, cout, Hout * Wout), jnp.float32),
        grid=(B, n_row_blocks),
        in_specs=[
            pl.BlockSpec((None, None, rows_per_blk, P * cin_pad, Wph),
                         lambda b, r: (b, r, 0, 0, 0)),
            pl.BlockSpec((cout, K), lambda b, r: (0, 0)),
            pl.BlockSpec((cout, 1), lambda b, r: (0, 0)),
        ],
        out_specs=pl.BlockSpec((None, cout, row_blk * Wout), lambda b, r: (b, 0, r)),
        compiler_params=pltpu.CompilerParams(
            dimension_semantics=("parallel", "parallel"),
            vmem_limit_bytes=vmem_limit),
        cost_estimate=pl.CostEstimate(flops=flops, transcendentals=0,
                                      bytes_accessed=bytes_accessed),
    )(phases_blk, w_flat, bias_col)

    # Minor-dim split only; no data movement.
    return out_flat.reshape(B, cout, Hout, Wout)


# ---------------------------------------------------------------------------
# Pure-JAX reference (true f32 semantics of the PyTorch module)
# ---------------------------------------------------------------------------
def reference_forward(x, conv_params, *, kernel_sizes, stride=2):
    ks = sorted(kernel_sizes)
    outs = []
    for k, (w, b) in zip(ks, conv_params):
        p = (k - stride) // 2
        y = jax.lax.conv_general_dilated(
            x, w, window_strides=(stride, stride),
            padding=((p, p), (p, p)),
            dimension_numbers=("NCHW", "OIHW", "NCHW"),
            precision=jax.lax.Precision.HIGHEST)
        outs.append(y + b[None, :, None, None])
    return jnp.concatenate(outs, axis=1)


# ---------------------------------------------------------------------------
if __name__ == "__main__":
    B, dim_in, H, W = 2, 4, 16, 16
    dim_out = 32
    stride = 2
    kernel_sizes = (2, 4, 8)          # all even, matching stride % 2 per the module assert

    ks_sorted = sorted(kernel_sizes)
    num_scales = len(ks_sorted)
    dim_scales = [int(dim_out / 2 ** i) for i in range(1, num_scales)]
    dim_scales = [*dim_scales, dim_out - sum(dim_scales)]     # [16, 8, 8]

    key = jax.random.PRNGKey(0)
    keys = jax.random.split(key, 2 * num_scales + 1)
    conv_params = []
    for i, (k, dc) in enumerate(zip(ks_sorted, dim_scales)):
        w = 0.1 * jax.random.normal(keys[2 * i], (dc, dim_in, k, k), jnp.float32)
        b = 0.1 * jax.random.normal(keys[2 * i + 1], (dc,), jnp.float32)
        conv_params.append((w, b))
    x = jax.random.normal(keys[-1], (B, dim_in, H, W), jnp.float32)

    out = cross_embed_forward(x, conv_params, kernel_sizes=kernel_sizes, stride=stride)
    out = jax.block_until_ready(out)

    ref = jax.block_until_ready(
        reference_forward(x, conv_params, kernel_sizes=kernel_sizes, stride=stride))

    assert out.shape == (B, dim_out, H // stride, W // stride), out.shape
    max_err = float(jnp.max(jnp.abs(out - ref)))
    # bf16 MXU operands with f32 accumulation -> relaxed tolerance vs. the f32 reference.
    assert jnp.allclose(out, ref, rtol=2e-2, atol=2e-2), max_err
    print("KERNEL_OK")
</pallas_src>

<mosaic_0001>
module attributes {stable_mosaic.version = 11 : i64} {
  func.func @kernel(%arg0: i32, %arg1: i32, %arg2: memref<1x1x11x32x11xf32, #tpu.memory_space<vmem>>, %arg3: memref<32x512xbf16, #tpu.memory_space<vmem>>, %arg4: memref<32x1xf32, #tpu.memory_space<vmem>>, %arg5: memref<1x32x64xf32, #tpu.memory_space<vmem>>) attributes {dimension_semantics = [#tpu.dimension_semantics<parallel>, #tpu.dimension_semantics<parallel>], iteration_bounds = array<i64: 2, 1>, scalar_prefetch = 0 : i64, scratch_operands = 0 : i64, tpu.core_type = #tpu.core_type<tc>, window_params = [{transform_indices = @transform_0, window_bounds = array<i64: 1, 1, 11, 32, 11>}, {pipeline_mode = #tpu.pipeline_mode<synchronous>, transform_indices = @transform_1, window_bounds = array<i64: 32, 512>}, {pipeline_mode = #tpu.pipeline_mode<synchronous>, transform_indices = @transform_2, window_bounds = array<i64: 32, 1>}, {transform_indices = @transform_3, window_bounds = array<i64: 1, 32, 64>}]} {
    %c0 = arith.constant 0 : index
    %c0_0 = arith.constant 0 : index
    %c0_1 = arith.constant 0 : index
    %c0_2 = arith.constant 0 : index
    %c0_3 = arith.constant 0 : index
    %0 = vector.load %arg2[%c0, %c0_0, %c0_1, %c0_2, %c0_3] : memref<1x1x11x32x11xf32, #tpu.memory_space<vmem>>, vector<1x1x1x8x8xf32>
    %1 = vector.shape_cast %0 : vector<1x1x1x8x8xf32> to vector<8x8xf32>
    %c0_4 = arith.constant 0 : index
    %c0_5 = arith.constant 0 : index
    %c0_6 = arith.constant 0 : index
    %c8 = arith.constant 8 : index
    %c0_7 = arith.constant 0 : index
    %2 = vector.load %arg2[%c0_4, %c0_5, %c0_6, %c8, %c0_7] : memref<1x1x11x32x11xf32, #tpu.memory_space<vmem>>, vector<1x1x1x8x8xf32>
    %3 = vector.shape_cast %2 : vector<1x1x1x8x8xf32> to vector<8x8xf32>
    %c0_8 = arith.constant 0 : index
    %c0_9 = arith.constant 0 : index
    %c0_10 = arith.constant 0 : index
    %c0_11 = arith.constant 0 : index
    %c1 = arith.constant 1 : index
    %4 = vector.load %arg2[%c0_8, %c0_9, %c0_10, %c0_11, %c1] : memref<1x1x11x32x11xf32, #tpu.memory_space<vmem>>, vector<1x1x1x8x8xf32>
    %5 = vector.shape_cast %4 : vector<1x1x1x8x8xf32> to vector<8x8xf32>
    %c0_12 = arith.constant 0 : index
    %c0_13 = arith.constant 0 : index
    %c0_14 = arith.constant 0 : index
    %c8_15 = arith.constant 8 : index
    %c1_16 = arith.constant 1 : index
    %6 = vector.load %arg2[%c0_12, %c0_13, %c0_14, %c8_15, %c1_16] : memref<1x1x11x32x11xf32, #tpu.memory_space<vmem>>, vector<1x1x1x8x8xf32>
    %7 = vector.shape_cast %6 : vector<1x1x1x8x8xf32> to vector<8x8xf32>
    %c0_17 = arith.constant 0 : index
    %c0_18 = arith.constant 0 : index
    %c0_19 = arith.constant 0 : index
    %c0_20 = arith.constant 0 : index
    %c2 = arith.constant 2 : index
    %8 = vector.load %arg2[%c0_17, %c0_18, %c0_19, %c0_20, %c2] : memref<1x1x11x32x11xf32, #tpu.memory_space<vmem>>, vector<1x1x1x8x8xf32>
    %9 = vector.shape_cast %8 : vector<1x1x1x8x8xf32> to vector<8x8xf32>
    %c0_21 = arith.constant 0 : index
    %c0_22 = arith.constant 0 : index
    %c0_23 = arith.constant 0 : index
    %c8_24 = arith.constant 8 : index
    %c2_25 = arith.constant 2 : index
    %10 = vector.load %arg2[%c0_21, %c0_22, %c0_23, %c8_24, %c2_25] : memref<1x1x11x32x11xf32, #tpu.memory_space<vmem>>, vector<1x1x1x8x8xf32>
    %11 = vector.shape_cast %10 : vector<1x1x1x8x8xf32> to vector<8x8xf32>
    %c0_26 = arith.constant 0 : index
    %c0_27 = arith.constant 0 : index
    %c0_28 = arith.constant 0 : index
    %c0_29 = arith.constant 0 : index
    %c3 = arith.constant 3 : index
    %12 = vector.load %arg2[%c0_26, %c0_27, %c0_28, %c0_29, %c3] : memref<1x1x11x32x11xf32, #tpu.memory_space<vmem>>, vector<1x1x1x8x8xf32>
    %13 = vector.shape_cast %12 : vector<1x1x1x8x8xf32> to vector<8x8xf32>
    %c0_30 = arith.constant 0 : index
    %c0_31 = arith.constant 0 : index
    %c0_32 = arith.constant 0 : index
    %c8_33 = arith.constant 8 : index
    %c3_34 = arith.constant 3 : index
    %14 = vector.load %arg2[%c0_30, %c0_31, %c0_32, %c8_33, %c3_34] : memref<1x1x11x32x11xf32, #tpu.memory_space<vmem>>, vector<1x1x1x8x8xf32>
    %15 = vector.shape_cast %14 : vector<1x1x1x8x8xf32> to vector<8x8xf32>
    %c0_35 = arith.constant 0 : index
    %c0_36 = arith.constant 0 : index
    %c0_37 = arith.constant 0 : index
    %c16 = arith.constant 16 : index
    %c0_38 = arith.constant 0 : index
    %16 = vector.load %arg2[%c0_35, %c0_36, %c0_37, %c16, %c0_38] : memref<1x1x11x32x11xf32, #tpu.memory_space<vmem>>, vector<1x1x1x8x8xf32>
    %17 = vector.shape_cast %16 : vector<1x1x1x8x8xf32> to vector<8x8xf32>
    %c0_39 = arith.constant 0 : index
    %c0_40 = arith.constant 0 : index
    %c0_41 = arith.constant 0 : index
    %c24 = arith.constant 24 : index
    %c0_42 = arith.constant 0 : index
    %18 = vector.load %arg2[%c0_39, %c0_40, %c0_41, %c24, %c0_42] : memref<1x1x11x32x11xf32, #tpu.memory_space<vmem>>, vector<1x1x1x8x8xf32>
    %19 = vector.shape_cast %18 : vector<1x1x1x8x8xf32> to vector<8x8xf32>
    %c0_43 = arith.constant 0 : index
    %c0_44 = arith.constant 0 : index
    %c0_45 = arith.constant 0 : index
    %c16_46 = arith.constant 16 : index
    %c1_47 = arith.constant 1 : index
    %20 = vector.load %arg2[%c0_43, %c0_44, %c0_45, %c16_46, %c1_47] : memref<1x1x11x32x11xf32, #tpu.memory_space<vmem>>, vector<1x1x1x8x8xf32>
    %21 = vector.shape_cast %20 : vector<1x1x1x8x8xf32> to vector<8x8xf32>
    %c0_48 = arith.constant 0 : index
    %c0_49 = arith.constant 0 : index
    %c0_50 = arith.constant 0 : index
    %c24_51 = arith.constant 24 : index
    %c1_52 = arith.constant 1 : index
    %22 = vector.load %arg2[%c0_48, %c0_49, %c0_50, %c24_51, %c1_52] : memref<1x1x11x32x11xf32, #tpu.memory_space<vmem>>, vector<1x1x1x8x8xf32>
    %23 = vector.shape_cast %22 : vector<1x1x1x8x8xf32> to vector<8x8xf32>
    %c0_53 = arith.constant 0 : index
    %c0_54 = arith.constant 0 : index
    %c0_55 = arith.constant 0 : index
    %c16_56 = arith.constant 16 : index
    %c2_57 = arith.constant 2 : index
    %24 = vector.load %arg2[%c0_53, %c0_54, %c0_55, %c16_56, %c2_57] : memref<1x1x11x32x11xf32, #tpu.memory_space<vmem>>, vector<1x1x1x8x8xf32>
    %25 = vector.shape_cast %24 : vector<1x1x1x8x8xf32> to vector<8x8xf32>
    %c0_58 = arith.constant 0 : index
    %c0_59 = arith.constant 0 : index
    %c0_60 = arith.constant 0 : index
    %c24_61 = arith.constant 24 : index
    %c2_62 = arith.constant 2 : index
    %26 = vector.load %arg2[%c0_58, %c0_59, %c0_60, %c24_61, %c2_62] : memref<1x1x11x32x11xf32, #tpu.memory_space<vmem>>, vector<1x1x1x8x8xf32>
    %27 = vector.shape_cast %26 : vector<1x1x1x8x8xf32> to vector<8x8xf32>
    %c0_63 = arith.constant 0 : index
    %c0_64 = arith.constant 0 : index
    %c0_65 = arith.constant 0 : index
    %c16_66 = arith.constant 16 : index
    %c3_67 = arith.constant 3 : index
    %28 = vector.load %arg2[%c0_63, %c0_64, %c0_65, %c16_66, %c3_67] : memref<1x1x11x32x11xf32, #tpu.memory_space<vmem>>, vector<1x1x1x8x8xf32>
    %29 = vector.shape_cast %28 : vector<1x1x1x8x8xf32> to vector<8x8xf32>
    %c0_68 = arith.constant 0 : index
    %c0_69 = arith.constant 0 : index
    %c0_70 = arith.constant 0 : index
    %c24_71 = arith.constant 24 : index
    %c3_72 = arith.constant 3 : index
    %30 = vector.load %arg2[%c0_68, %c0_69, %c0_70, %c24_71, %c3_72] : memref<1x1x11x32x11xf32, #tpu.memory_space<vmem>>, vector<1x1x1x8x8xf32>
    %31 = vector.shape_cast %30 : vector<1x1x1x8x8xf32> to vector<8x8xf32>
    %c0_73 = arith.constant 0 : index
    %c0_74 = arith.constant 0 : index
    %c1_75 = arith.constant 1 : index
    %c0_76 = arith.constant 0 : index
    %c0_77 = arith.constant 0 : index
    %32 = vector.load %arg2[%c0_73, %c0_74, %c1_75, %c0_76, %c0_77] : memref<1x1x11x32x11xf32, #tpu.memory_space<vmem>>, vector<1x1x1x8x8xf32>
    %33 = vector.shape_cast %32 : vector<1x1x1x8x8xf32> to vector<8x8xf32>
    %c0_78 = arith.constant 0 : index
    %c0_79 = arith.constant 0 : index
    %c1_80 = arith.constant 1 : index
    %c8_81 = arith.constant 8 : index
    %c0_82 = arith.constant 0 : index
    %34 = vector.load %arg2[%c0_78, %c0_79, %c1_80, %c8_81, %c0_82] : memref<1x1x11x32x11xf32, #tpu.memory_space<vmem>>, vector<1x1x1x8x8xf32>
    %35 = vector.shape_cast %34 : vector<1x1x1x8x8xf32> to vector<8x8xf32>
    %c0_83 = arith.constant 0 : index
    %c0_84 = arith.constant 0 : index
    %c1_85 = arith.constant 1 : index
    %c0_86 = arith.constant 0 : index
    %c1_87 = arith.constant 1 : index
    %36 = vector.load %arg2[%c0_83, %c0_84, %c1_85, %c0_86, %c1_87] : memref<1x1x11x32x11xf32, #tpu.memory_space<vmem>>, vector<1x1x1x8x8xf32>
    %37 = vector.shape_cast %36 : vector<1x1x1x8x8xf32> to vector<8x8xf32>
    %c0_88 = arith.constant 0 : index
    %c0_89 = arith.constant 0 : index
    %c1_90 = arith.constant 1 : index
    %c8_91 = arith.constant 8 : index
    %c1_92 = arith.constant 1 : index
    %38 = vector.load %arg2[%c0_88, %c0_89, %c1_90, %c8_91, %c1_92] : memref<1x1x11x32x11xf32, #tpu.memory_space<vmem>>, vector<1x1x1x8x8xf32>
    %39 = vector.shape_cast %38 : vector<1x1x1x8x8xf32> to vector<8x8xf32>
    %c0_93 = arith.constant 0 : index
    %c0_94 = arith.constant 0 : index
    %c1_95 = arith.constant 1 : index
    %c0_96 = arith.constant 0 : index
    %c2_97 = arith.constant 2 : index
    %40 = vector.load %arg2[%c0_93, %c0_94, %c1_95, %c0_96, %c2_97] : memref<1x1x11x32x11xf32, #tpu.memory_space<vmem>>, vector<1x1x1x8x8xf32>
    %41 = vector.shape_cast %40 : vector<1x1x1x8x8xf32> to vector<8x8xf32>
    %c0_98 = arith.constant 0 : index
    %c0_99 = arith.constant 0 : index
    %c1_100 = arith.constant 1 : index
    %c8_101 = arith.constant 8 : index
    %c2_102 = arith.constant 2 : index
    %42 = vector.load %arg2[%c0_98, %c0_99, %c1_100, %c8_101, %c2_102] : memref<1x1x11x32x11xf32, #tpu.memory_space<vmem>>, vector<1x1x1x8x8xf32>
    %43 = vector.shape_cast %42 : vector<1x1x1x8x8xf32> to vector<8x8xf32>
    %c0_103 = arith.constant 0 : index
    %c0_104 = arith.constant 0 : index
    %c1_105 = arith.constant 1 : index
    %c0_106 = arith.constant 0 : index
    %c3_107 = arith.constant 3 : index
    %44 = vector.load %arg2[%c0_103, %c0_104, %c1_105, %c0_106, %c3_107] : memref<1x1x11x32x11xf32, #tpu.memory_space<vmem>>, vector<1x1x1x8x8xf32>
    %45 = vector.shape_cast %44 : vector<1x1x1x8x8xf32> to vector<8x8xf32>
    %c0_108 = arith.constant 0 : index
    %c0_109 = arith.constant 0 : index
    %c1_110 = arith.constant 1 : index
    %c8_111 = arith.constant 8 : index
    %c3_112 = arith.constant 3 : index
    %46 = vector.load %arg2[%c0_108, %c0_109, %c1_110, %c8_111, %c3_112] : memref<1x1x11x32x11xf32, #tpu.memory_space<vmem>>, vector<1x1x1x8x8xf32>
    %47 = vector.shape_cast %46 : vector<1x1x1x8x8xf32> to vector<8x8xf32>
    %c0_113 = arith.constant 0 : index
    %c0_114 = arith.constant 0 : index
    %c1_115 = arith.constant 1 : index
    %c16_116 = arith.constant 16 : index
    %c0_117 = arith.constant 0 : index
    %48 = vector.load %arg2[%c0_113, %c0_114, %c1_115, %c16_116, %c0_117] : memref<1x1x11x32x11xf32, #tpu.memory_space<vmem>>, vector<1x1x1x8x8xf32>
    %49 = vector.shape_cast %48 : vector<1x1x1x8x8xf32> to vector<8x8xf32>
    %c0_118 = arith.constant 0 : index
    %c0_119 = arith.constant 0 : index
    %c1_120 = arith.constant 1 : index
    %c24_121 = arith.constant 24 : index
    %c0_122 = arith.constant 0 : index
    %50 = vector.load %arg2[%c0_118, %c0_119, %c1_120, %c24_121, %c0_122] : memref<1x1x11x32x11xf32, #tpu.memory_space<vmem>>, vector<1x1x1x8x8xf32>
    %51 = vector.shape_cast %50 : vector<1x1x1x8x8xf32> to vector<8x8xf32>
    %c0_123 = arith.constant 0 : index
    %c0_124 = arith.constant 0 : index
    %c1_125 = arith.constant 1 : index
    %c16_126 = arith.constant 16 : index
    %c1_127 = arith.constant 1 : index
    %52 = vector.load %arg2[%c0_123, %c0_124, %c1_125, %c16_126, %c1_127] : memref<1x1x11x32x11xf32, #tpu.memory_space<vmem>>, vector<1x1x1x8x8xf32>
    %53 = vector.shape_cast %52 : vector<1x1x1x8x8xf32> to vector<8x8xf32>
    %c0_128 = arith.constant 0 : index
    %c0_129 = arith.constant 0 : index
    %c1_130 = arith.constant 1 : index
    %c24_131 = arith.constant 24 : index
    %c1_132 = arith.constant 1 : index
    %54 = vector.load %arg2[%c0_128, %c0_129, %c1_130, %c24_131, %c1_132] : memref<1x1x11x32x11xf32, #tpu.memory_space<vmem>>, vector<1x1x1x8x8xf32>
    %55 = vector.shape_cast %54 : vector<1x1x1x8x8xf32> to vector<8x8xf32>
    %c0_133 = arith.constant 0 : index
    %c0_134 = arith.constant 0 : index
    %c1_135 = arith.constant 1 : index
    %c16_136 = arith.constant 16 : index
    %c2_137 = arith.constant 2 : index
    %56 = vector.load %arg2[%c0_133, %c0_134, %c1_135, %c16_136, %c2_137] : memref<1x1x11x32x11xf32, #tpu.memory_space<vmem>>, vector<1x1x1x8x8xf32>
    %57 = vector.shape_cast %56 : vector<1x1x1x8x8xf32> to vector<8x8xf32>
    %c0_138 = arith.constant 0 : index
    %c0_139 = arith.constant 0 : index
    %c1_140 = arith.constant 1 : index
    %c24_141 = arith.constant 24 : index
    %c2_142 = arith.constant 2 : index
    %58 = vector.load %arg2[%c0_138, %c0_139, %c1_140, %c24_141, %c2_142] : memref<1x1x11x32x11xf32, #tpu.memory_space<vmem>>, vector<1x1x1x8x8xf32>
    %59 = vector.shape_cast %58 : vector<1x1x1x8x8xf32> to vector<8x8xf32>
    %c0_143 = arith.constant 0 : index
    %c0_144 = arith.constant 0 : index
    %c1_145 = arith.constant 1 : index
    %c16_146 = arith.constant 16 : index
    %c3_147 = arith.constant 3 : index
    %60 = vector.load %arg2[%c0_143, %c0_144, %c1_145, %c16_146, %c3_147] : memref<1x1x11x32x11xf32, #tpu.memory_space<vmem>>, vector<1x1x1x8x8xf32>
    %61 = vector.shape_cast %60 : vector<1x1x1x8x8xf32> to vector<8x8xf32>
    %c0_148 = arith.constant 0 : index
    %c0_149 = arith.constant 0 : index
    %c1_150 = arith.constant 1 : index
    %c24_151 = arith.constant 24 : index
    %c3_152 = arith.constant 3 : index
    %62 = vector.load %arg2[%c0_148, %c0_149, %c1_150, %c24_151, %c3_152] : memref<1x1x11x32x11xf32, #tpu.memory_space<vmem>>, vector<1x1x1x8x8xf32>
    %63 = vector.shape_cast %62 : vector<1x1x1x8x8xf32> to vector<8x8xf32>
    %c0_153 = arith.constant 0 : index
    %c0_154 = arith.constant 0 : index
    %c2_155 = arith.constant 2 : index
    %c0_156 = arith.constant 0 : index
    %c0_157 = arith.constant 0 : index
    %64 = vector.load %arg2[%c0_153, %c0_154, %c2_155, %c0_156, %c0_157] : memref<1x1x11x32x11xf32, #tpu.memory_space<vmem>>, vector<1x1x1x8x8xf32>
    %65 = vector.shape_cast %64 : vector<1x1x1x8x8xf32> to vector<8x8xf32>
    %c0_158 = arith.constant 0 : index
    %c0_159 = arith.constant 0 : index
    %c2_160 = arith.constant 2 : index
    %c8_161 = arith.constant 8 : index
    %c0_162 = arith.constant 0 : index
    %66 = vector.load %arg2[%c0_158, %c0_159, %c2_160, %c8_161, %c0_162] : memref<1x1x11x32x11xf32, #tpu.memory_space<vmem>>, vector<1x1x1x8x8xf32>
    %67 = vector.shape_cast %66 : vector<1x1x1x8x8xf32> to vector<8x8xf32>
    %c0_163 = arith.constant 0 : index
    %c0_164 = arith.constant 0 : index
    %c2_165 = arith.constant 2 : index
    %c0_166 = arith.constant 0 : index
    %c1_167 = arith.constant 1 : index
    %68 = vector.load %arg2[%c0_163, %c0_164, %c2_165, %c0_166, %c1_167] : memref<1x1x11x32x11xf32, #tpu.memory_space<vmem>>, vector<1x1x1x8x8xf32>
    %69 = vector.shape_cast %68 : vector<1x1x1x8x8xf32> to vector<8x8xf32>
    %c0_168 = arith.constant 0 : index
    %c0_169 = arith.constant 0 : index
    %c2_170 = arith.constant 2 : index
    %c8_171 = arith.constant 8 : index
    %c1_172 = arith.constant 1 : index
    %70 = vector.load %arg2[%c0_168, %c0_169, %c2_170, %c8_171, %c1_172] : memref<1x1x11x32x11xf32, #tpu.memory_space<vmem>>, vector<1x1x1x8x8xf32>
    %71 = vector.shape_cast %70 : vector<1x1x1x8x8xf32> to vector<8x8xf32>
    %c0_173 = arith.constant 0 : index
    %c0_174 = arith.constant 0 : index
    %c2_175 = arith.constant 2 : index
    %c0_176 = arith.constant 0 : index
    %c2_177 = arith.constant 2 : index
    %72 = vector.load %arg2[%c0_173, %c0_174, %c2_175, %c0_176, %c2_177] : memref<1x1x11x32x11xf32, #tpu.memory_space<vmem>>, vector<1x1x1x8x8xf32>
    %73 = vector.shape_cast %72 : vector<1x1x1x8x8xf32> to vector<8x8xf32>
    %c0_178 = arith.constant 0 : index
    %c0_179 = arith.constant 0 : index
    %c2_180 = arith.constant 2 : index
    %c8_181 = arith.constant 8 : index
    %c2_182 = arith.constant 2 : index
    %74 = vector.load %arg2[%c0_178, %c0_179, %c2_180, %c8_181, %c2_182] : memref<1x1x11x32x11xf32, #tpu.memory_space<vmem>>, vector<1x1x1x8x8xf32>
    %75 = vector.shape_cast %74 : vector<1x1x1x8x8xf32> to vector<8x8xf32>
    %c0_183 = arith.constant 0 : index
    %c0_184 = arith.constant 0 : index
    %c2_185 = arith.constant 2 : index
    %c0_186 = arith.constant 0 : index
    %c3_187 = arith.constant 3 : index
    %76 = vector.load %arg2[%c0_183, %c0_184, %c2_185, %c0_186, %c3_187] : memref<1x1x11x32x11xf32, #tpu.memory_space<vmem>>, vector<1x1x1x8x8xf32>
    %77 = vector.shape_cast %76 : vector<1x1x1x8x8xf32> to vector<8x8xf32>
    %c0_188 = arith.constant 0 : index
    %c0_189 = arith.constant 0 : index
    %c2_190 = arith.constant 2 : index
    %c8_191 = arith.constant 8 : index
    %c3_192 = arith.constant 3 : index
    %78 = vector.load %arg2[%c0_188, %c0_189, %c2_190, %c8_191, %c3_192] : memref<1x1x11x32x11xf32, #tpu.memory_space<vmem>>, vector<1x1x1x8x8xf32>
    %79 = vector.shape_cast %78 : vector<1x1x1x8x8xf32> to vector<8x8xf32>
    %c0_193 = arith.constant 0 : index
    %c0_194 = arith.constant 0 : index
    %c2_195 = arith.constant 2 : index
    %c16_196 = arith.constant 16 : index
    %c0_197 = arith.constant 0 : index
    %80 = vector.load %arg2[%c0_193, %c0_194, %c2_195, %c16_196, %c0_197] : memref<1x1x11x32x11xf32, #tpu.memory_space<vmem>>, vector<1x1x1x8x8xf32>
    %81 = vector.shape_cast %80 : vector<1x1x1x8x8xf32> to vector<8x8xf32>
    %c0_198 = arith.constant 0 : index
    %c0_199 = arith.constant 0 : index
    %c2_200 = arith.constant 2 : index
    %c24_201 = arith.constant 24 : index
    %c0_202 = arith.constant 0 : index
    %82 = vector.load %arg2[%c0_198, %c0_199, %c2_200, %c24_201, %c0_202] : memref<1x1x11x32x11xf32, #tpu.memory_space<vmem>>, vector<1x1x1x8x8xf32>
    %83 = vector.shape_cast %82 : vector<1x1x1x8x8xf32> to vector<8x8xf32>
    %c0_203 = arith.constant 0 : index
    %c0_204 = arith.constant 0 : index
    %c2_205 = arith.constant 2 : index
    %c16_206 = arith.constant 16 : index
    %c1_207 = arith.constant 1 : index
    %84 = vector.load %arg2[%c0_203, %c0_204, %c2_205, %c16_206, %c1_207] : memref<1x1x11x32x11xf32, #tpu.memory_space<vmem>>, vector<1x1x1x8x8xf32>
    %85 = vector.shape_cast %84 : vector<1x1x1x8x8xf32> to vector<8x8xf32>
    %c0_208 = arith.constant 0 : index
    %c0_209 = arith.constant 0 : index
    %c2_210 = arith.constant 2 : index
    %c24_211 = arith.constant 24 : index
    %c1_212 = arith.constant 1 : index
    %86 = vector.load %arg2[%c0_208, %c0_209, %c2_210, %c24_211, %c1_212] : memref<1x1x11x32x11xf32, #tpu.memory_space<vmem>>, vector<1x1x1x8x8xf32>
    %87 = vector.shape_cast %86 : vector<1x1x1x8x8xf32> to vector<8x8xf32>
    %c0_213 = arith.constant 0 : index
    %c0_214 = arith.constant 0 : index
    %c2_215 = arith.constant 2 : index
    %c16_216 = arith.constant 16 : index
    %c2_217 = arith.constant 2 : index
    %88 = vector.load %arg2[%c0_213, %c0_214, %c2_215, %c16_216, %c2_217] : memref<1x1x11x32x11xf32, #tpu.memory_space<vmem>>, vector<1x1x1x8x8xf32>
    %89 = vector.shape_cast %88 : vector<1x1x1x8x8xf32> to vector<8x8xf32>
    %c0_218 = arith.constant 0 : index
    %c0_219 = arith.constant 0 : index
    %c2_220 = arith.constant 2 : index
    %c24_221 = arith.constant 24 : index
    %c2_222 = arith.constant 2 : index
    %90 = vector.load %arg2[%c0_218, %c0_219, %c2_220, %c24_221, %c2_222] : memref<1x1x11x32x11xf32, #tpu.memory_space<vmem>>, vector<1x1x1x8x8xf32>
    %91 = vector.shape_cast %90 : vector<1x1x1x8x8xf32> to vector<8x8xf32>
    %c0_223 = arith.constant 0 : index
    %c0_224 = arith.constant 0 : index
    %c2_225 = arith.constant 2 : index
    %c16_226 = arith.constant 16 : index
    %c3_227 = arith.constant 3 : index
    %92 = vector.load %arg2[%c0_223, %c0_224, %c2_225, %c16_226, %c3_227] : memref<1x1x11x32x11xf32, #tpu.memory_space<vmem>>, vector<1x1x1x8x8xf32>
    %93 = vector.shape_cast %92 : vector<1x1x1x8x8xf32> to vector<8x8xf32>
    %c0_228 = arith.constant 0 : index
    %c0_229 = arith.constant 0 : index
    %c2_230 = arith.constant 2 : index
    %c24_231 = arith.constant 24 : index
    %c3_232 = arith.constant 3 : index
    %94 = vector.load %arg2[%c0_228, %c0_229, %c2_230, %c24_231, %c3_232] : memref<1x1x11x32x11xf32, #tpu.memory_space<vmem>>, vector<1x1x1x8x8xf32>
    %95 = vector.shape_cast %94 : vector<1x1x1x8x8xf32> to vector<8x8xf32>
    %c0_233 = arith.constant 0 : index
    %c0_234 = arith.constant 0 : index
    %c3_235 = arith.constant 3 : index
    %c0_236 = arith.constant 0 : index
    %c0_237 = arith.constant 0 : index
    %96 = vector.load %arg2[%c0_233, %c0_234, %c3_235, %c0_236, %c0_237] : memref<1x1x11x32x11xf32, #tpu.memory_space<vmem>>, vector<1x1x1x8x8xf32>
    %97 = vector.shape_cast %96 : vector<1x1x1x8x8xf32> to vector<8x8xf32>
    %c0_238 = arith.constant 0 : index
    %c0_239 = arith.constant 0 : index
    %c3_240 = arith.constant 3 : index
    %c8_241 = arith.constant 8 : index
    %c0_242 = arith.constant 0 : index
    %98 = vector.load %arg2[%c0_238, %c0_239, %c3_240, %c8_241, %c0_242] : memref<1x1x11x32x11xf32, #tpu.memory_space<vmem>>, vector<1x1x1x8x8xf32>
    %99 = vector.shape_cast %98 : vector<1x1x1x8x8xf32> to vector<8x8xf32>
    %c0_243 = arith.constant 0 : index
    %c0_244 = arith.constant 0 : index
    %c3_245 = arith.constant 3 : index
    %c0_246 = arith.constant 0 : index
    %c1_247 = arith.constant 1 : index
    %100 = vector.load %arg2[%c0_243, %c0_244, %c3_245, %c0_246, %c1_247] : memref<1x1x11x32x11xf32, #tpu.memory_space<vmem>>, vector<1x1x1x8x8xf32>
    %101 = vector.shape_cast %100 : vector<1x1x1x8x8xf32> to vector<8x8xf32>
    %c0_248 = arith.constant 0 : index
    %c0_249 = arith.constant 0 : index
    %c3_250 = arith.constant 3 : index
    %c8_251 = arith.constant 8 : index
    %c1_252 = arith.constant 1 : index
    %102 = vector.load %arg2[%c0_248, %c0_249, %c3_250, %c8_251, %c1_252] : memref<1x1x11x32x11xf32, #tpu.memory_space<vmem>>, vector<1x1x1x8x8xf32>
    %103 = vector.shape_cast %102 : vector<1x1x1x8x8xf32> to vector<8x8xf32>
    %c0_253 = arith.constant 0 : index
    %c0_254 = arith.constant 0 : index
    %c3_255 = arith.constant 3 : index
    %c0_256 = arith.constant 0 : index
    %c2_257 = arith.constant 2 : index
    %104 = vector.load %arg2[%c0_253, %c0_254, %c3_255, %c0_256, %c2_257] : memref<1x1x11x32x11xf32, #tpu.memory_space<vmem>>, vector<1x1x1x8x8xf32>
    %105 = vector.shape_cast %104 : vector<1x1x1x8x8xf32> to vector<8x8xf32>
    %c0_258 = arith.constant 0 : index
    %c0_259 = arith.constant 0 : index
    %c3_260 = arith.constant 3 : index
    %c8_261 = arith.constant 8 : index
    %c2_262 = arith.constant 2 : index
    %106 = vector.load %arg2[%c0_258, %c0_259, %c3_260, %c8_261, %c2_262] : memref<1x1x11x32x11xf32, #tpu.memory_space<vmem>>, vector<1x1x1x8x8xf32>
    %107 = vector.shape_cast %106 : vector<1x1x1x8x8xf32> to vector<8x8xf32>
    %c0_263 = arith.constant 0 : index
    %c0_264 = arith.constant 0 : index
    %c3_265 = arith.constant 3 : index
    %c0_266 = arith.constant 0 : index
    %c3_267 = arith.constant 3 : index
    %108 = vector.load %arg2[%c0_263, %c0_264, %c3_265, %c0_266, %c3_267] : memref<1x1x11x32x11xf32, #tpu.memory_space<vmem>>, vector<1x1x1x8x8xf32>
    %109 = vector.shape_cast %108 : vector<1x1x1x8x8xf32> to vector<8x8xf32>
    %c0_268 = arith.constant 0 : index
    %c0_269 = arith.constant 0 : index
    %c3_270 = arith.constant 3 : index
    %c8_271 = arith.constant 8 : index
    %c3_272 = arith.constant 3 : index
    %110 = vector.load %arg2[%c0_268, %c0_269, %c3_270, %c8_271, %c3_272] : memref<1x1x11x32x11xf32, #tpu.memory_space<vmem>>, vector<1x1x1x8x8xf32>
    %111 = vector.shape_cast %110 : vector<1x1x1x8x8xf32> to vector<8x8xf32>
    %c0_273 = arith.constant 0 : index
    %c0_274 = arith.constant 0 : index
    %c3_275 = arith.constant 3 : index
    %c16_276 = arith.constant 16 : index
    %c0_277 = arith.constant 0 : index
    %112 = vector.load %arg2[%c0_273, %c0_274, %c3_275, %c16_276, %c0_277] : memref<1x1x11x32x11xf32, #tpu.memory_space<vmem>>, vector<1x1x1x8x8xf32>
    %113 = vector.shape_cast %112 : vector<1x1x1x8x8xf32> to vector<8x8xf32>
    %c0_278 = arith.constant 0 : index
    %c0_279 = arith.constant 0 : index
    %c3_280 = arith.constant 3 : index
    %c24_281 = arith.constant 24 : index
    %c0_282 = arith.constant 0 : index
    %114 = vector.load %arg2[%c0_278, %c0_279, %c3_280, %c24_281, %c0_282] : memref<1x1x11x32x11xf32, #tpu.memory_space<vmem>>, vector<1x1x1x8x8xf32>
    %115 = vector.shape_cast %114 : vector<1x1x1x8x8xf32> to vector<8x8xf32>
    %c0_283 = arith.constant 0 : index
    %c0_284 = arith.constant 0 : index
    %c3_285 = arith.constant 3 : index
    %c16_286 = arith.constant 16 : index
    %c1_287 = arith.constant 1 : index
    %116 = vector.load %arg2[%c0_283, %c0_284, %c3_285, %c16_286, %c1_287] : memref<1x1x11x32x11xf32, #tpu.memory_space<vmem>>, vector<1x1x1x8x8xf32>
    %117 = vector.shape_cast %116 : vector<1x1x1x8x8xf32> to vector<8x8xf32>
    %c0_288 = arith.constant 0 : index
    %c0_289 = arith.constant 0 : index
    %c3_290 = arith.constant 3 : index
    %c24_291 = arith.constant 24 : index
    %c1_292 = arith.constant 1 : index
    %118 = vector.load %arg2[%c0_288, %c0_289, %c3_290, %c24_291, %c1_292] : memref<1x1x11x32x11xf32, #tpu.memory_space<vmem>>, vector<1x1x1x8x8xf32>
    %119 = vector.shape_cast %118 : vector<1x1x1x8x8xf32> to vector<8x8xf32>
    %c0_293 = arith.constant 0 : index
    %c0_294 = arith.constant 0 : index
    %c3_295 = arith.constant 3 : index
    %c16_296 = arith.constant 16 : index
    %c2_297 = arith.constant 2 : index
    %120 = vector.load %arg2[%c0_293, %c0_294, %c3_295, %c16_296, %c2_297] : memref<1x1x11x32x11xf32, #tpu.memory_space<vmem>>, vector<1x1x1x8x8xf32>
    %121 = vector.shape_cast %120 : vector<1x1x1x8x8xf32> to vector<8x8xf32>
    %c0_298 = arith.constant 0 : index
    %c0_299 = arith.constant 0 : index
    %c3_300 = arith.constant 3 : index
    %c24_301 = arith.constant 24 : index
    %c2_302 = arith.constant 2 : index
    %122 = vector.load %arg2[%c0_298, %c0_299, %c3_300, %c24_301, %c2_302] : memref<1x1x11x32x11xf32, #tpu.memory_space<vmem>>, vector<1x1x1x8x8xf32>
    %123 = vector.shape_cast %122 : vector<1x1x1x8x8xf32> to vector<8x8xf32>
    %c0_303 = arith.constant 0 : index
    %c0_304 = arith.constant 0 : index
    %c3_305 = arith.constant 3 : index
    %c16_306 = arith.constant 16 : index
    %c3_307 = arith.constant 3 : index
    %124 = vector.load %arg2[%c0_303, %c0_304, %c3_305, %c16_306, %c3_307] : memref<1x1x11x32x11xf32, #tpu.memory_space<vmem>>, vector<1x1x1x8x8xf32>
    %125 = vector.shape_cast %124 : vector<1x1x1x8x8xf32> to vector<8x8xf32>
    %c0_308 = arith.constant 0 : index
    %c0_309 = arith.constant 0 : index
    %c3_310 = arith.constant 3 : index
    %c24_311 = arith.constant 24 : index
    %c3_312 = arith.constant 3 : index
    %126 = vector.load %arg2[%c0_308, %c0_309, %c3_310, %c24_311, %c3_312] : memref<1x1x11x32x11xf32, #tpu.memory_space<vmem>>, vector<1x1x1x8x8xf32>
    %127 = vector.shape_cast %126 : vector<1x1x1x8x8xf32> to vector<8x8xf32>
    %128 = tpu.concatenate %1, %3, %5, %7, %9, %11, %13, %15, %17, %19, %21, %23, %25, %27, %29, %31 in 0 : vector<8x8xf32>, vector<8x8xf32>, vector<8x8xf32>, vector<8x8xf32>, vector<8x8xf32>, vector<8x8xf32>, vector<8x8xf32>, vector<8x8xf32>, vector<8x8xf32>, vector<8x8xf32>, vector<8x8xf32>, vector<8x8xf32>, vector<8x8xf32>, vector<8x8xf32>, vector<8x8xf32>, vector<8x8xf32> -> vector<128x8xf32>
    %129 = tpu.concatenate %33, %35, %37, %39, %41, %43, %45, %47, %49, %51, %53, %55, %57, %59, %61, %63 in 0 : vector<8x8xf32>, vector<8x8xf32>, vector<8x8xf32>, vector<8x8xf32>, vector<8x8xf32>, vector<8x8xf32>, vector<8x8xf32>, vector<8x8xf32>, vector<8x8xf32>, vector<8x8xf32>, vector<8x8xf32>, vector<8x8xf32>, vector<8x8xf32>, vector<8x8xf32>, vector<8x8xf32>, vector<8x8xf32> -> vector<128x8xf32>
    %130 = tpu.concatenate %65, %67, %69, %71, %73, %75, %77, %79, %81, %83, %85, %87, %89, %91, %93, %95 in 0 : vector<8x8xf32>, vector<8x8xf32>, vector<8x8xf32>, vector<8x8xf32>, vector<8x8xf32>, vector<8x8xf32>, vector<8x8xf32>, vector<8x8xf32>, vector<8x8xf32>, vector<8x8xf32>, vector<8x8xf32>, vector<8x8xf32>, vector<8x8xf32>, vector<8x8xf32>, vector<8x8xf32>, vector<8x8xf32> -> vector<128x8xf32>
    %131 = tpu.concatenate %97, %99, %101, %103, %105, %107, %109, %111, %113, %115, %117, %119, %121, %123, %125, %127 in 0 : vector<8x8xf32>, vector<8x8xf32>, vector<8x8xf32>, vector<8x8xf32>, vector<8x8xf32>, vector<8x8xf32>, vector<8x8xf32>, vector<8x8xf32>, vector<8x8xf32>, vector<8x8xf32>, vector<8x8xf32>, vector<8x8xf32>, vector<8x8xf32>, vector<8x8xf32>, vector<8x8xf32>, vector<8x8xf32> -> vector<128x8xf32>
    %132 = tpu.concatenate %128, %129, %130, %131 in 0 : vector<128x8xf32>, vector<128x8xf32>, vector<128x8xf32>, vector<128x8xf32> -> vector<512x8xf32>
    %c0_313 = arith.constant 0 : index
    %c0_314 = arith.constant 0 : index
    %c1_315 = arith.constant 1 : index
    %c0_316 = arith.constant 0 : index
    %c0_317 = arith.constant 0 : index
    %133 = vector.load %arg2[%c0_313, %c0_314, %c1_315, %c0_316, %c0_317] : memref<1x1x11x32x11xf32, #tpu.memory_space<vmem>>, vector<1x1x1x8x8xf32>
    %134 = vector.shape_cast %133 : vector<1x1x1x8x8xf32> to vector<8x8xf32>
    %c0_318 = arith.constant 0 : index
    %c0_319 = arith.constant 0 : index
    %c1_320 = arith.constant 1 : index
    %c8_321 = arith.constant 8 : index
    %c0_322 = arith.constant 0 : index
    %135 = vector.load %arg2[%c0_318, %c0_319, %c1_320, %c8_321, %c0_322] : memref<1x1x11x32x11xf32, #tpu.memory_space<vmem>>, vector<1x1x1x8x8xf32>
    %136 = vector.shape_cast %135 : vector<1x1x1x8x8xf32> to vector<8x8xf32>
    %c0_323 = arith.constant 0 : index
    %c0_324 = arith.constant 0 : index
    %c1_325 = arith.constant 1 : index
    %c0_326 = arith.constant 0 : index
    %c1_327 = arith.constant 1 : index
    %137 = vector.load %arg2[%c0_323, %c0_324, %c1_325, %c0_326, %c1_327] : memref<1x1x11x32x11xf32, #tpu.memory_space<vmem>>, vector<1x1x1x8x8xf32>
    %138 = vector.shape_cast %137 : vector<1x1x1x8x8xf32> to vector<8x8xf32>
    %c0_328 = arith.constant 0 : index
    %c0_329 = arith.constant 0 : index
    %c1_330 = arith.constant 1 : index
    %c8_331 = arith.constant 8 : index
    %c1_332 = arith.constant 1 : index
    %139 = vector.load %arg2[%c0_328, %c0_329, %c1_330, %c8_331, %c1_332] : memref<1x1x11x32x11xf32, #tpu.memory_space<vmem>>, vector<1x1x1x8x8xf32>
    %140 = vector.shape_cast %139 : vector<1x1x1x8x8xf32> to vector<8x8xf32>
    %c0_333 = arith.constant 0 : index
    %c0_334 = arith.constant 0 : index
    %c1_335 = arith.constant 1 : index
    %c0_336 = arith.constant 0 : index
    %c2_337 = arith.constant 2 : index
    %141 = vector.load %arg2[%c0_333, %c0_334, %c1_335, %c0_336, %c2_337] : memref<1x1x11x32x11xf32, #tpu.memory_space<vmem>>, vector<1x1x1x8x8xf32>
    %142 = vector.shape_cast %141 : vector<1x1x1x8x8xf32> to vector<8x8xf32>
    %c0_338 = arith.constant 0 : index
    %c0_339 = arith.constant 0 : index
    %c1_340 = arith.constant 1 : index
    %c8_341 = arith.constant 8 : index
    %c2_342 = arith.constant 2 : index
    %143 = vector.load %arg2[%c0_338, %c0_339, %c1_340, %c8_341, %c2_342] : memref<1x1x11x32x11xf32, #tpu.memory_space<vmem>>, vector<1x1x1x8x8xf32>
    %144 = vector.shape_cast %143 : vector<1x1x1x8x8xf32> to vector<8x8xf32>
    %c0_343 = arith.constant 0 : index
    %c0_344 = arith.constant 0 : index
    %c1_345 = arith.constant 1 : index
    %c0_346 = arith.constant 0 : index
    %c3_347 = arith.constant 3 : index
    %145 = vector.load %arg2[%c0_343, %c0_344, %c1_345, %c0_346, %c3_347] : memref<1x1x11x32x11xf32, #tpu.memory_space<vmem>>, vector<1x1x1x8x8xf32>
    %146 = vector.shape_cast %145 : vector<1x1x1x8x8xf32> to vector<8x8xf32>
    %c0_348 = arith.constant 0 : index
    %c0_349 = arith.constant 0 : index
    %c1_350 = arith.constant 1 : index
    %c8_351 = arith.constant 8 : index
    %c3_352 = arith.constant 3 : index
    %147 = vector.load %arg2[%c0_348, %c0_349, %c1_350, %c8_351, %c3_352] : memref<1x1x11x32x11xf32, #tpu.memory_space<vmem>>, vector<1x1x1x8x8xf32>
    %148 = vector.shape_cast %147 : vector<1x1x1x8x8xf32> to vector<8x8xf32>
    %c0_353 = arith.constant 0 : index
    %c0_354 = arith.constant 0 : index
    %c1_355 = arith.constant 1 : index
    %c16_356 = arith.constant 16 : index
    %c0_357 = arith.constant 0 : index
    %149 = vector.load %arg2[%c0_353, %c0_354, %c1_355, %c16_356, %c0_357] : memref<1x1x11x32x11xf32, #tpu.memory_space<vmem>>, vector<1x1x1x8x8xf32>
    %150 = vector.shape_cast %149 : vector<1x1x1x8x8xf32> to vector<8x8xf32>
    %c0_358 = arith.constant 0 : index
    %c0_359 = arith.constant 0 : index
    %c1_360 = arith.constant 1 : index
    %c24_361 = arith.constant 24 : index
    %c0_362 = arith.constant 0 : index
    %151 = vector.load %arg2[%c0_358, %c0_359, %c1_360, %c24_361, %c0_362] : memref<1x1x11x32x11xf32, #tpu.memory_space<vmem>>, vector<1x1x1x8x8xf32>
    %152 = vector.shape_cast %151 : vector<1x1x1x8x8xf32> to vector<8x8xf32>
    %c0_363 = arith.constant 0 : index
    %c0_364 = arith.constant 0 : index
    %c1_365 = arith.constant 1 : index
    %c16_366 = arith.constant 16 : index
    %c1_367 = arith.constant 1 : index
    %153 = vector.load %arg2[%c0_363, %c0_364, %c1_365, %c16_366, %c1_367] : memref<1x1x11x32x11xf32, #tpu.memory_space<vmem>>, vector<1x1x1x8x8xf32>
    %154 = vector.shape_cast %153 : vector<1x1x1x8x8xf32> to vector<8x8xf32>
    %c0_368 = arith.constant 0 : index
    %c0_369 = arith.constant 0 : index
    %c1_370 = arith.constant 1 : index
    %c24_371 = arith.constant 24 : index
    %c1_372 = arith.constant 1 : index
    %155 = vector.load %arg2[%c0_368, %c0_369, %c1_370, %c24_371, %c1_372] : memref<1x1x11x32x11xf32, #tpu.memory_space<vmem>>, vector<1x1x1x8x8xf32>
    %156 = vector.shape_cast %155 : vector<1x1x1x8x8xf32> to vector<8x8xf32>
    %c0_373 = arith.constant 0 : index
    %c0_374 = arith.constant 0 : index
    %c1_375 = arith.constant 1 : index
    %c16_376 = arith.constant 16 : index
    %c2_377 = arith.constant 2 : index
    %157 = vector.load %arg2[%c0_373, %c0_374, %c1_375, %c16_376, %c2_377] : memref<1x1x11x32x11xf32, #tpu.memory_space<vmem>>, vector<1x1x1x8x8xf32>
    %158 = vector.shape_cast %157 : vector<1x1x1x8x8xf32> to vector<8x8xf32>
    %c0_378 = arith.constant 0 : index
    %c0_379 = arith.constant 0 : index
    %c1_380 = arith.constant 1 : index
    %c24_381 = arith.constant 24 : index
    %c2_382 = arith.constant 2 : index
    %159 = vector.load %arg2[%c0_378, %c0_379, %c1_380, %c24_381, %c2_382] : memref<1x1x11x32x11xf32, #tpu.memory_space<vmem>>, vector<1x1x1x8x8xf32>
    %160 = vector.shape_cast %159 : vector<1x1x1x8x8xf32> to vector<8x8xf32>
    %c0_383 = arith.constant 0 : index
    %c0_384 = arith.constant 0 : index
    %c1_385 = arith.constant 1 : index
    %c16_386 = arith.constant 16 : index
    %c3_387 = arith.constant 3 : index
    %161 = vector.load %arg2[%c0_383, %c0_384, %c1_385, %c16_386, %c3_387] : memref<1x1x11x32x11xf32, #tpu.memory_space<vmem>>, vector<1x1x1x8x8xf32>
    %162 = vector.shape_cast %161 : vector<1x1x1x8x8xf32> to vector<8x8xf32>
    %c0_388 = arith.constant 0 : index
    %c0_389 = arith.constant 0 : index
    %c1_390 = arith.constant 1 : index
    %c24_391 = arith.constant 24 : index
    %c3_392 = arith.constant 3 : index
    %163 = vector.load %arg2[%c0_388, %c0_389, %c1_390, %c24_391, %c3_392] : memref<1x1x11x32x11xf32, #tpu.memory_space<vmem>>, vector<1x1x1x8x8xf32>
    %164 = vector.shape_cast %163 : vector<1x1x1x8x8xf32> to vector<8x8xf32>
    %c0_393 = arith.constant 0 : index
    %c0_394 = arith.constant 0 : index
    %c2_395 = arith.constant 2 : index
    %c0_396 = arith.constant 0 : index
    %c0_397 = arith.constant 0 : index
    %165 = vector.load %arg2[%c0_393, %c0_394, %c2_395, %c0_396, %c0_397] : memref<1x1x11x32x11xf32, #tpu.memory_space<vmem>>, vector<1x1x1x8x8xf32>
    %166 = vector.shape_cast %165 : vector<1x1x1x8x8xf32> to vector<8x8xf32>
    %c0_398 = arith.constant 0 : index
    %c0_399 = arith.constant 0 : index
    %c2_400 = arith.constant 2 : index
    %c8_401 = arith.constant 8 : index
    %c0_402 = arith.constant 0 : index
    %167 = vector.load %arg2[%c0_398, %c0_399, %c2_400, %c8_401, %c0_402] : memref<1x1x11x32x11xf32, #tpu.memory_space<vmem>>, vector<1x1x1x8x8xf32>
    %168 = vector.shape_cast %167 : vector<1x1x1x8x8xf32> to vector<8x8xf32>
    %c0_403 = arith.constant 0 : index
    %c0_404 = arith.constant 0 : index
    %c2_405 = arith.constant 2 : index
    %c0_406 = arith.constant 0 : index
    %c1_407 = arith.constant 1 : index
    %169 = vector.load %arg2[%c0_403, %c0_404, %c2_405, %c0_406, %c1_407] : memref<1x1x11x32x11xf32, #tpu.memory_space<vmem>>, vector<1x1x1x8x8xf32>
    %170 = vector.shape_cast %169 : vector<1x1x1x8x8xf32> to vector<8x8xf32>
    %c0_408 = arith.constant 0 : index
    %c0_409 = arith.constant 0 : index
    %c2_410 = arith.constant 2 : index
    %c8_411 = arith.constant 8 : index
    %c1_412 = arith.constant 1 : index
    %171 = vector.load %arg2[%c0_408, %c0_409, %c2_410, %c8_411, %c1_412] : memref<1x1x11x32x11xf32, #tpu.memory_space<vmem>>, vector<1x1x1x8x8xf32>
    %172 = vector.shape_cast %171 : vector<1x1x1x8x8xf32> to vector<8x8xf32>
    %c0_413 = arith.constant 0 : index
    %c0_414 = arith.constant 0 : index
    %c2_415 = arith.constant 2 : index
    %c0_416 = arith.constant 0 : index
    %c2_417 = arith.constant 2 : index
    %173 = vector.load %arg2[%c0_413, %c0_414, %c2_415, %c0_416, %c2_417] : memref<1x1x11x32x11xf32, #tpu.memory_space<vmem>>, vector<1x1x1x8x8xf32>
    %174 = vector.shape_cast %173 : vector<1x1x1x8x8xf32> to vector<8x8xf32>
    %c0_418 = arith.constant 0 : index
    %c0_419 = arith.constant 0 : index
    %c2_420 = arith.constant 2 : index
    %c8_421 = arith.constant 8 : index
    %c2_422 = arith.constant 2 : index
    %175 = vector.load %arg2[%c0_418, %c0_419, %c2_420, %c8_421, %c2_422] : memref<1x1x11x32x11xf32, #tpu.memory_space<vmem>>, vector<1x1x1x8x8xf32>
    %176 = vector.shape_cast %175 : vector<1x1x1x8x8xf32> to vector<8x8xf32>
    %c0_423 = arith.constant 0 : index
    %c0_424 = arith.constant 0 : index
    %c2_425 = arith.constant 2 : index
    %c0_426 = arith.constant 0 : index
    %c3_427 = arith.constant 3 : index
    %177 = vector.load %arg2[%c0_423, %c0_424, %c2_425, %c0_426, %c3_427] : memref<1x1x11x32x11xf32, #tpu.memory_space<vmem>>, vector<1x1x1x8x8xf32>
    %178 = vector.shape_cast %177 : vector<1x1x1x8x8xf32> to vector<8x8xf32>
    %c0_428 = arith.constant 0 : index
    %c0_429 = arith.constant 0 : index
    %c2_430 = arith.constant 2 : index
    %c8_431 = arith.constant 8 : index
    %c3_432 = arith.constant 3 : index
    %179 = vector.load %arg2[%c0_428, %c0_429, %c2_430, %c8_431, %c3_432] : memref<1x1x11x32x11xf32, #tpu.memory_space<vmem>>, vector<1x1x1x8x8xf32>
    %180 = vector.shape_cast %179 : vector<1x1x1x8x8xf32> to vector<8x8xf32>
    %c0_433 = arith.constant 0 : index
    %c0_434 = arith.constant 0 : index
    %c2_435 = arith.constant 2 : index
    %c16_436 = arith.constant 16 : index
    %c0_437 = arith.constant 0 : index
    %181 = vector.load %arg2[%c0_433, %c0_434, %c2_435, %c16_436, %c0_437] : memref<1x1x11x32x11xf32, #tpu.memory_space<vmem>>, vector<1x1x1x8x8xf32>
    %182 = vector.shape_cast %181 : vector<1x1x1x8x8xf32> to vector<8x8xf32>
    %c0_438 = arith.constant 0 : index
    %c0_439 = arith.constant 0 : index
    %c2_440 = arith.constant 2 : index
    %c24_441 = arith.constant 24 : index
    %c0_442 = arith.constant 0 : index
    %183 = vector.load %arg2[%c0_438, %c0_439, %c2_440, %c24_441, %c0_442] : memref<1x1x11x32x11xf32, #tpu.memory_space<vmem>>, vector<1x1x1x8x8xf32>
    %184 = vector.shape_cast %183 : vector<1x1x1x8x8xf32> to vector<8x8xf32>
    %c0_443 = arith.constant 0 : index
    %c0_444 = arith.constant 0 : index
    %c2_445 = arith.constant 2 : index
    %c16_446 = arith.constant 16 : index
    %c1_447 = arith.constant 1 : index
    %185 = vector.load %arg2[%c0_443, %c0_444, %c2_445, %c16_446, %c1_447] : memref<1x1x11x32x11xf32, #tpu.memory_space<vmem>>, vector<1x1x1x8x8xf32>
    %186 = vector.shape_cast %185 : vector<1x1x1x8x8xf32> to vector<8x8xf32>
    %c0_448 = arith.constant 0 : index
    %c0_449 = arith.constant 0 : index
    %c2_450 = arith.constant 2 : index
    %c24_451 = arith.constant 24 : index
    %c1_452 = arith.constant 1 : index
    %187 = vector.load %arg2[%c0_448, %c0_449, %c2_450, %c24_451, %c1_452] : memref<1x1x11x32x11xf32, #tpu.memory_space<vmem>>, vector<1x1x1x8x8xf32>
    %188 = vector.shape_cast %187 : vector<1x1x1x8x8xf32> to vector<8x8xf32>
    %c0_453 = arith.constant 0 : index
    %c0_454 = arith.constant 0 : index
    %c2_455 = arith.constant 2 : index
    %c16_456 = arith.constant 16 : index
    %c2_457 = arith.constant 2 : index
    %189 = vector.load %arg2[%c0_453, %c0_454, %c2_455, %c16_456, %c2_457] : memref<1x1x11x32x11xf32, #tpu.memory_space<vmem>>, vector<1x1x1x8x8xf32>
    %190 = vector.shape_cast %189 : vector<1x1x1x8x8xf32> to vector<8x8xf32>
    %c0_458 = arith.constant 0 : index
    %c0_459 = arith.constant 0 : index
    %c2_460 = arith.constant 2 : index
    %c24_461 = arith.constant 24 : index
    %c2_462 = arith.constant 2 : index
    %191 = vector.load %arg2[%c0_458, %c0_459, %c2_460, %c24_461, %c2_462] : memref<1x1x11x32x11xf32, #tpu.memory_space<vmem>>, vector<1x1x1x8x8xf32>
    %192 = vector.shape_cast %191 : vector<1x1x1x8x8xf32> to vector<8x8xf32>
    %c0_463 = arith.constant 0 : index
    %c0_464 = arith.constant 0 : index
    %c2_465 = arith.constant 2 : index
    %c16_466 = arith.constant 16 : index
    %c3_467 = arith.constant 3 : index
    %193 = vector.load %arg2[%c0_463, %c0_464, %c2_465, %c16_466, %c3_467] : memref<1x1x11x32x11xf32, #tpu.memory_space<vmem>>, vector<1x1x1x8x8xf32>
    %194 = vector.shape_cast %193 : vector<1x1x1x8x8xf32> to vector<8x8xf32>
    %c0_468 = arith.constant 0 : index
    %c0_469 = arith.constant 0 : index
    %c2_470 = arith.constant 2 : index
    %c24_471 = arith.constant 24 : index
    %c3_472 = arith.constant 3 : index
    %195 = vector.load %arg2[%c0_468, %c0_469, %c2_470, %c24_471, %c3_472] : memref<1x1x11x32x11xf32, #tpu.memory_space<vmem>>, vector<1x1x1x8x8xf32>
    %196 = vector.shape_cast %195 : vector<1x1x1x8x8xf32> to vector<8x8xf32>
    %c0_473 = arith.constant 0 : index
    %c0_474 = arith.constant 0 : index
    %c3_475 = arith.constant 3 : index
    %c0_476 = arith.constant 0 : index
    %c0_477 = arith.constant 0 : index
    %197 = vector.load %arg2[%c0_473, %c0_474, %c3_475, %c0_476, %c0_477] : memref<1x1x11x32x11xf32, #tpu.memory_space<vmem>>, vector<1x1x1x8x8xf32>
    %198 = vector.shape_cast %197 : vector<1x1x1x8x8xf32> to vector<8x8xf32>
    %c0_478 = arith.constant 0 : index
    %c0_479 = arith.constant 0 : index
    %c3_480 = arith.constant 3 : index
    %c8_481 = arith.constant 8 : index
    %c0_482 = arith.constant 0 : index
    %199 = vector.load %arg2[%c0_478, %c0_479, %c3_480, %c8_481, %c0_482] : memref<1x1x11x32x11xf32, #tpu.memory_space<vmem>>, vector<1x1x1x8x8xf32>
    %200 = vector.shape_cast %199 : vector<1x1x1x8x8xf32> to vector<8x8xf32>
    %c0_483 = arith.constant 0 : index
    %c0_484 = arith.constant 0 : index
    %c3_485 = arith.constant 3 : index
    %c0_486 = arith.constant 0 : index
    %c1_487 = arith.constant 1 : index
    %201 = vector.load %arg2[%c0_483, %c0_484, %c3_485, %c0_486, %c1_487] : memref<1x1x11x32x11xf32, #tpu.memory_space<vmem>>, vector<1x1x1x8x8xf32>
    %202 = vector.shape_cast %201 : vector<1x1x1x8x8xf32> to vector<8x8xf32>
    %c0_488 = arith.constant 0 : index
    %c0_489 = arith.constant 0 : index
    %c3_490 = arith.constant 3 : index
    %c8_491 = arith.constant 8 : index
    %c1_492 = arith.constant 1 : index
    %203 = vector.load %arg2[%c0_488, %c0_489, %c3_490, %c8_491, %c1_492] : memref<1x1x11x32x11xf32, #tpu.memory_space<vmem>>, vector<1x1x1x8x8xf32>
    %204 = vector.shape_cast %203 : vector<1x1x1x8x8xf32> to vector<8x8xf32>
    %c0_493 = arith.constant 0 : index
    %c0_494 = arith.constant 0 : index
    %c3_495 = arith.constant 3 : index
    %c0_496 = arith.constant 0 : index
    %c2_497 = arith.constant 2 : index
    %205 = vector.load %arg2[%c0_493, %c0_494, %c3_495, %c0_496, %c2_497] : memref<1x1x11x32x11xf32, #tpu.memory_space<vmem>>, vector<1x1x1x8x8xf32>
    %206 = vector.shape_cast %205 : vector<1x1x1x8x8xf32> to vector<8x8xf32>
    %c0_498 = arith.constant 0 : index
    %c0_499 = arith.constant 0 : index
    %c3_500 = arith.constant 3 : index
    %c8_501 = arith.constant 8 : index
    %c2_502 = arith.constant 2 : index
    %207 = vector.load %arg2[%c0_498, %c0_499, %c3_500, %c8_501, %c2_502] : memref<1x1x11x32x11xf32, #tpu.memory_space<vmem>>, vector<1x1x1x8x8xf32>
    %208 = vector.shape_cast %207 : vector<1x1x1x8x8xf32> to vector<8x8xf32>
    %c0_503 = arith.constant 0 : index
    %c0_504 = arith.constant 0 : index
    %c3_505 = arith.constant 3 : index
    %c0_506 = arith.constant 0 : index
    %c3_507 = arith.constant 3 : index
    %209 = vector.load %arg2[%c0_503, %c0_504, %c3_505, %c0_506, %c3_507] : memref<1x1x11x32x11xf32, #tpu.memory_space<vmem>>, vector<1x1x1x8x8xf32>
    %210 = vector.shape_cast %209 : vector<1x1x1x8x8xf32> to vector<8x8xf32>
    %c0_508 = arith.constant 0 : index
    %c0_509 = arith.constant 0 : index
    %c3_510 = arith.constant 3 : index
    %c8_511 = arith.constant 8 : index
    %c3_512 = arith.constant 3 : index
    %211 = vector.load %arg2[%c0_508, %c0_509, %c3_510, %c8_511, %c3_512] : memref<1x1x11x32x11xf32, #tpu.memory_space<vmem>>, vector<1x1x1x8x8xf32>
    %212 = vector.shape_cast %211 : vector<1x1x1x8x8xf32> to vector<8x8xf32>
    %c0_513 = arith.constant 0 : index
    %c0_514 = arith.constant 0 : index
    %c3_515 = arith.constant 3 : index
    %c16_516 = arith.constant 16 : index
    %c0_517 = arith.constant 0 : index
    %213 = vector.load %arg2[%c0_513, %c0_514, %c3_515, %c16_516, %c0_517] : memref<1x1x11x32x11xf32, #tpu.memory_space<vmem>>, vector<1x1x1x8x8xf32>
    %214 = vector.shape_cast %213 : vector<1x1x1x8x8xf32> to vector<8x8xf32>
    %c0_518 = arith.constant 0 : index
    %c0_519 = arith.constant 0 : index
    %c3_520 = arith.constant 3 : index
    %c24_521 = arith.constant 24 : index
    %c0_522 = arith.constant 0 : index
    %215 = vector.load %arg2[%c0_518, %c0_519, %c3_520, %c24_521, %c0_522] : memref<1x1x11x32x11xf32, #tpu.memory_space<vmem>>, vector<1x1x1x8x8xf32>
    %216 = vector.shape_cast %215 : vector<1x1x1x8x8xf32> to vector<8x8xf32>
    %c0_523 = arith.constant 0 : index
    %c0_524 = arith.constant 0 : index
    %c3_525 = arith.constant 3 : index
    %c16_526 = arith.constant 16 : index
    %c1_527 = arith.constant 1 : index
    %217 = vector.load %arg2[%c0_523, %c0_524, %c3_525, %c16_526, %c1_527] : memref<1x1x11x32x11xf32, #tpu.memory_space<vmem>>, vector<1x1x1x8x8xf32>
    %218 = vector.shape_cast %217 : vector<1x1x1x8x8xf32> to vector<8x8xf32>
    %c0_528 = arith.constant 0 : index
    %c0_529 = arith.constant 0 : index
    %c3_530 = arith.constant 3 : index
    %c24_531 = arith.constant 24 : index
    %c1_532 = arith.constant 1 : index
    %219 = vector.load %arg2[%c0_528, %c0_529, %c3_530, %c24_531, %c1_532] : memref<1x1x11x32x11xf32, #tpu.memory_space<vmem>>, vector<1x1x1x8x8xf32>
    %220 = vector.shape_cast %219 : vector<1x1x1x8x8xf32> to vector<8x8xf32>
    %c0_533 = arith.constant 0 : index
    %c0_534 = arith.constant 0 : index
    %c3_535 = arith.constant 3 : index
    %c16_536 = arith.constant 16 : index
    %c2_537 = arith.constant 2 : index
    %221 = vector.load %arg2[%c0_533, %c0_534, %c3_535, %c16_536, %c2_537] : memref<1x1x11x32x11xf32, #tpu.memory_space<vmem>>, vector<1x1x1x8x8xf32>
    %222 = vector.shape_cast %221 : vector<1x1x1x8x8xf32> to vector<8x8xf32>
    %c0_538 = arith.constant 0 : index
    %c0_539 = arith.constant 0 : index
    %c3_540 = arith.constant 3 : index
    %c24_541 = arith.constant 24 : index
    %c2_542 = arith.constant 2 : index
    %223 = vector.load %arg2[%c0_538, %c0_539, %c3_540, %c24_541, %c2_542] : memref<1x1x11x32x11xf32, #tpu.memory_space<vmem>>, vector<1x1x1x8x8xf32>
    %224 = vector.shape_cast %223 : vector<1x1x1x8x8xf32> to vector<8x8xf32>
    %c0_543 = arith.constant 0 : index
    %c0_544 = arith.constant 0 : index
    %c3_545 = arith.constant 3 : index
    %c16_546 = arith.constant 16 : index
    %c3_547 = arith.constant 3 : index
    %225 = vector.load %arg2[%c0_543, %c0_544, %c3_545, %c16_546, %c3_547] : memref<1x1x11x32x11xf32, #tpu.memory_space<vmem>>, vector<1x1x1x8x8xf32>
    %226 = vector.shape_cast %225 : vector<1x1x1x8x8xf32> to vector<8x8xf32>
    %c0_548 = arith.constant 0 : index
    %c0_549 = arith.constant 0 : index
    %c3_550 = arith.constant 3 : index
    %c24_551 = arith.constant 24 : index
    %c3_552 = arith.constant 3 : index
    %227 = vector.load %arg2[%c0_548, %c0_549, %c3_550, %c24_551, %c3_552] : memref<1x1x11x32x11xf32, #tpu.memory_space<vmem>>, vector<1x1x1x8x8xf32>
    %228 = vector.shape_cast %227 : vector<1x1x1x8x8xf32> to vector<8x8xf32>
    %c0_553 = arith.constant 0 : index
    %c0_554 = arith.constant 0 : index
    %c4 = arith.constant 4 : index
    %c0_555 = arith.constant 0 : index
    %c0_556 = arith.constant 0 : index
    %229 = vector.load %arg2[%c0_553, %c0_554, %c4, %c0_555, %c0_556] : memref<1x1x11x32x11xf32, #tpu.memory_space<vmem>>, vector<1x1x1x8x8xf32>
    %230 = vector.shape_cast %229 : vector<1x1x1x8x8xf32> to vector<8x8xf32>
    %c0_557 = arith.constant 0 : index
    %c0_558 = arith.constant 0 : index
    %c4_559 = arith.constant 4 : index
    %c8_560 = arith.constant 8 : index
    %c0_561 = arith.constant 0 : index
    %231 = vector.load %arg2[%c0_557, %c0_558, %c4_559, %c8_560, %c0_561] : memref<1x1x11x32x11xf32, #tpu.memory_space<vmem>>, vector<1x1x1x8x8xf32>
    %232 = vector.shape_cast %231 : vector<1x1x1x8x8xf32> to vector<8x8xf32>
    %c0_562 = arith.constant 0 : index
    %c0_563 = arith.constant 0 : index
    %c4_564 = arith.constant 4 : index
    %c0_565 = arith.constant 0 : index
    %c1_566 = arith.constant 1 : index
    %233 = vector.load %arg2[%c0_562, %c0_563, %c4_564, %c0_565, %c1_566] : memref<1x1x11x32x11xf32, #tpu.memory_space<vmem>>, vector<1x1x1x8x8xf32>
    %234 = vector.shape_cast %233 : vector<1x1x1x8x8xf32> to vector<8x8xf32>
    %c0_567 = arith.constant 0 : index
    %c0_568 = arith.constant 0 : index
    %c4_569 = arith.constant 4 : index
    %c8_570 = arith.constant 8 : index
    %c1_571 = arith.constant 1 : index
    %235 = vector.load %arg2[%c0_567, %c0_568, %c4_569, %c8_570, %c1_571] : memref<1x1x11x32x11xf32, #tpu.memory_space<vmem>>, vector<1x1x1x8x8xf32>
    %236 = vector.shape_cast %235 : vector<1x1x1x8x8xf32> to vector<8x8xf32>
    %c0_572 = arith.constant 0 : index
    %c0_573 = arith.constant 0 : index
    %c4_574 = arith.constant 4 : index
    %c0_575 = arith.constant 0 : index
    %c2_576 = arith.constant 2 : index
    %237 = vector.load %arg2[%c0_572, %c0_573, %c4_574, %c0_575, %c2_576] : memref<1x1x11x32x11xf32, #tpu.memory_space<vmem>>, vector<1x1x1x8x8xf32>
    %238 = vector.shape_cast %237 : vector<1x1x1x8x8xf32> to vector<8x8xf32>
    %c0_577 = arith.constant 0 : index
    %c0_578 = arith.constant 0 : index
    %c4_579 = arith.constant 4 : index
    %c8_580 = arith.constant 8 : index
    %c2_581 = arith.constant 2 : index
    %239 = vector.load %arg2[%c0_577, %c0_578, %c4_579, %c8_580, %c2_581] : memref<1x1x11x32x11xf32, #tpu.memory_space<vmem>>, vector<1x1x1x8x8xf32>
    %240 = vector.shape_cast %239 : vector<1x1x1x8x8xf32> to vector<8x8xf32>
    %c0_582 = arith.constant 0 : index
    %c0_583 = arith.constant 0 : index
    %c4_584 = arith.constant 4 : index
    %c0_585 = arith.constant 0 : index
    %c3_586 = arith.constant 3 : index
    %241 = vector.load %arg2[%c0_582, %c0_583, %c4_584, %c0_585, %c3_586] : memref<1x1x11x32x11xf32, #tpu.memory_space<vmem>>, vector<1x1x1x8x8xf32>
    %242 = vector.shape_cast %241 : vector<1x1x1x8x8xf32> to vector<8x8xf32>
    %c0_587 = arith.constant 0 : index
    %c0_588 = arith.constant 0 : index
    %c4_589 = arith.constant 4 : index
    %c8_590 = arith.constant 8 : index
    %c3_591 = arith.constant 3 : index
    %243 = vector.load %arg2[%c0_587, %c0_588, %c4_589, %c8_590, %c3_591] : memref<1x1x11x32x11xf32, #tpu.memory_space<vmem>>, vector<1x1x1x8x8xf32>
    %244 = vector.shape_cast %243 : vector<1x1x1x8x8xf32> to vector<8x8xf32>
    %c0_592 = arith.constant 0 : index
    %c0_593 = arith.constant 0 : index
    %c4_594 = arith.constant 4 : index
    %c16_595 = arith.constant 16 : index
    %c0_596 = arith.constant 0 : index
    %245 = vector.load %arg2[%c0_592, %c0_593, %c4_594, %c16_595, %c0_596] : memref<1x1x11x32x11xf32, #tpu.memory_space<vmem>>, vector<1x1x1x8x8xf32>
    %246 = vector.shape_cast %245 : vector<1x1x1x8x8xf32> to vector<8x8xf32>
    %c0_597 = arith.constant 0 : index
    %c0_598 = arith.constant 0 : index
    %c4_599 = arith.constant 4 : index
    %c24_600 = arith.constant 24 : index
    %c0_601 = arith.constant 0 : index
    %247 = vector.load %arg2[%c0_597, %c0_598, %c4_599, %c24_600, %c0_601] : memref<1x1x11x32x11xf32, #tpu.memory_space<vmem>>, vector<1x1x1x8x8xf32>
    %248 = vector.shape_cast %247 : vector<1x1x1x8x8xf32> to vector<8x8xf32>
    %c0_602 = arith.constant 0 : index
    %c0_603 = arith.constant 0 : index
    %c4_604 = arith.constant 4 : index
    %c16_605 = arith.constant 16 : index
    %c1_606 = arith.constant 1 : index
    %249 = vector.load %arg2[%c0_602, %c0_603, %c4_604, %c16_605, %c1_606] : memref<1x1x11x32x11xf32, #tpu.memory_space<vmem>>, vector<1x1x1x8x8xf32>
    %250 = vector.shape_cast %249 : vector<1x1x1x8x8xf32> to vector<8x8xf32>
    %c0_607 = arith.constant 0 : index
    %c0_608 = arith.constant 0 : index
    %c4_609 = arith.constant 4 : index
    %c24_610 = arith.constant 24 : index
    %c1_611 = arith.constant 1 : index
    %251 = vector.load %arg2[%c0_607, %c0_608, %c4_609, %c24_610, %c1_611] : memref<1x1x11x32x11xf32, #tpu.memory_space<vmem>>, vector<1x1x1x8x8xf32>
    %252 = vector.shape_cast %251 : vector<1x1x1x8x8xf32> to vector<8x8xf32>
    %c0_612 = arith.constant 0 : index
    %c0_613 = arith.constant 0 : index
    %c4_614 = arith.constant 4 : index
    %c16_615 = arith.constant 16 : index
    %c2_616 = arith.constant 2 : index
    %253 = vector.load %arg2[%c0_612, %c0_613, %c4_614, %c16_615, %c2_616] : memref<1x1x11x32x11xf32, #tpu.memory_space<vmem>>, vector<1x1x1x8x8xf32>
    %254 = vector.shape_cast %253 : vector<1x1x1x8x8xf32> to vector<8x8xf32>
    %c0_617 = arith.constant 0 : index
    %c0_618 = arith.constant 0 : index
    %c4_619 = arith.constant 4 : index
    %c24_620 = arith.constant 24 : index
    %c2_621 = arith.constant 2 : index
    %255 = vector.load %arg2[%c0_617, %c0_618, %c4_619, %c24_620, %c2_621] : memref<1x1x11x32x11xf32, #tpu.memory_space<vmem>>, vector<1x1x1x8x8xf32>
    %256 = vector.shape_cast %255 : vector<1x1x1x8x8xf32> to vector<8x8xf32>
    %c0_622 = arith.constant 0 : index
    %c0_623 = arith.constant 0 : index
    %c4_624 = arith.constant 4 : index
    %c16_625 = arith.constant 16 : index
    %c3_626 = arith.constant 3 : index
    %257 = vector.load %arg2[%c0_622, %c0_623, %c4_624, %c16_625, %c3_626] : memref<1x1x11x32x11xf32, #tpu.memory_space<vmem>>, vector<1x1x1x8x8xf32>
    %258 = vector.shape_cast %257 : vector<1x1x1x8x8xf32> to vector<8x8xf32>
    %c0_627 = arith.constant 0 : index
    %c0_628 = arith.constant 0 : index
    %c4_629 = arith.constant 4 : index
    %c24_630 = arith.constant 24 : index
    %c3_631 = arith.constant 3 : index
    %259 = vector.load %arg2[%c0_627, %c0_628, %c4_629, %c24_630, %c3_631] : memref<1x1x11x32x11xf32, #tpu.memory_space<vmem>>, vector<1x1x1x8x8xf32>
    %260 = vector.shape_cast %259 : vector<1x1x1x8x8xf32> to vector<8x8xf32>
    %261 = tpu.concatenate %134, %136, %138, %140, %142, %144, %146, %148, %150, %152, %154, %156, %158, %160, %162, %164 in 0 : vector<8x8xf32>, vector<8x8xf32>, vector<8x8xf32>, vector<8x8xf32>, vector<8x8xf32>, vector<8x8xf32>, vector<8x8xf32>, vector<8x8xf32>, vector<8x8xf32>, vector<8x8xf32>, vector<8x8xf32>, vector<8x8xf32>, vector<8x8xf32>, vector<8x8xf32>, vector<8x8xf32>, vector<8x8xf32> -> vector<128x8xf32>
    %262 = tpu.concatenate %166, %168, %170, %172, %174, %176, %178, %180, %182, %184, %186, %188, %190, %192, %194, %196 in 0 : vector<8x8xf32>, vector<8x8xf32>, vector<8x8xf32>, vector<8x8xf32>, vector<8x8xf32>, vector<8x8xf32>, vector<8x8xf32>, vector<8x8xf32>, vector<8x8xf32>, vector<8x8xf32>, vector<8x8xf32>, vector<8x8xf32>, vector<8x8xf32>, vector<8x8xf32>, vector<8x8xf32>, vector<8x8xf32> -> vector<128x8xf32>
    %263 = tpu.concatenate %198, %200, %202, %204, %206, %208, %210, %212, %214, %216, %218, %220, %222, %224, %226, %228 in 0 : vector<8x8xf32>, vector<8x8xf32>, vector<8x8xf32>, vector<8x8xf32>, vector<8x8xf32>, vector<8x8xf32>, vector<8x8xf32>, vector<8x8xf32>, vector<8x8xf32>, vector<8x8xf32>, vector<8x8xf32>, vector<8x8xf32>, vector<8x8xf32>, vector<8x8xf32>, vector<8x8xf32>, vector<8x8xf32> -> vector<128x8xf32>
    %264 = tpu.concatenate %230, %232, %234, %236, %238, %240, %242, %244, %246, %248, %250, %252, %254, %256, %258, %260 in 0 : vector<8x8xf32>, vector<8x8xf32>, vector<8x8xf32>, vector<8x8xf32>, vector<8x8xf32>, vector<8x8xf32>, vector<8x8xf32>, vector<8x8xf32>, vector<8x8xf32>, vector<8x8xf32>, vector<8x8xf32>, vector<8x8xf32>, vector<8x8xf32>, vector<8x8xf32>, vector<8x8xf32>, vector<8x8xf32> -> vector<128x8xf32>
    %265 = tpu.concatenate %261, %262, %263, %264 in 0 : vector<128x8xf32>, vector<128x8xf32>, vector<128x8xf32>, vector<128x8xf32> -> vector<512x8xf32>
    %c0_632 = arith.constant 0 : index
    %c0_633 = arith.constant 0 : index
    %c2_634 = arith.constant 2 : index
    %c0_635 = arith.constant 0 : index
    %c0_636 = arith.constant 0 : index
    %266 = vector.load %arg2[%c0_632, %c0_633, %c2_634, %c0_635, %c0_636] : memref<1x1x11x32x11xf32, #tpu.memory_space<vmem>>, vector<1x1x1x8x8xf32>
    %267 = vector.shape_cast %266 : vector<1x1x1x8x8xf32> to vector<8x8xf32>
    %c0_637 = arith.constant 0 : index
    %c0_638 = arith.constant 0 : index
    %c2_639 = arith.constant 2 : index
    %c8_640 = arith.constant 8 : index
    %c0_641 = arith.constant 0 : index
    %268 = vector.load %arg2[%c0_637, %c0_638, %c2_639, %c8_640, %c0_641] : memref<1x1x11x32x11xf32, #tpu.memory_space<vmem>>, vector<1x1x1x8x8xf32>
    %269 = vector.shape_cast %268 : vector<1x1x1x8x8xf32> to vector<8x8xf32>
    %c0_642 = arith.constant 0 : index
    %c0_643 = arith.constant 0 : index
    %c2_644 = arith.constant 2 : index
    %c0_645 = arith.constant 0 : index
    %c1_646 = arith.constant 1 : index
    %270 = vector.load %arg2[%c0_642, %c0_643, %c2_644, %c0_645, %c1_646] : memref<1x1x11x32x11xf32, #tpu.memory_space<vmem>>, vector<1x1x1x8x8xf32>
    %271 = vector.shape_cast %270 : vector<1x1x1x8x8xf32> to vector<8x8xf32>
    %c0_647 = arith.constant 0 : index
    %c0_648 = arith.constant 0 : index
    %c2_649 = arith.constant 2 : index
    %c8_650 = arith.constant 8 : index
    %c1_651 = arith.constant 1 : index
    %272 = vector.load %arg2[%c0_647, %c0_648, %c2_649, %c8_650, %c1_651] : memref<1x1x11x32x11xf32, #tpu.memory_space<vmem>>, vector<1x1x1x8x8xf32>
    %273 = vector.shape_cast %272 : vector<1x1x1x8x8xf32> to vector<8x8xf32>
    %c0_652 = arith.constant 0 : index
    %c0_653 = arith.constant 0 : index
    %c2_654 = arith.constant 2 : index
    %c0_655 = arith.constant 0 : index
    %c2_656 = arith.constant 2 : index
    %274 = vector.load %arg2[%c0_652, %c0_653, %c2_654, %c0_655, %c2_656] : memref<1x1x11x32x11xf32, #tpu.memory_space<vmem>>, vector<1x1x1x8x8xf32>
    %275 = vector.shape_cast %274 : vector<1x1x1x8x8xf32> to vector<8x8xf32>
    %c0_657 = arith.constant 0 : index
    %c0_658 = arith.constant 0 : index
    %c2_659 = arith.constant 2 : index
    %c8_660 = arith.constant 8 : index
    %c2_661 = arith.constant 2 : index
    %276 = vector.load %arg2[%c0_657, %c0_658, %c2_659, %c8_660, %c2_661] : memref<1x1x11x32x11xf32, #tpu.memory_space<vmem>>, vector<1x1x1x8x8xf32>
    %277 = vector.shape_cast %276 : vector<1x1x1x8x8xf32> to vector<8x8xf32>
    %c0_662 = arith.constant 0 : index
    %c0_663 = arith.constant 0 : index
    %c2_664 = arith.constant 2 : index
    %c0_665 = arith.constant 0 : index
    %c3_666 = arith.constant 3 : index
    %278 = vector.load %arg2[%c0_662, %c0_663, %c2_664, %c0_665, %c3_666] : memref<1x1x11x32x11xf32, #tpu.memory_space<vmem>>, vector<1x1x1x8x8xf32>
    %279 = vector.shape_cast %278 : vector<1x1x1x8x8xf32> to vector<8x8xf32>
    %c0_667 = arith.constant 0 : index
    %c0_668 = arith.constant 0 : index
    %c2_669 = arith.constant 2 : index
    %c8_670 = arith.constant 8 : index
    %c3_671 = arith.constant 3 : index
    %280 = vector.load %arg2[%c0_667, %c0_668, %c2_669, %c8_670, %c3_671] : memref<1x1x11x32x11xf32, #tpu.memory_space<vmem>>, vector<1x1x1x8x8xf32>
    %281 = vector.shape_cast %280 : vector<1x1x1x8x8xf32> to vector<8x8xf32>
    %c0_672 = arith.constant 0 : index
    %c0_673 = arith.constant 0 : index
    %c2_674 = arith.constant 2 : index
    %c16_675 = arith.constant 16 : index
    %c0_676 = arith.constant 0 : index
    %282 = vector.load %arg2[%c0_672, %c0_673, %c2_674, %c16_675, %c0_676] : memref<1x1x11x32x11xf32, #tpu.memory_space<vmem>>, vector<1x1x1x8x8xf32>
    %283 = vector.shape_cast %282 : vector<1x1x1x8x8xf32> to vector<8x8xf32>
    %c0_677 = arith.constant 0 : index
    %c0_678 = arith.constant 0 : index
    %c2_679 = arith.constant 2 : index
    %c24_680 = arith.constant 24 : index
    %c0_681 = arith.constant 0 : index
    %284 = vector.load %arg2[%c0_677, %c0_678, %c2_679, %c24_680, %c0_681] : memref<1x1x11x32x11xf32, #tpu.memory_space<vmem>>, vector<1x1x1x8x8xf32>
    %285 = vector.shape_cast %284 : vector<1x1x1x8x8xf32> to vector<8x8xf32>
    %c0_682 = arith.constant 0 : index
    %c0_683 = arith.constant 0 : index
    %c2_684 = arith.constant 2 : index
    %c16_685 = arith.constant 16 : index
    %c1_686 = arith.constant 1 : index
    %286 = vector.load %arg2[%c0_682, %c0_683, %c2_684, %c16_685, %c1_686] : memref<1x1x11x32x11xf32, #tpu.memory_space<vmem>>, vector<1x1x1x8x8xf32>
    %287 = vector.shape_cast %286 : vector<1x1x1x8x8xf32> to vector<8x8xf32>
    %c0_687 = arith.constant 0 : index
    %c0_688 = arith.constant 0 : index
    %c2_689 = arith.constant 2 : index
    %c24_690 = arith.constant 24 : index
    %c1_691 = arith.constant 1 : index
    %288 = vector.load %arg2[%c0_687, %c0_688, %c2_689, %c24_690, %c1_691] : memref<1x1x11x32x11xf32, #tpu.memory_space<vmem>>, vector<1x1x1x8x8xf32>
    %289 = vector.shape_cast %288 : vector<1x1x1x8x8xf32> to vector<8x8xf32>
    %c0_692 = arith.constant 0 : index
    %c0_693 = arith.constant 0 : index
    %c2_694 = arith.constant 2 : index
    %c16_695 = arith.constant 16 : index
    %c2_696 = arith.constant 2 : index
    %290 = vector.load %arg2[%c0_692, %c0_693, %c2_694, %c16_695, %c2_696] : memref<1x1x11x32x11xf32, #tpu.memory_space<vmem>>, vector<1x1x1x8x8xf32>
    %291 = vector.shape_cast %290 : vector<1x1x1x8x8xf32> to vector<8x8xf32>
    %c0_697 = arith.constant 0 : index
    %c0_698 = arith.constant 0 : index
    %c2_699 = arith.constant 2 : index
    %c24_700 = arith.constant 24 : index
    %c2_701 = arith.constant 2 : index
    %292 = vector.load %arg2[%c0_697, %c0_698, %c2_699, %c24_700, %c2_701] : memref<1x1x11x32x11xf32, #tpu.memory_space<vmem>>, vector<1x1x1x8x8xf32>
    %293 = vector.shape_cast %292 : vector<1x1x1x8x8xf32> to vector<8x8xf32>
    %c0_702 = arith.constant 0 : index
    %c0_703 = arith.constant 0 : index
    %c2_704 = arith.constant 2 : index
    %c16_705 = arith.constant 16 : index
    %c3_706 = arith.constant 3 : index
    %294 = vector.load %arg2[%c0_702, %c0_703, %c2_704, %c16_705, %c3_706] : memref<1x1x11x32x11xf32, #tpu.memory_space<vmem>>, vector<1x1x1x8x8xf32>
    %295 = vector.shape_cast %294 : vector<1x1x1x8x8xf32> to vector<8x8xf32>
    %c0_707 = arith.constant 0 : index
    %c0_708 = arith.constant 0 : index
    %c2_709 = arith.constant 2 : index
    %c24_710 = arith.constant 24 : index
    %c3_711 = arith.constant 3 : index
    %296 = vector.load %arg2[%c0_707, %c0_708, %c2_709, %c24_710, %c3_711] : memref<1x1x11x32x11xf32, #tpu.memory_space<vmem>>, vector<1x1x1x8x8xf32>
    %297 = vector.shape_cast %296 : vector<1x1x1x8x8xf32> to vector<8x8xf32>
    %c0_712 = arith.constant 0 : index
    %c0_713 = arith.constant 0 : index
    %c3_714 = arith.constant 3 : index
    %c0_715 = arith.constant 0 : index
    %c0_716 = arith.constant 0 : index
    %298 = vector.load %arg2[%c0_712, %c0_713, %c3_714, %c0_715, %c0_716] : memref<1x1x11x32x11xf32, #tpu.memory_space<vmem>>, vector<1x1x1x8x8xf32>
    %299 = vector.shape_cast %298 : vector<1x1x1x8x8xf32> to vector<8x8xf32>
    %c0_717 = arith.constant 0 : index
    %c0_718 = arith.constant 0 : index
    %c3_719 = arith.constant 3 : index
    %c8_720 = arith.constant 8 : index
    %c0_721 = arith.constant 0 : index
    %300 = vector.load %arg2[%c0_717, %c0_718, %c3_719, %c8_720, %c0_721] : memref<1x1x11x32x11xf32, #tpu.memory_space<vmem>>, vector<1x1x1x8x8xf32>
    %301 = vector.shape_cast %300 : vector<1x1x1x8x8xf32> to vector<8x8xf32>
    %c0_722 = arith.constant 0 : index
    %c0_723 = arith.constant 0 : index
    %c3_724 = arith.constant 3 : index
    %c0_725 = arith.constant 0 : index
    %c1_726 = arith.constant 1 : index
    %302 = vector.load %arg2[%c0_722, %c0_723, %c3_724, %c0_725, %c1_726] : memref<1x1x11x32x11xf32, #tpu.memory_space<vmem>>, vector<1x1x1x8x8xf32>
    %303 = vector.shape_cast %302 : vector<1x1x1x8x8xf32> to vector<8x8xf32>
    %c0_727 = arith.constant 0 : index
    %c0_728 = arith.constant 0 : index
    %c3_729 = arith.constant 3 : index
    %c8_730 = arith.constant 8 : index
    %c1_731 = arith.constant 1 : index
    %304 = vector.load %arg2[%c0_727, %c0_728, %c3_729, %c8_730, %c1_731] : memref<1x1x11x32x11xf32, #tpu.memory_space<vmem>>, vector<1x1x1x8x8xf32>
    %305 = vector.shape_cast %304 : vector<1x1x1x8x8xf32> to vector<8x8xf32>
    %c0_732 = arith.constant 0 : index
    %c0_733 = arith.constant 0 : index
    %c3_734 = arith.constant 3 : index
    %c0_735 = arith.constant 0 : index
    %c2_736 = arith.constant 2 : index
    %306 = vector.load %arg2[%c0_732, %c0_733, %c3_734, %c0_735, %c2_736] : memref<1x1x11x32x11xf32, #tpu.memory_space<vmem>>, vector<1x1x1x8x8xf32>
    %307 = vector.shape_cast %306 : vector<1x1x1x8x8xf32> to vector<8x8xf32>
    %c0_737 = arith.constant 0 : index
    %c0_738 = arith.constant 0 : index
    %c3_739 = arith.constant 3 : index
    %c8_740 = arith.constant 8 : index
    %c2_741 = arith.constant 2 : index
    %308 = vector.load %arg2[%c0_737, %c0_738, %c3_739, %c8_740, %c2_741] : memref<1x1x11x32x11xf32, #tpu.memory_space<vmem>>, vector<1x1x1x8x8xf32>
    %309 = vector.shape_cast %308 : vector<1x1x1x8x8xf32> to vector<8x8xf32>
    %c0_742 = arith.constant 0 : index
    %c0_743 = arith.constant 0 : index
    %c3_744 = arith.constant 3 : index
    %c0_745 = arith.constant 0 : index
    %c3_746 = arith.constant 3 : index
    %310 = vector.load %arg2[%c0_742, %c0_743, %c3_744, %c0_745, %c3_746] : memref<1x1x11x32x11xf32, #tpu.memory_space<vmem>>, vector<1x1x1x8x8xf32>
    %311 = vector.shape_cast %310 : vector<1x1x1x8x8xf32> to vector<8x8xf32>
    %c0_747 = arith.constant 0 : index
    %c0_748 = arith.constant 0 : index
    %c3_749 = arith.constant 3 : index
    %c8_750 = arith.constant 8 : index
    %c3_751 = arith.constant 3 : index
    %312 = vector.load %arg2[%c0_747, %c0_748, %c3_749, %c8_750, %c3_751] : memref<1x1x11x32x11xf32, #tpu.memory_space<vmem>>, vector<1x1x1x8x8xf32>
    %313 = vector.shape_cast %312 : vector<1x1x1x8x8xf32> to vector<8x8xf32>
    %c0_752 = arith.constant 0 : index
    %c0_753 = arith.constant 0 : index
    %c3_754 = arith.constant 3 : index
    %c16_755 = arith.constant 16 : index
    %c0_756 = arith.constant 0 : index
    %314 = vector.load %arg2[%c0_752, %c0_753, %c3_754, %c16_755, %c0_756] : memref<1x1x11x32x11xf32, #tpu.memory_space<vmem>>, vector<1x1x1x8x8xf32>
    %315 = vector.shape_cast %314 : vector<1x1x1x8x8xf32> to vector<8x8xf32>
    %c0_757 = arith.constant 0 : index
    %c0_758 = arith.constant 0 : index
    %c3_759 = arith.constant 3 : index
    %c24_760 = arith.constant 24 : index
    %c0_761 = arith.constant 0 : index
    %316 = vector.load %arg2[%c0_757, %c0_758, %c3_759, %c24_760, %c0_761] : memref<1x1x11x32x11xf32, #tpu.memory_space<vmem>>, vector<1x1x1x8x8xf32>
    %317 = vector.shape_cast %316 : vector<1x1x1x8x8xf32> to vector<8x8xf32>
    %c0_762 = arith.constant 0 : index
    %c0_763 = arith.constant 0 : index
    %c3_764 = arith.constant 3 : index
    %c16_765 = arith.constant 16 : index
    %c1_766 = arith.constant 1 : index
    %318 = vector.load %arg2[%c0_762, %c0_763, %c3_764, %c16_765, %c1_766] : memref<1x1x11x32x11xf32, #tpu.memory_space<vmem>>, vector<1x1x1x8x8xf32>
    %319 = vector.shape_cast %318 : vector<1x1x1x8x8xf32> to vector<8x8xf32>
    %c0_767 = arith.constant 0 : index
    %c0_768 = arith.constant 0 : index
    %c3_769 = arith.constant 3 : index
    %c24_770 = arith.constant 24 : index
    %c1_771 = arith.constant 1 : index
    %320 = vector.load %arg2[%c0_767, %c0_768, %c3_769, %c24_770, %c1_771] : memref<1x1x11x32x11xf32, #tpu.memory_space<vmem>>, vector<1x1x1x8x8xf32>
    %321 = vector.shape_cast %320 : vector<1x1x1x8x8xf32> to vector<8x8xf32>
    %c0_772 = arith.constant 0 : index
    %c0_773 = arith.constant 0 : index
    %c3_774 = arith.constant 3 : index
    %c16_775 = arith.constant 16 : index
    %c2_776 = arith.constant 2 : index
    %322 = vector.load %arg2[%c0_772, %c0_773, %c3_774, %c16_775, %c2_776] : memref<1x1x11x32x11xf32, #tpu.memory_space<vmem>>, vector<1x1x1x8x8xf32>
    %323 = vector.shape_cast %322 : vector<1x1x1x8x8xf32> to vector<8x8xf32>
    %c0_777 = arith.constant 0 : index
    %c0_778 = arith.constant 0 : index
    %c3_779 = arith.constant 3 : index
    %c24_780 = arith.constant 24 : index
    %c2_781 = arith.constant 2 : index
    %324 = vector.load %arg2[%c0_777, %c0_778, %c3_779, %c24_780, %c2_781] : memref<1x1x11x32x11xf32, #tpu.memory_space<vmem>>, vector<1x1x1x8x8xf32>
    %325 = vector.shape_cast %324 : vector<1x1x1x8x8xf32> to vector<8x8xf32>
    %c0_782 = arith.constant 0 : index
    %c0_783 = arith.constant 0 : index
    %c3_784 = arith.constant 3 : index
    %c16_785 = arith.constant 16 : index
    %c3_786 = arith.constant 3 : index
    %326 = vector.load %arg2[%c0_782, %c0_783, %c3_784, %c16_785, %c3_786] : memref<1x1x11x32x11xf32, #tpu.memory_space<vmem>>, vector<1x1x1x8x8xf32>
    %327 = vector.shape_cast %326 : vector<1x1x1x8x8xf32> to vector<8x8xf32>
    %c0_787 = arith.constant 0 : index
    %c0_788 = arith.constant 0 : index
    %c3_789 = arith.constant 3 : index
    %c24_790 = arith.constant 24 : index
    %c3_791 = arith.constant 3 : index
    %328 = vector.load %arg2[%c0_787, %c0_788, %c3_789, %c24_790, %c3_791] : memref<1x1x11x32x11xf32, #tpu.memory_space<vmem>>, vector<1x1x1x8x8xf32>
    %329 = vector.shape_cast %328 : vector<1x1x1x8x8xf32> to vector<8x8xf32>
    %c0_792 = arith.constant 0 : index
    %c0_793 = arith.constant 0 : index
    %c4_794 = arith.constant 4 : index
    %c0_795 = arith.constant 0 : index
    %c0_796 = arith.constant 0 : index
    %330 = vector.load %arg2[%c0_792, %c0_793, %c4_794, %c0_795, %c0_796] : memref<1x1x11x32x11xf32, #tpu.memory_space<vmem>>, vector<1x1x1x8x8xf32>
    %331 = vector.shape_cast %330 : vector<1x1x1x8x8xf32> to vector<8x8xf32>
    %c0_797 = arith.constant 0 : index
    %c0_798 = arith.constant 0 : index
    %c4_799 = arith.constant 4 : index
    %c8_800 = arith.constant 8 : index
    %c0_801 = arith.constant 0 : index
    %332 = vector.load %arg2[%c0_797, %c0_798, %c4_799, %c8_800, %c0_801] : memref<1x1x11x32x11xf32, #tpu.memory_space<vmem>>, vector<1x1x1x8x8xf32>
    %333 = vector.shape_cast %332 : vector<1x1x1x8x8xf32> to vector<8x8xf32>
    %c0_802 = arith.constant 0 : index
    %c0_803 = arith.constant 0 : index
    %c4_804 = arith.constant 4 : index
    %c0_805 = arith.constant 0 : index
    %c1_806 = arith.constant 1 : index
    %334 = vector.load %arg2[%c0_802, %c0_803, %c4_804, %c0_805, %c1_806] : memref<1x1x11x32x11xf32, #tpu.memory_space<vmem>>, vector<1x1x1x8x8xf32>
    %335 = vector.shape_cast %334 : vector<1x1x1x8x8xf32> to vector<8x8xf32>
    %c0_807 = arith.constant 0 : index
    %c0_808 = arith.constant 0 : index
    %c4_809 = arith.constant 4 : index
    %c8_810 = arith.constant 8 : index
    %c1_811 = arith.constant 1 : index
    %336 = vector.load %arg2[%c0_807, %c0_808, %c4_809, %c8_810, %c1_811] : memref<1x1x11x32x11xf32, #tpu.memory_space<vmem>>, vector<1x1x1x8x8xf32>
    %337 = vector.shape_cast %336 : vector<1x1x1x8x8xf32> to vector<8x8xf32>
    %c0_812 = arith.constant 0 : index
    %c0_813 = arith.constant 0 : index
    %c4_814 = arith.constant 4 : index
    %c0_815 = arith.constant 0 : index
    %c2_816 = arith.constant 2 : index
    %338 = vector.load %arg2[%c0_812, %c0_813, %c4_814, %c0_815, %c2_816] : memref<1x1x11x32x11xf32, #tpu.memory_space<vmem>>, vector<1x1x1x8x8xf32>
    %339 = vector.shape_cast %338 : vector<1x1x1x8x8xf32> to vector<8x8xf32>
    %c0_817 = arith.constant 0 : index
    %c0_818 = arith.constant 0 : index
    %c4_819 = arith.constant 4 : index
    %c8_820 = arith.constant 8 : index
    %c2_821 = arith.constant 2 : index
    %340 = vector.load %arg2[%c0_817, %c0_818, %c4_819, %c8_820, %c2_821] : memref<1x1x11x32x11xf32, #tpu.memory_space<vmem>>, vector<1x1x1x8x8xf32>
    %341 = vector.shape_cast %340 : vector<1x1x1x8x8xf32> to vector<8x8xf32>
    %c0_822 = arith.constant 0 : index
    %c0_823 = arith.constant 0 : index
    %c4_824 = arith.constant 4 : index
    %c0_825 = arith.constant 0 : index
    %c3_826 = arith.constant 3 : index
    %342 = vector.load %arg2[%c0_822, %c0_823, %c4_824, %c0_825, %c3_826] : memref<1x1x11x32x11xf32, #tpu.memory_space<vmem>>, vector<1x1x1x8x8xf32>
    %343 = vector.shape_cast %342 : vector<1x1x1x8x8xf32> to vector<8x8xf32>
    %c0_827 = arith.constant 0 : index
    %c0_828 = arith.constant 0 : index
    %c4_829 = arith.constant 4 : index
    %c8_830 = arith.constant 8 : index
    %c3_831 = arith.constant 3 : index
    %344 = vector.load %arg2[%c0_827, %c0_828, %c4_829, %c8_830, %c3_831] : memref<1x1x11x32x11xf32, #tpu.memory_space<vmem>>, vector<1x1x1x8x8xf32>
    %345 = vector.shape_cast %344 : vector<1x1x1x8x8xf32> to vector<8x8xf32>
    %c0_832 = arith.constant 0 : index
    %c0_833 = arith.constant 0 : index
    %c4_834 = arith.constant 4 : index
    %c16_835 = arith.constant 16 : index
    %c0_836 = arith.constant 0 : index
    %346 = vector.load %arg2[%c0_832, %c0_833, %c4_834, %c16_835, %c0_836] : memref<1x1x11x32x11xf32, #tpu.memory_space<vmem>>, vector<1x1x1x8x8xf32>
    %347 = vector.shape_cast %346 : vector<1x1x1x8x8xf32> to vector<8x8xf32>
    %c0_837 = arith.constant 0 : index
    %c0_838 = arith.constant 0 : index
    %c4_839 = arith.constant 4 : index
    %c24_840 = arith.constant 24 : index
    %c0_841 = arith.constant 0 : index
    %348 = vector.load %arg2[%c0_837, %c0_838, %c4_839, %c24_840, %c0_841] : memref<1x1x11x32x11xf32, #tpu.memory_space<vmem>>, vector<1x1x1x8x8xf32>
    %349 = vector.shape_cast %348 : vector<1x1x1x8x8xf32> to vector<8x8xf32>
    %c0_842 = arith.constant 0 : index
    %c0_843 = arith.constant 0 : index
    %c4_844 = arith.constant 4 : index
    %c16_845 = arith.constant 16 : index
    %c1_846 = arith.constant 1 : index
    %350 = vector.load %arg2[%c0_842, %c0_843, %c4_844, %c16_845, %c1_846] : memref<1x1x11x32x11xf32, #tpu.memory_space<vmem>>, vector<1x1x1x8x8xf32>
    %351 = vector.shape_cast %350 : vector<1x1x1x8x8xf32> to vector<8x8xf32>
    %c0_847 = arith.constant 0 : index
    %c0_848 = arith.constant 0 : index
    %c4_849 = arith.constant 4 : index
    %c24_850 = arith.constant 24 : index
    %c1_851 = arith.constant 1 : index
    %352 = vector.load %arg2[%c0_847, %c0_848, %c4_849, %c24_850, %c1_851] : memref<1x1x11x32x11xf32, #tpu.memory_space<vmem>>, vector<1x1x1x8x8xf32>
    %353 = vector.shape_cast %352 : vector<1x1x1x8x8xf32> to vector<8x8xf32>
    %c0_852 = arith.constant 0 : index
    %c0_853 = arith.constant 0 : index
    %c4_854 = arith.constant 4 : index
    %c16_855 = arith.constant 16 : index
    %c2_856 = arith.constant 2 : index
    %354 = vector.load %arg2[%c0_852, %c0_853, %c4_854, %c16_855, %c2_856] : memref<1x1x11x32x11xf32, #tpu.memory_space<vmem>>, vector<1x1x1x8x8xf32>
    %355 = vector.shape_cast %354 : vector<1x1x1x8x8xf32> to vector<8x8xf32>
    %c0_857 = arith.constant 0 : index
    %c0_858 = arith.constant 0 : index
    %c4_859 = arith.constant 4 : index
    %c24_860 = arith.constant 24 : index
    %c2_861 = arith.constant 2 : index
    %356 = vector.load %arg2[%c0_857, %c0_858, %c4_859, %c24_860, %c2_861] : memref<1x1x11x32x11xf32, #tpu.memory_space<vmem>>, vector<1x1x1x8x8xf32>
    %357 = vector.shape_cast %356 : vector<1x1x1x8x8xf32> to vector<8x8xf32>
    %c0_862 = arith.constant 0 : index
    %c0_863 = arith.constant 0 : index
    %c4_864 = arith.constant 4 : index
    %c16_865 = arith.constant 16 : index
    %c3_866 = arith.constant 3 : index
    %358 = vector.load %arg2[%c0_862, %c0_863, %c4_864, %c16_865, %c3_866] : memref<1x1x11x32x11xf32, #tpu.memory_space<vmem>>, vector<1x1x1x8x8xf32>
    %359 = vector.shape_cast %358 : vector<1x1x1x8x8xf32> to vector<8x8xf32>
    %c0_867 = arith.constant 0 : index
    %c0_868 = arith.constant 0 : index
    %c4_869 = arith.constant 4 : index
    %c24_870 = arith.constant 24 : index
    %c3_871 = arith.constant 3 : index
    %360 = vector.load %arg2[%c0_867, %c0_868, %c4_869, %c24_870, %c3_871] : memref<1x1x11x32x11xf32, #tpu.memory_space<vmem>>, vector<1x1x1x8x8xf32>
    %361 = vector.shape_cast %360 : vector<1x1x1x8x8xf32> to vector<8x8xf32>
    %c0_872 = arith.constant 0 : index
    %c0_873 = arith.constant 0 : index
    %c5 = arith.constant 5 : index
    %c0_874 = arith.constant 0 : index
    %c0_875 = arith.constant 0 : index
    %362 = vector.load %arg2[%c0_872, %c0_873, %c5, %c0_874, %c0_875] : memref<1x1x11x32x11xf32, #tpu.memory_space<vmem>>, vector<1x1x1x8x8xf32>
    %363 = vector.shape_cast %362 : vector<1x1x1x8x8xf32> to vector<8x8xf32>
    %c0_876 = arith.constant 0 : index
    %c0_877 = arith.constant 0 : index
    %c5_878 = arith.constant 5 : index
    %c8_879 = arith.constant 8 : index
    %c0_880 = arith.constant 0 : index
    %364 = vector.load %arg2[%c0_876, %c0_877, %c5_878, %c8_879, %c0_880] : memref<1x1x11x32x11xf32, #tpu.memory_space<vmem>>, vector<1x1x1x8x8xf32>
    %365 = vector.shape_cast %364 : vector<1x1x1x8x8xf32> to vector<8x8xf32>
    %c0_881 = arith.constant 0 : index
    %c0_882 = arith.constant 0 : index
    %c5_883 = arith.constant 5 : index
    %c0_884 = arith.constant 0 : index
    %c1_885 = arith.constant 1 : index
    %366 = vector.load %arg2[%c0_881, %c0_882, %c5_883, %c0_884, %c1_885] : memref<1x1x11x32x11xf32, #tpu.memory_space<vmem>>, vector<1x1x1x8x8xf32>
    %367 = vector.shape_cast %366 : vector<1x1x1x8x8xf32> to vector<8x8xf32>
    %c0_886 = arith.constant 0 : index
    %c0_887 = arith.constant 0 : index
    %c5_888 = arith.constant 5 : index
    %c8_889 = arith.constant 8 : index
    %c1_890 = arith.constant 1 : index
    %368 = vector.load %arg2[%c0_886, %c0_887, %c5_888, %c8_889, %c1_890] : memref<1x1x11x32x11xf32, #tpu.memory_space<vmem>>, vector<1x1x1x8x8xf32>
    %369 = vector.shape_cast %368 : vector<1x1x1x8x8xf32> to vector<8x8xf32>
    %c0_891 = arith.constant 0 : index
    %c0_892 = arith.constant 0 : index
    %c5_893 = arith.constant 5 : index
    %c0_894 = arith.constant 0 : index
    %c2_895 = arith.constant 2 : index
    %370 = vector.load %arg2[%c0_891, %c0_892, %c5_893, %c0_894, %c2_895] : memref<1x1x11x32x11xf32, #tpu.memory_space<vmem>>, vector<1x1x1x8x8xf32>
    %371 = vector.shape_cast %370 : vector<1x1x1x8x8xf32> to vector<8x8xf32>
    %c0_896 = arith.constant 0 : index
    %c0_897 = arith.constant 0 : index
    %c5_898 = arith.constant 5 : index
    %c8_899 = arith.constant 8 : index
    %c2_900 = arith.constant 2 : index
    %372 = vector.load %arg2[%c0_896, %c0_897, %c5_898, %c8_899, %c2_900] : memref<1x1x11x32x11xf32, #tpu.memory_space<vmem>>, vector<1x1x1x8x8xf32>
    %373 = vector.shape_cast %372 : vector<1x1x1x8x8xf32> to vector<8x8xf32>
    %c0_901 = arith.constant 0 : index
    %c0_902 = arith.constant 0 : index
    %c5_903 = arith.constant 5 : index
    %c0_904 = arith.constant 0 : index
    %c3_905 = arith.constant 3 : index
    %374 = vector.load %arg2[%c0_901, %c0_902, %c5_903, %c0_904, %c3_905] : memref<1x1x11x32x11xf32, #tpu.memory_space<vmem>>, vector<1x1x1x8x8xf32>
    %375 = vector.shape_cast %374 : vector<1x1x1x8x8xf32> to vector<8x8xf32>
    %c0_906 = arith.constant 0 : index
    %c0_907 = arith.constant 0 : index
    %c5_908 = arith.constant 5 : index
    %c8_909 = arith.constant 8 : index
    %c3_910 = arith.constant 3 : index
    %376 = vector.load %arg2[%c0_906, %c0_907, %c5_908, %c8_909, %c3_910] : memref<1x1x11x32x11xf32, #tpu.memory_space<vmem>>, vector<1x1x1x8x8xf32>
    %377 = vector.shape_cast %376 : vector<1x1x1x8x8xf32> to vector<8x8xf32>
    %c0_911 = arith.constant 0 : index
    %c0_912 = arith.constant 0 : index
    %c5_913 = arith.constant 5 : index
    %c16_914 = arith.constant 16 : index
    %c0_915 = arith.constant 0 : index
    %378 = vector.load %arg2[%c0_911, %c0_912, %c5_913, %c16_914, %c0_915] : memref<1x1x11x32x11xf32, #tpu.memory_space<vmem>>, vector<1x1x1x8x8xf32>
    %379 = vector.shape_cast %378 : vector<1x1x1x8x8xf32> to vector<8x8xf32>
    %c0_916 = arith.constant 0 : index
    %c0_917 = arith.constant 0 : index
    %c5_918 = arith.constant 5 : index
    %c24_919 = arith.constant 24 : index
    %c0_920 = arith.constant 0 : index
    %380 = vector.load %arg2[%c0_916, %c0_917, %c5_918, %c24_919, %c0_920] : memref<1x1x11x32x11xf32, #tpu.memory_space<vmem>>, vector<1x1x1x8x8xf32>
    %381 = vector.shape_cast %380 : vector<1x1x1x8x8xf32> to vector<8x8xf32>
    %c0_921 = arith.constant 0 : index
    %c0_922 = arith.constant 0 : index
    %c5_923 = arith.constant 5 : index
    %c16_924 = arith.constant 16 : index
    %c1_925 = arith.constant 1 : index
    %382 = vector.load %arg2[%c0_921, %c0_922, %c5_923, %c16_924, %c1_925] : memref<1x1x11x32x11xf32, #tpu.memory_space<vmem>>, vector<1x1x1x8x8xf32>
    %383 = vector.shape_cast %382 : vector<1x1x1x8x8xf32> to vector<8x8xf32>
    %c0_926 = arith.constant 0 : index
    %c0_927 = arith.constant 0 : index
    %c5_928 = arith.constant 5 : index
    %c24_929 = arith.constant 24 : index
    %c1_930 = arith.constant 1 : index
    %384 = vector.load %arg2[%c0_926, %c0_927, %c5_928, %c24_929, %c1_930] : memref<1x1x11x32x11xf32, #tpu.memory_space<vmem>>, vector<1x1x1x8x8xf32>
    %385 = vector.shape_cast %384 : vector<1x1x1x8x8xf32> to vector<8x8xf32>
    %c0_931 = arith.constant 0 : index
    %c0_932 = arith.constant 0 : index
    %c5_933 = arith.constant 5 : index
    %c16_934 = arith.constant 16 : index
    %c2_935 = arith.constant 2 : index
    %386 = vector.load %arg2[%c0_931, %c0_932, %c5_933, %c16_934, %c2_935] : memref<1x1x11x32x11xf32, #tpu.memory_space<vmem>>, vector<1x1x1x8x8xf32>
    %387 = vector.shape_cast %386 : vector<1x1x1x8x8xf32> to vector<8x8xf32>
    %c0_936 = arith.constant 0 : index
    %c0_937 = arith.constant 0 : index
    %c5_938 = arith.constant 5 : index
    %c24_939 = arith.constant 24 : index
    %c2_940 = arith.constant 2 : index
    %388 = vector.load %arg2[%c0_936, %c0_937, %c5_938, %c24_939, %c2_940] : memref<1x1x11x32x11xf32, #tpu.memory_space<vmem>>, vector<1x1x1x8x8xf32>
    %389 = vector.shape_cast %388 : vector<1x1x1x8x8xf32> to vector<8x8xf32>
    %c0_941 = arith.constant 0 : index
    %c0_942 = arith.constant 0 : index
    %c5_943 = arith.constant 5 : index
    %c16_944 = arith.constant 16 : index
    %c3_945 = arith.constant 3 : index
    %390 = vector.load %arg2[%c0_941, %c0_942, %c5_943, %c16_944, %c3_945] : memref<1x1x11x32x11xf32, #tpu.memory_space<vmem>>, vector<1x1x1x8x8xf32>
    %391 = vector.shape_cast %390 : vector<1x1x1x8x8xf32> to vector<8x8xf32>
    %c0_946 = arith.constant 0 : index
    %c0_947 = arith.constant 0 : index
    %c5_948 = arith.constant 5 : index
    %c24_949 = arith.constant 24 : index
    %c3_950 = arith.constant 3 : index
    %392 = vector.load %arg2[%c0_946, %c0_947, %c5_948, %c24_949, %c3_950] : memref<1x1x11x32x11xf32, #tpu.memory_space<vmem>>, vector<1x1x1x8x8xf32>
    %393 = vector.shape_cast %392 : vector<1x1x1x8x8xf32> to vector<8x8xf32>
    %394 = tpu.concatenate %267, %269, %271, %273, %275, %277, %279, %281, %283, %285, %287, %289, %291, %293, %295, %297 in 0 : vector<8x8xf32>, vector<8x8xf32>, vector<8x8xf32>, vector<8x8xf32>, vector<8x8xf32>, vector<8x8xf32>, vector<8x8xf32>, vector<8x8xf32>, vector<8x8xf32>, vector<8x8xf32>, vector<8x8xf32>, vector<8x8xf32>, vector<8x8xf32>, vector<8x8xf32>, vector<8x8xf32>, vector<8x8xf32> -> vector<128x8xf32>
    %395 = tpu.concatenate %299, %301, %303, %305, %307, %309, %311, %313, %315, %317, %319, %321, %323, %325, %327, %329 in 0 : vector<8x8xf32>, vector<8x8xf32>, vector<8x8xf32>, vector<8x8xf32>, vector<8x8xf32>, vector<8x8xf32>, vector<8x8xf32>, vector<8x8xf32>, vector<8x8xf32>, vector<8x8xf32>, vector<8x8xf32>, vector<8x8xf32>, vector<8x8xf32>, vector<8x8xf32>, vector<8x8xf32>, vector<8x8xf32> -> vector<128x8xf32>
    %396 = tpu.concatenate %331, %333, %335, %337, %339, %341, %343, %345, %347, %349, %351, %353, %355, %357, %359, %361 in 0 : vector<8x8xf32>, vector<8x8xf32>, vector<8x8xf32>, vector<8x8xf32>, vector<8x8xf32>, vector<8x8xf32>, vector<8x8xf32>, vector<8x8xf32>, vector<8x8xf32>, vector<8x8xf32>, vector<8x8xf32>, vector<8x8xf32>, vector<8x8xf32>, vector<8x8xf32>, vector<8x8xf32>, vector<8x8xf32> -> vector<128x8xf32>
    %397 = tpu.concatenate %363, %365, %367, %369, %371, %373, %375, %377, %379, %381, %383, %385, %387, %389, %391, %393 in 0 : vector<8x8xf32>, vector<8x8xf32>, vector<8x8xf32>, vector<8x8xf32>, vector<8x8xf32>, vector<8x8xf32>, vector<8x8xf32>, vector<8x8xf32>, vector<8x8xf32>, vector<8x8xf32>, vector<8x8xf32>, vector<8x8xf32>, vector<8x8xf32>, vector<8x8xf32>, vector<8x8xf32>, vector<8x8xf32> -> vector<128x8xf32>
    %398 = tpu.concatenate %394, %395, %396, %397 in 0 : vector<128x8xf32>, vector<128x8xf32>, vector<128x8xf32>, vector<128x8xf32> -> vector<512x8xf32>
    %c0_951 = arith.constant 0 : index
    %c0_952 = arith.constant 0 : index
    %c3_953 = arith.constant 3 : index
    %c0_954 = arith.constant 0 : index
    %c0_955 = arith.constant 0 : index
    %399 = vector.load %arg2[%c0_951, %c0_952, %c3_953, %c0_954, %c0_955] : memref<1x1x11x32x11xf32, #tpu.memory_space<vmem>>, vector<1x1x1x8x8xf32>
    %400 = vector.shape_cast %399 : vector<1x1x1x8x8xf32> to vector<8x8xf32>
    %c0_956 = arith.constant 0 : index
    %c0_957 = arith.constant 0 : index
    %c3_958 = arith.constant 3 : index
    %c8_959 = arith.constant 8 : index
    %c0_960 = arith.constant 0 : index
    %401 = vector.load %arg2[%c0_956, %c0_957, %c3_958, %c8_959, %c0_960] : memref<1x1x11x32x11xf32, #tpu.memory_space<vmem>>, vector<1x1x1x8x8xf32>
    %402 = vector.shape_cast %401 : vector<1x1x1x8x8xf32> to vector<8x8xf32>
    %c0_961 = arith.constant 0 : index
    %c0_962 = arith.constant 0 : index
    %c3_963 = arith.constant 3 : index
    %c0_964 = arith.constant 0 : index
    %c1_965 = arith.constant 1 : index
    %403 = vector.load %arg2[%c0_961, %c0_962, %c3_963, %c0_964, %c1_965] : memref<1x1x11x32x11xf32, #tpu.memory_space<vmem>>, vector<1x1x1x8x8xf32>
    %404 = vector.shape_cast %403 : vector<1x1x1x8x8xf32> to vector<8x8xf32>
    %c0_966 = arith.constant 0 : index
    %c0_967 = arith.constant 0 : index
    %c3_968 = arith.constant 3 : index
    %c8_969 = arith.constant 8 : index
    %c1_970 = arith.constant 1 : index
    %405 = vector.load %arg2[%c0_966, %c0_967, %c3_968, %c8_969, %c1_970] : memref<1x1x11x32x11xf32, #tpu.memory_space<vmem>>, vector<1x1x1x8x8xf32>
    %406 = vector.shape_cast %405 : vector<1x1x1x8x8xf32> to vector<8x8xf32>
    %c0_971 = arith.constant 0 : index
    %c0_972 = arith.constant 0 : index
    %c3_973 = arith.constant 3 : index
    %c0_974 = arith.constant 0 : index
    %c2_975 = arith.constant 2 : index
    %407 = vector.load %arg2[%c0_971, %c0_972, %c3_973, %c0_974, %c2_975] : memref<1x1x11x32x11xf32, #tpu.memory_space<vmem>>, vector<1x1x1x8x8xf32>
    %408 = vector.shape_cast %407 : vector<1x1x1x8x8xf32> to vector<8x8xf32>
    %c0_976 = arith.constant 0 : index
    %c0_977 = arith.constant 0 : index
    %c3_978 = arith.constant 3 : index
    %c8_979 = arith.constant 8 : index
    %c2_980 = arith.constant 2 : index
    %409 = vector.load %arg2[%c0_976, %c0_977, %c3_978, %c8_979, %c2_980] : memref<1x1x11x32x11xf32, #tpu.memory_space<vmem>>, vector<1x1x1x8x8xf32>
    %410 = vector.shape_cast %409 : vector<1x1x1x8x8xf32> to vector<8x8xf32>
    %c0_981 = arith.constant 0 : index
    %c0_982 = arith.constant 0 : index
    %c3_983 = arith.constant 3 : index
    %c0_984 = arith.constant 0 : index
    %c3_985 = arith.constant 3 : index
    %411 = vector.load %arg2[%c0_981, %c0_982, %c3_983, %c0_984, %c3_985] : memref<1x1x11x32x11xf32, #tpu.memory_space<vmem>>, vector<1x1x1x8x8xf32>
    %412 = vector.shape_cast %411 : vector<1x1x1x8x8xf32> to vector<8x8xf32>
    %c0_986 = arith.constant 0 : index
    %c0_987 = arith.constant 0 : index
    %c3_988 = arith.constant 3 : index
    %c8_989 = arith.constant 8 : index
    %c3_990 = arith.constant 3 : index
    %413 = vector.load %arg2[%c0_986, %c0_987, %c3_988, %c8_989, %c3_990] : memref<1x1x11x32x11xf32, #tpu.memory_space<vmem>>, vector<1x1x1x8x8xf32>
    %414 = vector.shape_cast %413 : vector<1x1x1x8x8xf32> to vector<8x8xf32>
    %c0_991 = arith.constant 0 : index
    %c0_992 = arith.constant 0 : index
    %c3_993 = arith.constant 3 : index
    %c16_994 = arith.constant 16 : index
    %c0_995 = arith.constant 0 : index
    %415 = vector.load %arg2[%c0_991, %c0_992, %c3_993, %c16_994, %c0_995] : memref<1x1x11x32x11xf32, #tpu.memory_space<vmem>>, vector<1x1x1x8x8xf32>
    %416 = vector.shape_cast %415 : vector<1x1x1x8x8xf32> to vector<8x8xf32>
    %c0_996 = arith.constant 0 : index
    %c0_997 = arith.constant 0 : index
    %c3_998 = arith.constant 3 : index
    %c24_999 = arith.constant 24 : index
    %c0_1000 = arith.constant 0 : index
    %417 = vector.load %arg2[%c0_996, %c0_997, %c3_998, %c24_999, %c0_1000] : memref<1x1x11x32x11xf32, #tpu.memory_space<vmem>>, vector<1x1x1x8x8xf32>
    %418 = vector.shape_cast %417 : vector<1x1x1x8x8xf32> to vector<8x8xf32>
    %c0_1001 = arith.constant 0 : index
    %c0_1002 = arith.constant 0 : index
    %c3_1003 = arith.constant 3 : index
    %c16_1004 = arith.constant 16 : index
    %c1_1005 = arith.constant 1 : index
    %419 = vector.load %arg2[%c0_1001, %c0_1002, %c3_1003, %c16_1004, %c1_1005] : memref<1x1x11x32x11xf32, #tpu.memory_space<vmem>>, vector<1x1x1x8x8xf32>
    %420 = vector.shape_cast %419 : vector<1x1x1x8x8xf32> to vector<8x8xf32>
    %c0_1006 = arith.constant 0 : index
    %c0_1007 = arith.constant 0 : index
    %c3_1008 = arith.constant 3 : index
    %c24_1009 = arith.constant 24 : index
    %c1_1010 = arith.constant 1 : index
    %421 = vector.load %arg2[%c0_1006, %c0_1007, %c3_1008, %c24_1009, %c1_1010] : memref<1x1x11x32x11xf32, #tpu.memory_space<vmem>>, vector<1x1x1x8x8xf32>
    %422 = vector.shape_cast %421 : vector<1x1x1x8x8xf32> to vector<8x8xf32>
    %c0_1011 = arith.constant 0 : index
    %c0_1012 = arith.constant 0 : index
    %c3_1013 = arith.constant 3 : index
    %c16_1014 = arith.constant 16 : index
    %c2_1015 = arith.constant 2 : index
    %423 = vector.load %arg2[%c0_1011, %c0_1012, %c3_1013, %c16_1014, %c2_1015] : memref<1x1x11x32x11xf32, #tpu.memory_space<vmem>>, vector<1x1x1x8x8xf32>
    %424 = vector.shape_cast %423 : vector<1x1x1x8x8xf32> to vector<8x8xf32>
    %c0_1016 = arith.constant 0 : index
    %c0_1017 = arith.constant 0 : index
    %c3_1018 = arith.constant 3 : index
    %c24_1019 = arith.constant 24 : index
    %c2_1020 = arith.constant 2 : index
    %425 = vector.load %arg2[%c0_1016, %c0_1017, %c3_1018, %c24_1019, %c2_1020] : memref<1x1x11x32x11xf32, #tpu.memory_space<vmem>>, vector<1x1x1x8x8xf32>
    %426 = vector.shape_cast %425 : vector<1x1x1x8x8xf32> to vector<8x8xf32>
    %c0_1021 = arith.constant 0 : index
    %c0_1022 = arith.constant 0 : index
    %c3_1023 = arith.constant 3 : index
    %c16_1024 = arith.constant 16 : index
    %c3_1025 = arith.constant 3 : index
    %427 = vector.load %arg2[%c0_1021, %c0_1022, %c3_1023, %c16_1024, %c3_1025] : memref<1x1x11x32x11xf32, #tpu.memory_space<vmem>>, vector<1x1x1x8x8xf32>
    %428 = vector.shape_cast %427 : vector<1x1x1x8x8xf32> to vector<8x8xf32>
    %c0_1026 = arith.constant 0 : index
    %c0_1027 = arith.constant 0 : index
    %c3_1028 = arith.constant 3 : index
    %c24_1029 = arith.constant 24 : index
    %c3_1030 = arith.constant 3 : index
    %429 = vector.load %arg2[%c0_1026, %c0_1027, %c3_1028, %c24_1029, %c3_1030] : memref<1x1x11x32x11xf32, #tpu.memory_space<vmem>>, vector<1x1x1x8x8xf32>
    %430 = vector.shape_cast %429 : vector<1x1x1x8x8xf32> to vector<8x8xf32>
    %c0_1031 = arith.constant 0 : index
    %c0_1032 = arith.constant 0 : index
    %c4_1033 = arith.constant 4 : index
    %c0_1034 = arith.constant 0 : index
    %c0_1035 = arith.constant 0 : index
    %431 = vector.load %arg2[%c0_1031, %c0_1032, %c4_1033, %c0_1034, %c0_1035] : memref<1x1x11x32x11xf32, #tpu.memory_space<vmem>>, vector<1x1x1x8x8xf32>
    %432 = vector.shape_cast %431 : vector<1x1x1x8x8xf32> to vector<8x8xf32>
    %c0_1036 = arith.constant 0 : index
    %c0_1037 = arith.constant 0 : index
    %c4_1038 = arith.constant 4 : index
    %c8_1039 = arith.constant 8 : index
    %c0_1040 = arith.constant 0 : index
    %433 = vector.load %arg2[%c0_1036, %c0_1037, %c4_1038, %c8_1039, %c0_1040] : memref<1x1x11x32x11xf32, #tpu.memory_space<vmem>>, vector<1x1x1x8x8xf32>
    %434 = vector.shape_cast %433 : vector<1x1x1x8x8xf32> to vector<8x8xf32>
    %c0_1041 = arith.constant 0 : index
    %c0_1042 = arith.constant 0 : index
    %c4_1043 = arith.constant 4 : index
    %c0_1044 = arith.constant 0 : index
    %c1_1045 = arith.constant 1 : index
    %435 = vector.load %arg2[%c0_1041, %c0_1042, %c4_1043, %c0_1044, %c1_1045] : memref<1x1x11x32x11xf32, #tpu.memory_space<vmem>>, vector<1x1x1x8x8xf32>
    %436 = vector.shape_cast %435 : vector<1x1x1x8x8xf32> to vector<8x8xf32>
    %c0_1046 = arith.constant 0 : index
    %c0_1047 = arith.constant 0 : index
    %c4_1048 = arith.constant 4 : index
    %c8_1049 = arith.constant 8 : index
    %c1_1050 = arith.constant 1 : index
    %437 = vector.load %arg2[%c0_1046, %c0_1047, %c4_1048, %c8_1049, %c1_1050] : memref<1x1x11x32x11xf32, #tpu.memory_space<vmem>>, vector<1x1x1x8x8xf32>
    %438 = vector.shape_cast %437 : vector<1x1x1x8x8xf32> to vector<8x8xf32>
    %c0_1051 = arith.constant 0 : index
    %c0_1052 = arith.constant 0 : index
    %c4_1053 = arith.constant 4 : index
    %c0_1054 = arith.constant 0 : index
    %c2_1055 = arith.constant 2 : index
    %439 = vector.load %arg2[%c0_1051, %c0_1052, %c4_1053, %c0_1054, %c2_1055] : memref<1x1x11x32x11xf32, #tpu.memory_space<vmem>>, vector<1x1x1x8x8xf32>
    %440 = vector.shape_cast %439 : vector<1x1x1x8x8xf32> to vector<8x8xf32>
    %c0_1056 = arith.constant 0 : index
    %c0_1057 = arith.constant 0 : index
    %c4_1058 = arith.constant 4 : index
    %c8_1059 = arith.constant 8 : index
    %c2_1060 = arith.constant 2 : index
    %441 = vector.load %arg2[%c0_1056, %c0_1057, %c4_1058, %c8_1059, %c2_1060] : memref<1x1x11x32x11xf32, #tpu.memory_space<vmem>>, vector<1x1x1x8x8xf32>
    %442 = vector.shape_cast %441 : vector<1x1x1x8x8xf32> to vector<8x8xf32>
    %c0_1061 = arith.constant 0 : index
    %c0_1062 = arith.constant 0 : index
    %c4_1063 = arith.constant 4 : index
    %c0_1064 = arith.constant 0 : index
    %c3_1065 = arith.constant 3 : index
    %443 = vector.load %arg2[%c0_1061, %c0_1062, %c4_1063, %c0_1064, %c3_1065] : memref<1x1x11x32x11xf32, #tpu.memory_space<vmem>>, vector<1x1x1x8x8xf32>
    %444 = vector.shape_cast %443 : vector<1x1x1x8x8xf32> to vector<8x8xf32>
    %c0_1066 = arith.constant 0 : index
    %c0_1067 = arith.constant 0 : index
    %c4_1068 = arith.constant 4 : index
    %c8_1069 = arith.constant 8 : index
    %c3_1070 = arith.constant 3 : index
    %445 = vector.load %arg2[%c0_1066, %c0_1067, %c4_1068, %c8_1069, %c3_1070] : memref<1x1x11x32x11xf32, #tpu.memory_space<vmem>>, vector<1x1x1x8x8xf32>
    %446 = vector.shape_cast %445 : vector<1x1x1x8x8xf32> to vector<8x8xf32>
    %c0_1071 = arith.constant 0 : index
    %c0_1072 = arith.constant 0 : index
    %c4_1073 = arith.constant 4 : index
    %c16_1074 = arith.constant 16 : index
    %c0_1075 = arith.constant 0 : index
    %447 = vector.load %arg2[%c0_1071, %c0_1072, %c4_1073, %c16_1074, %c0_1075] : memref<1x1x11x32x11xf32, #tpu.memory_space<vmem>>, vector<1x1x1x8x8xf32>
    %448 = vector.shape_cast %447 : vector<1x1x1x8x8xf32> to vector<8x8xf32>
    %c0_1076 = arith.constant 0 : index
    %c0_1077 = arith.constant 0 : index
    %c4_1078 = arith.constant 4 : index
    %c24_1079 = arith.constant 24 : index
    %c0_1080 = arith.constant 0 : index
    %449 = vector.load %arg2[%c0_1076, %c0_1077, %c4_1078, %c24_1079, %c0_1080] : memref<1x1x11x32x11xf32, #tpu.memory_space<vmem>>, vector<1x1x1x8x8xf32>
    %450 = vector.shape_cast %449 : vector<1x1x1x8x8xf32> to vector<8x8xf32>
    %c0_1081 = arith.constant 0 : index
    %c0_1082 = arith.constant 0 : index
    %c4_1083 = arith.constant 4 : index
    %c16_1084 = arith.constant 16 : index
    %c1_1085 = arith.constant 1 : index
    %451 = vector.load %arg2[%c0_1081, %c0_1082, %c4_1083, %c16_1084, %c1_1085] : memref<1x1x11x32x11xf32, #tpu.memory_space<vmem>>, vector<1x1x1x8x8xf32>
    %452 = vector.shape_cast %451 : vector<1x1x1x8x8xf32> to vector<8x8xf32>
    %c0_1086 = arith.constant 0 : index
    %c0_1087 = arith.constant 0 : index
    %c4_1088 = arith.constant 4 : index
    %c24_1089 = arith.constant 24 : index
    %c1_1090 = arith.constant 1 : index
    %453 = vector.load %arg2[%c0_1086, %c0_1087, %c4_1088, %c24_1089, %c1_1090] : memref<1x1x11x32x11xf32, #tpu.memory_space<vmem>>, vector<1x1x1x8x8xf32>
    %454 = vector.shape_cast %453 : vector<1x1x1x8x8xf32> to vector<8x8xf32>
    %c0_1091 = arith.constant 0 : index
    %c0_1092 = arith.constant 0 : index
    %c4_1093 = arith.constant 4 : index
    %c16_1094 = arith.constant 16 : index
    %c2_1095 = arith.constant 2 : index
    %455 = vector.load %arg2[%c0_1091, %c0_1092, %c4_1093, %c16_1094, %c2_1095] : memref<1x1x11x32x11xf32, #tpu.memory_space<vmem>>, vector<1x1x1x8x8xf32>
    %456 = vector.shape_cast %455 : vector<1x1x1x8x8xf32> to vector<8x8xf32>
    %c0_1096 = arith.constant 0 : index
    %c0_1097 = arith.constant 0 : index
    %c4_1098 = arith.constant 4 : index
    %c24_1099 = arith.constant 24 : index
    %c2_1100 = arith.constant 2 : index
    %457 = vector.load %arg2[%c0_1096, %c0_1097, %c4_1098, %c24_1099, %c2_1100] : memref<1x1x11x32x11xf32, #tpu.memory_space<vmem>>, vector<1x1x1x8x8xf32>
    %458 = vector.shape_cast %457 : vector<1x1x1x8x8xf32> to vector<8x8xf32>
    %c0_1101 = arith.constant 0 : index
    %c0_1102 = arith.constant 0 : index
    %c4_1103 = arith.constant 4 : index
    %c16_1104 = arith.constant 16 : index
    %c3_1105 = arith.constant 3 : index
    %459 = vector.load %arg2[%c0_1101, %c0_1102, %c4_1103, %c16_1104, %c3_1105] : memref<1x1x11x32x11xf32, #tpu.memory_space<vmem>>, vector<1x1x1x8x8xf32>
    %460 = vector.shape_cast %459 : vector<1x1x1x8x8xf32> to vector<8x8xf32>
    %c0_1106 = arith.constant 0 : index
    %c0_1107 = arith.constant 0 : index
    %c4_1108 = arith.constant 4 : index
    %c24_1109 = arith.constant 24 : index
    %c3_1110 = arith.constant 3 : index
    %461 = vector.load %arg2[%c0_1106, %c0_1107, %c4_1108, %c24_1109, %c3_1110] : memref<1x1x11x32x11xf32, #tpu.memory_space<vmem>>, vector<1x1x1x8x8xf32>
    %462 = vector.shape_cast %461 : vector<1x1x1x8x8xf32> to vector<8x8xf32>
    %c0_1111 = arith.constant 0 : index
    %c0_1112 = arith.constant 0 : index
    %c5_1113 = arith.constant 5 : index
    %c0_1114 = arith.constant 0 : index
    %c0_1115 = arith.constant 0 : index
    %463 = vector.load %arg2[%c0_1111, %c0_1112, %c5_1113, %c0_1114, %c0_1115] : memref<1x1x11x32x11xf32, #tpu.memory_space<vmem>>, vector<1x1x1x8x8xf32>
    %464 = vector.shape_cast %463 : vector<1x1x1x8x8xf32> to vector<8x8xf32>
    %c0_1116 = arith.constant 0 : index
    %c0_1117 = arith.constant 0 : index
    %c5_1118 = arith.constant 5 : index
    %c8_1119 = arith.constant 8 : index
    %c0_1120 = arith.constant 0 : index
    %465 = vector.load %arg2[%c0_1116, %c0_1117, %c5_1118, %c8_1119, %c0_1120] : memref<1x1x11x32x11xf32, #tpu.memory_space<vmem>>, vector<1x1x1x8x8xf32>
    %466 = vector.shape_cast %465 : vector<1x1x1x8x8xf32> to vector<8x8xf32>
    %c0_1121 = arith.constant 0 : index
    %c0_1122 = arith.constant 0 : index
    %c5_1123 = arith.constant 5 : index
    %c0_1124 = arith.constant 0 : index
    %c1_1125 = arith.constant 1 : index
    %467 = vector.load %arg2[%c0_1121, %c0_1122, %c5_1123, %c0_1124, %c1_1125] : memref<1x1x11x32x11xf32, #tpu.memory_space<vmem>>, vector<1x1x1x8x8xf32>
    %468 = vector.shape_cast %467 : vector<1x1x1x8x8xf32> to vector<8x8xf32>
    %c0_1126 = arith.constant 0 : index
    %c0_1127 = arith.constant 0 : index
    %c5_1128 = arith.constant 5 : index
    %c8_1129 = arith.constant 8 : index
    %c1_1130 = arith.constant 1 : index
    %469 = vector.load %arg2[%c0_1126, %c0_1127, %c5_1128, %c8_1129, %c1_1130] : memref<1x1x11x32x11xf32, #tpu.memory_space<vmem>>, vector<1x1x1x8x8xf32>
    %470 = vector.shape_cast %469 : vector<1x1x1x8x8xf32> to vector<8x8xf32>
    %c0_1131 = arith.constant 0 : index
    %c0_1132 = arith.constant 0 : index
    %c5_1133 = arith.constant 5 : index
    %c0_1134 = arith.constant 0 : index
    %c2_1135 = arith.constant 2 : index
    %471 = vector.load %arg2[%c0_1131, %c0_1132, %c5_1133, %c0_1134, %c2_1135] : memref<1x1x11x32x11xf32, #tpu.memory_space<vmem>>, vector<1x1x1x8x8xf32>
    %472 = vector.shape_cast %471 : vector<1x1x1x8x8xf32> to vector<8x8xf32>
    %c0_1136 = arith.constant 0 : index
    %c0_1137 = arith.constant 0 : index
    %c5_1138 = arith.constant 5 : index
    %c8_1139 = arith.constant 8 : index
    %c2_1140 = arith.constant 2 : index
    %473 = vector.load %arg2[%c0_1136, %c0_1137, %c5_1138, %c8_1139, %c2_1140] : memref<1x1x11x32x11xf32, #tpu.memory_space<vmem>>, vector<1x1x1x8x8xf32>
    %474 = vector.shape_cast %473 : vector<1x1x1x8x8xf32> to vector<8x8xf32>
    %c0_1141 = arith.constant 0 : index
    %c0_1142 = arith.constant 0 : index
    %c5_1143 = arith.constant 5 : index
    %c0_1144 = arith.constant 0 : index
    %c3_1145 = arith.constant 3 : index
    %475 = vector.load %arg2[%c0_1141, %c0_1142, %c5_1143, %c0_1144, %c3_1145] : memref<1x1x11x32x11xf32, #tpu.memory_space<vmem>>, vector<1x1x1x8x8xf32>
    %476 = vector.shape_cast %475 : vector<1x1x1x8x8xf32> to vector<8x8xf32>
    %c0_1146 = arith.constant 0 : index
    %c0_1147 = arith.constant 0 : index
    %c5_1148 = arith.constant 5 : index
    %c8_1149 = arith.constant 8 : index
    %c3_1150 = arith.constant 3 : index
    %477 = vector.load %arg2[%c0_1146, %c0_1147, %c5_1148, %c8_1149, %c3_1150] : memref<1x1x11x32x11xf32, #tpu.memory_space<vmem>>, vector<1x1x1x8x8xf32>
    %478 = vector.shape_cast %477 : vector<1x1x1x8x8xf32> to vector<8x8xf32>
    %c0_1151 = arith.constant 0 : index
    %c0_1152 = arith.constant 0 : index
    %c5_1153 = arith.constant 5 : index
    %c16_1154 = arith.constant 16 : index
    %c0_1155 = arith.constant 0 : index
    %479 = vector.load %arg2[%c0_1151, %c0_1152, %c5_1153, %c16_1154, %c0_1155] : memref<1x1x11x32x11xf32, #tpu.memory_space<vmem>>, vector<1x1x1x8x8xf32>
    %480 = vector.shape_cast %479 : vector<1x1x1x8x8xf32> to vector<8x8xf32>
    %c0_1156 = arith.constant 0 : index
    %c0_1157 = arith.constant 0 : index
    %c5_1158 = arith.constant 5 : index
    %c24_1159 = arith.constant 24 : index
    %c0_1160 = arith.constant 0 : index
    %481 = vector.load %arg2[%c0_1156, %c0_1157, %c5_1158, %c24_1159, %c0_1160] : memref<1x1x11x32x11xf32, #tpu.memory_space<vmem>>, vector<1x1x1x8x8xf32>
    %482 = vector.shape_cast %481 : vector<1x1x1x8x8xf32> to vector<8x8xf32>
    %c0_1161 = arith.constant 0 : index
    %c0_1162 = arith.constant 0 : index
    %c5_1163 = arith.constant 5 : index
    %c16_1164 = arith.constant 16 : index
    %c1_1165 = arith.constant 1 : index
    %483 = vector.load %arg2[%c0_1161, %c0_1162, %c5_1163, %c16_1164, %c1_1165] : memref<1x1x11x32x11xf32, #tpu.memory_space<vmem>>, vector<1x1x1x8x8xf32>
    %484 = vector.shape_cast %483 : vector<1x1x1x8x8xf32> to vector<8x8xf32>
    %c0_1166 = arith.constant 0 : index
    %c0_1167 = arith.constant 0 : index
    %c5_1168 = arith.constant 5 : index
    %c24_1169 = arith.constant 24 : index
    %c1_1170 = arith.constant 1 : index
    %485 = vector.load %arg2[%c0_1166, %c0_1167, %c5_1168, %c24_1169, %c1_1170] : memref<1x1x11x32x11xf32, #tpu.memory_space<vmem>>, vector<1x1x1x8x8xf32>
    %486 = vector.shape_cast %485 : vector<1x1x1x8x8xf32> to vector<8x8xf32>
    %c0_1171 = arith.constant 0 : index
    %c0_1172 = arith.constant 0 : index
    %c5_1173 = arith.constant 5 : index
    %c16_1174 = arith.constant 16 : index
    %c2_1175 = arith.constant 2 : index
    %487 = vector.load %arg2[%c0_1171, %c0_1172, %c5_1173, %c16_1174, %c2_1175] : memref<1x1x11x32x11xf32, #tpu.memory_space<vmem>>, vector<1x1x1x8x8xf32>
    %488 = vector.shape_cast %487 : vector<1x1x1x8x8xf32> to vector<8x8xf32>
    %c0_1176 = arith.constant 0 : index
    %c0_1177 = arith.constant 0 : index
    %c5_1178 = arith.constant 5 : index
    %c24_1179 = arith.constant 24 : index
    %c2_1180 = arith.constant 2 : index
    %489 = vector.load %arg2[%c0_1176, %c0_1177, %c5_1178, %c24_1179, %c2_1180] : memref<1x1x11x32x11xf32, #tpu.memory_space<vmem>>, vector<1x1x1x8x8xf32>
    %490 = vector.shape_cast %489 : vector<1x1x1x8x8xf32> to vector<8x8xf32>
    %c0_1181 = arith.constant 0 : index
    %c0_1182 = arith.constant 0 : index
    %c5_1183 = arith.constant 5 : index
    %c16_1184 = arith.constant 16 : index
    %c3_1185 = arith.constant 3 : index
    %491 = vector.load %arg2[%c0_1181, %c0_1182, %c5_1183, %c16_1184, %c3_1185] : memref<1x1x11x32x11xf32, #tpu.memory_space<vmem>>, vector<1x1x1x8x8xf32>
    %492 = vector.shape_cast %491 : vector<1x1x1x8x8xf32> to vector<8x8xf32>
    %c0_1186 = arith.constant 0 : index
    %c0_1187 = arith.constant 0 : index
    %c5_1188 = arith.constant 5 : index
    %c24_1189 = arith.constant 24 : index
    %c3_1190 = arith.constant 3 : index
    %493 = vector.load %arg2[%c0_1186, %c0_1187, %c5_1188, %c24_1189, %c3_1190] : memref<1x1x11x32x11xf32, #tpu.memory_space<vmem>>, vector<1x1x1x8x8xf32>
    %494 = vector.shape_cast %493 : vector<1x1x1x8x8xf32> to vector<8x8xf32>
    %c0_1191 = arith.constant 0 : index
    %c0_1192 = arith.constant 0 : index
    %c6 = arith.constant 6 : index
    %c0_1193 = arith.constant 0 : index
    %c0_1194 = arith.constant 0 : index
    %495 = vector.load %arg2[%c0_1191, %c0_1192, %c6, %c0_1193, %c0_1194] : memref<1x1x11x32x11xf32, #tpu.memory_space<vmem>>, vector<1x1x1x8x8xf32>
    %496 = vector.shape_cast %495 : vector<1x1x1x8x8xf32> to vector<8x8xf32>
    %c0_1195 = arith.constant 0 : index
    %c0_1196 = arith.constant 0 : index
    %c6_1197 = arith.constant 6 : index
    %c8_1198 = arith.constant 8 : index
    %c0_1199 = arith.constant 0 : index
    %497 = vector.load %arg2[%c0_1195, %c0_1196, %c6_1197, %c8_1198, %c0_1199] : memref<1x1x11x32x11xf32, #tpu.memory_space<vmem>>, vector<1x1x1x8x8xf32>
    %498 = vector.shape_cast %497 : vector<1x1x1x8x8xf32> to vector<8x8xf32>
    %c0_1200 = arith.constant 0 : index
    %c0_1201 = arith.constant 0 : index
    %c6_1202 = arith.constant 6 : index
    %c0_1203 = arith.constant 0 : index
    %c1_1204 = arith.constant 1 : index
    %499 = vector.load %arg2[%c0_1200, %c0_1201, %c6_1202, %c0_1203, %c1_1204] : memref<1x1x11x32x11xf32, #tpu.memory_space<vmem>>, vector<1x1x1x8x8xf32>
    %500 = vector.shape_cast %499 : vector<1x1x1x8x8xf32> to vector<8x8xf32>
    %c0_1205 = arith.constant 0 : index
    %c0_1206 = arith.constant 0 : index
    %c6_1207 = arith.constant 6 : index
    %c8_1208 = arith.constant 8 : index
    %c1_1209 = arith.constant 1 : index
    %501 = vector.load %arg2[%c0_1205, %c0_1206, %c6_1207, %c8_1208, %c1_1209] : memref<1x1x11x32x11xf32, #tpu.memory_space<vmem>>, vector<1x1x1x8x8xf32>
    %502 = vector.shape_cast %501 : vector<1x1x1x8x8xf32> to vector<8x8xf32>
    %c0_1210 = arith.constant 0 : index
    %c0_1211 = arith.constant 0 : index
    %c6_1212 = arith.constant 6 : index
    %c0_1213 = arith.constant 0 : index
    %c2_1214 = arith.constant 2 : index
    %503 = vector.load %arg2[%c0_1210, %c0_1211, %c6_1212, %c0_1213, %c2_1214] : memref<1x1x11x32x11xf32, #tpu.memory_space<vmem>>, vector<1x1x1x8x8xf32>
    %504 = vector.shape_cast %503 : vector<1x1x1x8x8xf32> to vector<8x8xf32>
    %c0_1215 = arith.constant 0 : index
    %c0_1216 = arith.constant 0 : index
    %c6_1217 = arith.constant 6 : index
    %c8_1218 = arith.constant 8 : index
    %c2_1219 = arith.constant 2 : index
    %505 = vector.load %arg2[%c0_1215, %c0_1216, %c6_1217, %c8_1218, %c2_1219] : memref<1x1x11x32x11xf32, #tpu.memory_space<vmem>>, vector<1x1x1x8x8xf32>
    %506 = vector.shape_cast %505 : vector<1x1x1x8x8xf32> to vector<8x8xf32>
    %c0_1220 = arith.constant 0 : index
    %c0_1221 = arith.constant 0 : index
    %c6_1222 = arith.constant 6 : index
    %c0_1223 = arith.constant 0 : index
    %c3_1224 = arith.constant 3 : index
    %507 = vector.load %arg2[%c0_1220, %c0_1221, %c6_1222, %c0_1223, %c3_1224] : memref<1x1x11x32x11xf32, #tpu.memory_space<vmem>>, vector<1x1x1x8x8xf32>
    %508 = vector.shape_cast %507 : vector<1x1x1x8x8xf32> to vector<8x8xf32>
    %c0_1225 = arith.constant 0 : index
    %c0_1226 = arith.constant 0 : index
    %c6_1227 = arith.constant 6 : index
    %c8_1228 = arith.constant 8 : index
    %c3_1229 = arith.constant 3 : index
    %509 = vector.load %arg2[%c0_1225, %c0_1226, %c6_1227, %c8_1228, %c3_1229] : memref<1x1x11x32x11xf32, #tpu.memory_space<vmem>>, vector<1x1x1x8x8xf32>
    %510 = vector.shape_cast %509 : vector<1x1x1x8x8xf32> to vector<8x8xf32>
    %c0_1230 = arith.constant 0 : index
    %c0_1231 = arith.constant 0 : index
    %c6_1232 = arith.constant 6 : index
    %c16_1233 = arith.constant 16 : index
    %c0_1234 = arith.constant 0 : index
    %511 = vector.load %arg2[%c0_1230, %c0_1231, %c6_1232, %c16_1233, %c0_1234] : memref<1x1x11x32x11xf32, #tpu.memory_space<vmem>>, vector<1x1x1x8x8xf32>
    %512 = vector.shape_cast %511 : vector<1x1x1x8x8xf32> to vector<8x8xf32>
    %c0_1235 = arith.constant 0 : index
    %c0_1236 = arith.constant 0 : index
    %c6_1237 = arith.constant 6 : index
    %c24_1238 = arith.constant 24 : index
    %c0_1239 = arith.constant 0 : index
    %513 = vector.load %arg2[%c0_1235, %c0_1236, %c6_1237, %c24_1238, %c0_1239] : memref<1x1x11x32x11xf32, #tpu.memory_space<vmem>>, vector<1x1x1x8x8xf32>
    %514 = vector.shape_cast %513 : vector<1x1x1x8x8xf32> to vector<8x8xf32>
    %c0_1240 = arith.constant 0 : index
    %c0_1241 = arith.constant 0 : index
    %c6_1242 = arith.constant 6 : index
    %c16_1243 = arith.constant 16 : index
    %c1_1244 = arith.constant 1 : index
    %515 = vector.load %arg2[%c0_1240, %c0_1241, %c6_1242, %c16_1243, %c1_1244] : memref<1x1x11x32x11xf32, #tpu.memory_space<vmem>>, vector<1x1x1x8x8xf32>
    %516 = vector.shape_cast %515 : vector<1x1x1x8x8xf32> to vector<8x8xf32>
    %c0_1245 = arith.constant 0 : index
    %c0_1246 = arith.constant 0 : index
    %c6_1247 = arith.constant 6 : index
    %c24_1248 = arith.constant 24 : index
    %c1_1249 = arith.constant 1 : index
    %517 = vector.load %arg2[%c0_1245, %c0_1246, %c6_1247, %c24_1248, %c1_1249] : memref<1x1x11x32x11xf32, #tpu.memory_space<vmem>>, vector<1x1x1x8x8xf32>
    %518 = vector.shape_cast %517 : vector<1x1x1x8x8xf32> to vector<8x8xf32>
    %c0_1250 = arith.constant 0 : index
    %c0_1251 = arith.constant 0 : index
    %c6_1252 = arith.constant 6 : index
    %c16_1253 = arith.constant 16 : index
    %c2_1254 = arith.constant 2 : index
    %519 = vector.load %arg2[%c0_1250, %c0_1251, %c6_1252, %c16_1253, %c2_1254] : memref<1x1x11x32x11xf32, #tpu.memory_space<vmem>>, vector<1x1x1x8x8xf32>
    %520 = vector.shape_cast %519 : vector<1x1x1x8x8xf32> to vector<8x8xf32>
    %c0_1255 = arith.constant 0 : index
    %c0_1256 = arith.constant 0 : index
    %c6_1257 = arith.constant 6 : index
    %c24_1258 = arith.constant 24 : index
    %c2_1259 = arith.constant 2 : index
    %521 = vector.load %arg2[%c0_1255, %c0_1256, %c6_1257, %c24_1258, %c2_1259] : memref<1x1x11x32x11xf32, #tpu.memory_space<vmem>>, vector<1x1x1x8x8xf32>
    %522 = vector.shape_cast %521 : vector<1x1x1x8x8xf32> to vector<8x8xf32>
    %c0_1260 = arith.constant 0 : index
    %c0_1261 = arith.constant 0 : index
    %c6_1262 = arith.constant 6 : index
    %c16_1263 = arith.constant 16 : index
    %c3_1264 = arith.constant 3 : index
    %523 = vector.load %arg2[%c0_1260, %c0_1261, %c6_1262, %c16_1263, %c3_1264] : memref<1x1x11x32x11xf32, #tpu.memory_space<vmem>>, vector<1x1x1x8x8xf32>
    %524 = vector.shape_cast %523 : vector<1x1x1x8x8xf32> to vector<8x8xf32>
    %c0_1265 = arith.constant 0 : index
    %c0_1266 = arith.constant 0 : index
    %c6_1267 = arith.constant 6 : index
    %c24_1268 = arith.constant 24 : index
    %c3_1269 = arith.constant 3 : index
    %525 = vector.load %arg2[%c0_1265, %c0_1266, %c6_1267, %c24_1268, %c3_1269] : memref<1x1x11x32x11xf32, #tpu.memory_space<vmem>>, vector<1x1x1x8x8xf32>
    %526 = vector.shape_cast %525 : vector<1x1x1x8x8xf32> to vector<8x8xf32>
    %527 = tpu.concatenate %400, %402, %404, %406, %408, %410, %412, %414, %416, %418, %420, %422, %424, %426, %428, %430 in 0 : vector<8x8xf32>, vector<8x8xf32>, vector<8x8xf32>, vector<8x8xf32>, vector<8x8xf32>, vector<8x8xf32>, vector<8x8xf32>, vector<8x8xf32>, vector<8x8xf32>, vector<8x8xf32>, vector<8x8xf32>, vector<8x8xf32>, vector<8x8xf32>, vector<8x8xf32>, vector<8x8xf32>, vector<8x8xf32> -> vector<128x8xf32>
    %528 = tpu.concatenate %432, %434, %436, %438, %440, %442, %444, %446, %448, %450, %452, %454, %456, %458, %460, %462 in 0 : vector<8x8xf32>, vector<8x8xf32>, vector<8x8xf32>, vector<8x8xf32>, vector<8x8xf32>, vector<8x8xf32>, vector<8x8xf32>, vector<8x8xf32>, vector<8x8xf32>, vector<8x8xf32>, vector<8x8xf32>, vector<8x8xf32>, vector<8x8xf32>, vector<8x8xf32>, vector<8x8xf32>, vector<8x8xf32> -> vector<128x8xf32>
    %529 = tpu.concatenate %464, %466, %468, %470, %472, %474, %476, %478, %480, %482, %484, %486, %488, %490, %492, %494 in 0 : vector<8x8xf32>, vector<8x8xf32>, vector<8x8xf32>, vector<8x8xf32>, vector<8x8xf32>, vector<8x8xf32>, vector<8x8xf32>, vector<8x8xf32>, vector<8x8xf32>, vector<8x8xf32>, vector<8x8xf32>, vector<8x8xf32>, vector<8x8xf32>, vector<8x8xf32>, vector<8x8xf32>, vector<8x8xf32> -> vector<128x8xf32>
    %530 = tpu.concatenate %496, %498, %500, %502, %504, %506, %508, %510, %512, %514, %516, %518, %520, %522, %524, %526 in 0 : vector<8x8xf32>, vector<8x8xf32>, vector<8x8xf32>, vector<8x8xf32>, vector<8x8xf32>, vector<8x8xf32>, vector<8x8xf32>, vector<8x8xf32>, vector<8x8xf32>, vector<8x8xf32>, vector<8x8xf32>, vector<8x8xf32>, vector<8x8xf32>, vector<8x8xf32>, vector<8x8xf32>, vector<8x8xf32> -> vector<128x8xf32>
    %531 = tpu.concatenate %527, %528, %529, %530 in 0 : vector<128x8xf32>, vector<128x8xf32>, vector<128x8xf32>, vector<128x8xf32> -> vector<512x8xf32>
    %c0_1270 = arith.constant 0 : index
    %c0_1271 = arith.constant 0 : index
    %c4_1272 = arith.constant 4 : index
    %c0_1273 = arith.constant 0 : index
    %c0_1274 = arith.constant 0 : index
    %532 = vector.load %arg2[%c0_1270, %c0_1271, %c4_1272, %c0_1273, %c0_1274] : memref<1x1x11x32x11xf32, #tpu.memory_space<vmem>>, vector<1x1x1x8x8xf32>
    %533 = vector.shape_cast %532 : vector<1x1x1x8x8xf32> to vector<8x8xf32>
    %c0_1275 = arith.constant 0 : index
    %c0_1276 = arith.constant 0 : index
    %c4_1277 = arith.constant 4 : index
    %c8_1278 = arith.constant 8 : index
    %c0_1279 = arith.constant 0 : index
    %534 = vector.load %arg2[%c0_1275, %c0_1276, %c4_1277, %c8_1278, %c0_1279] : memref<1x1x11x32x11xf32, #tpu.memory_space<vmem>>, vector<1x1x1x8x8xf32>
    %535 = vector.shape_cast %534 : vector<1x1x1x8x8xf32> to vector<8x8xf32>
    %c0_1280 = arith.constant 0 : index
    %c0_1281 = arith.constant 0 : index
    %c4_1282 = arith.constant 4 : index
    %c0_1283 = arith.constant 0 : index
    %c1_1284 = arith.constant 1 : index
    %536 = vector.load %arg2[%c0_1280, %c0_1281, %c4_1282, %c0_1283, %c1_1284] : memref<1x1x11x32x11xf32, #tpu.memory_space<vmem>>, vector<1x1x1x8x8xf32>
    %537 = vector.shape_cast %536 : vector<1x1x1x8x8xf32> to vector<8x8xf32>
    %c0_1285 = arith.constant 0 : index
    %c0_1286 = arith.constant 0 : index
    %c4_1287 = arith.constant 4 : index
    %c8_1288 = arith.constant 8 : index
    %c1_1289 = arith.constant 1 : index
    %538 = vector.load %arg2[%c0_1285, %c0_1286, %c4_1287, %c8_1288, %c1_1289] : memref<1x1x11x32x11xf32, #tpu.memory_space<vmem>>, vector<1x1x1x8x8xf32>
    %539 = vector.shape_cast %538 : vector<1x1x1x8x8xf32> to vector<8x8xf32>
    %c0_1290 = arith.constant 0 : index
    %c0_1291 = arith.constant 0 : index
    %c4_1292 = arith.constant 4 : index
    %c0_1293 = arith.constant 0 : index
    %c2_1294 = arith.constant 2 : index
    %540 = vector.load %arg2[%c0_1290, %c0_1291, %c4_1292, %c0_1293, %c2_1294] : memref<1x1x11x32x11xf32, #tpu.memory_space<vmem>>, vector<1x1x1x8x8xf32>
    %541 = vector.shape_cast %540 : vector<1x1x1x8x8xf32> to vector<8x8xf32>
    %c0_1295 = arith.constant 0 : index
    %c0_1296 = arith.constant 0 : index
    %c4_1297 = arith.constant 4 : index
    %c8_1298 = arith.constant 8 : index
    %c2_1299 = arith.constant 2 : index
    %542 = vector.load %arg2[%c0_1295, %c0_1296, %c4_1297, %c8_1298, %c2_1299] : memref<1x1x11x32x11xf32, #tpu.memory_space<vmem>>, vector<1x1x1x8x8xf32>
    %543 = vector.shape_cast %542 : vector<1x1x1x8x8xf32> to vector<8x8xf32>
    %c0_1300 = arith.constant 0 : index
    %c0_1301 = arith.constant 0 : index
    %c4_1302 = arith.constant 4 : index
    %c0_1303 = arith.constant 0 : index
    %c3_1304 = arith.constant 3 : index
    %544 = vector.load %arg2[%c0_1300, %c0_1301, %c4_1302, %c0_1303, %c3_1304] : memref<1x1x11x32x11xf32, #tpu.memory_space<vmem>>, vector<1x1x1x8x8xf32>
    %545 = vector.shape_cast %544 : vector<1x1x1x8x8xf32> to vector<8x8xf32>
    %c0_1305 = arith.constant 0 : index
    %c0_1306 = arith.constant 0 : index
    %c4_1307 = arith.constant 4 : index
    %c8_1308 = arith.constant 8 : index
    %c3_1309 = arith.constant 3 : index
    %546 = vector.load %arg2[%c0_1305, %c0_1306, %c4_1307, %c8_1308, %c3_1309] : memref<1x1x11x32x11xf32, #tpu.memory_space<vmem>>, vector<1x1x1x8x8xf32>
    %547 = vector.shape_cast %546 : vector<1x1x1x8x8xf32> to vector<8x8xf32>
    %c0_1310 = arith.constant 0 : index
    %c0_1311 = arith.constant 0 : index
    %c4_1312 = arith.constant 4 : index
    %c16_1313 = arith.constant 16 : index
    %c0_1314 = arith.constant 0 : index
    %548 = vector.load %arg2[%c0_1310, %c0_1311, %c4_1312, %c16_1313, %c0_1314] : memref<1x1x11x32x11xf32, #tpu.memory_space<vmem>>, vector<1x1x1x8x8xf32>
    %549 = vector.shape_cast %548 : vector<1x1x1x8x8xf32> to vector<8x8xf32>
    %c0_1315 = arith.constant 0 : index
    %c0_1316 = arith.constant 0 : index
    %c4_1317 = arith.constant 4 : index
    %c24_1318 = arith.constant 24 : index
    %c0_1319 = arith.constant 0 : index
    %550 = vector.load %arg2[%c0_1315, %c0_1316, %c4_1317, %c24_1318, %c0_1319] : memref<1x1x11x32x11xf32, #tpu.memory_space<vmem>>, vector<1x1x1x8x8xf32>
    %551 = vector.shape_cast %550 : vector<1x1x1x8x8xf32> to vector<8x8xf32>
    %c0_1320 = arith.constant 0 : index
    %c0_1321 = arith.constant 0 : index
    %c4_1322 = arith.constant 4 : index
    %c16_1323 = arith.constant 16 : index
    %c1_1324 = arith.constant 1 : index
    %552 = vector.load %arg2[%c0_1320, %c0_1321, %c4_1322, %c16_1323, %c1_1324] : memref<1x1x11x32x11xf32, #tpu.memory_space<vmem>>, vector<1x1x1x8x8xf32>
    %553 = vector.shape_cast %552 : vector<1x1x1x8x8xf32> to vector<8x8xf32>
    %c0_1325 = arith.constant 0 : index
    %c0_1326 = arith.constant 0 : index
    %c4_1327 = arith.constant 4 : index
    %c24_1328 = arith.constant 24 : index
    %c1_1329 = arith.constant 1 : index
    %554 = vector.load %arg2[%c0_1325, %c0_1326, %c4_1327, %c24_1328, %c1_1329] : memref<1x1x11x32x11xf32, #tpu.memory_space<vmem>>, vector<1x1x1x8x8xf32>
    %555 = vector.shape_cast %554 : vector<1x1x1x8x8xf32> to vector<8x8xf32>
    %c0_1330 = arith.constant 0 : index
    %c0_1331 = arith.constant 0 : index
    %c4_1332 = arith.constant 4 : index
    %c16_1333 = arith.constant 16 : index
    %c2_1334 = arith.constant 2 : index
    %556 = vector.load %arg2[%c0_1330, %c0_1331, %c4_1332, %c16_1333, %c2_1334] : memref<1x1x11x32x11xf32, #tpu.memory_space<vmem>>, vector<1x1x1x8x8xf32>
    %557 = vector.shape_cast %556 : vector<1x1x1x8x8xf32> to vector<8x8xf32>
    %c0_1335 = arith.constant 0 : index
    %c0_1336 = arith.constant 0 : index
    %c4_1337 = arith.constant 4 : index
    %c24_1338 = arith.constant 24 : index
    %c2_1339 = arith.constant 2 : index
    %558 = vector.load %arg2[%c0_1335, %c0_1336, %c4_1337, %c24_1338, %c2_1339] : memref<1x1x11x32x11xf32, #tpu.memory_space<vmem>>, vector<1x1x1x8x8xf32>
    %559 = vector.shape_cast %558 : vector<1x1x1x8x8xf32> to vector<8x8xf32>
    %c0_1340 = arith.constant 0 : index
    %c0_1341 = arith.constant 0 : index
    %c4_1342 = arith.constant 4 : index
    %c16_1343 = arith.constant 16 : index
    %c3_1344 = arith.constant 3 : index
    %560 = vector.load %arg2[%c0_1340, %c0_1341, %c4_1342, %c16_1343, %c3_1344] : memref<1x1x11x32x11xf32, #tpu.memory_space<vmem>>, vector<1x1x1x8x8xf32>
    %561 = vector.shape_cast %560 : vector<1x1x1x8x8xf32> to vector<8x8xf32>
    %c0_1345 = arith.constant 0 : index
    %c0_1346 = arith.constant 0 : index
    %c4_1347 = arith.constant 4 : index
    %c24_1348 = arith.constant 24 : index
    %c3_1349 = arith.constant 3 : index
    %562 = vector.load %arg2[%c0_1345, %c0_1346, %c4_1347, %c24_1348, %c3_1349] : memref<1x1x11x32x11xf32, #tpu.memory_space<vmem>>, vector<1x1x1x8x8xf32>
    %563 = vector.shape_cast %562 : vector<1x1x1x8x8xf32> to vector<8x8xf32>
    %c0_1350 = arith.constant 0 : index
    %c0_1351 = arith.constant 0 : index
    %c5_1352 = arith.constant 5 : index
    %c0_1353 = arith.constant 0 : index
    %c0_1354 = arith.constant 0 : index
    %564 = vector.load %arg2[%c0_1350, %c0_1351, %c5_1352, %c0_1353, %c0_1354] : memref<1x1x11x32x11xf32, #tpu.memory_space<vmem>>, vector<1x1x1x8x8xf32>
    %565 = vector.shape_cast %564 : vector<1x1x1x8x8xf32> to vector<8x8xf32>
    %c0_1355 = arith.constant 0 : index
    %c0_1356 = arith.constant 0 : index
    %c5_1357 = arith.constant 5 : index
    %c8_1358 = arith.constant 8 : index
    %c0_1359 = arith.constant 0 : index
    %566 = vector.load %arg2[%c0_1355, %c0_1356, %c5_1357, %c8_1358, %c0_1359] : memref<1x1x11x32x11xf32, #tpu.memory_space<vmem>>, vector<1x1x1x8x8xf32>
    %567 = vector.shape_cast %566 : vector<1x1x1x8x8xf32> to vector<8x8xf32>
    %c0_1360 = arith.constant 0 : index
    %c0_1361 = arith.constant 0 : index
    %c5_1362 = arith.constant 5 : index
    %c0_1363 = arith.constant 0 : index
    %c1_1364 = arith.constant 1 : index
    %568 = vector.load %arg2[%c0_1360, %c0_1361, %c5_1362, %c0_1363, %c1_1364] : memref<1x1x11x32x11xf32, #tpu.memory_space<vmem>>, vector<1x1x1x8x8xf32>
    %569 = vector.shape_cast %568 : vector<1x1x1x8x8xf32> to vector<8x8xf32>
    %c0_1365 = arith.constant 0 : index
    %c0_1366 = arith.constant 0 : index
    %c5_1367 = arith.constant 5 : index
    %c8_1368 = arith.constant 8 : index
    %c1_1369 = arith.constant 1 : index
    %570 = vector.load %arg2[%c0_1365, %c0_1366, %c5_1367, %c8_1368, %c1_1369] : memref<1x1x11x32x11xf32, #tpu.memory_space<vmem>>, vector<1x1x1x8x8xf32>
    %571 = vector.shape_cast %570 : vector<1x1x1x8x8xf32> to vector<8x8xf32>
    %c0_1370 = arith.constant 0 : index
    %c0_1371 = arith.constant 0 : index
    %c5_1372 = arith.constant 5 : index
    %c0_1373 = arith.constant 0 : index
    %c2_1374 = arith.constant 2 : index
    %572 = vector.load %arg2[%c0_1370, %c0_1371, %c5_1372, %c0_1373, %c2_1374] : memref<1x1x11x32x11xf32, #tpu.memory_space<vmem>>, vector<1x1x1x8x8xf32>
    %573 = vector.shape_cast %572 : vector<1x1x1x8x8xf32> to vector<8x8xf32>
    %c0_1375 = arith.constant 0 : index
    %c0_1376 = arith.constant 0 : index
    %c5_1377 = arith.constant 5 : index
    %c8_1378 = arith.constant 8 : index
    %c2_1379 = arith.constant 2 : index
    %574 = vector.load %arg2[%c0_1375, %c0_1376, %c5_1377, %c8_1378, %c2_1379] : memref<1x1x11x32x11xf32, #tpu.memory_space<vmem>>, vector<1x1x1x8x8xf32>
    %575 = vector.shape_cast %574 : vector<1x1x1x8x8xf32> to vector<8x8xf32>
    %c0_1380 = arith.constant 0 : index
    %c0_1381 = arith.constant 0 : index
    %c5_1382 = arith.constant 5 : index
    %c0_1383 = arith.constant 0 : index
    %c3_1384 = arith.constant 3 : index
    %576 = vector.load %arg2[%c0_1380, %c0_1381, %c5_1382, %c0_1383, %c3_1384] : memref<1x1x11x32x11xf32, #tpu.memory_space<vmem>>, vector<1x1x1x8x8xf32>
    %577 = vector.shape_cast %576 : vector<1x1x1x8x8xf32> to vector<8x8xf32>
    %c0_1385 = arith.constant 0 : index
    %c0_1386 = arith.constant 0 : index
    %c5_1387 = arith.constant 5 : index
    %c8_1388 = arith.constant 8 : index
    %c3_1389 = arith.constant 3 : index
    %578 = vector.load %arg2[%c0_1385, %c0_1386, %c5_1387, %c8_1388, %c3_1389] : memref<1x1x11x32x11xf32, #tpu.memory_space<vmem>>, vector<1x1x1x8x8xf32>
    %579 = vector.shape_cast %578 : vector<1x1x1x8x8xf32> to vector<8x8xf32>
    %c0_1390 = arith.constant 0 : index
    %c0_1391 = arith.constant 0 : index
    %c5_1392 = arith.constant 5 : index
    %c16_1393 = arith.constant 16 : index
    %c0_1394 = arith.constant 0 : index
    %580 = vector.load %arg2[%c0_1390, %c0_1391, %c5_1392, %c16_1393, %c0_1394] : memref<1x1x11x32x11xf32, #tpu.memory_space<vmem>>, vector<1x1x1x8x8xf32>
    %581 = vector.shape_cast %580 : vector<1x1x1x8x8xf32> to vector<8x8xf32>
    %c0_1395 = arith.constant 0 : index
    %c0_1396 = arith.constant 0 : index
    %c5_1397 = arith.constant 5 : index
    %c24_1398 = arith.constant 24 : index
    %c0_1399 = arith.constant 0 : index
    %582 = vector.load %arg2[%c0_1395, %c0_1396, %c5_1397, %c24_1398, %c0_1399] : memref<1x1x11x32x11xf32, #tpu.memory_space<vmem>>, vector<1x1x1x8x8xf32>
    %583 = vector.shape_cast %582 : vector<1x1x1x8x8xf32> to vector<8x8xf32>
    %c0_1400 = arith.constant 0 : index
    %c0_1401 = arith.constant 0 : index
    %c5_1402 = arith.constant 5 : index
    %c16_1403 = arith.constant 16 : index
    %c1_1404 = arith.constant 1 : index
    %584 = vector.load %arg2[%c0_1400, %c0_1401, %c5_1402, %c16_1403, %c1_1404] : memref<1x1x11x32x11xf32, #tpu.memory_space<vmem>>, vector<1x1x1x8x8xf32>
    %585 = vector.shape_cast %584 : vector<1x1x1x8x8xf32> to vector<8x8xf32>
    %c0_1405 = arith.constant 0 : index
    %c0_1406 = arith.constant 0 : index
    %c5_1407 = arith.constant 5 : index
    %c24_1408 = arith.constant 24 : index
    %c1_1409 = arith.constant 1 : index
    %586 = vector.load %arg2[%c0_1405, %c0_1406, %c5_1407, %c24_1408, %c1_1409] : memref<1x1x11x32x11xf32, #tpu.memory_space<vmem>>, vector<1x1x1x8x8xf32>
    %587 = vector.shape_cast %586 : vector<1x1x1x8x8xf32> to vector<8x8xf32>
    %c0_1410 = arith.constant 0 : index
    %c0_1411 = arith.constant 0 : index
    %c5_1412 = arith.constant 5 : index
    %c16_1413 = arith.constant 16 : index
    %c2_1414 = arith.constant 2 : index
    %588 = vector.load %arg2[%c0_1410, %c0_1411, %c5_1412, %c16_1413, %c2_1414] : memref<1x1x11x32x11xf32, #tpu.memory_space<vmem>>, vector<1x1x1x8x8xf32>
    %589 = vector.shape_cast %588 : vector<1x1x1x8x8xf32> to vector<8x8xf32>
    %c0_1415 = arith.constant 0 : index
    %c0_1416 = arith.constant 0 : index
    %c5_1417 = arith.constant 5 : index
    %c24_1418 = arith.constant 24 : index
    %c2_1419 = arith.constant 2 : index
    %590 = vector.load %arg2[%c0_1415, %c0_1416, %c5_1417, %c24_1418, %c2_1419] : memref<1x1x11x32x11xf32, #tpu.memory_space<vmem>>, vector<1x1x1x8x8xf32>
    %591 = vector.shape_cast %590 : vector<1x1x1x8x8xf32> to vector<8x8xf32>
    %c0_1420 = arith.constant 0 : index
    %c0_1421 = arith.constant 0 : index
    %c5_1422 = arith.constant 5 : index
    %c16_1423 = arith.constant 16 : index
    %c3_1424 = arith.constant 3 : index
    %592 = vector.load %arg2[%c0_1420, %c0_1421, %c5_1422, %c16_1423, %c3_1424] : memref<1x1x11x32x11xf32, #tpu.memory_space<vmem>>, vector<1x1x1x8x8xf32>
    %593 = vector.shape_cast %592 : vector<1x1x1x8x8xf32> to vector<8x8xf32>
    %c0_1425 = arith.constant 0 : index
    %c0_1426 = arith.constant 0 : index
    %c5_1427 = arith.constant 5 : index
    %c24_1428 = arith.constant 24 : index
    %c3_1429 = arith.constant 3 : index
    %594 = vector.load %arg2[%c0_1425, %c0_1426, %c5_1427, %c24_1428, %c3_1429] : memref<1x1x11x32x11xf32, #tpu.memory_space<vmem>>, vector<1x1x1x8x8xf32>
    %595 = vector.shape_cast %594 : vector<1x1x1x8x8xf32> to vector<8x8xf32>
    %c0_1430 = arith.constant 0 : index
    %c0_1431 = arith.constant 0 : index
    %c6_1432 = arith.constant 6 : index
    %c0_1433 = arith.constant 0 : index
    %c0_1434 = arith.constant 0 : index
    %596 = vector.load %arg2[%c0_1430, %c0_1431, %c6_1432, %c0_1433, %c0_1434] : memref<1x1x11x32x11xf32, #tpu.memory_space<vmem>>, vector<1x1x1x8x8xf32>
    %597 = vector.shape_cast %596 : vector<1x1x1x8x8xf32> to vector<8x8xf32>
    %c0_1435 = arith.constant 0 : index
    %c0_1436 = arith.constant 0 : index
    %c6_1437 = arith.constant 6 : index
    %c8_1438 = arith.constant 8 : index
    %c0_1439 = arith.constant 0 : index
    %598 = vector.load %arg2[%c0_1435, %c0_1436, %c6_1437, %c8_1438, %c0_1439] : memref<1x1x11x32x11xf32, #tpu.memory_space<vmem>>, vector<1x1x1x8x8xf32>
    %599 = vector.shape_cast %598 : vector<1x1x1x8x8xf32> to vector<8x8xf32>
    %c0_1440 = arith.constant 0 : index
    %c0_1441 = arith.constant 0 : index
    %c6_1442 = arith.constant 6 : index
    %c0_1443 = arith.constant 0 : index
    %c1_1444 = arith.constant 1 : index
    %600 = vector.load %arg2[%c0_1440, %c0_1441, %c6_1442, %c0_1443, %c1_1444] : memref<1x1x11x32x11xf32, #tpu.memory_space<vmem>>, vector<1x1x1x8x8xf32>
    %601 = vector.shape_cast %600 : vector<1x1x1x8x8xf32> to vector<8x8xf32>
    %c0_1445 = arith.constant 0 : index
    %c0_1446 = arith.constant 0 : index
    %c6_1447 = arith.constant 6 : index
    %c8_1448 = arith.constant 8 : index
    %c1_1449 = arith.constant 1 : index
    %602 = vector.load %arg2[%c0_1445, %c0_1446, %c6_1447, %c8_1448, %c1_1449] : memref<1x1x11x32x11xf32, #tpu.memory_space<vmem>>, vector<1x1x1x8x8xf32>
    %603 = vector.shape_cast %602 : vector<1x1x1x8x8xf32> to vector<8x8xf32>
    %c0_1450 = arith.constant 0 : index
    %c0_1451 = arith.constant 0 : index
    %c6_1452 = arith.constant 6 : index
    %c0_1453 = arith.constant 0 : index
    %c2_1454 = arith.constant 2 : index
    %604 = vector.load %arg2[%c0_1450, %c0_1451, %c6_1452, %c0_1453, %c2_1454] : memref<1x1x11x32x11xf32, #tpu.memory_space<vmem>>, vector<1x1x1x8x8xf32>
    %605 = vector.shape_cast %604 : vector<1x1x1x8x8xf32> to vector<8x8xf32>
    %c0_1455 = arith.constant 0 : index
    %c0_1456 = arith.constant 0 : index
    %c6_1457 = arith.constant 6 : index
    %c8_1458 = arith.constant 8 : index
    %c2_1459 = arith.constant 2 : index
    %606 = vector.load %arg2[%c0_1455, %c0_1456, %c6_1457, %c8_1458, %c2_1459] : memref<1x1x11x32x11xf32, #tpu.memory_space<vmem>>, vector<1x1x1x8x8xf32>
    %607 = vector.shape_cast %606 : vector<1x1x1x8x8xf32> to vector<8x8xf32>
    %c0_1460 = arith.constant 0 : index
    %c0_1461 = arith.constant 0 : index
    %c6_1462 = arith.constant 6 : index
    %c0_1463 = arith.constant 0 : index
    %c3_1464 = arith.constant 3 : index
    %608 = vector.load %arg2[%c0_1460, %c0_1461, %c6_1462, %c0_1463, %c3_1464] : memref<1x1x11x32x11xf32, #tpu.memory_space<vmem>>, vector<1x1x1x8x8xf32>
    %609 = vector.shape_cast %608 : vector<1x1x1x8x8xf32> to vector<8x8xf32>
    %c0_1465 = arith.constant 0 : index
    %c0_1466 = arith.constant 0 : index
    %c6_1467 = arith.constant 6 : index
    %c8_1468 = arith.constant 8 : index
    %c3_1469 = arith.constant 3 : index
    %610 = vector.load %arg2[%c0_1465, %c0_1466, %c6_1467, %c8_1468, %c3_1469] : memref<1x1x11x32x11xf32, #tpu.memory_space<vmem>>, vector<1x1x1x8x8xf32>
    %611 = vector.shape_cast %610 : vector<1x1x1x8x8xf32> to vector<8x8xf32>
    %c0_1470 = arith.constant 0 : index
    %c0_1471 = arith.constant 0 : index
    %c6_1472 = arith.constant 6 : index
    %c16_1473 = arith.constant 16 : index
    %c0_1474 = arith.constant 0 : index
    %612 = vector.load %arg2[%c0_1470, %c0_1471, %c6_1472, %c16_1473, %c0_1474] : memref<1x1x11x32x11xf32, #tpu.memory_space<vmem>>, vector<1x1x1x8x8xf32>
    %613 = vector.shape_cast %612 : vector<1x1x1x8x8xf32> to vector<8x8xf32>
    %c0_1475 = arith.constant 0 : index
    %c0_1476 = arith.constant 0 : index
    %c6_1477 = arith.constant 6 : index
    %c24_1478 = arith.constant 24 : index
    %c0_1479 = arith.constant 0 : index
    %614 = vector.load %arg2[%c0_1475, %c0_1476, %c6_1477, %c24_1478, %c0_1479] : memref<1x1x11x32x11xf32, #tpu.memory_space<vmem>>, vector<1x1x1x8x8xf32>
    %615 = vector.shape_cast %614 : vector<1x1x1x8x8xf32> to vector<8x8xf32>
    %c0_1480 = arith.constant 0 : index
    %c0_1481 = arith.constant 0 : index
    %c6_1482 = arith.constant 6 : index
    %c16_1483 = arith.constant 16 : index
    %c1_1484 = arith.constant 1 : index
    %616 = vector.load %arg2[%c0_1480, %c0_1481, %c6_1482, %c16_1483, %c1_1484] : memref<1x1x11x32x11xf32, #tpu.memory_space<vmem>>, vector<1x1x1x8x8xf32>
    %617 = vector.shape_cast %616 : vector<1x1x1x8x8xf32> to vector<8x8xf32>
    %c0_1485 = arith.constant 0 : index
    %c0_1486 = arith.constant 0 : index
    %c6_1487 = arith.constant 6 : index
    %c24_1488 = arith.constant 24 : index
    %c1_1489 = arith.constant 1 : index
    %618 = vector.load %arg2[%c0_1485, %c0_1486, %c6_1487, %c24_1488, %c1_1489] : memref<1x1x11x32x11xf32, #tpu.memory_space<vmem>>, vector<1x1x1x8x8xf32>
    %619 = vector.shape_cast %618 : vector<1x1x1x8x8xf32> to vector<8x8xf32>
    %c0_1490 = arith.constant 0 : index
    %c0_1491 = arith.constant 0 : index
    %c6_1492 = arith.constant 6 : index
    %c16_1493 = arith.constant 16 : index
    %c2_1494 = arith.constant 2 : index
    %620 = vector.load %arg2[%c0_1490, %c0_1491, %c6_1492, %c16_1493, %c2_1494] : memref<1x1x11x32x11xf32, #tpu.memory_space<vmem>>, vector<1x1x1x8x8xf32>
    %621 = vector.shape_cast %620 : vector<1x1x1x8x8xf32> to vector<8x8xf32>
    %c0_1495 = arith.constant 0 : index
    %c0_1496 = arith.constant 0 : index
    %c6_1497 = arith.constant 6 : index
    %c24_1498 = arith.constant 24 : index
    %c2_1499 = arith.constant 2 : index
    %622 = vector.load %arg2[%c0_1495, %c0_1496, %c6_1497, %c24_1498, %c2_1499] : memref<1x1x11x32x11xf32, #tpu.memory_space<vmem>>, vector<1x1x1x8x8xf32>
    %623 = vector.shape_cast %622 : vector<1x1x1x8x8xf32> to vector<8x8xf32>
    %c0_1500 = arith.constant 0 : index
    %c0_1501 = arith.constant 0 : index
    %c6_1502 = arith.constant 6 : index
    %c16_1503 = arith.constant 16 : index
    %c3_1504 = arith.constant 3 : index
    %624 = vector.load %arg2[%c0_1500, %c0_1501, %c6_1502, %c16_1503, %c3_1504] : memref<1x1x11x32x11xf32, #tpu.memory_space<vmem>>, vector<1x1x1x8x8xf32>
    %625 = vector.shape_cast %624 : vector<1x1x1x8x8xf32> to vector<8x8xf32>
    %c0_1505 = arith.constant 0 : index
    %c0_1506 = arith.constant 0 : index
    %c6_1507 = arith.constant 6 : index
    %c24_1508 = arith.constant 24 : index
    %c3_1509 = arith.constant 3 : index
    %626 = vector.load %arg2[%c0_1505, %c0_1506, %c6_1507, %c24_1508, %c3_1509] : memref<1x1x11x32x11xf32, #tpu.memory_space<vmem>>, vector<1x1x1x8x8xf32>
    %627 = vector.shape_cast %626 : vector<1x1x1x8x8xf32> to vector<8x8xf32>
    %c0_1510 = arith.constant 0 : index
    %c0_1511 = arith.constant 0 : index
    %c7 = arith.constant 7 : index
    %c0_1512 = arith.constant 0 : index
    %c0_1513 = arith.constant 0 : index
    %628 = vector.load %arg2[%c0_1510, %c0_1511, %c7, %c0_1512, %c0_1513] : memref<1x1x11x32x11xf32, #tpu.memory_space<vmem>>, vector<1x1x1x8x8xf32>
    %629 = vector.shape_cast %628 : vector<1x1x1x8x8xf32> to vector<8x8xf32>
    %c0_1514 = arith.constant 0 : index
    %c0_1515 = arith.constant 0 : index
    %c7_1516 = arith.constant 7 : index
    %c8_1517 = arith.constant 8 : index
    %c0_1518 = arith.constant 0 : index
    %630 = vector.load %arg2[%c0_1514, %c0_1515, %c7_1516, %c8_1517, %c0_1518] : memref<1x1x11x32x11xf32, #tpu.memory_space<vmem>>, vector<1x1x1x8x8xf32>
    %631 = vector.shape_cast %630 : vector<1x1x1x8x8xf32> to vector<8x8xf32>
    %c0_1519 = arith.constant 0 : index
    %c0_1520 = arith.constant 0 : index
    %c7_1521 = arith.constant 7 : index
    %c0_1522 = arith.constant 0 : index
    %c1_1523 = arith.constant 1 : index
    %632 = vector.load %arg2[%c0_1519, %c0_1520, %c7_1521, %c0_1522, %c1_1523] : memref<1x1x11x32x11xf32, #tpu.memory_space<vmem>>, vector<1x1x1x8x8xf32>
    %633 = vector.shape_cast %632 : vector<1x1x1x8x8xf32> to vector<8x8xf32>
    %c0_1524 = arith.constant 0 : index
    %c0_1525 = arith.constant 0 : index
    %c7_1526 = arith.constant 7 : index
    %c8_1527 = arith.constant 8 : index
    %c1_1528 = arith.constant 1 : index
    %634 = vector.load %arg2[%c0_1524, %c0_1525, %c7_1526, %c8_1527, %c1_1528] : memref<1x1x11x32x11xf32, #tpu.memory_space<vmem>>, vector<1x1x1x8x8xf32>
    %635 = vector.shape_cast %634 : vector<1x1x1x8x8xf32> to vector<8x8xf32>
    %c0_1529 = arith.constant 0 : index
    %c0_1530 = arith.constant 0 : index
    %c7_1531 = arith.constant 7 : index
    %c0_1532 = arith.constant 0 : index
    %c2_1533 = arith.constant 2 : index
    %636 = vector.load %arg2[%c0_1529, %c0_1530, %c7_1531, %c0_1532, %c2_1533] : memref<1x1x11x32x11xf32, #tpu.memory_space<vmem>>, vector<1x1x1x8x8xf32>
    %637 = vector.shape_cast %636 : vector<1x1x1x8x8xf32> to vector<8x8xf32>
    %c0_1534 = arith.constant 0 : index
    %c0_1535 = arith.constant 0 : index
    %c7_1536 = arith.constant 7 : index
    %c8_1537 = arith.constant 8 : index
    %c2_1538 = arith.constant 2 : index
    %638 = vector.load %arg2[%c0_1534, %c0_1535, %c7_1536, %c8_1537, %c2_1538] : memref<1x1x11x32x11xf32, #tpu.memory_space<vmem>>, vector<1x1x1x8x8xf32>
    %639 = vector.shape_cast %638 : vector<1x1x1x8x8xf32> to vector<8x8xf32>
    %c0_1539 = arith.constant 0 : index
    %c0_1540 = arith.constant 0 : index
    %c7_1541 = arith.constant 7 : index
    %c0_1542 = arith.constant 0 : index
    %c3_1543 = arith.constant 3 : index
    %640 = vector.load %arg2[%c0_1539, %c0_1540, %c7_1541, %c0_1542, %c3_1543] : memref<1x1x11x32x11xf32, #tpu.memory_space<vmem>>, vector<1x1x1x8x8xf32>
    %641 = vector.shape_cast %640 : vector<1x1x1x8x8xf32> to vector<8x8xf32>
    %c0_1544 = arith.constant 0 : index
    %c0_1545 = arith.constant 0 : index
    %c7_1546 = arith.constant 7 : index
    %c8_1547 = arith.constant 8 : index
    %c3_1548 = arith.constant 3 : index
    %642 = vector.load %arg2[%c0_1544, %c0_1545, %c7_1546, %c8_1547, %c3_1548] : memref<1x1x11x32x11xf32, #tpu.memory_space<vmem>>, vector<1x1x1x8x8xf32>
    %643 = vector.shape_cast %642 : vector<1x1x1x8x8xf32> to vector<8x8xf32>
    %c0_1549 = arith.constant 0 : index
    %c0_1550 = arith.constant 0 : index
    %c7_1551 = arith.constant 7 : index
    %c16_1552 = arith.constant 16 : index
    %c0_1553 = arith.constant 0 : index
    %644 = vector.load %arg2[%c0_1549, %c0_1550, %c7_1551, %c16_1552, %c0_1553] : memref<1x1x11x32x11xf32, #tpu.memory_space<vmem>>, vector<1x1x1x8x8xf32>
    %645 = vector.shape_cast %644 : vector<1x1x1x8x8xf32> to vector<8x8xf32>
    %c0_1554 = arith.constant 0 : index
    %c0_1555 = arith.constant 0 : index
    %c7_1556 = arith.constant 7 : index
    %c24_1557 = arith.constant 24 : index
    %c0_1558 = arith.constant 0 : index
    %646 = vector.load %arg2[%c0_1554, %c0_1555, %c7_1556, %c24_1557, %c0_1558] : memref<1x1x11x32x11xf32, #tpu.memory_space<vmem>>, vector<1x1x1x8x8xf32>
    %647 = vector.shape_cast %646 : vector<1x1x1x8x8xf32> to vector<8x8xf32>
    %c0_1559 = arith.constant 0 : index
    %c0_1560 = arith.constant 0 : index
    %c7_1561 = arith.constant 7 : index
    %c16_1562 = arith.constant 16 : index
    %c1_1563 = arith.constant 1 : index
    %648 = vector.load %arg2[%c0_1559, %c0_1560, %c7_1561, %c16_1562, %c1_1563] : memref<1x1x11x32x11xf32, #tpu.memory_space<vmem>>, vector<1x1x1x8x8xf32>
    %649 = vector.shape_cast %648 : vector<1x1x1x8x8xf32> to vector<8x8xf32>
    %c0_1564 = arith.constant 0 : index
    %c0_1565 = arith.constant 0 : index
    %c7_1566 = arith.constant 7 : index
    %c24_1567 = arith.constant 24 : index
    %c1_1568 = arith.constant 1 : index
    %650 = vector.load %arg2[%c0_1564, %c0_1565, %c7_1566, %c24_1567, %c1_1568] : memref<1x1x11x32x11xf32, #tpu.memory_space<vmem>>, vector<1x1x1x8x8xf32>
    %651 = vector.shape_cast %650 : vector<1x1x1x8x8xf32> to vector<8x8xf32>
    %c0_1569 = arith.constant 0 : index
    %c0_1570 = arith.constant 0 : index
    %c7_1571 = arith.constant 7 : index
    %c16_1572 = arith.constant 16 : index
    %c2_1573 = arith.constant 2 : index
    %652 = vector.load %arg2[%c0_1569, %c0_1570, %c7_1571, %c16_1572, %c2_1573] : memref<1x1x11x32x11xf32, #tpu.memory_space<vmem>>, vector<1x1x1x8x8xf32>
    %653 = vector.shape_cast %652 : vector<1x1x1x8x8xf32> to vector<8x8xf32>
    %c0_1574 = arith.constant 0 : index
    %c0_1575 = arith.constant 0 : index
    %c7_1576 = arith.constant 7 : index
    %c24_1577 = arith.constant 24 : index
    %c2_1578 = arith.constant 2 : index
    %654 = vector.load %arg2[%c0_1574, %c0_1575, %c7_1576, %c24_1577, %c2_1578] : memref<1x1x11x32x11xf32, #tpu.memory_space<vmem>>, vector<1x1x1x8x8xf32>
    %655 = vector.shape_cast %654 : vector<1x1x1x8x8xf32> to vector<8x8xf32>
    %c0_1579 = arith.constant 0 : index
    %c0_1580 = arith.constant 0 : index
    %c7_1581 = arith.constant 7 : index
    %c16_1582 = arith.constant 16 : index
    %c3_1583 = arith.constant 3 : index
    %656 = vector.load %arg2[%c0_1579, %c0_1580, %c7_1581, %c16_1582, %c3_1583] : memref<1x1x11x32x11xf32, #tpu.memory_space<vmem>>, vector<1x1x1x8x8xf32>
    %657 = vector.shape_cast %656 : vector<1x1x1x8x8xf32> to vector<8x8xf32>
    %c0_1584 = arith.constant 0 : index
    %c0_1585 = arith.constant 0 : index
    %c7_1586 = arith.constant 7 : index
    %c24_1587 = arith.constant 24 : index
    %c3_1588 = arith.constant 3 : index
    %658 = vector.load %arg2[%c0_1584, %c0_1585, %c7_1586, %c24_1587, %c3_1588] : memref<1x1x11x32x11xf32, #tpu.memory_space<vmem>>, vector<1x1x1x8x8xf32>
    %659 = vector.shape_cast %658 : vector<1x1x1x8x8xf32> to vector<8x8xf32>
    %660 = tpu.concatenate %533, %535, %537, %539, %541, %543, %545, %547, %549, %551, %553, %555, %557, %559, %561, %563 in 0 : vector<8x8xf32>, vector<8x8xf32>, vector<8x8xf32>, vector<8x8xf32>, vector<8x8xf32>, vector<8x8xf32>, vector<8x8xf32>, vector<8x8xf32>, vector<8x8xf32>, vector<8x8xf32>, vector<8x8xf32>, vector<8x8xf32>, vector<8x8xf32>, vector<8x8xf32>, vector<8x8xf32>, vector<8x8xf32> -> vector<128x8xf32>
    %661 = tpu.concatenate %565, %567, %569, %571, %573, %575, %577, %579, %581, %583, %585, %587, %589, %591, %593, %595 in 0 : vector<8x8xf32>, vector<8x8xf32>, vector<8x8xf32>, vector<8x8xf32>, vector<8x8xf32>, vector<8x8xf32>, vector<8x8xf32>, vector<8x8xf32>, vector<8x8xf32>, vector<8x8xf32>, vector<8x8xf32>, vector<8x8xf32>, vector<8x8xf32>, vector<8x8xf32>, vector<8x8xf32>, vector<8x8xf32> -> vector<128x8xf32>
    %662 = tpu.concatenate %597, %599, %601, %603, %605, %607, %609, %611, %613, %615, %617, %619, %621, %623, %625, %627 in 0 : vector<8x8xf32>, vector<8x8xf32>, vector<8x8xf32>, vector<8x8xf32>, vector<8x8xf32>, vector<8x8xf32>, vector<8x8xf32>, vector<8x8xf32>, vector<8x8xf32>, vector<8x8xf32>, vector<8x8xf32>, vector<8x8xf32>, vector<8x8xf32>, vector<8x8xf32>, vector<8x8xf32>, vector<8x8xf32> -> vector<128x8xf32>
    %663 = tpu.concatenate %629, %631, %633, %635, %637, %639, %641, %643, %645, %647, %649, %651, %653, %655, %657, %659 in 0 : vector<8x8xf32>, vector<8x8xf32>, vector<8x8xf32>, vector<8x8xf32>, vector<8x8xf32>, vector<8x8xf32>, vector<8x8xf32>, vector<8x8xf32>, vector<8x8xf32>, vector<8x8xf32>, vector<8x8xf32>, vector<8x8xf32>, vector<8x8xf32>, vector<8x8xf32>, vector<8x8xf32>, vector<8x8xf32> -> vector<128x8xf32>
    %664 = tpu.concatenate %660, %661, %662, %663 in 0 : vector<128x8xf32>, vector<128x8xf32>, vector<128x8xf32>, vector<128x8xf32> -> vector<512x8xf32>
    %c0_1589 = arith.constant 0 : index
    %c0_1590 = arith.constant 0 : index
    %c5_1591 = arith.constant 5 : index
    %c0_1592 = arith.constant 0 : index
    %c0_1593 = arith.constant 0 : index
    %665 = vector.load %arg2[%c0_1589, %c0_1590, %c5_1591, %c0_1592, %c0_1593] : memref<1x1x11x32x11xf32, #tpu.memory_space<vmem>>, vector<1x1x1x8x8xf32>
    %666 = vector.shape_cast %665 : vector<1x1x1x8x8xf32> to vector<8x8xf32>
    %c0_1594 = arith.constant 0 : index
    %c0_1595 = arith.constant 0 : index
    %c5_1596 = arith.constant 5 : index
    %c8_1597 = arith.constant 8 : index
    %c0_1598 = arith.constant 0 : index
    %667 = vector.load %arg2[%c0_1594, %c0_1595, %c5_1596, %c8_1597, %c0_1598] : memref<1x1x11x32x11xf32, #tpu.memory_space<vmem>>, vector<1x1x1x8x8xf32>
    %668 = vector.shape_cast %667 : vector<1x1x1x8x8xf32> to vector<8x8xf32>
    %c0_1599 = arith.constant 0 : index
    %c0_1600 = arith.constant 0 : index
    %c5_1601 = arith.constant 5 : index
    %c0_1602 = arith.constant 0 : index
    %c1_1603 = arith.constant 1 : index
    %669 = vector.load %arg2[%c0_1599, %c0_1600, %c5_1601, %c0_1602, %c1_1603] : memref<1x1x11x32x11xf32, #tpu.memory_space<vmem>>, vector<1x1x1x8x8xf32>
    %670 = vector.shape_cast %669 : vector<1x1x1x8x8xf32> to vector<8x8xf32>
    %c0_1604 = arith.constant 0 : index
    %c0_1605 = arith.constant 0 : index
    %c5_1606 = arith.constant 5 : index
    %c8_1607 = arith.constant 8 : index
    %c1_1608 = arith.constant 1 : index
    %671 = vector.load %arg2[%c0_1604, %c0_1605, %c5_1606, %c8_1607, %c1_1608] : memref<1x1x11x32x11xf32, #tpu.memory_space<vmem>>, vector<1x1x1x8x8xf32>
    %672 = vector.shape_cast %671 : vector<1x1x1x8x8xf32> to vector<8x8xf32>
    %c0_1609 = arith.constant 0 : index
    %c0_1610 = arith.constant 0 : index
    %c5_1611 = arith.constant 5 : index
    %c0_1612 = arith.constant 0 : index
    %c2_1613 = arith.constant 2 : index
    %673 = vector.load %arg2[%c0_1609, %c0_1610, %c5_1611, %c0_1612, %c2_1613] : memref<1x1x11x32x11xf32, #tpu.memory_space<vmem>>, vector<1x1x1x8x8xf32>
    %674 = vector.shape_cast %673 : vector<1x1x1x8x8xf32> to vector<8x8xf32>
    %c0_1614 = arith.constant 0 : index
    %c0_1615 = arith.constant 0 : index
    %c5_1616 = arith.constant 5 : index
    %c8_1617 = arith.constant 8 : index
    %c2_1618 = arith.constant 2 : index
    %675 = vector.load %arg2[%c0_1614, %c0_1615, %c5_1616, %c8_1617, %c2_1618] : memref<1x1x11x32x11xf32, #tpu.memory_space<vmem>>, vector<1x1x1x8x8xf32>
    %676 = vector.shape_cast %675 : vector<1x1x1x8x8xf32> to vector<8x8xf32>
    %c0_1619 = arith.constant 0 : index
    %c0_1620 = arith.constant 0 : index
    %c5_1621 = arith.constant 5 : index
    %c0_1622 = arith.constant 0 : index
    %c3_1623 = arith.constant 3 : index
    %677 = vector.load %arg2[%c0_1619, %c0_1620, %c5_1621, %c0_1622, %c3_1623] : memref<1x1x11x32x11xf32, #tpu.memory_space<vmem>>, vector<1x1x1x8x8xf32>
    %678 = vector.shape_cast %677 : vector<1x1x1x8x8xf32> to vector<8x8xf32>
    %c0_1624 = arith.constant 0 : index
    %c0_1625 = arith.constant 0 : index
    %c5_1626 = arith.constant 5 : index
    %c8_1627 = arith.constant 8 : index
    %c3_1628 = arith.constant 3 : index
    %679 = vector.load %arg2[%c0_1624, %c0_1625, %c5_1626, %c8_1627, %c3_1628] : memref<1x1x11x32x11xf32, #tpu.memory_space<vmem>>, vector<1x1x1x8x8xf32>
    %680 = vector.shape_cast %679 : vector<1x1x1x8x8xf32> to vector<8x8xf32>
    %c0_1629 = arith.constant 0 : index
    %c0_1630 = arith.constant 0 : index
    %c5_1631 = arith.constant 5 : index
    %c16_1632 = arith.constant 16 : index
    %c0_1633 = arith.constant 0 : index
    %681 = vector.load %arg2[%c0_1629, %c0_1630, %c5_1631, %c16_1632, %c0_1633] : memref<1x1x11x32x11xf32, #tpu.memory_space<vmem>>, vector<1x1x1x8x8xf32>
    %682 = vector.shape_cast %681 : vector<1x1x1x8x8xf32> to vector<8x8xf32>
    %c0_1634 = arith.constant 0 : index
    %c0_1635 = arith.constant 0 : index
    %c5_1636 = arith.constant 5 : index
    %c24_1637 = arith.constant 24 : index
    %c0_1638 = arith.constant 0 : index
    %683 = vector.load %arg2[%c0_1634, %c0_1635, %c5_1636, %c24_1637, %c0_1638] : memref<1x1x11x32x11xf32, #tpu.memory_space<vmem>>, vector<1x1x1x8x8xf32>
    %684 = vector.shape_cast %683 : vector<1x1x1x8x8xf32> to vector<8x8xf32>
    %c0_1639 = arith.constant 0 : index
    %c0_1640 = arith.constant 0 : index
    %c5_1641 = arith.constant 5 : index
    %c16_1642 = arith.constant 16 : index
    %c1_1643 = arith.constant 1 : index
    %685 = vector.load %arg2[%c0_1639, %c0_1640, %c5_1641, %c16_1642, %c1_1643] : memref<1x1x11x32x11xf32, #tpu.memory_space<vmem>>, vector<1x1x1x8x8xf32>
    %686 = vector.shape_cast %685 : vector<1x1x1x8x8xf32> to vector<8x8xf32>
    %c0_1644 = arith.constant 0 : index
    %c0_1645 = arith.constant 0 : index
    %c5_1646 = arith.constant 5 : index
    %c24_1647 = arith.constant 24 : index
    %c1_1648 = arith.constant 1 : index
    %687 = vector.load %arg2[%c0_1644, %c0_1645, %c5_1646, %c24_1647, %c1_1648] : memref<1x1x11x32x11xf32, #tpu.memory_space<vmem>>, vector<1x1x1x8x8xf32>
    %688 = vector.shape_cast %687 : vector<1x1x1x8x8xf32> to vector<8x8xf32>
    %c0_1649 = arith.constant 0 : index
    %c0_1650 = arith.constant 0 : index
    %c5_1651 = arith.constant 5 : index
    %c16_1652 = arith.constant 16 : index
    %c2_1653 = arith.constant 2 : index
    %689 = vector.load %arg2[%c0_1649, %c0_1650, %c5_1651, %c16_1652, %c2_1653] : memref<1x1x11x32x11xf32, #tpu.memory_space<vmem>>, vector<1x1x1x8x8xf32>
    %690 = vector.shape_cast %689 : vector<1x1x1x8x8xf32> to vector<8x8xf32>
    %c0_1654 = arith.constant 0 : index
    %c0_1655 = arith.constant 0 : index
    %c5_1656 = arith.constant 5 : index
    %c24_1657 = arith.constant 24 : index
    %c2_1658 = arith.constant 2 : index
    %691 = vector.load %arg2[%c0_1654, %c0_1655, %c5_1656, %c24_1657, %c2_1658] : memref<1x1x11x32x11xf32, #tpu.memory_space<vmem>>, vector<1x1x1x8x8xf32>
    %692 = vector.shape_cast %691 : vector<1x1x1x8x8xf32> to vector<8x8xf32>
    %c0_1659 = arith.constant 0 : index
    %c0_1660 = arith.constant 0 : index
    %c5_1661 = arith.constant 5 : index
    %c16_1662 = arith.constant 16 : index
    %c3_1663 = arith.constant 3 : index
    %693 = vector.load %arg2[%c0_1659, %c0_1660, %c5_1661, %c16_1662, %c3_1663] : memref<1x1x11x32x11xf32, #tpu.memory_space<vmem>>, vector<1x1x1x8x8xf32>
    %694 = vector.shape_cast %693 : vector<1x1x1x8x8xf32> to vector<8x8xf32>
    %c0_1664 = arith.constant 0 : index
    %c0_1665 = arith.constant 0 : index
    %c5_1666 = arith.constant 5 : index
    %c24_1667 = arith.constant 24 : index
    %c3_1668 = arith.constant 3 : index
    %695 = vector.load %arg2[%c0_1664, %c0_1665, %c5_1666, %c24_1667, %c3_1668] : memref<1x1x11x32x11xf32, #tpu.memory_space<vmem>>, vector<1x1x1x8x8xf32>
    %696 = vector.shape_cast %695 : vector<1x1x1x8x8xf32> to vector<8x8xf32>
    %c0_1669 = arith.constant 0 : index
    %c0_1670 = arith.constant 0 : index
    %c6_1671 = arith.constant 6 : index
    %c0_1672 = arith.constant 0 : index
    %c0_1673 = arith.constant 0 : index
    %697 = vector.load %arg2[%c0_1669, %c0_1670, %c6_1671, %c0_1672, %c0_1673] : memref<1x1x11x32x11xf32, #tpu.memory_space<vmem>>, vector<1x1x1x8x8xf32>
    %698 = vector.shape_cast %697 : vector<1x1x1x8x8xf32> to vector<8x8xf32>
    %c0_1674 = arith.constant 0 : index
    %c0_1675 = arith.constant 0 : index
    %c6_1676 = arith.constant 6 : index
    %c8_1677 = arith.constant 8 : index
    %c0_1678 = arith.constant 0 : index
    %699 = vector.load %arg2[%c0_1674, %c0_1675, %c6_1676, %c8_1677, %c0_1678] : memref<1x1x11x32x11xf32, #tpu.memory_space<vmem>>, vector<1x1x1x8x8xf32>
    %700 = vector.shape_cast %699 : vector<1x1x1x8x8xf32> to vector<8x8xf32>
    %c0_1679 = arith.constant 0 : index
    %c0_1680 = arith.constant 0 : index
    %c6_1681 = arith.constant 6 : index
    %c0_1682 = arith.constant 0 : index
    %c1_1683 = arith.constant 1 : index
    %701 = vector.load %arg2[%c0_1679, %c0_1680, %c6_1681, %c0_1682, %c1_1683] : memref<1x1x11x32x11xf32, #tpu.memory_space<vmem>>, vector<1x1x1x8x8xf32>
    %702 = vector.shape_cast %701 : vector<1x1x1x8x8xf32> to vector<8x8xf32>
    %c0_1684 = arith.constant 0 : index
    %c0_1685 = arith.constant 0 : index
    %c6_1686 = arith.constant 6 : index
    %c8_1687 = arith.constant 8 : index
    %c1_1688 = arith.constant 1 : index
    %703 = vector.load %arg2[%c0_1684, %c0_1685, %c6_1686, %c8_1687, %c1_1688] : memref<1x1x11x32x11xf32, #tpu.memory_space<vmem>>, vector<1x1x1x8x8xf32>
    %704 = vector.shape_cast %703 : vector<1x1x1x8x8xf32> to vector<8x8xf32>
    %c0_1689 = arith.constant 0 : index
    %c0_1690 = arith.constant 0 : index
    %c6_1691 = arith.constant 6 : index
    %c0_1692 = arith.constant 0 : index
    %c2_1693 = arith.constant 2 : index
    %705 = vector.load %arg2[%c0_1689, %c0_1690, %c6_1691, %c0_1692, %c2_1693] : memref<1x1x11x32x11xf32, #tpu.memory_space<vmem>>, vector<1x1x1x8x8xf32>
    %706 = vector.shape_cast %705 : vector<1x1x1x8x8xf32> to vector<8x8xf32>
    %c0_1694 = arith.constant 0 : index
    %c0_1695 = arith.constant 0 : index
    %c6_1696 = arith.constant 6 : index
    %c8_1697 = arith.constant 8 : index
    %c2_1698 = arith.constant 2 : index
    %707 = vector.load %arg2[%c0_1694, %c0_1695, %c6_1696, %c8_1697, %c2_1698] : memref<1x1x11x32x11xf32, #tpu.memory_space<vmem>>, vector<1x1x1x8x8xf32>
    %708 = vector.shape_cast %707 : vector<1x1x1x8x8xf32> to vector<8x8xf32>
    %c0_1699 = arith.constant 0 : index
    %c0_1700 = arith.constant 0 : index
    %c6_1701 = arith.constant 6 : index
    %c0_1702 = arith.constant 0 : index
    %c3_1703 = arith.constant 3 : index
    %709 = vector.load %arg2[%c0_1699, %c0_1700, %c6_1701, %c0_1702, %c3_1703] : memref<1x1x11x32x11xf32, #tpu.memory_space<vmem>>, vector<1x1x1x8x8xf32>
    %710 = vector.shape_cast %709 : vector<1x1x1x8x8xf32> to vector<8x8xf32>
    %c0_1704 = arith.constant 0 : index
    %c0_1705 = arith.constant 0 : index
    %c6_1706 = arith.constant 6 : index
    %c8_1707 = arith.constant 8 : index
    %c3_1708 = arith.constant 3 : index
    %711 = vector.load %arg2[%c0_1704, %c0_1705, %c6_1706, %c8_1707, %c3_1708] : memref<1x1x11x32x11xf32, #tpu.memory_space<vmem>>, vector<1x1x1x8x8xf32>
    %712 = vector.shape_cast %711 : vector<1x1x1x8x8xf32> to vector<8x8xf32>
    %c0_1709 = arith.constant 0 : index
    %c0_1710 = arith.constant 0 : index
    %c6_1711 = arith.constant 6 : index
    %c16_1712 = arith.constant 16 : index
    %c0_1713 = arith.constant 0 : index
    %713 = vector.load %arg2[%c0_1709, %c0_1710, %c6_1711, %c16_1712, %c0_1713] : memref<1x1x11x32x11xf32, #tpu.memory_space<vmem>>, vector<1x1x1x8x8xf32>
    %714 = vector.shape_cast %713 : vector<1x1x1x8x8xf32> to vector<8x8xf32>
    %c0_1714 = arith.constant 0 : index
    %c0_1715 = arith.constant 0 : index
    %c6_1716 = arith.constant 6 : index
    %c24_1717 = arith.constant 24 : index
    %c0_1718 = arith.constant 0 : index
    %715 = vector.load %arg2[%c0_1714, %c0_1715, %c6_1716, %c24_1717, %c0_1718] : memref<1x1x11x32x11xf32, #tpu.memory_space<vmem>>, vector<1x1x1x8x8xf32>
    %716 = vector.shape_cast %715 : vector<1x1x1x8x8xf32> to vector<8x8xf32>
    %c0_1719 = arith.constant 0 : index
    %c0_1720 = arith.constant 0 : index
    %c6_1721 = arith.constant 6 : index
    %c16_1722 = arith.constant 16 : index
    %c1_1723 = arith.constant 1 : index
    %717 = vector.load %arg2[%c0_1719, %c0_1720, %c6_1721, %c16_1722, %c1_1723] : memref<1x1x11x32x11xf32, #tpu.memory_space<vmem>>, vector<1x1x1x8x8xf32>
    %718 = vector.shape_cast %717 : vector<1x1x1x8x8xf32> to vector<8x8xf32>
    %c0_1724 = arith.constant 0 : index
    %c0_1725 = arith.constant 0 : index
    %c6_1726 = arith.constant 6 : index
    %c24_1727 = arith.constant 24 : index
    %c1_1728 = arith.constant 1 : index
    %719 = vector.load %arg2[%c0_1724, %c0_1725, %c6_1726, %c24_1727, %c1_1728] : memref<1x1x11x32x11xf32, #tpu.memory_space<vmem>>, vector<1x1x1x8x8xf32>
    %720 = vector.shape_cast %719 : vector<1x1x1x8x8xf32> to vector<8x8xf32>
    %c0_1729 = arith.constant 0 : index
    %c0_1730 = arith.constant 0 : index
    %c6_1731 = arith.constant 6 : index
    %c16_1732 = arith.constant 16 : index
    %c2_1733 = arith.constant 2 : index
    %721 = vector.load %arg2[%c0_1729, %c0_1730, %c6_1731, %c16_1732, %c2_1733] : memref<1x1x11x32x11xf32, #tpu.memory_space<vmem>>, vector<1x1x1x8x8xf32>
    %722 = vector.shape_cast %721 : vector<1x1x1x8x8xf32> to vector<8x8xf32>
    %c0_1734 = arith.constant 0 : index
    %c0_1735 = arith.constant 0 : index
    %c6_1736 = arith.constant 6 : index
    %c24_1737 = arith.constant 24 : index
    %c2_1738 = arith.constant 2 : index
    %723 = vector.load %arg2[%c0_1734, %c0_1735, %c6_1736, %c24_1737, %c2_1738] : memref<1x1x11x32x11xf32, #tpu.memory_space<vmem>>, vector<1x1x1x8x8xf32>
    %724 = vector.shape_cast %723 : vector<1x1x1x8x8xf32> to vector<8x8xf32>
    %c0_1739 = arith.constant 0 : index
    %c0_1740 = arith.constant 0 : index
    %c6_1741 = arith.constant 6 : index
    %c16_1742 = arith.constant 16 : index
    %c3_1743 = arith.constant 3 : index
    %725 = vector.load %arg2[%c0_1739, %c0_1740, %c6_1741, %c16_1742, %c3_1743] : memref<1x1x11x32x11xf32, #tpu.memory_space<vmem>>, vector<1x1x1x8x8xf32>
    %726 = vector.shape_cast %725 : vector<1x1x1x8x8xf32> to vector<8x8xf32>
    %c0_1744 = arith.constant 0 : index
    %c0_1745 = arith.constant 0 : index
    %c6_1746 = arith.constant 6 : index
    %c24_1747 = arith.constant 24 : index
    %c3_1748 = arith.constant 3 : index
    %727 = vector.load %arg2[%c0_1744, %c0_1745, %c6_1746, %c24_1747, %c3_1748] : memref<1x1x11x32x11xf32, #tpu.memory_space<vmem>>, vector<1x1x1x8x8xf32>
    %728 = vector.shape_cast %727 : vector<1x1x1x8x8xf32> to vector<8x8xf32>
    %c0_1749 = arith.constant 0 : index
    %c0_1750 = arith.constant 0 : index
    %c7_1751 = arith.constant 7 : index
    %c0_1752 = arith.constant 0 : index
    %c0_1753 = arith.constant 0 : index
    %729 = vector.load %arg2[%c0_1749, %c0_1750, %c7_1751, %c0_1752, %c0_1753] : memref<1x1x11x32x11xf32, #tpu.memory_space<vmem>>, vector<1x1x1x8x8xf32>
    %730 = vector.shape_cast %729 : vector<1x1x1x8x8xf32> to vector<8x8xf32>
    %c0_1754 = arith.constant 0 : index
    %c0_1755 = arith.constant 0 : index
    %c7_1756 = arith.constant 7 : index
    %c8_1757 = arith.constant 8 : index
    %c0_1758 = arith.constant 0 : index
    %731 = vector.load %arg2[%c0_1754, %c0_1755, %c7_1756, %c8_1757, %c0_1758] : memref<1x1x11x32x11xf32, #tpu.memory_space<vmem>>, vector<1x1x1x8x8xf32>
    %732 = vector.shape_cast %731 : vector<1x1x1x8x8xf32> to vector<8x8xf32>
    %c0_1759 = arith.constant 0 : index
    %c0_1760 = arith.constant 0 : index
    %c7_1761 = arith.constant 7 : index
    %c0_1762 = arith.constant 0 : index
    %c1_1763 = arith.constant 1 : index
    %733 = vector.load %arg2[%c0_1759, %c0_1760, %c7_1761, %c0_1762, %c1_1763] : memref<1x1x11x32x11xf32, #tpu.memory_space<vmem>>, vector<1x1x1x8x8xf32>
    %734 = vector.shape_cast %733 : vector<1x1x1x8x8xf32> to vector<8x8xf32>
    %c0_1764 = arith.constant 0 : index
    %c0_1765 = arith.constant 0 : index
    %c7_1766 = arith.constant 7 : index
    %c8_1767 = arith.constant 8 : index
    %c1_1768 = arith.constant 1 : index
    %735 = vector.load %arg2[%c0_1764, %c0_1765, %c7_1766, %c8_1767, %c1_1768] : memref<1x1x11x32x11xf32, #tpu.memory_space<vmem>>, vector<1x1x1x8x8xf32>
    %736 = vector.shape_cast %735 : vector<1x1x1x8x8xf32> to vector<8x8xf32>
    %c0_1769 = arith.constant 0 : index
    %c0_1770 = arith.constant 0 : index
    %c7_1771 = arith.constant 7 : index
    %c0_1772 = arith.constant 0 : index
    %c2_1773 = arith.constant 2 : index
    %737 = vector.load %arg2[%c0_1769, %c0_1770, %c7_1771, %c0_1772, %c2_1773] : memref<1x1x11x32x11xf32, #tpu.memory_space<vmem>>, vector<1x1x1x8x8xf32>
    %738 = vector.shape_cast %737 : vector<1x1x1x8x8xf32> to vector<8x8xf32>
    %c0_1774 = arith.constant 0 : index
    %c0_1775 = arith.constant 0 : index
    %c7_1776 = arith.constant 7 : index
    %c8_1777 = arith.constant 8 : index
    %c2_1778 = arith.constant 2 : index
    %739 = vector.load %arg2[%c0_1774, %c0_1775, %c7_1776, %c8_1777, %c2_1778] : memref<1x1x11x32x11xf32, #tpu.memory_space<vmem>>, vector<1x1x1x8x8xf32>
    %740 = vector.shape_cast %739 : vector<1x1x1x8x8xf32> to vector<8x8xf32>
    %c0_1779 = arith.constant 0 : index
    %c0_1780 = arith.constant 0 : index
    %c7_1781 = arith.constant 7 : index
    %c0_1782 = arith.constant 0 : index
    %c3_1783 = arith.constant 3 : index
    %741 = vector.load %arg2[%c0_1779, %c0_1780, %c7_1781, %c0_1782, %c3_1783] : memref<1x1x11x32x11xf32, #tpu.memory_space<vmem>>, vector<1x1x1x8x8xf32>
    %742 = vector.shape_cast %741 : vector<1x1x1x8x8xf32> to vector<8x8xf32>
    %c0_1784 = arith.constant 0 : index
    %c0_1785 = arith.constant 0 : index
    %c7_1786 = arith.constant 7 : index
    %c8_1787 = arith.constant 8 : index
    %c3_1788 = arith.constant 3 : index
    %743 = vector.load %arg2[%c0_1784, %c0_1785, %c7_1786, %c8_1787, %c3_1788] : memref<1x1x11x32x11xf32, #tpu.memory_space<vmem>>, vector<1x1x1x8x8xf32>
    %744 = vector.shape_cast %743 : vector<1x1x1x8x8xf32> to vector<8x8xf32>
    %c0_1789 = arith.constant 0 : index
    %c0_1790 = arith.constant 0 : index
    %c7_1791 = arith.constant 7 : index
    %c16_1792 = arith.constant 16 : index
    %c0_1793 = arith.constant 0 : index
    %745 = vector.load %arg2[%c0_1789, %c0_1790, %c7_1791, %c16_1792, %c0_1793] : memref<1x1x11x32x11xf32, #tpu.memory_space<vmem>>, vector<1x1x1x8x8xf32>
    %746 = vector.shape_cast %745 : vector<1x1x1x8x8xf32> to vector<8x8xf32>
    %c0_1794 = arith.constant 0 : index
    %c0_1795 = arith.constant 0 : index
    %c7_1796 = arith.constant 7 : index
    %c24_1797 = arith.constant 24 : index
    %c0_1798 = arith.constant 0 : index
    %747 = vector.load %arg2[%c0_1794, %c0_1795, %c7_1796, %c24_1797, %c0_1798] : memref<1x1x11x32x11xf32, #tpu.memory_space<vmem>>, vector<1x1x1x8x8xf32>
    %748 = vector.shape_cast %747 : vector<1x1x1x8x8xf32> to vector<8x8xf32>
    %c0_1799 = arith.constant 0 : index
    %c0_1800 = arith.constant 0 : index
    %c7_1801 = arith.constant 7 : index
    %c16_1802 = arith.constant 16 : index
    %c1_1803 = arith.constant 1 : index
    %749 = vector.load %arg2[%c0_1799, %c0_1800, %c7_1801, %c16_1802, %c1_1803] : memref<1x1x11x32x11xf32, #tpu.memory_space<vmem>>, vector<1x1x1x8x8xf32>
    %750 = vector.shape_cast %749 : vector<1x1x1x8x8xf32> to vector<8x8xf32>
    %c0_1804 = arith.constant 0 : index
    %c0_1805 = arith.constant 0 : index
    %c7_1806 = arith.constant 7 : index
    %c24_1807 = arith.constant 24 : index
    %c1_1808 = arith.constant 1 : index
    %751 = vector.load %arg2[%c0_1804, %c0_1805, %c7_1806, %c24_1807, %c1_1808] : memref<1x1x11x32x11xf32, #tpu.memory_space<vmem>>, vector<1x1x1x8x8xf32>
    %752 = vector.shape_cast %751 : vector<1x1x1x8x8xf32> to vector<8x8xf32>
    %c0_1809 = arith.constant 0 : index
    %c0_1810 = arith.constant 0 : index
    %c7_1811 = arith.constant 7 : index
    %c16_1812 = arith.constant 16 : index
    %c2_1813 = arith.constant 2 : index
    %753 = vector.load %arg2[%c0_1809, %c0_1810, %c7_1811, %c16_1812, %c2_1813] : memref<1x1x11x32x11xf32, #tpu.memory_space<vmem>>, vector<1x1x1x8x8xf32>
    %754 = vector.shape_cast %753 : vector<1x1x1x8x8xf32> to vector<8x8xf32>
    %c0_1814 = arith.constant 0 : index
    %c0_1815 = arith.constant 0 : index
    %c7_1816 = arith.constant 7 : index
    %c24_1817 = arith.constant 24 : index
    %c2_1818 = arith.constant 2 : index
    %755 = vector.load %arg2[%c0_1814, %c0_1815, %c7_1816, %c24_1817, %c2_1818] : memref<1x1x11x32x11xf32, #tpu.memory_space<vmem>>, vector<1x1x1x8x8xf32>
    %756 = vector.shape_cast %755 : vector<1x1x1x8x8xf32> to vector<8x8xf32>
    %c0_1819 = arith.constant 0 : index
    %c0_1820 = arith.constant 0 : index
    %c7_1821 = arith.constant 7 : index
    %c16_1822 = arith.constant 16 : index
    %c3_1823 = arith.constant 3 : index
    %757 = vector.load %arg2[%c0_1819, %c0_1820, %c7_1821, %c16_1822, %c3_1823] : memref<1x1x11x32x11xf32, #tpu.memory_space<vmem>>, vector<1x1x1x8x8xf32>
    %758 = vector.shape_cast %757 : vector<1x1x1x8x8xf32> to vector<8x8xf32>
    %c0_1824 = arith.constant 0 : index
    %c0_1825 = arith.constant 0 : index
    %c7_1826 = arith.constant 7 : index
    %c24_1827 = arith.constant 24 : index
    %c3_1828 = arith.constant 3 : index
    %759 = vector.load %arg2[%c0_1824, %c0_1825, %c7_1826, %c24_1827, %c3_1828] : memref<1x1x11x32x11xf32, #tpu.memory_space<vmem>>, vector<1x1x1x8x8xf32>
    %760 = vector.shape_cast %759 : vector<1x1x1x8x8xf32> to vector<8x8xf32>
    %c0_1829 = arith.constant 0 : index
    %c0_1830 = arith.constant 0 : index
    %c8_1831 = arith.constant 8 : index
    %c0_1832 = arith.constant 0 : index
    %c0_1833 = arith.constant 0 : index
    %761 = vector.load %arg2[%c0_1829, %c0_1830, %c8_1831, %c0_1832, %c0_1833] : memref<1x1x11x32x11xf32, #tpu.memory_space<vmem>>, vector<1x1x1x8x8xf32>
    %762 = vector.shape_cast %761 : vector<1x1x1x8x8xf32> to vector<8x8xf32>
    %c0_1834 = arith.constant 0 : index
    %c0_1835 = arith.constant 0 : index
    %c8_1836 = arith.constant 8 : index
    %c8_1837 = arith.constant 8 : index
    %c0_1838 = arith.constant 0 : index
    %763 = vector.load %arg2[%c0_1834, %c0_1835, %c8_1836, %c8_1837, %c0_1838] : memref<1x1x11x32x11xf32, #tpu.memory_space<vmem>>, vector<1x1x1x8x8xf32>
    %764 = vector.shape_cast %763 : vector<1x1x1x8x8xf32> to vector<8x8xf32>
    %c0_1839 = arith.constant 0 : index
    %c0_1840 = arith.constant 0 : index
    %c8_1841 = arith.constant 8 : index
    %c0_1842 = arith.constant 0 : index
    %c1_1843 = arith.constant 1 : index
    %765 = vector.load %arg2[%c0_1839, %c0_1840, %c8_1841, %c0_1842, %c1_1843] : memref<1x1x11x32x11xf32, #tpu.memory_space<vmem>>, vector<1x1x1x8x8xf32>
    %766 = vector.shape_cast %765 : vector<1x1x1x8x8xf32> to vector<8x8xf32>
    %c0_1844 = arith.constant 0 : index
    %c0_1845 = arith.constant 0 : index
    %c8_1846 = arith.constant 8 : index
    %c8_1847 = arith.constant 8 : index
    %c1_1848 = arith.constant 1 : index
    %767 = vector.load %arg2[%c0_1844, %c0_1845, %c8_1846, %c8_1847, %c1_1848] : memref<1x1x11x32x11xf32, #tpu.memory_space<vmem>>, vector<1x1x1x8x8xf32>
    %768 = vector.shape_cast %767 : vector<1x1x1x8x8xf32> to vector<8x8xf32>
    %c0_1849 = arith.constant 0 : index
    %c0_1850 = arith.constant 0 : index
    %c8_1851 = arith.constant 8 : index
    %c0_1852 = arith.constant 0 : index
    %c2_1853 = arith.constant 2 : index
    %769 = vector.load %arg2[%c0_1849, %c0_1850, %c8_1851, %c0_1852, %c2_1853] : memref<1x1x11x32x11xf32, #tpu.memory_space<vmem>>, vector<1x1x1x8x8xf32>
    %770 = vector.shape_cast %769 : vector<1x1x1x8x8xf32> to vector<8x8xf32>
    %c0_1854 = arith.constant 0 : index
    %c0_1855 = arith.constant 0 : index
    %c8_1856 = arith.constant 8 : index
    %c8_1857 = arith.constant 8 : index
    %c2_1858 = arith.constant 2 : index
    %771 = vector.load %arg2[%c0_1854, %c0_1855, %c8_1856, %c8_1857, %c2_1858] : memref<1x1x11x32x11xf32, #tpu.memory_space<vmem>>, vector<1x1x1x8x8xf32>
    %772 = vector.shape_cast %771 : vector<1x1x1x8x8xf32> to vector<8x8xf32>
    %c0_1859 = arith.constant 0 : index
    %c0_1860 = arith.constant 0 : index
    %c8_1861 = arith.constant 8 : index
    %c0_1862 = arith.constant 0 : index
    %c3_1863 = arith.constant 3 : index
    %773 = vector.load %arg2[%c0_1859, %c0_1860, %c8_1861, %c0_1862, %c3_1863] : memref<1x1x11x32x11xf32, #tpu.memory_space<vmem>>, vector<1x1x1x8x8xf32>
    %774 = vector.shape_cast %773 : vector<1x1x1x8x8xf32> to vector<8x8xf32>
    %c0_1864 = arith.constant 0 : index
    %c0_1865 = arith.constant 0 : index
    %c8_1866 = arith.constant 8 : index
    %c8_1867 = arith.constant 8 : index
    %c3_1868 = arith.constant 3 : index
    %775 = vector.load %arg2[%c0_1864, %c0_1865, %c8_1866, %c8_1867, %c3_1868] : memref<1x1x11x32x11xf32, #tpu.memory_space<vmem>>, vector<1x1x1x8x8xf32>
    %776 = vector.shape_cast %775 : vector<1x1x1x8x8xf32> to vector<8x8xf32>
    %c0_1869 = arith.constant 0 : index
    %c0_1870 = arith.constant 0 : index
    %c8_1871 = arith.constant 8 : index
    %c16_1872 = arith.constant 16 : index
    %c0_1873 = arith.constant 0 : index
    %777 = vector.load %arg2[%c0_1869, %c0_1870, %c8_1871, %c16_1872, %c0_1873] : memref<1x1x11x32x11xf32, #tpu.memory_space<vmem>>, vector<1x1x1x8x8xf32>
    %778 = vector.shape_cast %777 : vector<1x1x1x8x8xf32> to vector<8x8xf32>
    %c0_1874 = arith.constant 0 : index
    %c0_1875 = arith.constant 0 : index
    %c8_1876 = arith.constant 8 : index
    %c24_1877 = arith.constant 24 : index
    %c0_1878 = arith.constant 0 : index
    %779 = vector.load %arg2[%c0_1874, %c0_1875, %c8_1876, %c24_1877, %c0_1878] : memref<1x1x11x32x11xf32, #tpu.memory_space<vmem>>, vector<1x1x1x8x8xf32>
    %780 = vector.shape_cast %779 : vector<1x1x1x8x8xf32> to vector<8x8xf32>
    %c0_1879 = arith.constant 0 : index
    %c0_1880 = arith.constant 0 : index
    %c8_1881 = arith.constant 8 : index
    %c16_1882 = arith.constant 16 : index
    %c1_1883 = arith.constant 1 : index
    %781 = vector.load %arg2[%c0_1879, %c0_1880, %c8_1881, %c16_1882, %c1_1883] : memref<1x1x11x32x11xf32, #tpu.memory_space<vmem>>, vector<1x1x1x8x8xf32>
    %782 = vector.shape_cast %781 : vector<1x1x1x8x8xf32> to vector<8x8xf32>
    %c0_1884 = arith.constant 0 : index
    %c0_1885 = arith.constant 0 : index
    %c8_1886 = arith.constant 8 : index
    %c24_1887 = arith.constant 24 : index
    %c1_1888 = arith.constant 1 : index
    %783 = vector.load %arg2[%c0_1884, %c0_1885, %c8_1886, %c24_1887, %c1_1888] : memref<1x1x11x32x11xf32, #tpu.memory_space<vmem>>, vector<1x1x1x8x8xf32>
    %784 = vector.shape_cast %783 : vector<1x1x1x8x8xf32> to vector<8x8xf32>
    %c0_1889 = arith.constant 0 : index
    %c0_1890 = arith.constant 0 : index
    %c8_1891 = arith.constant 8 : index
    %c16_1892 = arith.constant 16 : index
    %c2_1893 = arith.constant 2 : index
    %785 = vector.load %arg2[%c0_1889, %c0_1890, %c8_1891, %c16_1892, %c2_1893] : memref<1x1x11x32x11xf32, #tpu.memory_space<vmem>>, vector<1x1x1x8x8xf32>
    %786 = vector.shape_cast %785 : vector<1x1x1x8x8xf32> to vector<8x8xf32>
    %c0_1894 = arith.constant 0 : index
    %c0_1895 = arith.constant 0 : index
    %c8_1896 = arith.constant 8 : index
    %c24_1897 = arith.constant 24 : index
    %c2_1898 = arith.constant 2 : index
    %787 = vector.load %arg2[%c0_1894, %c0_1895, %c8_1896, %c24_1897, %c2_1898] : memref<1x1x11x32x11xf32, #tpu.memory_space<vmem>>, vector<1x1x1x8x8xf32>
    %788 = vector.shape_cast %787 : vector<1x1x1x8x8xf32> to vector<8x8xf32>
    %c0_1899 = arith.constant 0 : index
    %c0_1900 = arith.constant 0 : index
    %c8_1901 = arith.constant 8 : index
    %c16_1902 = arith.constant 16 : index
    %c3_1903 = arith.constant 3 : index
    %789 = vector.load %arg2[%c0_1899, %c0_1900, %c8_1901, %c16_1902, %c3_1903] : memref<1x1x11x32x11xf32, #tpu.memory_space<vmem>>, vector<1x1x1x8x8xf32>
    %790 = vector.shape_cast %789 : vector<1x1x1x8x8xf32> to vector<8x8xf32>
    %c0_1904 = arith.constant 0 : index
    %c0_1905 = arith.constant 0 : index
    %c8_1906 = arith.constant 8 : index
    %c24_1907 = arith.constant 24 : index
    %c3_1908 = arith.constant 3 : index
    %791 = vector.load %arg2[%c0_1904, %c0_1905, %c8_1906, %c24_1907, %c3_1908] : memref<1x1x11x32x11xf32, #tpu.memory_space<vmem>>, vector<1x1x1x8x8xf32>
    %792 = vector.shape_cast %791 : vector<1x1x1x8x8xf32> to vector<8x8xf32>
    %793 = tpu.concatenate %666, %668, %670, %672, %674, %676, %678, %680, %682, %684, %686, %688, %690, %692, %694, %696 in 0 : vector<8x8xf32>, vector<8x8xf32>, vector<8x8xf32>, vector<8x8xf32>, vector<8x8xf32>, vector<8x8xf32>, vector<8x8xf32>, vector<8x8xf32>, vector<8x8xf32>, vector<8x8xf32>, vector<8x8xf32>, vector<8x8xf32>, vector<8x8xf32>, vector<8x8xf32>, vector<8x8xf32>, vector<8x8xf32> -> vector<128x8xf32>
    %794 = tpu.concatenate %698, %700, %702, %704, %706, %708, %710, %712, %714, %716, %718, %720, %722, %724, %726, %728 in 0 : vector<8x8xf32>, vector<8x8xf32>, vector<8x8xf32>, vector<8x8xf32>, vector<8x8xf32>, vector<8x8xf32>, vector<8x8xf32>, vector<8x8xf32>, vector<8x8xf32>, vector<8x8xf32>, vector<8x8xf32>, vector<8x8xf32>, vector<8x8xf32>, vector<8x8xf32>, vector<8x8xf32>, vector<8x8xf32> -> vector<128x8xf32>
    %795 = tpu.concatenate %730, %732, %734, %736, %738, %740, %742, %744, %746, %748, %750, %752, %754, %756, %758, %760 in 0 : vector<8x8xf32>, vector<8x8xf32>, vector<8x8xf32>, vector<8x8xf32>, vector<8x8xf32>, vector<8x8xf32>, vector<8x8xf32>, vector<8x8xf32>, vector<8x8xf32>, vector<8x8xf32>, vector<8x8xf32>, vector<8x8xf32>, vector<8x8xf32>, vector<8x8xf32>, vector<8x8xf32>, vector<8x8xf32> -> vector<128x8xf32>
    %796 = tpu.concatenate %762, %764, %766, %768, %770, %772, %774, %776, %778, %780, %782, %784, %786, %788, %790, %792 in 0 : vector<8x8xf32>, vector<8x8xf32>, vector<8x8xf32>, vector<8x8xf32>, vector<8x8xf32>, vector<8x8xf32>, vector<8x8xf32>, vector<8x8xf32>, vector<8x8xf32>, vector<8x8xf32>, vector<8x8xf32>, vector<8x8xf32>, vector<8x8xf32>, vector<8x8xf32>, vector<8x8xf32>, vector<8x8xf32> -> vector<128x8xf32>
    %797 = tpu.concatenate %793, %794, %795, %796 in 0 : vector<128x8xf32>, vector<128x8xf32>, vector<128x8xf32>, vector<128x8xf32> -> vector<512x8xf32>
    %c0_1909 = arith.constant 0 : index
    %c0_1910 = arith.constant 0 : index
    %c6_1911 = arith.constant 6 : index
    %c0_1912 = arith.constant 0 : index
    %c0_1913 = arith.constant 0 : index
    %798 = vector.load %arg2[%c0_1909, %c0_1910, %c6_1911, %c0_1912, %c0_1913] : memref<1x1x11x32x11xf32, #tpu.memory_space<vmem>>, vector<1x1x1x8x8xf32>
    %799 = vector.shape_cast %798 : vector<1x1x1x8x8xf32> to vector<8x8xf32>
    %c0_1914 = arith.constant 0 : index
    %c0_1915 = arith.constant 0 : index
    %c6_1916 = arith.constant 6 : index
    %c8_1917 = arith.constant 8 : index
    %c0_1918 = arith.constant 0 : index
    %800 = vector.load %arg2[%c0_1914, %c0_1915, %c6_1916, %c8_1917, %c0_1918] : memref<1x1x11x32x11xf32, #tpu.memory_space<vmem>>, vector<1x1x1x8x8xf32>
    %801 = vector.shape_cast %800 : vector<1x1x1x8x8xf32> to vector<8x8xf32>
    %c0_1919 = arith.constant 0 : index
    %c0_1920 = arith.constant 0 : index
    %c6_1921 = arith.constant 6 : index
    %c0_1922 = arith.constant 0 : index
    %c1_1923 = arith.constant 1 : index
    %802 = vector.load %arg2[%c0_1919, %c0_1920, %c6_1921, %c0_1922, %c1_1923] : memref<1x1x11x32x11xf32, #tpu.memory_space<vmem>>, vector<1x1x1x8x8xf32>
    %803 = vector.shape_cast %802 : vector<1x1x1x8x8xf32> to vector<8x8xf32>
    %c0_1924 = arith.constant 0 : index
    %c0_1925 = arith.constant 0 : index
    %c6_1926 = arith.constant 6 : index
    %c8_1927 = arith.constant 8 : index
    %c1_1928 = arith.constant 1 : index
    %804 = vector.load %arg2[%c0_1924, %c0_1925, %c6_1926, %c8_1927, %c1_1928] : memref<1x1x11x32x11xf32, #tpu.memory_space<vmem>>, vector<1x1x1x8x8xf32>
    %805 = vector.shape_cast %804 : vector<1x1x1x8x8xf32> to vector<8x8xf32>
    %c0_1929 = arith.constant 0 : index
    %c0_1930 = arith.constant 0 : index
    %c6_1931 = arith.constant 6 : index
    %c0_1932 = arith.constant 0 : index
    %c2_1933 = arith.constant 2 : index
    %806 = vector.load %arg2[%c0_1929, %c0_1930, %c6_1931, %c0_1932, %c2_1933] : memref<1x1x11x32x11xf32, #tpu.memory_space<vmem>>, vector<1x1x1x8x8xf32>
    %807 = vector.shape_cast %806 : vector<1x1x1x8x8xf32> to vector<8x8xf32>
    %c0_1934 = arith.constant 0 : index
    %c0_1935 = arith.constant 0 : index
    %c6_1936 = arith.constant 6 : index
    %c8_1937 = arith.constant 8 : index
    %c2_1938 = arith.constant 2 : index
    %808 = vector.load %arg2[%c0_1934, %c0_1935, %c6_1936, %c8_1937, %c2_1938] : memref<1x1x11x32x11xf32, #tpu.memory_space<vmem>>, vector<1x1x1x8x8xf32>
    %809 = vector.shape_cast %808 : vector<1x1x1x8x8xf32> to vector<8x8xf32>
    %c0_1939 = arith.constant 0 : index
    %c0_1940 = arith.constant 0 : index
    %c6_1941 = arith.constant 6 : index
    %c0_1942 = arith.constant 0 : index
    %c3_1943 = arith.constant 3 : index
    %810 = vector.load %arg2[%c0_1939, %c0_1940, %c6_1941, %c0_1942, %c3_1943] : memref<1x1x11x32x11xf32, #tpu.memory_space<vmem>>, vector<1x1x1x8x8xf32>
    %811 = vector.shape_cast %810 : vector<1x1x1x8x8xf32> to vector<8x8xf32>
    %c0_1944 = arith.constant 0 : index
    %c0_1945 = arith.constant 0 : index
    %c6_1946 = arith.constant 6 : index
    %c8_1947 = arith.constant 8 : index
    %c3_1948 = arith.constant 3 : index
    %812 = vector.load %arg2[%c0_1944, %c0_1945, %c6_1946, %c8_1947, %c3_1948] : memref<1x1x11x32x11xf32, #tpu.memory_space<vmem>>, vector<1x1x1x8x8xf32>
    %813 = vector.shape_cast %812 : vector<1x1x1x8x8xf32> to vector<8x8xf32>
    %c0_1949 = arith.constant 0 : index
    %c0_1950 = arith.constant 0 : index
    %c6_1951 = arith.constant 6 : index
    %c16_1952 = arith.constant 16 : index
    %c0_1953 = arith.constant 0 : index
    %814 = vector.load %arg2[%c0_1949, %c0_1950, %c6_1951, %c16_1952, %c0_1953] : memref<1x1x11x32x11xf32, #tpu.memory_space<vmem>>, vector<1x1x1x8x8xf32>
    %815 = vector.shape_cast %814 : vector<1x1x1x8x8xf32> to vector<8x8xf32>
    %c0_1954 = arith.constant 0 : index
    %c0_1955 = arith.constant 0 : index
    %c6_1956 = arith.constant 6 : index
    %c24_1957 = arith.constant 24 : index
    %c0_1958 = arith.constant 0 : index
    %816 = vector.load %arg2[%c0_1954, %c0_1955, %c6_1956, %c24_1957, %c0_1958] : memref<1x1x11x32x11xf32, #tpu.memory_space<vmem>>, vector<1x1x1x8x8xf32>
    %817 = vector.shape_cast %816 : vector<1x1x1x8x8xf32> to vector<8x8xf32>
    %c0_1959 = arith.constant 0 : index
    %c0_1960 = arith.constant 0 : index
    %c6_1961 = arith.constant 6 : index
    %c16_1962 = arith.constant 16 : index
    %c1_1963 = arith.constant 1 : index
    %818 = vector.load %arg2[%c0_1959, %c0_1960, %c6_1961, %c16_1962, %c1_1963] : memref<1x1x11x32x11xf32, #tpu.memory_space<vmem>>, vector<1x1x1x8x8xf32>
    %819 = vector.shape_cast %818 : vector<1x1x1x8x8xf32> to vector<8x8xf32>
    %c0_1964 = arith.constant 0 : index
    %c0_1965 = arith.constant 0 : index
    %c6_1966 = arith.constant 6 : index
    %c24_1967 = arith.constant 24 : index
    %c1_1968 = arith.constant 1 : index
    %820 = vector.load %arg2[%c0_1964, %c0_1965, %c6_1966, %c24_1967, %c1_1968] : memref<1x1x11x32x11xf32, #tpu.memory_space<vmem>>, vector<1x1x1x8x8xf32>
    %821 = vector.shape_cast %820 : vector<1x1x1x8x8xf32> to vector<8x8xf32>
    %c0_1969 = arith.constant 0 : index
    %c0_1970 = arith.constant 0 : index
    %c6_1971 = arith.constant 6 : index
    %c16_1972 = arith.constant 16 : index
    %c2_1973 = arith.constant 2 : index
    %822 = vector.load %arg2[%c0_1969, %c0_1970, %c6_1971, %c16_1972, %c2_1973] : memref<1x1x11x32x11xf32, #tpu.memory_space<vmem>>, vector<1x1x1x8x8xf32>
    %823 = vector.shape_cast %822 : vector<1x1x1x8x8xf32> to vector<8x8xf32>
    %c0_1974 = arith.constant 0 : index
    %c0_1975 = arith.constant 0 : index
    %c6_1976 = arith.constant 6 : index
    %c24_1977 = arith.constant 24 : index
    %c2_1978 = arith.constant 2 : index
    %824 = vector.load %arg2[%c0_1974, %c0_1975, %c6_1976, %c24_1977, %c2_1978] : memref<1x1x11x32x11xf32, #tpu.memory_space<vmem>>, vector<1x1x1x8x8xf32>
    %825 = vector.shape_cast %824 : vector<1x1x1x8x8xf32> to vector<8x8xf32>
    %c0_1979 = arith.constant 0 : index
    %c0_1980 = arith.constant 0 : index
    %c6_1981 = arith.constant 6 : index
    %c16_1982 = arith.constant 16 : index
    %c3_1983 = arith.constant 3 : index
    %826 = vector.load %arg2[%c0_1979, %c0_1980, %c6_1981, %c16_1982, %c3_1983] : memref<1x1x11x32x11xf32, #tpu.memory_space<vmem>>, vector<1x1x1x8x8xf32>
    %827 = vector.shape_cast %826 : vector<1x1x1x8x8xf32> to vector<8x8xf32>
    %c0_1984 = arith.constant 0 : index
    %c0_1985 = arith.constant 0 : index
    %c6_1986 = arith.constant 6 : index
    %c24_1987 = arith.constant 24 : index
    %c3_1988 = arith.constant 3 : index
    %828 = vector.load %arg2[%c0_1984, %c0_1985, %c6_1986, %c24_1987, %c3_1988] : memref<1x1x11x32x11xf32, #tpu.memory_space<vmem>>, vector<1x1x1x8x8xf32>
    %829 = vector.shape_cast %828 : vector<1x1x1x8x8xf32> to vector<8x8xf32>
    %c0_1989 = arith.constant 0 : index
    %c0_1990 = arith.constant 0 : index
    %c7_1991 = arith.constant 7 : index
    %c0_1992 = arith.constant 0 : index
    %c0_1993 = arith.constant 0 : index
    %830 = vector.load %arg2[%c0_1989, %c0_1990, %c7_1991, %c0_1992, %c0_1993] : memref<1x1x11x32x11xf32, #tpu.memory_space<vmem>>, vector<1x1x1x8x8xf32>
    %831 = vector.shape_cast %830 : vector<1x1x1x8x8xf32> to vector<8x8xf32>
    %c0_1994 = arith.constant 0 : index
    %c0_1995 = arith.constant 0 : index
    %c7_1996 = arith.constant 7 : index
    %c8_1997 = arith.constant 8 : index
    %c0_1998 = arith.constant 0 : index
    %832 = vector.load %arg2[%c0_1994, %c0_1995, %c7_1996, %c8_1997, %c0_1998] : memref<1x1x11x32x11xf32, #tpu.memory_space<vmem>>, vector<1x1x1x8x8xf32>
    %833 = vector.shape_cast %832 : vector<1x1x1x8x8xf32> to vector<8x8xf32>
    %c0_1999 = arith.constant 0 : index
    %c0_2000 = arith.constant 0 : index
    %c7_2001 = arith.constant 7 : index
    %c0_2002 = arith.constant 0 : index
    %c1_2003 = arith.constant 1 : index
    %834 = vector.load %arg2[%c0_1999, %c0_2000, %c7_2001, %c0_2002, %c1_2003] : memref<1x1x11x32x11xf32, #tpu.memory_space<vmem>>, vector<1x1x1x8x8xf32>
    %835 = vector.shape_cast %834 : vector<1x1x1x8x8xf32> to vector<8x8xf32>
    %c0_2004 = arith.constant 0 : index
    %c0_2005 = arith.constant 0 : index
    %c7_2006 = arith.constant 7 : index
    %c8_2007 = arith.constant 8 : index
    %c1_2008 = arith.constant 1 : index
    %836 = vector.load %arg2[%c0_2004, %c0_2005, %c7_2006, %c8_2007, %c1_2008] : memref<1x1x11x32x11xf32, #tpu.memory_space<vmem>>, vector<1x1x1x8x8xf32>
    %837 = vector.shape_cast %836 : vector<1x1x1x8x8xf32> to vector<8x8xf32>
    %c0_2009 = arith.constant 0 : index
    %c0_2010 = arith.constant 0 : index
    %c7_2011 = arith.constant 7 : index
    %c0_2012 = arith.constant 0 : index
    %c2_2013 = arith.constant 2 : index
    %838 = vector.load %arg2[%c0_2009, %c0_2010, %c7_2011, %c0_2012, %c2_2013] : memref<1x1x11x32x11xf32, #tpu.memory_space<vmem>>, vector<1x1x1x8x8xf32>
    %839 = vector.shape_cast %838 : vector<1x1x1x8x8xf32> to vector<8x8xf32>
    %c0_2014 = arith.constant 0 : index
    %c0_2015 = arith.constant 0 : index
    %c7_2016 = arith.constant 7 : index
    %c8_2017 = arith.constant 8 : index
    %c2_2018 = arith.constant 2 : index
    %840 = vector.load %arg2[%c0_2014, %c0_2015, %c7_2016, %c8_2017, %c2_2018] : memref<1x1x11x32x11xf32, #tpu.memory_space<vmem>>, vector<1x1x1x8x8xf32>
    %841 = vector.shape_cast %840 : vector<1x1x1x8x8xf32> to vector<8x8xf32>
    %c0_2019 = arith.constant 0 : index
    %c0_2020 = arith.constant 0 : index
    %c7_2021 = arith.constant 7 : index
    %c0_2022 = arith.constant 0 : index
    %c3_2023 = arith.constant 3 : index
    %842 = vector.load %arg2[%c0_2019, %c0_2020, %c7_2021, %c0_2022, %c3_2023] : memref<1x1x11x32x11xf32, #tpu.memory_space<vmem>>, vector<1x1x1x8x8xf32>
    %843 = vector.shape_cast %842 : vector<1x1x1x8x8xf32> to vector<8x8xf32>
    %c0_2024 = arith.constant 0 : index
    %c0_2025 = arith.constant 0 : index
    %c7_2026 = arith.constant 7 : index
    %c8_2027 = arith.constant 8 : index
    %c3_2028 = arith.constant 3 : index
    %844 = vector.load %arg2[%c0_2024, %c0_2025, %c7_2026, %c8_2027, %c3_2028] : memref<1x1x11x32x11xf32, #tpu.memory_space<vmem>>, vector<1x1x1x8x8xf32>
    %845 = vector.shape_cast %844 : vector<1x1x1x8x8xf32> to vector<8x8xf32>
    %c0_2029 = arith.constant 0 : index
    %c0_2030 = arith.constant 0 : index
    %c7_2031 = arith.constant 7 : index
    %c16_2032 = arith.constant 16 : index
    %c0_2033 = arith.constant 0 : index
    %846 = vector.load %arg2[%c0_2029, %c0_2030, %c7_2031, %c16_2032, %c0_2033] : memref<1x1x11x32x11xf32, #tpu.memory_space<vmem>>, vector<1x1x1x8x8xf32>
    %847 = vector.shape_cast %846 : vector<1x1x1x8x8xf32> to vector<8x8xf32>
    %c0_2034 = arith.constant 0 : index
    %c0_2035 = arith.constant 0 : index
    %c7_2036 = arith.constant 7 : index
    %c24_2037 = arith.constant 24 : index
    %c0_2038 = arith.constant 0 : index
    %848 = vector.load %arg2[%c0_2034, %c0_2035, %c7_2036, %c24_2037, %c0_2038] : memref<1x1x11x32x11xf32, #tpu.memory_space<vmem>>, vector<1x1x1x8x8xf32>
    %849 = vector.shape_cast %848 : vector<1x1x1x8x8xf32> to vector<8x8xf32>
    %c0_2039 = arith.constant 0 : index
    %c0_2040 = arith.constant 0 : index
    %c7_2041 = arith.constant 7 : index
    %c16_2042 = arith.constant 16 : index
    %c1_2043 = arith.constant 1 : index
    %850 = vector.load %arg2[%c0_2039, %c0_2040, %c7_2041, %c16_2042, %c1_2043] : memref<1x1x11x32x11xf32, #tpu.memory_space<vmem>>, vector<1x1x1x8x8xf32>
    %851 = vector.shape_cast %850 : vector<1x1x1x8x8xf32> to vector<8x8xf32>
    %c0_2044 = arith.constant 0 : index
    %c0_2045 = arith.constant 0 : index
    %c7_2046 = arith.constant 7 : index
    %c24_2047 = arith.constant 24 : index
    %c1_2048 = arith.constant 1 : index
    %852 = vector.load %arg2[%c0_2044, %c0_2045, %c7_2046, %c24_2047, %c1_2048] : memref<1x1x11x32x11xf32, #tpu.memory_space<vmem>>, vector<1x1x1x8x8xf32>
    %853 = vector.shape_cast %852 : vector<1x1x1x8x8xf32> to vector<8x8xf32>
    %c0_2049 = arith.constant 0 : index
    %c0_2050 = arith.constant 0 : index
    %c7_2051 = arith.constant 7 : index
    %c16_2052 = arith.constant 16 : index
    %c2_2053 = arith.constant 2 : index
    %854 = vector.load %arg2[%c0_2049, %c0_2050, %c7_2051, %c16_2052, %c2_2053] : memref<1x1x11x32x11xf32, #tpu.memory_space<vmem>>, vector<1x1x1x8x8xf32>
    %855 = vector.shape_cast %854 : vector<1x1x1x8x8xf32> to vector<8x8xf32>
    %c0_2054 = arith.constant 0 : index
    %c0_2055 = arith.constant 0 : index
    %c7_2056 = arith.constant 7 : index
    %c24_2057 = arith.constant 24 : index
    %c2_2058 = arith.constant 2 : index
    %856 = vector.load %arg2[%c0_2054, %c0_2055, %c7_2056, %c24_2057, %c2_2058] : memref<1x1x11x32x11xf32, #tpu.memory_space<vmem>>, vector<1x1x1x8x8xf32>
    %857 = vector.shape_cast %856 : vector<1x1x1x8x8xf32> to vector<8x8xf32>
    %c0_2059 = arith.constant 0 : index
    %c0_2060 = arith.constant 0 : index
    %c7_2061 = arith.constant 7 : index
    %c16_2062 = arith.constant 16 : index
    %c3_2063 = arith.constant 3 : index
    %858 = vector.load %arg2[%c0_2059, %c0_2060, %c7_2061, %c16_2062, %c3_2063] : memref<1x1x11x32x11xf32, #tpu.memory_space<vmem>>, vector<1x1x1x8x8xf32>
    %859 = vector.shape_cast %858 : vector<1x1x1x8x8xf32> to vector<8x8xf32>
    %c0_2064 = arith.constant 0 : index
    %c0_2065 = arith.constant 0 : index
    %c7_2066 = arith.constant 7 : index
    %c24_2067 = arith.constant 24 : index
    %c3_2068 = arith.constant 3 : index
    %860 = vector.load %arg2[%c0_2064, %c0_2065, %c7_2066, %c24_2067, %c3_2068] : memref<1x1x11x32x11xf32, #tpu.memory_space<vmem>>, vector<1x1x1x8x8xf32>
    %861 = vector.shape_cast %860 : vector<1x1x1x8x8xf32> to vector<8x8xf32>
    %c0_2069 = arith.constant 0 : index
    %c0_2070 = arith.constant 0 : index
    %c8_2071 = arith.constant 8 : index
    %c0_2072 = arith.constant 0 : index
    %c0_2073 = arith.constant 0 : index
    %862 = vector.load %arg2[%c0_2069, %c0_2070, %c8_2071, %c0_2072, %c0_2073] : memref<1x1x11x32x11xf32, #tpu.memory_space<vmem>>, vector<1x1x1x8x8xf32>
    %863 = vector.shape_cast %862 : vector<1x1x1x8x8xf32> to vector<8x8xf32>
    %c0_2074 = arith.constant 0 : index
    %c0_2075 = arith.constant 0 : index
    %c8_2076 = arith.constant 8 : index
    %c8_2077 = arith.constant 8 : index
    %c0_2078 = arith.constant 0 : index
    %864 = vector.load %arg2[%c0_2074, %c0_2075, %c8_2076, %c8_2077, %c0_2078] : memref<1x1x11x32x11xf32, #tpu.memory_space<vmem>>, vector<1x1x1x8x8xf32>
    %865 = vector.shape_cast %864 : vector<1x1x1x8x8xf32> to vector<8x8xf32>
    %c0_2079 = arith.constant 0 : index
    %c0_2080 = arith.constant 0 : index
    %c8_2081 = arith.constant 8 : index
    %c0_2082 = arith.constant 0 : index
    %c1_2083 = arith.constant 1 : index
    %866 = vector.load %arg2[%c0_2079, %c0_2080, %c8_2081, %c0_2082, %c1_2083] : memref<1x1x11x32x11xf32, #tpu.memory_space<vmem>>, vector<1x1x1x8x8xf32>
    %867 = vector.shape_cast %866 : vector<1x1x1x8x8xf32> to vector<8x8xf32>
    %c0_2084 = arith.constant 0 : index
    %c0_2085 = arith.constant 0 : index
    %c8_2086 = arith.constant 8 : index
    %c8_2087 = arith.constant 8 : index
    %c1_2088 = arith.constant 1 : index
    %868 = vector.load %arg2[%c0_2084, %c0_2085, %c8_2086, %c8_2087, %c1_2088] : memref<1x1x11x32x11xf32, #tpu.memory_space<vmem>>, vector<1x1x1x8x8xf32>
    %869 = vector.shape_cast %868 : vector<1x1x1x8x8xf32> to vector<8x8xf32>
    %c0_2089 = arith.constant 0 : index
    %c0_2090 = arith.constant 0 : index
    %c8_2091 = arith.constant 8 : index
    %c0_2092 = arith.constant 0 : index
    %c2_2093 = arith.constant 2 : index
    %870 = vector.load %arg2[%c0_2089, %c0_2090, %c8_2091, %c0_2092, %c2_2093] : memref<1x1x11x32x11xf32, #tpu.memory_space<vmem>>, vector<1x1x1x8x8xf32>
    %871 = vector.shape_cast %870 : vector<1x1x1x8x8xf32> to vector<8x8xf32>
    %c0_2094 = arith.constant 0 : index
    %c0_2095 = arith.constant 0 : index
    %c8_2096 = arith.constant 8 : index
    %c8_2097 = arith.constant 8 : index
    %c2_2098 = arith.constant 2 : index
    %872 = vector.load %arg2[%c0_2094, %c0_2095, %c8_2096, %c8_2097, %c2_2098] : memref<1x1x11x32x11xf32, #tpu.memory_space<vmem>>, vector<1x1x1x8x8xf32>
    %873 = vector.shape_cast %872 : vector<1x1x1x8x8xf32> to vector<8x8xf32>
    %c0_2099 = arith.constant 0 : index
    %c0_2100 = arith.constant 0 : index
    %c8_2101 = arith.constant 8 : index
    %c0_2102 = arith.constant 0 : index
    %c3_2103 = arith.constant 3 : index
    %874 = vector.load %arg2[%c0_2099, %c0_2100, %c8_2101, %c0_2102, %c3_2103] : memref<1x1x11x32x11xf32, #tpu.memory_space<vmem>>, vector<1x1x1x8x8xf32>
    %875 = vector.shape_cast %874 : vector<1x1x1x8x8xf32> to vector<8x8xf32>
    %c0_2104 = arith.constant 0 : index
    %c0_2105 = arith.constant 0 : index
    %c8_2106 = arith.constant 8 : index
    %c8_2107 = arith.constant 8 : index
    %c3_2108 = arith.constant 3 : index
    %876 = vector.load %arg2[%c0_2104, %c0_2105, %c8_2106, %c8_2107, %c3_2108] : memref<1x1x11x32x11xf32, #tpu.memory_space<vmem>>, vector<1x1x1x8x8xf32>
    %877 = vector.shape_cast %876 : vector<1x1x1x8x8xf32> to vector<8x8xf32>
    %c0_2109 = arith.constant 0 : index
    %c0_2110 = arith.constant 0 : index
    %c8_2111 = arith.constant 8 : index
    %c16_2112 = arith.constant 16 : index
    %c0_2113 = arith.constant 0 : index
    %878 = vector.load %arg2[%c0_2109, %c0_2110, %c8_2111, %c16_2112, %c0_2113] : memref<1x1x11x32x11xf32, #tpu.memory_space<vmem>>, vector<1x1x1x8x8xf32>
    %879 = vector.shape_cast %878 : vector<1x1x1x8x8xf32> to vector<8x8xf32>
    %c0_2114 = arith.constant 0 : index
    %c0_2115 = arith.constant 0 : index
    %c8_2116 = arith.constant 8 : index
    %c24_2117 = arith.constant 24 : index
    %c0_2118 = arith.constant 0 : index
    %880 = vector.load %arg2[%c0_2114, %c0_2115, %c8_2116, %c24_2117, %c0_2118] : memref<1x1x11x32x11xf32, #tpu.memory_space<vmem>>, vector<1x1x1x8x8xf32>
    %881 = vector.shape_cast %880 : vector<1x1x1x8x8xf32> to vector<8x8xf32>
    %c0_2119 = arith.constant 0 : index
    %c0_2120 = arith.constant 0 : index
    %c8_2121 = arith.constant 8 : index
    %c16_2122 = arith.constant 16 : index
    %c1_2123 = arith.constant 1 : index
    %882 = vector.load %arg2[%c0_2119, %c0_2120, %c8_2121, %c16_2122, %c1_2123] : memref<1x1x11x32x11xf32, #tpu.memory_space<vmem>>, vector<1x1x1x8x8xf32>
    %883 = vector.shape_cast %882 : vector<1x1x1x8x8xf32> to vector<8x8xf32>
    %c0_2124 = arith.constant 0 : index
    %c0_2125 = arith.constant 0 : index
    %c8_2126 = arith.constant 8 : index
    %c24_2127 = arith.constant 24 : index
    %c1_2128 = arith.constant 1 : index
    %884 = vector.load %arg2[%c0_2124, %c0_2125, %c8_2126, %c24_2127, %c1_2128] : memref<1x1x11x32x11xf32, #tpu.memory_space<vmem>>, vector<1x1x1x8x8xf32>
    %885 = vector.shape_cast %884 : vector<1x1x1x8x8xf32> to vector<8x8xf32>
    %c0_2129 = arith.constant 0 : index
    %c0_2130 = arith.constant 0 : index
    %c8_2131 = arith.constant 8 : index
    %c16_2132 = arith.constant 16 : index
    %c2_2133 = arith.constant 2 : index
    %886 = vector.load %arg2[%c0_2129, %c0_2130, %c8_2131, %c16_2132, %c2_2133] : memref<1x1x11x32x11xf32, #tpu.memory_space<vmem>>, vector<1x1x1x8x8xf32>
    %887 = vector.shape_cast %886 : vector<1x1x1x8x8xf32> to vector<8x8xf32>
    %c0_2134 = arith.constant 0 : index
    %c0_2135 = arith.constant 0 : index
    %c8_2136 = arith.constant 8 : index
    %c24_2137 = arith.constant 24 : index
    %c2_2138 = arith.constant 2 : index
    %888 = vector.load %arg2[%c0_2134, %c0_2135, %c8_2136, %c24_2137, %c2_2138] : memref<1x1x11x32x11xf32, #tpu.memory_space<vmem>>, vector<1x1x1x8x8xf32>
    %889 = vector.shape_cast %888 : vector<1x1x1x8x8xf32> to vector<8x8xf32>
    %c0_2139 = arith.constant 0 : index
    %c0_2140 = arith.constant 0 : index
    %c8_2141 = arith.constant 8 : index
    %c16_2142 = arith.constant 16 : index
    %c3_2143 = arith.constant 3 : index
    %890 = vector.load %arg2[%c0_2139, %c0_2140, %c8_2141, %c16_2142, %c3_2143] : memref<1x1x11x32x11xf32, #tpu.memory_space<vmem>>, vector<1x1x1x8x8xf32>
    %891 = vector.shape_cast %890 : vector<1x1x1x8x8xf32> to vector<8x8xf32>
    %c0_2144 = arith.constant 0 : index
    %c0_2145 = arith.constant 0 : index
    %c8_2146 = arith.constant 8 : index
    %c24_2147 = arith.constant 24 : index
    %c3_2148 = arith.constant 3 : index
    %892 = vector.load %arg2[%c0_2144, %c0_2145, %c8_2146, %c24_2147, %c3_2148] : memref<1x1x11x32x11xf32, #tpu.memory_space<vmem>>, vector<1x1x1x8x8xf32>
    %893 = vector.shape_cast %892 : vector<1x1x1x8x8xf32> to vector<8x8xf32>
    %c0_2149 = arith.constant 0 : index
    %c0_2150 = arith.constant 0 : index
    %c9 = arith.constant 9 : index
    %c0_2151 = arith.constant 0 : index
    %c0_2152 = arith.constant 0 : index
    %894 = vector.load %arg2[%c0_2149, %c0_2150, %c9, %c0_2151, %c0_2152] : memref<1x1x11x32x11xf32, #tpu.memory_space<vmem>>, vector<1x1x1x8x8xf32>
    %895 = vector.shape_cast %894 : vector<1x1x1x8x8xf32> to vector<8x8xf32>
    %c0_2153 = arith.constant 0 : index
    %c0_2154 = arith.constant 0 : index
    %c9_2155 = arith.constant 9 : index
    %c8_2156 = arith.constant 8 : index
    %c0_2157 = arith.constant 0 : index
    %896 = vector.load %arg2[%c0_2153, %c0_2154, %c9_2155, %c8_2156, %c0_2157] : memref<1x1x11x32x11xf32, #tpu.memory_space<vmem>>, vector<1x1x1x8x8xf32>
    %897 = vector.shape_cast %896 : vector<1x1x1x8x8xf32> to vector<8x8xf32>
    %c0_2158 = arith.constant 0 : index
    %c0_2159 = arith.constant 0 : index
    %c9_2160 = arith.constant 9 : index
    %c0_2161 = arith.constant 0 : index
    %c1_2162 = arith.constant 1 : index
    %898 = vector.load %arg2[%c0_2158, %c0_2159, %c9_2160, %c0_2161, %c1_2162] : memref<1x1x11x32x11xf32, #tpu.memory_space<vmem>>, vector<1x1x1x8x8xf32>
    %899 = vector.shape_cast %898 : vector<1x1x1x8x8xf32> to vector<8x8xf32>
    %c0_2163 = arith.constant 0 : index
    %c0_2164 = arith.constant 0 : index
    %c9_2165 = arith.constant 9 : index
    %c8_2166 = arith.constant 8 : index
    %c1_2167 = arith.constant 1 : index
    %900 = vector.load %arg2[%c0_2163, %c0_2164, %c9_2165, %c8_2166, %c1_2167] : memref<1x1x11x32x11xf32, #tpu.memory_space<vmem>>, vector<1x1x1x8x8xf32>
    %901 = vector.shape_cast %900 : vector<1x1x1x8x8xf32> to vector<8x8xf32>
    %c0_2168 = arith.constant 0 : index
    %c0_2169 = arith.constant 0 : index
    %c9_2170 = arith.constant 9 : index
    %c0_2171 = arith.constant 0 : index
    %c2_2172 = arith.constant 2 : index
    %902 = vector.load %arg2[%c0_2168, %c0_2169, %c9_2170, %c0_2171, %c2_2172] : memref<1x1x11x32x11xf32, #tpu.memory_space<vmem>>, vector<1x1x1x8x8xf32>
    %903 = vector.shape_cast %902 : vector<1x1x1x8x8xf32> to vector<8x8xf32>
    %c0_2173 = arith.constant 0 : index
    %c0_2174 = arith.constant 0 : index
    %c9_2175 = arith.constant 9 : index
    %c8_2176 = arith.constant 8 : index
    %c2_2177 = arith.constant 2 : index
    %904 = vector.load %arg2[%c0_2173, %c0_2174, %c9_2175, %c8_2176, %c2_2177] : memref<1x1x11x32x11xf32, #tpu.memory_space<vmem>>, vector<1x1x1x8x8xf32>
    %905 = vector.shape_cast %904 : vector<1x1x1x8x8xf32> to vector<8x8xf32>
    %c0_2178 = arith.constant 0 : index
    %c0_2179 = arith.constant 0 : index
    %c9_2180 = arith.constant 9 : index
    %c0_2181 = arith.constant 0 : index
    %c3_2182 = arith.constant 3 : index
    %906 = vector.load %arg2[%c0_2178, %c0_2179, %c9_2180, %c0_2181, %c3_2182] : memref<1x1x11x32x11xf32, #tpu.memory_space<vmem>>, vector<1x1x1x8x8xf32>
    %907 = vector.shape_cast %906 : vector<1x1x1x8x8xf32> to vector<8x8xf32>
    %c0_2183 = arith.constant 0 : index
    %c0_2184 = arith.constant 0 : index
    %c9_2185 = arith.constant 9 : index
    %c8_2186 = arith.constant 8 : index
    %c3_2187 = arith.constant 3 : index
    %908 = vector.load %arg2[%c0_2183, %c0_2184, %c9_2185, %c8_2186, %c3_2187] : memref<1x1x11x32x11xf32, #tpu.memory_space<vmem>>, vector<1x1x1x8x8xf32>
    %909 = vector.shape_cast %908 : vector<1x1x1x8x8xf32> to vector<8x8xf32>
    %c0_2188 = arith.constant 0 : index
    %c0_2189 = arith.constant 0 : index
    %c9_2190 = arith.constant 9 : index
    %c16_2191 = arith.constant 16 : index
    %c0_2192 = arith.constant 0 : index
    %910 = vector.load %arg2[%c0_2188, %c0_2189, %c9_2190, %c16_2191, %c0_2192] : memref<1x1x11x32x11xf32, #tpu.memory_space<vmem>>, vector<1x1x1x8x8xf32>
    %911 = vector.shape_cast %910 : vector<1x1x1x8x8xf32> to vector<8x8xf32>
    %c0_2193 = arith.constant 0 : index
    %c0_2194 = arith.constant 0 : index
    %c9_2195 = arith.constant 9 : index
    %c24_2196 = arith.constant 24 : index
    %c0_2197 = arith.constant 0 : index
    %912 = vector.load %arg2[%c0_2193, %c0_2194, %c9_2195, %c24_2196, %c0_2197] : memref<1x1x11x32x11xf32, #tpu.memory_space<vmem>>, vector<1x1x1x8x8xf32>
    %913 = vector.shape_cast %912 : vector<1x1x1x8x8xf32> to vector<8x8xf32>
    %c0_2198 = arith.constant 0 : index
    %c0_2199 = arith.constant 0 : index
    %c9_2200 = arith.constant 9 : index
    %c16_2201 = arith.constant 16 : index
    %c1_2202 = arith.constant 1 : index
    %914 = vector.load %arg2[%c0_2198, %c0_2199, %c9_2200, %c16_2201, %c1_2202] : memref<1x1x11x32x11xf32, #tpu.memory_space<vmem>>, vector<1x1x1x8x8xf32>
    %915 = vector.shape_cast %914 : vector<1x1x1x8x8xf32> to vector<8x8xf32>
    %c0_2203 = arith.constant 0 : index
    %c0_2204 = arith.constant 0 : index
    %c9_2205 = arith.constant 9 : index
    %c24_2206 = arith.constant 24 : index
    %c1_2207 = arith.constant 1 : index
    %916 = vector.load %arg2[%c0_2203, %c0_2204, %c9_2205, %c24_2206, %c1_2207] : memref<1x1x11x32x11xf32, #tpu.memory_space<vmem>>, vector<1x1x1x8x8xf32>
    %917 = vector.shape_cast %916 : vector<1x1x1x8x8xf32> to vector<8x8xf32>
    %c0_2208 = arith.constant 0 : index
    %c0_2209 = arith.constant 0 : index
    %c9_2210 = arith.constant 9 : index
    %c16_2211 = arith.constant 16 : index
    %c2_2212 = arith.constant 2 : index
    %918 = vector.load %arg2[%c0_2208, %c0_2209, %c9_2210, %c16_2211, %c2_2212] : memref<1x1x11x32x11xf32, #tpu.memory_space<vmem>>, vector<1x1x1x8x8xf32>
    %919 = vector.shape_cast %918 : vector<1x1x1x8x8xf32> to vector<8x8xf32>
    %c0_2213 = arith.constant 0 : index
    %c0_2214 = arith.constant 0 : index
    %c9_2215 = arith.constant 9 : index
    %c24_2216 = arith.constant 24 : index
    %c2_2217 = arith.constant 2 : index
    %920 = vector.load %arg2[%c0_2213, %c0_2214, %c9_2215, %c24_2216, %c2_2217] : memref<1x1x11x32x11xf32, #tpu.memory_space<vmem>>, vector<1x1x1x8x8xf32>
    %921 = vector.shape_cast %920 : vector<1x1x1x8x8xf32> to vector<8x8xf32>
    %c0_2218 = arith.constant 0 : index
    %c0_2219 = arith.constant 0 : index
    %c9_2220 = arith.constant 9 : index
    %c16_2221 = arith.constant 16 : index
    %c3_2222 = arith.constant 3 : index
    %922 = vector.load %arg2[%c0_2218, %c0_2219, %c9_2220, %c16_2221, %c3_2222] : memref<1x1x11x32x11xf32, #tpu.memory_space<vmem>>, vector<1x1x1x8x8xf32>
    %923 = vector.shape_cast %922 : vector<1x1x1x8x8xf32> to vector<8x8xf32>
    %c0_2223 = arith.constant 0 : index
    %c0_2224 = arith.constant 0 : index
    %c9_2225 = arith.constant 9 : index
    %c24_2226 = arith.constant 24 : index
    %c3_2227 = arith.constant 3 : index
    %924 = vector.load %arg2[%c0_2223, %c0_2224, %c9_2225, %c24_2226, %c3_2227] : memref<1x1x11x32x11xf32, #tpu.memory_space<vmem>>, vector<1x1x1x8x8xf32>
    %925 = vector.shape_cast %924 : vector<1x1x1x8x8xf32> to vector<8x8xf32>
    %926 = tpu.concatenate %799, %801, %803, %805, %807, %809, %811, %813, %815, %817, %819, %821, %823, %825, %827, %829 in 0 : vector<8x8xf32>, vector<8x8xf32>, vector<8x8xf32>, vector<8x8xf32>, vector<8x8xf32>, vector<8x8xf32>, vector<8x8xf32>, vector<8x8xf32>, vector<8x8xf32>, vector<8x8xf32>, vector<8x8xf32>, vector<8x8xf32>, vector<8x8xf32>, vector<8x8xf32>, vector<8x8xf32>, vector<8x8xf32> -> vector<128x8xf32>
    %927 = tpu.concatenate %831, %833, %835, %837, %839, %841, %843, %845, %847, %849, %851, %853, %855, %857, %859, %861 in 0 : vector<8x8xf32>, vector<8x8xf32>, vector<8x8xf32>, vector<8x8xf32>, vector<8x8xf32>, vector<8x8xf32>, vector<8x8xf32>, vector<8x8xf32>, vector<8x8xf32>, vector<8x8xf32>, vector<8x8xf32>, vector<8x8xf32>, vector<8x8xf32>, vector<8x8xf32>, vector<8x8xf32>, vector<8x8xf32> -> vector<128x8xf32>
    %928 = tpu.concatenate %863, %865, %867, %869, %871, %873, %875, %877, %879, %881, %883, %885, %887, %889, %891, %893 in 0 : vector<8x8xf32>, vector<8x8xf32>, vector<8x8xf32>, vector<8x8xf32>, vector<8x8xf32>, vector<8x8xf32>, vector<8x8xf32>, vector<8x8xf32>, vector<8x8xf32>, vector<8x8xf32>, vector<8x8xf32>, vector<8x8xf32>, vector<8x8xf32>, vector<8x8xf32>, vector<8x8xf32>, vector<8x8xf32> -> vector<128x8xf32>
    %929 = tpu.concatenate %895, %897, %899, %901, %903, %905, %907, %909, %911, %913, %915, %917, %919, %921, %923, %925 in 0 : vector<8x8xf32>, vector<8x8xf32>, vector<8x8xf32>, vector<8x8xf32>, vector<8x8xf32>, vector<8x8xf32>, vector<8x8xf32>, vector<8x8xf32>, vector<8x8xf32>, vector<8x8xf32>, vector<8x8xf32>, vector<8x8xf32>, vector<8x8xf32>, vector<8x8xf32>, vector<8x8xf32>, vector<8x8xf32> -> vector<128x8xf32>
    %930 = tpu.concatenate %926, %927, %928, %929 in 0 : vector<128x8xf32>, vector<128x8xf32>, vector<128x8xf32>, vector<128x8xf32> -> vector<512x8xf32>
    %c0_2228 = arith.constant 0 : index
    %c0_2229 = arith.constant 0 : index
    %c7_2230 = arith.constant 7 : index
    %c0_2231 = arith.constant 0 : index
    %c0_2232 = arith.constant 0 : index
    %931 = vector.load %arg2[%c0_2228, %c0_2229, %c7_2230, %c0_2231, %c0_2232] : memref<1x1x11x32x11xf32, #tpu.memory_space<vmem>>, vector<1x1x1x8x8xf32>
    %932 = vector.shape_cast %931 : vector<1x1x1x8x8xf32> to vector<8x8xf32>
    %c0_2233 = arith.constant 0 : index
    %c0_2234 = arith.constant 0 : index
    %c7_2235 = arith.constant 7 : index
    %c8_2236 = arith.constant 8 : index
    %c0_2237 = arith.constant 0 : index
    %933 = vector.load %arg2[%c0_2233, %c0_2234, %c7_2235, %c8_2236, %c0_2237] : memref<1x1x11x32x11xf32, #tpu.memory_space<vmem>>, vector<1x1x1x8x8xf32>
    %934 = vector.shape_cast %933 : vector<1x1x1x8x8xf32> to vector<8x8xf32>
    %c0_2238 = arith.constant 0 : index
    %c0_2239 = arith.constant 0 : index
    %c7_2240 = arith.constant 7 : index
    %c0_2241 = arith.constant 0 : index
    %c1_2242 = arith.constant 1 : index
    %935 = vector.load %arg2[%c0_2238, %c0_2239, %c7_2240, %c0_2241, %c1_2242] : memref<1x1x11x32x11xf32, #tpu.memory_space<vmem>>, vector<1x1x1x8x8xf32>
    %936 = vector.shape_cast %935 : vector<1x1x1x8x8xf32> to vector<8x8xf32>
    %c0_2243 = arith.constant 0 : index
    %c0_2244 = arith.constant 0 : index
    %c7_2245 = arith.constant 7 : index
    %c8_2246 = arith.constant 8 : index
    %c1_2247 = arith.constant 1 : index
    %937 = vector.load %arg2[%c0_2243, %c0_2244, %c7_2245, %c8_2246, %c1_2247] : memref<1x1x11x32x11xf32, #tpu.memory_space<vmem>>, vector<1x1x1x8x8xf32>
    %938 = vector.shape_cast %937 : vector<1x1x1x8x8xf32> to vector<8x8xf32>
    %c0_2248 = arith.constant 0 : index
    %c0_2249 = arith.constant 0 : index
    %c7_2250 = arith.constant 7 : index
    %c0_2251 = arith.constant 0 : index
    %c2_2252 = arith.constant 2 : index
    %939 = vector.load %arg2[%c0_2248, %c0_2249, %c7_2250, %c0_2251, %c2_2252] : memref<1x1x11x32x11xf32, #tpu.memory_space<vmem>>, vector<1x1x1x8x8xf32>
    %940 = vector.shape_cast %939 : vector<1x1x1x8x8xf32> to vector<8x8xf32>
    %c0_2253 = arith.constant 0 : index
    %c0_2254 = arith.constant 0 : index
    %c7_2255 = arith.constant 7 : index
    %c8_2256 = arith.constant 8 : index
    %c2_2257 = arith.constant 2 : index
    %941 = vector.load %arg2[%c0_2253, %c0_2254, %c7_2255, %c8_2256, %c2_2257] : memref<1x1x11x32x11xf32, #tpu.memory_space<vmem>>, vector<1x1x1x8x8xf32>
    %942 = vector.shape_cast %941 : vector<1x1x1x8x8xf32> to vector<8x8xf32>
    %c0_2258 = arith.constant 0 : index
    %c0_2259 = arith.constant 0 : index
    %c7_2260 = arith.constant 7 : index
    %c0_2261 = arith.constant 0 : index
    %c3_2262 = arith.constant 3 : index
    %943 = vector.load %arg2[%c0_2258, %c0_2259, %c7_2260, %c0_2261, %c3_2262] : memref<1x1x11x32x11xf32, #tpu.memory_space<vmem>>, vector<1x1x1x8x8xf32>
    %944 = vector.shape_cast %943 : vector<1x1x1x8x8xf32> to vector<8x8xf32>
    %c0_2263 = arith.constant 0 : index
    %c0_2264 = arith.constant 0 : index
    %c7_2265 = arith.constant 7 : index
    %c8_2266 = arith.constant 8 : index
    %c3_2267 = arith.constant 3 : index
    %945 = vector.load %arg2[%c0_2263, %c0_2264, %c7_2265, %c8_2266, %c3_2267] : memref<1x1x11x32x11xf32, #tpu.memory_space<vmem>>, vector<1x1x1x8x8xf32>
    %946 = vector.shape_cast %945 : vector<1x1x1x8x8xf32> to vector<8x8xf32>
    %c0_2268 = arith.constant 0 : index
    %c0_2269 = arith.constant 0 : index
    %c7_2270 = arith.constant 7 : index
    %c16_2271 = arith.constant 16 : index
    %c0_2272 = arith.constant 0 : index
    %947 = vector.load %arg2[%c0_2268, %c0_2269, %c7_2270, %c16_2271, %c0_2272] : memref<1x1x11x32x11xf32, #tpu.memory_space<vmem>>, vector<1x1x1x8x8xf32>
    %948 = vector.shape_cast %947 : vector<1x1x1x8x8xf32> to vector<8x8xf32>
    %c0_2273 = arith.constant 0 : index
    %c0_2274 = arith.constant 0 : index
    %c7_2275 = arith.constant 7 : index
    %c24_2276 = arith.constant 24 : index
    %c0_2277 = arith.constant 0 : index
    %949 = vector.load %arg2[%c0_2273, %c0_2274, %c7_2275, %c24_2276, %c0_2277] : memref<1x1x11x32x11xf32, #tpu.memory_space<vmem>>, vector<1x1x1x8x8xf32>
    %950 = vector.shape_cast %949 : vector<1x1x1x8x8xf32> to vector<8x8xf32>
    %c0_2278 = arith.constant 0 : index
    %c0_2279 = arith.constant 0 : index
    %c7_2280 = arith.constant 7 : index
    %c16_2281 = arith.constant 16 : index
    %c1_2282 = arith.constant 1 : index
    %951 = vector.load %arg2[%c0_2278, %c0_2279, %c7_2280, %c16_2281, %c1_2282] : memref<1x1x11x32x11xf32, #tpu.memory_space<vmem>>, vector<1x1x1x8x8xf32>
    %952 = vector.shape_cast %951 : vector<1x1x1x8x8xf32> to vector<8x8xf32>
    %c0_2283 = arith.constant 0 : index
    %c0_2284 = arith.constant 0 : index
    %c7_2285 = arith.constant 7 : index
    %c24_2286 = arith.constant 24 : index
    %c1_2287 = arith.constant 1 : index
    %953 = vector.load %arg2[%c0_2283, %c0_2284, %c7_2285, %c24_2286, %c1_2287] : memref<1x1x11x32x11xf32, #tpu.memory_space<vmem>>, vector<1x1x1x8x8xf32>
    %954 = vector.shape_cast %953 : vector<1x1x1x8x8xf32> to vector<8x8xf32>
    %c0_2288 = arith.constant 0 : index
    %c0_2289 = arith.constant 0 : index
    %c7_2290 = arith.constant 7 : index
    %c16_2291 = arith.constant 16 : index
    %c2_2292 = arith.constant 2 : index
    %955 = vector.load %arg2[%c0_2288, %c0_2289, %c7_2290, %c16_2291, %c2_2292] : memref<1x1x11x32x11xf32, #tpu.memory_space<vmem>>, vector<1x1x1x8x8xf32>
    %956 = vector.shape_cast %955 : vector<1x1x1x8x8xf32> to vector<8x8xf32>
    %c0_2293 = arith.constant 0 : index
    %c0_2294 = arith.constant 0 : index
    %c7_2295 = arith.constant 7 : index
    %c24_2296 = arith.constant 24 : index
    %c2_2297 = arith.constant 2 : index
    %957 = vector.load %arg2[%c0_2293, %c0_2294, %c7_2295, %c24_2296, %c2_2297] : memref<1x1x11x32x11xf32, #tpu.memory_space<vmem>>, vector<1x1x1x8x8xf32>
    %958 = vector.shape_cast %957 : vector<1x1x1x8x8xf32> to vector<8x8xf32>
    %c0_2298 = arith.constant 0 : index
    %c0_2299 = arith.constant 0 : index
    %c7_2300 = arith.constant 7 : index
    %c16_2301 = arith.constant 16 : index
    %c3_2302 = arith.constant 3 : index
    %959 = vector.load %arg2[%c0_2298, %c0_2299, %c7_2300, %c16_2301, %c3_2302] : memref<1x1x11x32x11xf32, #tpu.memory_space<vmem>>, vector<1x1x1x8x8xf32>
    %960 = vector.shape_cast %959 : vector<1x1x1x8x8xf32> to vector<8x8xf32>
    %c0_2303 = arith.constant 0 : index
    %c0_2304 = arith.constant 0 : index
    %c7_2305 = arith.constant 7 : index
    %c24_2306 = arith.constant 24 : index
    %c3_2307 = arith.constant 3 : index
    %961 = vector.load %arg2[%c0_2303, %c0_2304, %c7_2305, %c24_2306, %c3_2307] : memref<1x1x11x32x11xf32, #tpu.memory_space<vmem>>, vector<1x1x1x8x8xf32>
    %962 = vector.shape_cast %961 : vector<1x1x1x8x8xf32> to vector<8x8xf32>
    %c0_2308 = arith.constant 0 : index
    %c0_2309 = arith.constant 0 : index
    %c8_2310 = arith.constant 8 : index
    %c0_2311 = arith.constant 0 : index
    %c0_2312 = arith.constant 0 : index
    %963 = vector.load %arg2[%c0_2308, %c0_2309, %c8_2310, %c0_2311, %c0_2312] : memref<1x1x11x32x11xf32, #tpu.memory_space<vmem>>, vector<1x1x1x8x8xf32>
    %964 = vector.shape_cast %963 : vector<1x1x1x8x8xf32> to vector<8x8xf32>
    %c0_2313 = arith.constant 0 : index
    %c0_2314 = arith.constant 0 : index
    %c8_2315 = arith.constant 8 : index
    %c8_2316 = arith.constant 8 : index
    %c0_2317 = arith.constant 0 : index
    %965 = vector.load %arg2[%c0_2313, %c0_2314, %c8_2315, %c8_2316, %c0_2317] : memref<1x1x11x32x11xf32, #tpu.memory_space<vmem>>, vector<1x1x1x8x8xf32>
    %966 = vector.shape_cast %965 : vector<1x1x1x8x8xf32> to vector<8x8xf32>
    %c0_2318 = arith.constant 0 : index
    %c0_2319 = arith.constant 0 : index
    %c8_2320 = arith.constant 8 : index
    %c0_2321 = arith.constant 0 : index
    %c1_2322 = arith.constant 1 : index
    %967 = vector.load %arg2[%c0_2318, %c0_2319, %c8_2320, %c0_2321, %c1_2322] : memref<1x1x11x32x11xf32, #tpu.memory_space<vmem>>, vector<1x1x1x8x8xf32>
    %968 = vector.shape_cast %967 : vector<1x1x1x8x8xf32> to vector<8x8xf32>
    %c0_2323 = arith.constant 0 : index
    %c0_2324 = arith.constant 0 : index
    %c8_2325 = arith.constant 8 : index
    %c8_2326 = arith.constant 8 : index
    %c1_2327 = arith.constant 1 : index
    %969 = vector.load %arg2[%c0_2323, %c0_2324, %c8_2325, %c8_2326, %c1_2327] : memref<1x1x11x32x11xf32, #tpu.memory_space<vmem>>, vector<1x1x1x8x8xf32>
    %970 = vector.shape_cast %969 : vector<1x1x1x8x8xf32> to vector<8x8xf32>
    %c0_2328 = arith.constant 0 : index
    %c0_2329 = arith.constant 0 : index
    %c8_2330 = arith.constant 8 : index
    %c0_2331 = arith.constant 0 : index
    %c2_2332 = arith.constant 2 : index
    %971 = vector.load %arg2[%c0_2328, %c0_2329, %c8_2330, %c0_2331, %c2_2332] : memref<1x1x11x32x11xf32, #tpu.memory_space<vmem>>, vector<1x1x1x8x8xf32>
    %972 = vector.shape_cast %971 : vector<1x1x1x8x8xf32> to vector<8x8xf32>
    %c0_2333 = arith.constant 0 : index
    %c0_2334 = arith.constant 0 : index
    %c8_2335 = arith.constant 8 : index
    %c8_2336 = arith.constant 8 : index
    %c2_2337 = arith.constant 2 : index
    %973 = vector.load %arg2[%c0_2333, %c0_2334, %c8_2335, %c8_2336, %c2_2337] : memref<1x1x11x32x11xf32, #tpu.memory_space<vmem>>, vector<1x1x1x8x8xf32>
    %974 = vector.shape_cast %973 : vector<1x1x1x8x8xf32> to vector<8x8xf32>
    %c0_2338 = arith.constant 0 : index
    %c0_2339 = arith.constant 0 : index
    %c8_2340 = arith.constant 8 : index
    %c0_2341 = arith.constant 0 : index
    %c3_2342 = arith.constant 3 : index
    %975 = vector.load %arg2[%c0_2338, %c0_2339, %c8_2340, %c0_2341, %c3_2342] : memref<1x1x11x32x11xf32, #tpu.memory_space<vmem>>, vector<1x1x1x8x8xf32>
    %976 = vector.shape_cast %975 : vector<1x1x1x8x8xf32> to vector<8x8xf32>
    %c0_2343 = arith.constant 0 : index
    %c0_2344 = arith.constant 0 : index
    %c8_2345 = arith.constant 8 : index
    %c8_2346 = arith.constant 8 : index
    %c3_2347 = arith.constant 3 : index
    %977 = vector.load %arg2[%c0_2343, %c0_2344, %c8_2345, %c8_2346, %c3_2347] : memref<1x1x11x32x11xf32, #tpu.memory_space<vmem>>, vector<1x1x1x8x8xf32>
    %978 = vector.shape_cast %977 : vector<1x1x1x8x8xf32> to vector<8x8xf32>
    %c0_2348 = arith.constant 0 : index
    %c0_2349 = arith.constant 0 : index
    %c8_2350 = arith.constant 8 : index
    %c16_2351 = arith.constant 16 : index
    %c0_2352 = arith.constant 0 : index
    %979 = vector.load %arg2[%c0_2348, %c0_2349, %c8_2350, %c16_2351, %c0_2352] : memref<1x1x11x32x11xf32, #tpu.memory_space<vmem>>, vector<1x1x1x8x8xf32>
    %980 = vector.shape_cast %979 : vector<1x1x1x8x8xf32> to vector<8x8xf32>
    %c0_2353 = arith.constant 0 : index
    %c0_2354 = arith.constant 0 : index
    %c8_2355 = arith.constant 8 : index
    %c24_2356 = arith.constant 24 : index
    %c0_2357 = arith.constant 0 : index
    %981 = vector.load %arg2[%c0_2353, %c0_2354, %c8_2355, %c24_2356, %c0_2357] : memref<1x1x11x32x11xf32, #tpu.memory_space<vmem>>, vector<1x1x1x8x8xf32>
    %982 = vector.shape_cast %981 : vector<1x1x1x8x8xf32> to vector<8x8xf32>
    %c0_2358 = arith.constant 0 : index
    %c0_2359 = arith.constant 0 : index
    %c8_2360 = arith.constant 8 : index
    %c16_2361 = arith.constant 16 : index
    %c1_2362 = arith.constant 1 : index
    %983 = vector.load %arg2[%c0_2358, %c0_2359, %c8_2360, %c16_2361, %c1_2362] : memref<1x1x11x32x11xf32, #tpu.memory_space<vmem>>, vector<1x1x1x8x8xf32>
    %984 = vector.shape_cast %983 : vector<1x1x1x8x8xf32> to vector<8x8xf32>
    %c0_2363 = arith.constant 0 : index
    %c0_2364 = arith.constant 0 : index
    %c8_2365 = arith.constant 8 : index
    %c24_2366 = arith.constant 24 : index
    %c1_2367 = arith.constant 1 : index
    %985 = vector.load %arg2[%c0_2363, %c0_2364, %c8_2365, %c24_2366, %c1_2367] : memref<1x1x11x32x11xf32, #tpu.memory_space<vmem>>, vector<1x1x1x8x8xf32>
    %986 = vector.shape_cast %985 : vector<1x1x1x8x8xf32> to vector<8x8xf32>
    %c0_2368 = arith.constant 0 : index
    %c0_2369 = arith.constant 0 : index
    %c8_2370 = arith.constant 8 : index
    %c16_2371 = arith.constant 16 : index
    %c2_2372 = arith.constant 2 : index
    %987 = vector.load %arg2[%c0_2368, %c0_2369, %c8_2370, %c16_2371, %c2_2372] : memref<1x1x11x32x11xf32, #tpu.memory_space<vmem>>, vector<1x1x1x8x8xf32>
    %988 = vector.shape_cast %987 : vector<1x1x1x8x8xf32> to vector<8x8xf32>
    %c0_2373 = arith.constant 0 : index
    %c0_2374 = arith.constant 0 : index
    %c8_2375 = arith.constant 8 : index
    %c24_2376 = arith.constant 24 : index
    %c2_2377 = arith.constant 2 : index
    %989 = vector.load %arg2[%c0_2373, %c0_2374, %c8_2375, %c24_2376, %c2_2377] : memref<1x1x11x32x11xf32, #tpu.memory_space<vmem>>, vector<1x1x1x8x8xf32>
    %990 = vector.shape_cast %989 : vector<1x1x1x8x8xf32> to vector<8x8xf32>
    %c0_2378 = arith.constant 0 : index
    %c0_2379 = arith.constant 0 : index
    %c8_2380 = arith.constant 8 : index
    %c16_2381 = arith.constant 16 : index
    %c3_2382 = arith.constant 3 : index
    %991 = vector.load %arg2[%c0_2378, %c0_2379, %c8_2380, %c16_2381, %c3_2382] : memref<1x1x11x32x11xf32, #tpu.memory_space<vmem>>, vector<1x1x1x8x8xf32>
    %992 = vector.shape_cast %991 : vector<1x1x1x8x8xf32> to vector<8x8xf32>
    %c0_2383 = arith.constant 0 : index
    %c0_2384 = arith.constant 0 : index
    %c8_2385 = arith.constant 8 : index
    %c24_2386 = arith.constant 24 : index
    %c3_2387 = arith.constant 3 : index
    %993 = vector.load %arg2[%c0_2383, %c0_2384, %c8_2385, %c24_2386, %c3_2387] : memref<1x1x11x32x11xf32, #tpu.memory_space<vmem>>, vector<1x1x1x8x8xf32>
    %994 = vector.shape_cast %993 : vector<1x1x1x8x8xf32> to vector<8x8xf32>
    %c0_2388 = arith.constant 0 : index
    %c0_2389 = arith.constant 0 : index
    %c9_2390 = arith.constant 9 : index
    %c0_2391 = arith.constant 0 : index
    %c0_2392 = arith.constant 0 : index
    %995 = vector.load %arg2[%c0_2388, %c0_2389, %c9_2390, %c0_2391, %c0_2392] : memref<1x1x11x32x11xf32, #tpu.memory_space<vmem>>, vector<1x1x1x8x8xf32>
    %996 = vector.shape_cast %995 : vector<1x1x1x8x8xf32> to vector<8x8xf32>
    %c0_2393 = arith.constant 0 : index
    %c0_2394 = arith.constant 0 : index
    %c9_2395 = arith.constant 9 : index
    %c8_2396 = arith.constant 8 : index
    %c0_2397 = arith.constant 0 : index
    %997 = vector.load %arg2[%c0_2393, %c0_2394, %c9_2395, %c8_2396, %c0_2397] : memref<1x1x11x32x11xf32, #tpu.memory_space<vmem>>, vector<1x1x1x8x8xf32>
    %998 = vector.shape_cast %997 : vector<1x1x1x8x8xf32> to vector<8x8xf32>
    %c0_2398 = arith.constant 0 : index
    %c0_2399 = arith.constant 0 : index
    %c9_2400 = arith.constant 9 : index
    %c0_2401 = arith.constant 0 : index
    %c1_2402 = arith.constant 1 : index
    %999 = vector.load %arg2[%c0_2398, %c0_2399, %c9_2400, %c0_2401, %c1_2402] : memref<1x1x11x32x11xf32, #tpu.memory_space<vmem>>, vector<1x1x1x8x8xf32>
    %1000 = vector.shape_cast %999 : vector<1x1x1x8x8xf32> to vector<8x8xf32>
    %c0_2403 = arith.constant 0 : index
    %c0_2404 = arith.constant 0 : index
    %c9_2405 = arith.constant 9 : index
    %c8_2406 = arith.constant 8 : index
    %c1_2407 = arith.constant 1 : index
    %1001 = vector.load %arg2[%c0_2403, %c0_2404, %c9_2405, %c8_2406, %c1_2407] : memref<1x1x11x32x11xf32, #tpu.memory_space<vmem>>, vector<1x1x1x8x8xf32>
    %1002 = vector.shape_cast %1001 : vector<1x1x1x8x8xf32> to vector<8x8xf32>
    %c0_2408 = arith.constant 0 : index
    %c0_2409 = arith.constant 0 : index
    %c9_2410 = arith.constant 9 : index
    %c0_2411 = arith.constant 0 : index
    %c2_2412 = arith.constant 2 : index
    %1003 = vector.load %arg2[%c0_2408, %c0_2409, %c9_2410, %c0_2411, %c2_2412] : memref<1x1x11x32x11xf32, #tpu.memory_space<vmem>>, vector<1x1x1x8x8xf32>
    %1004 = vector.shape_cast %1003 : vector<1x1x1x8x8xf32> to vector<8x8xf32>
    %c0_2413 = arith.constant 0 : index
    %c0_2414 = arith.constant 0 : index
    %c9_2415 = arith.constant 9 : index
    %c8_2416 = arith.constant 8 : index
    %c2_2417 = arith.constant 2 : index
    %1005 = vector.load %arg2[%c0_2413, %c0_2414, %c9_2415, %c8_2416, %c2_2417] : memref<1x1x11x32x11xf32, #tpu.memory_space<vmem>>, vector<1x1x1x8x8xf32>
    %1006 = vector.shape_cast %1005 : vector<1x1x1x8x8xf32> to vector<8x8xf32>
    %c0_2418 = arith.constant 0 : index
    %c0_2419 = arith.constant 0 : index
    %c9_2420 = arith.constant 9 : index
    %c0_2421 = arith.constant 0 : index
    %c3_2422 = arith.constant 3 : index
    %1007 = vector.load %arg2[%c0_2418, %c0_2419, %c9_2420, %c0_2421, %c3_2422] : memref<1x1x11x32x11xf32, #tpu.memory_space<vmem>>, vector<1x1x1x8x8xf32>
    %1008 = vector.shape_cast %1007 : vector<1x1x1x8x8xf32> to vector<8x8xf32>
    %c0_2423 = arith.constant 0 : index
    %c0_2424 = arith.constant 0 : index
    %c9_2425 = arith.constant 9 : index
    %c8_2426 = arith.constant 8 : index
    %c3_2427 = arith.constant 3 : index
    %1009 = vector.load %arg2[%c0_2423, %c0_2424, %c9_2425, %c8_2426, %c3_2427] : memref<1x1x11x32x11xf32, #tpu.memory_space<vmem>>, vector<1x1x1x8x8xf32>
    %1010 = vector.shape_cast %1009 : vector<1x1x1x8x8xf32> to vector<8x8xf32>
    %c0_2428 = arith.constant 0 : index
    %c0_2429 = arith.constant 0 : index
    %c9_2430 = arith.constant 9 : index
    %c16_2431 = arith.constant 16 : index
    %c0_2432 = arith.constant 0 : index
    %1011 = vector.load %arg2[%c0_2428, %c0_2429, %c9_2430, %c16_2431, %c0_2432] : memref<1x1x11x32x11xf32, #tpu.memory_space<vmem>>, vector<1x1x1x8x8xf32>
    %1012 = vector.shape_cast %1011 : vector<1x1x1x8x8xf32> to vector<8x8xf32>
    %c0_2433 = arith.constant 0 : index
    %c0_2434 = arith.constant 0 : index
    %c9_2435 = arith.constant 9 : index
    %c24_2436 = arith.constant 24 : index
    %c0_2437 = arith.constant 0 : index
    %1013 = vector.load %arg2[%c0_2433, %c0_2434, %c9_2435, %c24_2436, %c0_2437] : memref<1x1x11x32x11xf32, #tpu.memory_space<vmem>>, vector<1x1x1x8x8xf32>
    %1014 = vector.shape_cast %1013 : vector<1x1x1x8x8xf32> to vector<8x8xf32>
    %c0_2438 = arith.constant 0 : index
    %c0_2439 = arith.constant 0 : index
    %c9_2440 = arith.constant 9 : index
    %c16_2441 = arith.constant 16 : index
    %c1_2442 = arith.constant 1 : index
    %1015 = vector.load %arg2[%c0_2438, %c0_2439, %c9_2440, %c16_2441, %c1_2442] : memref<1x1x11x32x11xf32, #tpu.memory_space<vmem>>, vector<1x1x1x8x8xf32>
    %1016 = vector.shape_cast %1015 : vector<1x1x1x8x8xf32> to vector<8x8xf32>
    %c0_2443 = arith.constant 0 : index
    %c0_2444 = arith.constant 0 : index
    %c9_2445 = arith.constant 9 : index
    %c24_2446 = arith.constant 24 : index
    %c1_2447 = arith.constant 1 : index
    %1017 = vector.load %arg2[%c0_2443, %c0_2444, %c9_2445, %c24_2446, %c1_2447] : memref<1x1x11x32x11xf32, #tpu.memory_space<vmem>>, vector<1x1x1x8x8xf32>
    %1018 = vector.shape_cast %1017 : vector<1x1x1x8x8xf32> to vector<8x8xf32>
    %c0_2448 = arith.constant 0 : index
    %c0_2449 = arith.constant 0 : index
    %c9_2450 = arith.constant 9 : index
    %c16_2451 = arith.constant 16 : index
    %c2_2452 = arith.constant 2 : index
    %1019 = vector.load %arg2[%c0_2448, %c0_2449, %c9_2450, %c16_2451, %c2_2452] : memref<1x1x11x32x11xf32, #tpu.memory_space<vmem>>, vector<1x1x1x8x8xf32>
    %1020 = vector.shape_cast %1019 : vector<1x1x1x8x8xf32> to vector<8x8xf32>
    %c0_2453 = arith.constant 0 : index
    %c0_2454 = arith.constant 0 : index
    %c9_2455 = arith.constant 9 : index
    %c24_2456 = arith.constant 24 : index
    %c2_2457 = arith.constant 2 : index
    %1021 = vector.load %arg2[%c0_2453, %c0_2454, %c9_2455, %c24_2456, %c2_2457] : memref<1x1x11x32x11xf32, #tpu.memory_space<vmem>>, vector<1x1x1x8x8xf32>
    %1022 = vector.shape_cast %1021 : vector<1x1x1x8x8xf32> to vector<8x8xf32>
    %c0_2458 = arith.constant 0 : index
    %c0_2459 = arith.constant 0 : index
    %c9_2460 = arith.constant 9 : index
    %c16_2461 = arith.constant 16 : index
    %c3_2462 = arith.constant 3 : index
    %1023 = vector.load %arg2[%c0_2458, %c0_2459, %c9_2460, %c16_2461, %c3_2462] : memref<1x1x11x32x11xf32, #tpu.memory_space<vmem>>, vector<1x1x1x8x8xf32>
    %1024 = vector.shape_cast %1023 : vector<1x1x1x8x8xf32> to vector<8x8xf32>
    %c0_2463 = arith.constant 0 : index
    %c0_2464 = arith.constant 0 : index
    %c9_2465 = arith.constant 9 : index
    %c24_2466 = arith.constant 24 : index
    %c3_2467 = arith.constant 3 : index
    %1025 = vector.load %arg2[%c0_2463, %c0_2464, %c9_2465, %c24_2466, %c3_2467] : memref<1x1x11x32x11xf32, #tpu.memory_space<vmem>>, vector<1x1x1x8x8xf32>
    %1026 = vector.shape_cast %1025 : vector<1x1x1x8x8xf32> to vector<8x8xf32>
    %c0_2468 = arith.constant 0 : index
    %c0_2469 = arith.constant 0 : index
    %c10 = arith.constant 10 : index
    %c0_2470 = arith.constant 0 : index
    %c0_2471 = arith.constant 0 : index
    %1027 = vector.load %arg2[%c0_2468, %c0_2469, %c10, %c0_2470, %c0_2471] : memref<1x1x11x32x11xf32, #tpu.memory_space<vmem>>, vector<1x1x1x8x8xf32>
    %1028 = vector.shape_cast %1027 : vector<1x1x1x8x8xf32> to vector<8x8xf32>
    %c0_2472 = arith.constant 0 : index
    %c0_2473 = arith.constant 0 : index
    %c10_2474 = arith.constant 10 : index
    %c8_2475 = arith.constant 8 : index
    %c0_2476 = arith.constant 0 : index
    %1029 = vector.load %arg2[%c0_2472, %c0_2473, %c10_2474, %c8_2475, %c0_2476] : memref<1x1x11x32x11xf32, #tpu.memory_space<vmem>>, vector<1x1x1x8x8xf32>
    %1030 = vector.shape_cast %1029 : vector<1x1x1x8x8xf32> to vector<8x8xf32>
    %c0_2477 = arith.constant 0 : index
    %c0_2478 = arith.constant 0 : index
    %c10_2479 = arith.constant 10 : index
    %c0_2480 = arith.constant 0 : index
    %c1_2481 = arith.constant 1 : index
    %1031 = vector.load %arg2[%c0_2477, %c0_2478, %c10_2479, %c0_2480, %c1_2481] : memref<1x1x11x32x11xf32, #tpu.memory_space<vmem>>, vector<1x1x1x8x8xf32>
    %1032 = vector.shape_cast %1031 : vector<1x1x1x8x8xf32> to vector<8x8xf32>
    %c0_2482 = arith.constant 0 : index
    %c0_2483 = arith.constant 0 : index
    %c10_2484 = arith.constant 10 : index
    %c8_2485 = arith.constant 8 : index
    %c1_2486 = arith.constant 1 : index
    %1033 = vector.load %arg2[%c0_2482, %c0_2483, %c10_2484, %c8_2485, %c1_2486] : memref<1x1x11x32x11xf32, #tpu.memory_space<vmem>>, vector<1x1x1x8x8xf32>
    %1034 = vector.shape_cast %1033 : vector<1x1x1x8x8xf32> to vector<8x8xf32>
    %c0_2487 = arith.constant 0 : index
    %c0_2488 = arith.constant 0 : index
    %c10_2489 = arith.constant 10 : index
    %c0_2490 = arith.constant 0 : index
    %c2_2491 = arith.constant 2 : index
    %1035 = vector.load %arg2[%c0_2487, %c0_2488, %c10_2489, %c0_2490, %c2_2491] : memref<1x1x11x32x11xf32, #tpu.memory_space<vmem>>, vector<1x1x1x8x8xf32>
    %1036 = vector.shape_cast %1035 : vector<1x1x1x8x8xf32> to vector<8x8xf32>
    %c0_2492 = arith.constant 0 : index
    %c0_2493 = arith.constant 0 : index
    %c10_2494 = arith.constant 10 : index
    %c8_2495 = arith.constant 8 : index
    %c2_2496 = arith.constant 2 : index
    %1037 = vector.load %arg2[%c0_2492, %c0_2493, %c10_2494, %c8_2495, %c2_2496] : memref<1x1x11x32x11xf32, #tpu.memory_space<vmem>>, vector<1x1x1x8x8xf32>
    %1038 = vector.shape_cast %1037 : vector<1x1x1x8x8xf32> to vector<8x8xf32>
    %c0_2497 = arith.constant 0 : index
    %c0_2498 = arith.constant 0 : index
    %c10_2499 = arith.constant 10 : index
    %c0_2500 = arith.constant 0 : index
    %c3_2501 = arith.constant 3 : index
    %1039 = vector.load %arg2[%c0_2497, %c0_2498, %c10_2499, %c0_2500, %c3_2501] : memref<1x1x11x32x11xf32, #tpu.memory_space<vmem>>, vector<1x1x1x8x8xf32>
    %1040 = vector.shape_cast %1039 : vector<1x1x1x8x8xf32> to vector<8x8xf32>
    %c0_2502 = arith.constant 0 : index
    %c0_2503 = arith.constant 0 : index
    %c10_2504 = arith.constant 10 : index
    %c8_2505 = arith.constant 8 : index
    %c3_2506 = arith.constant 3 : index
    %1041 = vector.load %arg2[%c0_2502, %c0_2503, %c10_2504, %c8_2505, %c3_2506] : memref<1x1x11x32x11xf32, #tpu.memory_space<vmem>>, vector<1x1x1x8x8xf32>
    %1042 = vector.shape_cast %1041 : vector<1x1x1x8x8xf32> to vector<8x8xf32>
    %c0_2507 = arith.constant 0 : index
    %c0_2508 = arith.constant 0 : index
    %c10_2509 = arith.constant 10 : index
    %c16_2510 = arith.constant 16 : index
    %c0_2511 = arith.constant 0 : index
    %1043 = vector.load %arg2[%c0_2507, %c0_2508, %c10_2509, %c16_2510, %c0_2511] : memref<1x1x11x32x11xf32, #tpu.memory_space<vmem>>, vector<1x1x1x8x8xf32>
    %1044 = vector.shape_cast %1043 : vector<1x1x1x8x8xf32> to vector<8x8xf32>
    %c0_2512 = arith.constant 0 : index
    %c0_2513 = arith.constant 0 : index
    %c10_2514 = arith.constant 10 : index
    %c24_2515 = arith.constant 24 : index
    %c0_2516 = arith.constant 0 : index
    %1045 = vector.load %arg2[%c0_2512, %c0_2513, %c10_2514, %c24_2515, %c0_2516] : memref<1x1x11x32x11xf32, #tpu.memory_space<vmem>>, vector<1x1x1x8x8xf32>
    %1046 = vector.shape_cast %1045 : vector<1x1x1x8x8xf32> to vector<8x8xf32>
    %c0_2517 = arith.constant 0 : index
    %c0_2518 = arith.constant 0 : index
    %c10_2519 = arith.constant 10 : index
    %c16_2520 = arith.constant 16 : index
    %c1_2521 = arith.constant 1 : index
    %1047 = vector.load %arg2[%c0_2517, %c0_2518, %c10_2519, %c16_2520, %c1_2521] : memref<1x1x11x32x11xf32, #tpu.memory_space<vmem>>, vector<1x1x1x8x8xf32>
    %1048 = vector.shape_cast %1047 : vector<1x1x1x8x8xf32> to vector<8x8xf32>
    %c0_2522 = arith.constant 0 : index
    %c0_2523 = arith.constant 0 : index
    %c10_2524 = arith.constant 10 : index
    %c24_2525 = arith.constant 24 : index
    %c1_2526 = arith.constant 1 : index
    %1049 = vector.load %arg2[%c0_2522, %c0_2523, %c10_2524, %c24_2525, %c1_2526] : memref<1x1x11x32x11xf32, #tpu.memory_space<vmem>>, vector<1x1x1x8x8xf32>
    %1050 = vector.shape_cast %1049 : vector<1x1x1x8x8xf32> to vector<8x8xf32>
    %c0_2527 = arith.constant 0 : index
    %c0_2528 = arith.constant 0 : index
    %c10_2529 = arith.constant 10 : index
    %c16_2530 = arith.constant 16 : index
    %c2_2531 = arith.constant 2 : index
    %1051 = vector.load %arg2[%c0_2527, %c0_2528, %c10_2529, %c16_2530, %c2_2531] : memref<1x1x11x32x11xf32, #tpu.memory_space<vmem>>, vector<1x1x1x8x8xf32>
    %1052 = vector.shape_cast %1051 : vector<1x1x1x8x8xf32> to vector<8x8xf32>
    %c0_2532 = arith.constant 0 : index
    %c0_2533 = arith.constant 0 : index
    %c10_2534 = arith.constant 10 : index
    %c24_2535 = arith.constant 24 : index
    %c2_2536 = arith.constant 2 : index
    %1053 = vector.load %arg2[%c0_2532, %c0_2533, %c10_2534, %c24_2535, %c2_2536] : memref<1x1x11x32x11xf32, #tpu.memory_space<vmem>>, vector<1x1x1x8x8xf32>
    %1054 = vector.shape_cast %1053 : vector<1x1x1x8x8xf32> to vector<8x8xf32>
    %c0_2537 = arith.constant 0 : index
    %c0_2538 = arith.constant 0 : index
    %c10_2539 = arith.constant 10 : index
    %c16_2540 = arith.constant 16 : index
    %c3_2541 = arith.constant 3 : index
    %1055 = vector.load %arg2[%c0_2537, %c0_2538, %c10_2539, %c16_2540, %c3_2541] : memref<1x1x11x32x11xf32, #tpu.memory_space<vmem>>, vector<1x1x1x8x8xf32>
    %1056 = vector.shape_cast %1055 : vector<1x1x1x8x8xf32> to vector<8x8xf32>
    %c0_2542 = arith.constant 0 : index
    %c0_2543 = arith.constant 0 : index
    %c10_2544 = arith.constant 10 : index
    %c24_2545 = arith.constant 24 : index
    %c3_2546 = arith.constant 3 : index
    %1057 = vector.load %arg2[%c0_2542, %c0_2543, %c10_2544, %c24_2545, %c3_2546] : memref<1x1x11x32x11xf32, #tpu.memory_space<vmem>>, vector<1x1x1x8x8xf32>
    %1058 = vector.shape_cast %1057 : vector<1x1x1x8x8xf32> to vector<8x8xf32>
    %1059 = tpu.concatenate %932, %934, %936, %938, %940, %942, %944, %946, %948, %950, %952, %954, %956, %958, %960, %962 in 0 : vector<8x8xf32>, vector<8x8xf32>, vector<8x8xf32>, vector<8x8xf32>, vector<8x8xf32>, vector<8x8xf32>, vector<8x8xf32>, vector<8x8xf32>, vector<8x8xf32>, vector<8x8xf32>, vector<8x8xf32>, vector<8x8xf32>, vector<8x8xf32>, vector<8x8xf32>, vector<8x8xf32>, vector<8x8xf32> -> vector<128x8xf32>
    %1060 = tpu.concatenate %964, %966, %968, %970, %972, %974, %976, %978, %980, %982, %984, %986, %988, %990, %992, %994 in 0 : vector<8x8xf32>, vector<8x8xf32>, vector<8x8xf32>, vector<8x8xf32>, vector<8x8xf32>, vector<8x8xf32>, vector<8x8xf32>, vector<8x8xf32>, vector<8x8xf32>, vector<8x8xf32>, vector<8x8xf32>, vector<8x8xf32>, vector<8x8xf32>, vector<8x8xf32>, vector<8x8xf32>, vector<8x8xf32> -> vector<128x8xf32>
    %1061 = tpu.concatenate %996, %998, %1000, %1002, %1004, %1006, %1008, %1010, %1012, %1014, %1016, %1018, %1020, %1022, %1024, %1026 in 0 : vector<8x8xf32>, vector<8x8xf32>, vector<8x8xf32>, vector<8x8xf32>, vector<8x8xf32>, vector<8x8xf32>, vector<8x8xf32>, vector<8x8xf32>, vector<8x8xf32>, vector<8x8xf32>, vector<8x8xf32>, vector<8x8xf32>, vector<8x8xf32>, vector<8x8xf32>, vector<8x8xf32>, vector<8x8xf32> -> vector<128x8xf32>
    %1062 = tpu.concatenate %1028, %1030, %1032, %1034, %1036, %1038, %1040, %1042, %1044, %1046, %1048, %1050, %1052, %1054, %1056, %1058 in 0 : vector<8x8xf32>, vector<8x8xf32>, vector<8x8xf32>, vector<8x8xf32>, vector<8x8xf32>, vector<8x8xf32>, vector<8x8xf32>, vector<8x8xf32>, vector<8x8xf32>, vector<8x8xf32>, vector<8x8xf32>, vector<8x8xf32>, vector<8x8xf32>, vector<8x8xf32>, vector<8x8xf32>, vector<8x8xf32> -> vector<128x8xf32>
    %1063 = tpu.concatenate %1059, %1060, %1061, %1062 in 0 : vector<128x8xf32>, vector<128x8xf32>, vector<128x8xf32>, vector<128x8xf32> -> vector<512x8xf32>
    %1064 = tpu.concatenate %132, %265, %398, %531, %664, %797, %930, %1063 in 1 : vector<512x8xf32>, vector<512x8xf32>, vector<512x8xf32>, vector<512x8xf32>, vector<512x8xf32>, vector<512x8xf32>, vector<512x8xf32>, vector<512x8xf32> -> vector<512x64xf32>
    %c0_2547 = arith.constant 0 : index
    %c0_2548 = arith.constant 0 : index
    %1065 = vector.load %arg3[%c0_2547, %c0_2548] : memref<32x512xbf16, #tpu.memory_space<vmem>>, vector<32x512xbf16>
    %1066 = arith.truncf %1064 : vector<512x64xf32> to vector<512x64xbf16>
    %cst = arith.constant dense<0.000000e+00> : vector<32x64xf32>
    %1067 = tpu.matmul %1065, %1066, %cst {dimension_numbers = #tpu.dot_dimension_numbers<[1], [0], [0], [1], [0, 0, 1, 1], [], []>} : vector<32x512xbf16>, vector<512x64xbf16>, vector<32x64xf32> -> vector<32x64xf32>
    %c0_2549 = arith.constant 0 : index
    %c0_2550 = arith.constant 0 : index
    %1068 = vector.load %arg4[%c0_2549, %c0_2550] : memref<32x1xf32, #tpu.memory_space<vmem>>, vector<32x1xf32>
    %1069 = vector.broadcast %1068 : vector<32x1xf32> to vector<32x64xf32>
    %1070 = arith.addf %1067, %1069 : vector<32x64xf32>
    %c0_2551 = arith.constant 0 : index
    %c0_2552 = arith.constant 0 : index
    %c0_2553 = arith.constant 0 : index
    %1071 = vector.load %arg5[%c0_2551, %c0_2552, %c0_2553] : memref<1x32x64xf32, #tpu.memory_space<vmem>>, vector<1x32x64xf32>
    %1072 = vector.shape_cast %1071 : vector<1x32x64xf32> to vector<32x64xf32>
    %1073 = vector.shape_cast %1070 : vector<32x64xf32> to vector<1x32x64xf32>
    tpu.vector_store %arg5[%c0_2551, %c0_2552, %c0_2553], %1073 {strides = array<i32>} : memref<1x32x64xf32, #tpu.memory_space<vmem>>, vector<1x32x64xf32>,
    return
  }
  func.func @transform_0(%arg0: i32, %arg1: i32) -> (i32, i32, i32, i32, i32) {
    %c0_i32 = arith.constant 0 : i32
    %c0_i32_0 = arith.constant 0 : i32
    %c0_i32_1 = arith.constant 0 : i32
    %c0_i32_2 = arith.constant 0 : i32
    return %arg0, %arg1, %c0_i32, %c0_i32_0, %c0_i32_1 : i32, i32, i32, i32, i32
  }
  func.func @transform_1(%arg0: i32, %arg1: i32) -> (i32, i32) {
    %c0_i32 = arith.constant 0 : i32
    %c0_i32_0 = arith.constant 0 : i32
    %c0_i32_1 = arith.constant 0 : i32
    return %c0_i32, %c0_i32_0 : i32, i32
  }
  func.func @transform_2(%arg0: i32, %arg1: i32) -> (i32, i32) {
    %c0_i32 = arith.constant 0 : i32
    %c0_i32_0 = arith.constant 0 : i32
    %c0_i32_1 = arith.constant 0 : i32
    return %c0_i32, %c0_i32_0 : i32, i32
  }
  func.func @transform_3(%arg0: i32, %arg1: i32) -> (i32, i32, i32) {
    %c0_i32 = arith.constant 0 : i32
    %c0_i32_0 = arith.constant 0 : i32
    return %arg0, %c0_i32, %arg1 : i32, i32, i32
  }
}

</mosaic_0001>

<bundles_post_ra>
// kernel: tpu_custom_call.1
= control target key start
LH: loop header
LB: loop body
LE: loop exit
PB: predicated region body
PF: predicated region fallthrough
CT: control target
= control target key end

     0   :  { %8 = vsyncpa [#allocation3], 0  ;;  %s7063_s0 = inlined_call_operand.vmem [shape: f32[2,1,11,32,11], index: 0, kind: input, shape index: {}]   ;;  %s7064_s1 = inlined_call_operand.vmem [shape: bf16[32,512], index: 1, kind: input, shape index: {}]   ;;  %s7065_s2 = inlined_call_operand.vmem [shape: f32[32,1], index: 2, kind: input, shape index: {}]   ;;  %s7066_s3 = inlined_call_operand.hbm [shape: f32[2,32,64], index: 3, kind: output, shape index: {}]  }
   0x1   :  { %10 = vsyncpa [#allocation3 + $0x1], 0  ;;  %s4518_s12 = smov 0   ;;  %s4520_s13 = smov 0  }
   0x2   :  { %s4522_s14 = smov 0   ;;  %s4524_s15 = smov 0  }
   0x3   :  { %s4526_s16 = smov 0   ;;  %s4528_s17 = smov 0  }
   0x4 LB: > { %s2710_s18 = sadd.s32 4294967295, %s4483_s17   ;;  %s2711_s19 = sadd.s32 4294967294, %s4483_s17   ;;  %s4483_s17 = sphi %s4528_s17, %s16_s17   ;;  %s4479_s16 = sphi %s4526_s16, %s7550_s16   ;;  %s4475_s15 = sphi %s4524_s15, %s7549_s15   ;;  %s4471_s14 = sphi %s4522_s14, %s7548_s14   ;;  %s4467_s13 = sphi %s4520_s13, %s7547_s13   ;;  %s4463_s12 = sphi %s4518_s12, %s7546_s12  }
   0x5   : > { %s28_s20 = sadd.s32 1, %s4479_s16  ;;  %s107_s21 = sadd.s32 1, %s4471_s14 }
   0x6   : > { %p30_p0 = scmp.ge.s32.totalorder %s28_s20, 2  ;;  %p117_p1 = scmp.ne.s32.totalorder %s4471_s14, %s4467_s13 }
   0x7   : > { %p118_p2 = scmp.eq.s32.totalorder %s2710_s18, 1  ;;  %p123_p3 = scmp.ne.s32.totalorder %s4467_s13, %s4463_s12 }
   0x8   : > { %s7552_s20 = smov (%p30_p0, %s28_s20), 0  ;;  %p124_p5 = scmp.eq.s32.totalorder %s2711_s19, 1 }
   0x9   : > { %p4558_p4 = por %p118_p2, %p117_p1  ;;  %s102_s23 = ssub.s32 %s4479_s16, %s7552_s20 }
   0xa   : > { %p2714_p6 = scmp.ge.s32.totalorder %s4483_s17, 1  ;;  %p105_p7 = scmp.eq.s32.totalorder %s102_s23, 0 }
   0xb   : > { %p4565_p8 = por %p124_p5, %p123_p3  ;;  %p160_p9 = scmp.lt.s32.totalorder %s4483_s17, 3 }
   0xc   : > { %s4571_s25 = scalar_select %p105_p7, %s4471_s14, %s107_s21  }
   0xd   : > { %p161_p10 = pnand %p2714_p6, %p160_p9 }
   0xf   : > { %164 = sbr.rel (%p161_p10) target bundleno = 958 (0x3be), region = 32 }
  0x14   : > { %p188_p11 = scmp.lt.s32.totalorder %s4475_s15, 1  ;;  %s4485_s4 = smov 125   ;;  %vm1952_vm0 = vcmask 64512   ;;  %vm2017_vm1 = vcmask 130048   ;;  %vm2082_vm2 = vcmask 195584   ;;  %vm2147_vm3 = vcmask 261120  }
  0x15   : > { %s4486_s5 = smov 127   ;;  %s4487_s6 = smov 126   ;;  %vm2212_vm4 = vcmask 326656   ;;  %vm2277_vm5 = vcmask 392192   ;;  %vm2342_vm6 = vcmask 457728   ;;  %vm2609_vm7 = vcmask 523264  }
  0x16   : > { %s189_s26 = scalar_select %p188_p11, %s4475_s15, 1 }
  0x17   : > { %s4488_s7 = smov 8   ;;  %s4489_s8 = smov 16  }
  0x18   : > { %s2827_s27 = smul.u32 352, %s189_s26  ;;  %s4490_s9 = smov 24  }
  0x19   : > { %s4491_s10 = smov 32   ;;  %s4492_s11 = smov 40  }
  0x1a   : > { %s4578_s30 = scalar_lea.vmem %s7063_s0, %s2827_s27  ;;  %s4493_s18 = smov 48  }
  0x1b   : > { %v198_v0 = vld [vmem:[%s4578_s30] sm:$0xff]  ;;  %v199_v1 = vld [vmem:[%s4578_s30 + $0x8] sm:$0xff]  ;;  %v200_v2 = vld [vmem:[%s4578_s30 + $0x10] sm:$0xff]  ;;  %s4494_s19 = smov 56   ;;  %s4496_s23 = smov [#allocation2]  }
  0x1c   : > { %v2905_v3 = vpack.i.bf16 %v199_v1, %v198_v0  ;;  %v201_v4 = vld [vmem:[%s4578_s30 + $0x18] sm:$0xff]  ;;  %v2717_v6 = vld [vmem:[%s4578_s30 + $0x20] sm:$0xff]  ;;  %v2718_v7 = vld [vmem:[%s4578_s30 + $0x28] sm:$0xff]  ;;  %s4411_s26 = sshll.u32 %s4496_s23, 4  ;;  %s4412_s26 = int_to_ptr.vmem [resolvable:$false] %s4411_s26 }
  0x1d   : > { %v2910_v5 = vpack.i.bf16 %v201_v4, %v200_v2  ;;  %v4592_v8 = vpack.i.bf16 %v2718_v7, %v2717_v6  ;;  %v2719_v9 = vld [vmem:[%s4578_s30 + $0x30] sm:$0xff]  ;;  %v2720_v10 = vld [vmem:[%s4578_s30 + $0x38] sm:$0xff]  ;;  %v2721_v12 = vld [vmem:[%s4578_s30 + $0x40] sm:$0xff]  ;;  %s4413_s27 = scalar_lea.vmem %s4412_s26, 1024 }
  0x1e   : > { %2906 = vrot.lane.b32.xlu1 %v2905_v3, %s4485_s4  ;;  %2896 = vrot.lane.b32.xlu0 %v2905_v3, %s4486_s5  ;;  %v4600_v11 = vpack.i.bf16 %v2720_v10, %v2719_v9  ;;  %v2722_v13 = vld [vmem:[%s4578_s30 + $0x48] sm:$0xff]  ;;  %v2723_v15 = vld [vmem:[%s4578_s30 + $0x50] sm:$0xff] }
  0x1f   : > { %v4612_v14 = vpack.i.bf16 %v2722_v13, %v2721_v12  ;;  %v2724_v16 = vld [vmem:[%s4578_s30 + $0x58] sm:$0xff]  ;;  %v2725_v18 = vld [vmem:[%s4578_s30 + $0x60] sm:$0xff]  ;;  %v2726_v19 = vld [vmem:[%s4578_s30 + $0x68] sm:$0xff] }
  0x20   : > { %v4620_v17 = vpack.i.bf16 %v2724_v16, %v2723_v15  ;;  %v4632_v20 = vpack.i.bf16 %v2726_v19, %v2725_v18  ;;  %v2727_v21 = vld [vmem:[%s4578_s30 + $0x70] sm:$0xff]  ;;  %v2728_v22 = vld [vmem:[%s4578_s30 + $0x78] sm:$0xff]  ;;  %v2729_v24 = vld [vmem:[%s4578_s30 + $0x80] sm:$0xff] }
  0x21   : > { %v4640_v23 = vpack.i.bf16 %v2728_v22, %v2727_v21  ;;  %v2730_v25 = vld [vmem:[%s4578_s30 + $0x88] sm:$0xff]  ;;  %v2731_v27 = vld [vmem:[%s4578_s30 + $0x90] sm:$0xff]  ;;  %v2732_v28 = vld [vmem:[%s4578_s30 + $0x98] sm:$0xff] }
  0x22   : > { %2911 = vrot.lane.b32.xlu1 %v2910_v5, %s4486_s5  ;;  %2901 = vrot.lane.b32.xlu0 %v2905_v3, %s4487_s6  ;;  %v4652_v26 = vpack.i.bf16 %v2730_v25, %v2729_v24  ;;  %v4660_v29 = vpack.i.bf16 %v2732_v28, %v2731_v27  ;;  %v2733_v30 = vld [vmem:[%s4578_s30 + $0xa0] sm:$0xff]  ;;  %v2734_v31 = vld [vmem:[%s4578_s30 + $0xa8] sm:$0xff] }
  0x23   : > { %v4672_v32 = vpack.i.bf16 %v2734_v31, %v2733_v30  ;;  %v2735_v33 = vld [vmem:[%s4578_s30 + $0xb0] sm:$0xff]  ;;  %v2736_v34 = vld [vmem:[%s4578_s30 + $0xb8] sm:$0xff]  ;;  %v2737_v36 = vld [vmem:[%s4578_s30 + $0xc0] sm:$0xff] }
  0x24   : > { %v4680_v35 = vpack.i.bf16 %v2736_v34, %v2735_v33  ;;  %v2738_v37 = vld [vmem:[%s4578_s30 + $0xc8] sm:$0xff]  ;;  %v2739_v39 = vld [vmem:[%s4578_s30 + $0xd0] sm:$0xff]  ;;  %v2740_v40 = vld [vmem:[%s4578_s30 + $0xd8] sm:$0xff] }
  0x25   : > { %v4692_v38 = vpack.i.bf16 %v2738_v37, %v2737_v36  ;;  %v4700_v41 = vpack.i.bf16 %v2740_v40, %v2739_v39  ;;  %v2741_v42 = vld [vmem:[%s4578_s30 + $0xe0] sm:$0xff]  ;;  %v2742_v43 = vld [vmem:[%s4578_s30 + $0xe8] sm:$0xff]  ;;  %v2743_v45 = vld [vmem:[%s4578_s30 + $0xf0] sm:$0xff] }
  0x26   : > { %2921 = vrot.lane.b32.xlu1 %v2910_v5, %s4485_s4  ;;  %2916 = vrot.lane.b32.xlu0 %v2910_v5, %s4487_s6  ;;  %v3110_v44 = vpack.i.bf16 %v2742_v43, %v2741_v42  ;;  %v2744_v46 = vld [vmem:[%s4578_s30 + $0xf8] sm:$0xff]  ;;  %v2745_v48 = vld [vmem:[%s4578_s30 + $0x100] sm:$0xff] }
  0x27   : > { %v3120_v47 = vpack.i.bf16 %v2744_v46, %v2743_v45  ;;  %v2746_v49 = vld [vmem:[%s4578_s30 + $0x108] sm:$0xff]  ;;  %v2747_v51 = vld [vmem:[%s4578_s30 + $0x110] sm:$0xff]  ;;  %v2748_v52 = vld [vmem:[%s4578_s30 + $0x118] sm:$0xff] }
  0x28   : > { %v3140_v50 = vpack.i.bf16 %v2746_v49, %v2745_v48  ;;  %v3150_v53 = vpack.i.bf16 %v2748_v52, %v2747_v51  ;;  %v2749_v54 = vld [vmem:[%s4578_s30 + $0x120] sm:$0xff]  ;;  %v2750_v55 = vld [vmem:[%s4578_s30 + $0x128] sm:$0xff]  ;;  %v2751_v57 = vld [vmem:[%s4578_s30 + $0x130] sm:$0xff] }
  0x29   : > { %v3170_v56 = vpack.i.bf16 %v2750_v55, %v2749_v54  ;;  %v2752_v58 = vld [vmem:[%s4578_s30 + $0x138] sm:$0xff]  ;;  %v2753_v60 = vld [vmem:[%s4578_s30 + $0x140] sm:$0xff]  ;;  %v2754_v61 = vld [vmem:[%s4578_s30 + $0x148] sm:$0xff] }
  0x2a   : > { %2931 = vrot.lane.b32.xlu1 %v4592_v8, %s4487_s6  ;;  %2926 = vrot.lane.b32.xlu0 %v4592_v8, %s4486_s5  ;;  %v3180_v59 = vpack.i.bf16 %v2752_v58, %v2751_v57  ;;  %v3200_v0 = vpack.i.bf16 %v2754_v61, %v2753_v60  ;;  %v2755_v1 = vld [vmem:[%s4578_s30 + $0x150] sm:$0xff]  ;;  %v2756_v2 = vld [vmem:[%s4578_s30 + $0x158] sm:$0xff] }
  0x2b   : > { %v3210_v5 = vpack.i.bf16 %v2756_v2, %v2755_v1 }
  0x2e   : > { %2941 = vrot.lane.b32.xlu1 %v4600_v11, %s4486_s5  ;;  %2936 = vrot.lane.b32.xlu0 %v4592_v8, %s4485_s4 }
  0x32   : > { %2951 = vrot.lane.b32.xlu1 %v4600_v11, %s4485_s4  ;;  %2946 = vrot.lane.b32.xlu0 %v4600_v11, %s4487_s6 }
  0x36   : > { %2961 = vrot.lane.b32.xlu1 %v4612_v14, %s4487_s6  ;;  %2956 = vrot.lane.b32.xlu0 %v4612_v14, %s4486_s5 }
  0x3a   : > { %2971 = vrot.lane.b32.xlu1 %v4620_v17, %s4486_s5  ;;  %2966 = vrot.lane.b32.xlu0 %v4612_v14, %s4485_s4 }
  0x3e   : > { %2981 = vrot.lane.b32.xlu1 %v4620_v17, %s4485_s4  ;;  %2976 = vrot.lane.b32.xlu0 %v4620_v17, %s4487_s6 }
  0x42   : > { %2991 = vrot.lane.b32.xlu1 %v4632_v20, %s4487_s6  ;;  %2986 = vrot.lane.b32.xlu0 %v4632_v20, %s4486_s5 }
  0x46   : > { %3001 = vrot.lane.b32.xlu1 %v4640_v23, %s4486_s5  ;;  %2996 = vrot.lane.b32.xlu0 %v4632_v20, %s4485_s4 }
  0x4a   : > { %3011 = vrot.lane.b32.xlu1 %v4640_v23, %s4485_s4  ;;  %3006 = vrot.lane.b32.xlu0 %v4640_v23, %s4487_s6 }
  0x4e   : > { %3021 = vrot.lane.b32.xlu1 %v4652_v26, %s4487_s6  ;;  %3016 = vrot.lane.b32.xlu0 %v4652_v26, %s4486_s5 }
  0x52   : > { %3031 = vrot.lane.b32.xlu1 %v4660_v29, %s4486_s5  ;;  %3026 = vrot.lane.b32.xlu0 %v4652_v26, %s4485_s4 }
  0x56   : > { %3041 = vrot.lane.b32.xlu1 %v4660_v29, %s4485_s4  ;;  %3036 = vrot.lane.b32.xlu0 %v4660_v29, %s4487_s6 }
  0x5a   : > { %3051 = vrot.lane.b32.xlu1 %v4672_v32, %s4487_s6  ;;  %3046 = vrot.lane.b32.xlu0 %v4672_v32, %s4486_s5 }
  0x5e   : > { %3061 = vrot.lane.b32.xlu1 %v4680_v35, %s4486_s5  ;;  %3056 = vrot.lane.b32.xlu0 %v4672_v32, %s4485_s4 }
  0x62   : > { %3071 = vrot.lane.b32.xlu1 %v4680_v35, %s4485_s4  ;;  %3066 = vrot.lane.b32.xlu0 %v4680_v35, %s4487_s6 }
  0x66   : > { %3081 = vrot.lane.b32.xlu1 %v4692_v38, %s4487_s6  ;;  %3076 = vrot.lane.b32.xlu0 %v4692_v38, %s4486_s5 }
  0x6a   : > { %3091 = vrot.lane.b32.xlu1 %v4700_v41, %s4486_s5  ;;  %3086 = vrot.lane.b32.xlu0 %v4692_v38, %s4485_s4 }
  0x6e   : > { %3101 = vrot.lane.b32.xlu1 %v4700_v41, %s4485_s4  ;;  %3096 = vrot.lane.b32.xlu0 %v4700_v41, %s4487_s6 }
  0x72   : > { %3111 = vrot.lane.b32.xlu1 %v3110_v44, %s4487_s6  ;;  %3106 = vrot.lane.b32.xlu0 %v3110_v44, %s4486_s5 }
  0x76   : > { %3121 = vrot.lane.b32.xlu1 %v3120_v47, %s4486_s5  ;;  %3116 = vrot.lane.b32.xlu0 %v3110_v44, %s4485_s4 }
  0x7a   : > { %3131 = vrot.lane.b32.xlu1 %v3120_v47, %s4485_s4  ;;  %3126 = vrot.lane.b32.xlu0 %v3120_v47, %s4487_s6 }
  0x7e   : > { %3141 = vrot.lane.b32.xlu1 %v3140_v50, %s4487_s6  ;;  %3136 = vrot.lane.b32.xlu0 %v3140_v50, %s4486_s5 }
  0x82   : > { %3151 = vrot.lane.b32.xlu1 %v3150_v53, %s4486_s5  ;;  %3146 = vrot.lane.b32.xlu0 %v3140_v50, %s4485_s4 }
  0x86   : > { %3161 = vrot.lane.b32.xlu1 %v3150_v53, %s4485_s4  ;;  %3156 = vrot.lane.b32.xlu0 %v3150_v53, %s4487_s6 }
  0x8a   : > { %3171 = vrot.lane.b32.xlu1 %v3170_v56, %s4487_s6  ;;  %3166 = vrot.lane.b32.xlu0 %v3170_v56, %s4486_s5 }
  0x8e   : > { %3181 = vrot.lane.b32.xlu1 %v3180_v59, %s4486_s5  ;;  %3176 = vrot.lane.b32.xlu0 %v3170_v56, %s4485_s4 }
  0x90   : > { %v4740_v62 = vpop.permute.xlu1 %2906  ;;  %v4742_v63 = vpop.permute.xlu0 %2896 }
  0x92   : > { %3191 = vrot.lane.b32.xlu1 %v3180_v59, %s4485_s4  ;;  %3186 = vrot.lane.b32.xlu0 %v3180_v59, %s4487_s6 }
  0x94   : > { %v4748_v3 = vpop.permute.xlu1 %2911  ;;  %v4750_v4 = vpop.permute.xlu0 %2901 }
  0x95   : > { %7182 = vst [vmem:[#allocation5_spill] sm:$0xff] %v4748_v3 }
  0x96   : > { %3201 = vrot.lane.b32.xlu1 %v3200_v0, %s4487_s6  ;;  %3196 = vrot.lane.b32.xlu0 %v3200_v0, %s4486_s5 }
  0x98   : > { %v4754_v6 = vpop.permute.xlu1 %2921  ;;  %v4756_v7 = vpop.permute.xlu0 %2916 }
  0x99   : > { %7183 = vst [vmem:[#allocation6_spill] sm:$0xff] %v4754_v6  ;;  %7184 = vst [vmem:[#allocation7_spill] sm:$0xff] %v4756_v7 }
  0x9a   : > { %3211 = vrot.lane.b32.xlu1 %v3210_v5, %s4486_s5  ;;  %3206 = vrot.lane.b32.xlu0 %v3200_v0, %s4485_s4  ;;  %s185_s5 = sand.u32 1, %s4467_s13  }
  0x9b   : > { %s7017_s21 = scalar_lea.sflag [#allocation3], %s185_s5 }
  0x9c   : > { %v4760_v9 = vpop.permute.xlu1 %2931  ;;  %v4762_v10 = vpop.permute.xlu0 %2926 }
  0x9e   : > { %3221 = vrot.lane.b32.xlu1 %v3210_v5, %s4485_s4  ;;  %3216 = vrot.lane.b32.xlu0 %v3210_v5, %s4487_s6  ;;  %s2715_s6 = sshll.u32 %s185_s5, 5 }
  0xa0   : > { %v4770_v18 = vpop.permute.xlu1 %2941  ;;  %v4772_v19 = vpop.permute.xlu0 %2936 }
  0xa1   : > { %7185 = vst [vmem:[#allocation8_spill] sm:$0xff] %v4770_v18 }
  0xa2   : > { %3226 = vrot.lane.b32.xlu0 %v4592_v8, %s4488_s7  ;;  %3231 = vrot.lane.b32.xlu1 %v4762_v10, %s4488_s7 }
  0xa4   : > { %v4782_v27 = vpop.permute.xlu1 %2951  ;;  %v4784_v28 = vpop.permute.xlu0 %2946 }
  0xa5   : > { %7186 = vst [vmem:[#allocation9_spill] sm:$0xff] %v4782_v27  ;;  %7187 = vst [vmem:[#allocation10_spill] sm:$0xff] %v4784_v28 }
  0xa6   : > { %3236 = vrot.lane.b32.xlu0 %v4760_v9, %s4488_s7  ;;  %3241 = vrot.lane.b32.xlu1 %v4772_v19, %s4488_s7 }
  0xa8   : > { %v4794_v34 = vpop.permute.xlu1 %2961  ;;  %v4796_v36 = vpop.permute.xlu0 %2956 }
  0xaa   : > { %3246 = vrot.lane.b32.xlu0 %v4600_v11, %s4488_s7  ;;  %3251 = vrot.lane.b32.xlu1 %v4770_v18, %s4488_s7 }
  0xac   : > { %v4804_v40 = vpop.permute.xlu1 %2971  ;;  %v4806_v42 = vpop.permute.xlu0 %2966 }
  0xad   : > { %7188 = vst [vmem:[#allocation11_spill] sm:$0xff] %v4804_v40 }
  0xae   : > { %3256 = vrot.lane.b32.xlu0 %v4784_v28, %s4488_s7  ;;  %3261 = vrot.lane.b32.xlu1 %v4782_v27, %s4488_s7 }
  0xb0   : > { %v4816_v46 = vpop.permute.xlu1 %2981  ;;  %v4818_v47 = vpop.permute.xlu0 %2976 }
  0xb1   : > { %7189 = vst [vmem:[#allocation12_spill] sm:$0xff] %v4816_v46  ;;  %7190 = vst [vmem:[#allocation13_spill] sm:$0xff] %v4818_v47 }
  0xb2   : > { %3266 = vrot.lane.b32.xlu0 %v4612_v14, %s4488_s7  ;;  %3271 = vrot.lane.b32.xlu1 %v4796_v36, %s4488_s7 }
  0xb4   : > { %v4826_v50 = vpop.permute.xlu1 %2991  ;;  %v4828_v51 = vpop.permute.xlu0 %2986 }
  0xb5   : > { %7191 = vst [vmem:[#allocation14_spill] sm:$0xff] %v4826_v50 }
  0xb6   : > { %3276 = vrot.lane.b32.xlu0 %v4794_v34, %s4488_s7  ;;  %3281 = vrot.lane.b32.xlu1 %v4806_v42, %s4488_s7 }
  0xb8   : > { %v4838_v56 = vpop.permute.xlu1 %3001  ;;  %v4840_v57 = vpop.permute.xlu0 %2996 }
  0xb9   : > { %7192 = vst [vmem:[#allocation15_spill] sm:$0xff] %v4838_v56  ;;  %7193 = vst [vmem:[#allocation16_spill] sm:$0xff] %v4840_v57 }
  0xba   : > { %3286 = vrot.lane.b32.xlu0 %v4620_v17, %s4488_s7  ;;  %3291 = vrot.lane.b32.xlu1 %v4804_v40, %s4488_s7 }
  0xbc   : > { %v4848_v60 = vpop.permute.xlu1 %3011  ;;  %v4850_v61 = vpop.permute.xlu0 %3006 }
  0xbd   : > { %7194 = vst [vmem:[#allocation17_spill] sm:$0xff] %v4848_v60  ;;  %7195 = vst [vmem:[#allocation18_spill] sm:$0xff] %v4850_v61 }
  0xbe   : > { %3296 = vrot.lane.b32.xlu0 %v4818_v47, %s4488_s7  ;;  %3301 = vrot.lane.b32.xlu1 %v4816_v46, %s4488_s7 }
  0xc0   : > { %v4860_v53 = vpop.permute.xlu1 %3021  ;;  %v4862_v52 = vpop.permute.xlu0 %3016 }
  0xc2   : > { %3306 = vrot.lane.b32.xlu0 %v4632_v20, %s4488_s7  ;;  %3311 = vrot.lane.b32.xlu1 %v4828_v51, %s4488_s7 }
  0xc4   : > { %v4870_v49 = vpop.permute.xlu1 %3031  ;;  %v4872_v48 = vpop.permute.xlu0 %3026 }
  0xc6   : > { %3316 = vrot.lane.b32.xlu0 %v4826_v50, %s4488_s7  ;;  %3321 = vrot.lane.b32.xlu1 %v4840_v57, %s4488_s7 }
  0xc8   : > { %v4882_v33 = vpop.permute.xlu1 %3041  ;;  %v4884_v31 = vpop.permute.xlu0 %3036 }
  0xca   : > { %3326 = vrot.lane.b32.xlu0 %v4640_v23, %s4488_s7  ;;  %3331 = vrot.lane.b32.xlu1 %v4838_v56, %s4488_s7 }
  0xcc   : > { %v4890_v25 = vpop.permute.xlu1 %3051  ;;  %v4892_v24 = vpop.permute.xlu0 %3046 }
  0xce   : > { %3336 = vrot.lane.b32.xlu0 %v4850_v61, %s4488_s7  ;;  %3341 = vrot.lane.b32.xlu1 %v4848_v60, %s4488_s7 }
  0xd0   : > { %v4898_v54 = vpop.permute.xlu1 %3061  ;;  %v4900_v55 = vpop.permute.xlu0 %3056 }
  0xd2   : > { %3346 = vrot.lane.b32.xlu0 %v4652_v26, %s4488_s7  ;;  %3351 = vrot.lane.b32.xlu1 %v4862_v52, %s4488_s7 }
  0xd4   : > { %v4906_v30 = vpop.permute.xlu1 %3071  ;;  %v4908_v8 = vpop.permute.xlu0 %3066 }
  0xd6   : > { %3356 = vrot.lane.b32.xlu0 %v4860_v53, %s4488_s7  ;;  %3361 = vrot.lane.b32.xlu1 %v4872_v48, %s4488_s7 }
  0xd8   : > { %v4914_v5 = vpop.permute.xlu1 %3081  ;;  %v4916_v2 = vpop.permute.xlu0 %3076 }
  0xd9   : > { %7196 = vst [vmem:[#allocation19_spill] sm:$0xff] %v4916_v2 }
  0xda   : > { %3366 = vrot.lane.b32.xlu0 %v4660_v29, %s4488_s7  ;;  %3371 = vrot.lane.b32.xlu1 %v4870_v49, %s4488_s7 }
  0xdc   : > { %v4922_v1 = vpop.permute.xlu1 %3091  ;;  %v4924_v0 = vpop.permute.xlu0 %3086 }
  0xde   : > { %3376 = vrot.lane.b32.xlu0 %v4884_v31, %s4488_s7  ;;  %3381 = vrot.lane.b32.xlu1 %v4882_v33, %s4488_s7 }
  0xe0   : > { %v4930_v59 = vpop.permute.xlu1 %3101  ;;  %v4932_v58 = vpop.permute.xlu0 %3096 }
  0xe2   : > { %3386 = vrot.lane.b32.xlu0 %v4612_v14, %s4489_s8  ;;  %3391 = vrot.lane.b32.xlu1 %v4796_v36, %s4489_s8 }
  0xe4   : > { %v4938_v45 = vpop.permute.xlu1 %3111  ;;  %v4940_v44 = vpop.permute.xlu0 %3106 }
  0xe5   : > { %7197 = vst [vmem:[#allocation20_spill] sm:$0xff] %v4938_v45  ;;  %7198 = vst [vmem:[#allocation21_spill] sm:$0xff] %v4940_v44 }
  0xe6   : > { %3396 = vrot.lane.b32.xlu0 %v4794_v34, %s4489_s8  ;;  %3401 = vrot.lane.b32.xlu1 %v4806_v42, %s4489_s8 }
  0xe8   : > { %v4946_v11 = vpop.permute.xlu1 %3121  ;;  %v4948_v43 = vpop.permute.xlu0 %3116 }
  0xe9   : > { %7199 = vst [vmem:[#allocation22_spill] sm:$0xff] %v4946_v11  ;;  %7200 = vst [vmem:[#allocation23_spill] sm:$0xff] %v4948_v43 }
  0xea   : > { %3406 = vrot.lane.b32.xlu0 %v4620_v17, %s4489_s8  ;;  %3411 = vrot.lane.b32.xlu1 %v4804_v40, %s4489_s8 }
  0xec   : > { %v4954_v14 = vpop.permute.xlu1 %3131  ;;  %v4956_v39 = vpop.permute.xlu0 %3126 }
  0xed   : > { %7201 = vst [vmem:[#allocation24_spill] sm:$0xff] %v4954_v14  ;;  %7202 = vst [vmem:[#allocation25_spill] sm:$0xff] %v4956_v39 }
  0xee   : > { %3416 = vrot.lane.b32.xlu0 %v4818_v47, %s4489_s8  ;;  %3421 = vrot.lane.b32.xlu1 %v4816_v46, %s4489_s8 }
  0xf0   : > { %v4962_v37 = vpop.permute.xlu1 %3141  ;;  %v4964_v22 = vpop.permute.xlu0 %3136 }
  0xf1   : > { %7203 = vst [vmem:[#allocation26_spill] sm:$0xff] %v4962_v37  ;;  %7204 = vst [vmem:[#allocation27_spill] sm:$0xff] %v4964_v22 }
  0xf2   : > { %3426 = vrot.lane.b32.xlu0 %v4632_v20, %s4489_s8  ;;  %3431 = vrot.lane.b32.xlu1 %v4828_v51, %s4489_s8 }
  0xf4   : > { %v4970_v17 = vpop.permute.xlu1 %3151  ;;  %v4972_v21 = vpop.permute.xlu0 %3146 }
  0xf5   : > { %7205 = vst [vmem:[#allocation28_spill] sm:$0xff] %v4970_v17  ;;  %7206 = vst [vmem:[#allocation29_spill] sm:$0xff] %v4972_v21 }
  0xf6   : > { %3436 = vrot.lane.b32.xlu0 %v4826_v50, %s4489_s8  ;;  %3441 = vrot.lane.b32.xlu1 %v4840_v57, %s4489_s8 }
  0xf8   : > { %v4978_v16 = vpop.permute.xlu1 %3161  ;;  %v4980_v15 = vpop.permute.xlu0 %3156 }
  0xf9   : > { %7207 = vst [vmem:[#allocation30_spill] sm:$0xff] %v4978_v16  ;;  %7208 = vst [vmem:[#allocation31_spill] sm:$0xff] %v4980_v15  ;;  %v2903_v16 = vunpack.i.l.bf16 %v4750_v4 }
  0xfa   : > { %3446 = vrot.lane.b32.xlu0 %v4640_v23, %s4489_s8  ;;  %3451 = vrot.lane.b32.xlu1 %v4838_v56, %s4489_s8 }
  0xfc   : > { %v4986_v13 = vpop.permute.xlu1 %3171  ;;  %v4988_v12 = vpop.permute.xlu0 %3166 }
  0xfd   : > { %7209 = vst [vmem:[#allocation32_spill] sm:$0xff] %v4986_v13  ;;  %7210 = vst [vmem:[#allocation33_spill] sm:$0xff] %v4988_v12 }
  0xfe   : > { %3456 = vrot.lane.b32.xlu0 %v4850_v61, %s4489_s8  ;;  %3461 = vrot.lane.b32.xlu1 %v4848_v60, %s4489_s8 }
 0x100   : > { %v4994_v22 = vpop.permute.xlu1 %3181  ;;  %v4996_v37 = vpop.permute.xlu0 %3176 }
 0x101   : > { %7211 = vst [vmem:[#allocation34_spill] sm:$0xff] %v4994_v22  ;;  %7212 = vst [vmem:[#allocation35_spill] sm:$0xff] %v4996_v37 }
 0x102   : > { %3466 = vrot.lane.b32.xlu0 %v4652_v26, %s4489_s8  ;;  %3471 = vrot.lane.b32.xlu1 %v4862_v52, %s4489_s8 }
 0x104   : > { %v5002_v46 = vpop.permute.xlu1 %3191  ;;  %v5004_v13 = vpop.permute.xlu0 %3186 }
 0x105   : > { %7213 = vst [vmem:[#allocation36_spill] sm:$0xff] %v5002_v46  ;;  %7214 = vst [vmem:[#allocation37_spill] sm:$0xff] %v5004_v13  ;;  %v2898_v46 = vunpack.i.l.bf16 %v4742_v63 }
 0x106   : > { %3476 = vrot.lane.b32.xlu0 %v4860_v53, %s4489_s8  ;;  %3481 = vrot.lane.b32.xlu1 %v4872_v48, %s4489_s8 }
 0x108   : > { %v5010_v12 = vpop.permute.xlu1 %3201  ;;  %v5012_v47 = vpop.permute.xlu0 %3196 }
 0x109   : > { %7215 = vst [vmem:[#allocation38_spill] sm:$0xff] %v5010_v12  ;;  %7216 = vst [vmem:[#allocation39_spill] sm:$0xff] %v5012_v47 }
 0x10a   : > { %3486 = vrot.lane.b32.xlu0 %v4660_v29, %s4489_s8  ;;  %3491 = vrot.lane.b32.xlu1 %v4870_v49, %s4489_s8 }
 0x10c   : > { %v5018_v37 = vpop.permute.xlu1 %3211  ;;  %v5020_v21 = vpop.permute.xlu0 %3206 }
 0x10d   : > { %7217 = vst [vmem:[#allocation40_spill] sm:$0xff] %v5018_v37  ;;  %7218 = vst [vmem:[#allocation41_spill] sm:$0xff] %v5020_v21 }
 0x10e   : > { %3496 = vrot.lane.b32.xlu0 %v4884_v31, %s4489_s8  ;;  %3501 = vrot.lane.b32.xlu1 %v4882_v33, %s4489_s8 }
 0x110   : > { %v5026_v40 = vpop.permute.xlu1 %3221  ;;  %v5028_v12 = vpop.permute.xlu0 %3216 }
 0x111   : > { %7219 = vst [vmem:[#allocation42_spill] sm:$0xff] %v5026_v40  ;;  %7220 = vst [vmem:[#allocation43_spill] sm:$0xff] %v5028_v12 }
 0x112   : > { %3506 = vrot.lane.b32.xlu0 %v4672_v32, %s4489_s8  ;;  %3511 = vrot.lane.b32.xlu1 %v4892_v24, %s4489_s8 }
 0x114   : > { %v5034_v47 = vpop.permute.xlu0 %3226  ;;  %v5036_v27 = vpop.permute.xlu1 %3231 }
 0x115   : > { %v3229_v12 = vunpack.i.h.bf16 %v5034_v47  ;;  %v3228_v13 = vunpack.i.l.bf16 %v5034_v47  ;;  %v3234_v14 = vunpack.i.h.bf16 %v5036_v27  ;;  %v4359_v47 = vld [vmem:[%s4578_s30 + $0x8] sm:$0xff] }
 0x116   : > { %3516 = vrot.lane.b32.xlu0 %v4890_v25, %s4489_s8  ;;  %3521 = vrot.lane.b32.xlu1 %v4900_v55, %s4489_s8 }
 0x118   : > { %v5042_v21 = vpop.permute.xlu0 %3236  ;;  %v5044_v28 = vpop.permute.xlu1 %3241 }
 0x11a   : > { %3526 = vrot.lane.b32.xlu0 %v4680_v35, %s4489_s8  ;;  %3531 = vrot.lane.b32.xlu1 %v4898_v54, %s4489_s8 }
 0x11c   : > { %v5050_v18 = vpop.permute.xlu0 %3246  ;;  %v5052_v37 = vpop.permute.xlu1 %3251 }
 0x11d   : > { %7221 = vst [vmem:[#allocation44_spill] sm:$0xff] %v5050_v18  ;;  %7222 = vst [vmem:[#allocation45_spill] sm:$0xff] %v5052_v37 }
 0x11e   : > { %3536 = vrot.lane.b32.xlu0 %v4908_v8, %s4489_s8  ;;  %3541 = vrot.lane.b32.xlu1 %v4906_v30, %s4489_s8  ;;  %s187_s8 = scalar_lea.vmem [#allocation2], %s2715_s6 }
 0x120   : > { %v5058_v7 = vpop.permute.xlu0 %3256  ;;  %v5060_v6 = vpop.permute.xlu1 %3261 }
 0x121   : > { %7223 = vst [vmem:[#allocation46_spill] sm:$0xff] %v5058_v7  ;;  %7224 = vst [vmem:[#allocation47_spill] sm:$0xff] %v5060_v6 }
 0x122   : > { %3546 = vrot.lane.b32.xlu0 %v4632_v20, %s4490_s9  ;;  %3551 = vrot.lane.b32.xlu1 %v4828_v51, %s4490_s9 }
 0x124   : > { %v5066_v18 = vpop.permute.xlu0 %3266  ;;  %v5068_v37 = vpop.permute.xlu1 %3271 }
 0x126   : > { %3556 = vrot.lane.b32.xlu0 %v4826_v50, %s4490_s9  ;;  %3561 = vrot.lane.b32.xlu1 %v4840_v57, %s4490_s9 }
 0x128   : > { %v5074_v7 = vpop.permute.xlu0 %3276  ;;  %v5076_v6 = vpop.permute.xlu1 %3281 }
 0x12a   : > { %3566 = vrot.lane.b32.xlu0 %v4640_v23, %s4490_s9  ;;  %3571 = vrot.lane.b32.xlu1 %v4838_v56, %s4490_s9 }
 0x12c   : > { %v5082_v20 = vpop.permute.xlu0 %3286  ;;  %v5084_v22 = vpop.permute.xlu1 %3291 }
 0x12d   : > { %7225 = vst [vmem:[#allocation48_spill] sm:$0xff] %v5082_v20  ;;  %7226 = vst [vmem:[#allocation49_spill] sm:$0xff] %v5084_v22 }
 0x12e   : > { %3576 = vrot.lane.b32.xlu0 %v4850_v61, %s4490_s9  ;;  %3581 = vrot.lane.b32.xlu1 %v4848_v60, %s4490_s9 }
 0x130   : > { %v5090_v3 = vpop.permute.xlu0 %3296  ;;  %v5092_v17 = vpop.permute.xlu1 %3301 }
 0x131   : > { %7227 = vst [vmem:[#allocation50_spill] sm:$0xff] %v5090_v3  ;;  %7228 = vst [vmem:[#allocation51_spill] sm:$0xff] %v5092_v17 }
 0x132   : > { %3586 = vrot.lane.b32.xlu0 %v4652_v26, %s4490_s9  ;;  %3591 = vrot.lane.b32.xlu1 %v4862_v52, %s4490_s9 }
 0x134   : > { %v5098_v23 = vpop.permute.xlu0 %3306  ;;  %v5100_v56 = vpop.permute.xlu1 %3311 }
 0x136   : > { %3596 = vrot.lane.b32.xlu0 %v4860_v53, %s4490_s9  ;;  %3601 = vrot.lane.b32.xlu1 %v4872_v48, %s4490_s9 }
 0x138   : > { %v5106_v60 = vpop.permute.xlu0 %3316  ;;  %v5108_v61 = vpop.permute.xlu1 %3321 }
 0x13a   : > { %3606 = vrot.lane.b32.xlu0 %v4660_v29, %s4490_s9  ;;  %3611 = vrot.lane.b32.xlu1 %v4870_v49, %s4490_s9 }
 0x13c   : > { %v5114_v26 = vpop.permute.xlu0 %3326  ;;  %v5116_v17 = vpop.permute.xlu1 %3331 }
 0x13d   : > { %7229 = vst [vmem:[#allocation52_spill] sm:$0xff] %v5116_v17 }
 0x13e   : > { %3616 = vrot.lane.b32.xlu0 %v4884_v31, %s4490_s9  ;;  %3621 = vrot.lane.b32.xlu1 %v4882_v33, %s4490_s9 }
 0x140   : > { %v5122_v3 = vpop.permute.xlu0 %3336  ;;  %v5124_v22 = vpop.permute.xlu1 %3341 }
 0x141   : > { %7230 = vst [vmem:[#allocation53_spill] sm:$0xff] %v5122_v3  ;;  %7231 = vst [vmem:[#allocation54_spill] sm:$0xff] %v5124_v22 }
 0x142   : > { %3626 = vrot.lane.b32.xlu0 %v4672_v32, %s4490_s9  ;;  %3631 = vrot.lane.b32.xlu1 %v4892_v24, %s4490_s9 }
 0x144   : > { %v5130_v29 = vpop.permute.xlu0 %3346  ;;  %v5132_v20 = vpop.permute.xlu1 %3351 }
 0x146   : > { %3636 = vrot.lane.b32.xlu0 %v4890_v25, %s4490_s9  ;;  %3641 = vrot.lane.b32.xlu1 %v4900_v55, %s4490_s9 }
 0x148   : > { %v5138_v17 = vpop.permute.xlu0 %3356  ;;  %v5140_v3 = vpop.permute.xlu1 %3361 }
 0x149   : > { %7232 = vst [vmem:[#allocation55_spill] sm:$0xff] %v5138_v17  ;;  %7233 = vst [vmem:[#allocation56_spill] sm:$0xff] %v5140_v3  ;;  %v3239_v3 = vunpack.i.h.bf16 %v5042_v21  ;;  %v3244_v17 = vunpack.i.h.bf16 %v5044_v28 }
 0x14a   : > { %3646 = vrot.lane.b32.xlu0 %v4680_v35, %s4490_s9  ;;  %3651 = vrot.lane.b32.xlu1 %v4898_v54, %s4490_s9  ;;  %v3233_v35 = vunpack.i.l.bf16 %v5036_v27 }
 0x14c   : > { %v5146_v32 = vpop.permute.xlu0 %3366  ;;  %v5148_v22 = vpop.permute.xlu1 %3371  ;;  %v1955_v11 = vsel %vm1952_vm0, %v2898_v46, %v3233_v35 }
 0x14d   : > { %7234 = vst [vmem:[#allocation57_spill] sm:$0xff] %v5146_v32  ;;  %7235 = vst [vmem:[#allocation58_spill] sm:$0xff] %v5148_v22  ;;  %v2909_v22 = vunpack.i.h.bf16 %v4740_v62  ;;  %v2899_v32 = vunpack.i.h.bf16 %v4742_v63  ;;  %v3238_v63 = vunpack.i.l.bf16 %v5042_v21 }
 0x14e   : > { %3656 = vrot.lane.b32.xlu0 %v4908_v8, %s4490_s9  ;;  %3661 = vrot.lane.b32.xlu1 %v4906_v30, %s4490_s9 }
 0x14f   : > { %v1956_v50 = vsel %vm1952_vm0, %v2899_v32, %v3234_v14  ;;  %v1957_v46 = vsel %vm1952_vm0, %v2903_v16, %v3238_v63 }
 0x150   : > { %v5157_v15 = vpop.permute.xlu0 %3376  ;;  %v5159_v40 = vpop.permute.xlu1 %3381 }
 0x151   : > { %7236 = vst [vmem:[#allocation59_spill] sm:$0xff] %v5157_v15  ;;  %7237 = vst [vmem:[#allocation60_spill] sm:$0xff] %v5159_v40  ;;  %v1954_v40 = vsel %vm1952_vm0, %v4359_v47, %v3229_v12  ;;  %v4360_v15 = vld [vmem:[%s4578_s30] sm:$0xff]  ;;  %v3243_v12 = vunpack.i.l.bf16 %v5044_v28  ;;  %v2908_v28 = vunpack.i.l.bf16 %v4740_v62 }
 0x152   : > { %3666 = vrot.lane.b32.xlu0 %v4692_v38, %s4490_s9  ;;  %3671 = vrot.lane.b32.xlu1 %v4916_v2, %s4490_s9  ;;  %v1953_v39 = vsel %vm1952_vm0, %v4360_v15, %v3228_v13 }
 0x154   : > { %v3387_v43 = vpop.permute.xlu0 %3386  ;;  %v3392_v45 = vpop.permute.xlu1 %3391 }
 0x155   : > { %v3389_v27 = vunpack.i.h.bf16 %v3387_v43  ;;  %v3388_v44 = vunpack.i.l.bf16 %v3387_v43  ;;  %v3394_v57 = vunpack.i.h.bf16 %v3392_v45  ;;  %v3393_v38 = vunpack.i.l.bf16 %v3392_v45 }
 0x156   : > { %3676 = vrot.lane.b32.xlu0 %v4914_v5, %s4490_s9  ;;  %3681 = vrot.lane.b32.xlu1 %v4924_v0, %s4490_s9  ;;  %v2904_v45 = vunpack.i.h.bf16 %v4750_v4 }
 0x157   : > { %v5185_v13 = vsel %vm2017_vm1, %v1954_v40, %v3389_v27  ;;  %v5188_v15 = vsel %vm2017_vm1, %v1953_v39, %v3388_v44  ;;  %v5191_v43 = vsel %vm2017_vm1, %v1955_v11, %v3393_v38  ;;  %v5194_v21 = vsel %vm2017_vm1, %v1956_v50, %v3394_v57 }
 0x158   : > { %v3397_v14 = vpop.permute.xlu0 %3396  ;;  %v3402_v32 = vpop.permute.xlu1 %3401  ;;  %v1958_v11 = vsel %vm1952_vm0, %v2904_v45, %v3239_v3  ;;  %v1960_v44 = vsel %vm1952_vm0, %v2909_v22, %v3244_v17  ;;  %v1959_v50 = vsel %vm1952_vm0, %v2908_v28, %v3243_v12  ;;  %v4362_v17 = vld [vmem:[%s4578_s30 + $0x88] sm:$0xff]  ;;  %v3269_v27 = vunpack.i.h.bf16 %v5066_v18 }
 0x159   : > { %v3399_v35 = vunpack.i.h.bf16 %v3397_v14  ;;  %v3398_v40 = vunpack.i.l.bf16 %v3397_v14  ;;  %v3404_v47 = vunpack.i.h.bf16 %v3402_v32  ;;  %v3403_v39 = vunpack.i.l.bf16 %v3402_v32  ;;  %v4363_v14 = vld [vmem:[%s4578_s30 + $0x90] sm:$0xff]  ;;  %v4364_v32 = vld [vmem:[%s4578_s30 + $0x98] sm:$0xff] }
 0x15a   : > { %3686 = vrot.lane.b32.xlu0 %v4700_v41, %s4490_s9  ;;  %3691 = vrot.lane.b32.xlu1 %v4922_v1, %s4490_s9  ;;  %v4361_v41 = vld [vmem:[%s4578_s30 + $0x80] sm:$0xff]  ;;  %v3268_v38 = vunpack.i.l.bf16 %v5066_v18  ;;  %v3274_v12 = vunpack.i.h.bf16 %v5068_v37 }
 0x15b   : > { %v5207_v62 = vsel %vm2017_vm1, %v1957_v46, %v3398_v40  ;;  %v5210_v4 = vsel %vm2017_vm1, %v1958_v11, %v3399_v35  ;;  %v5213_v16 = vsel %vm2017_vm1, %v1959_v50, %v3403_v39  ;;  %v5216_v3 = vsel %vm2017_vm1, %v1960_v44, %v3404_v47  ;;  %v4365_v40 = vld [vmem:[%s4578_s30 + $0x28] sm:$0xff]  ;;  %v4366_v47 = vld [vmem:[%s4578_s30 + $0x20] sm:$0xff] }
 0x15c   : > { %v5218_v22 = vpop.permute.xlu0 %3406  ;;  %v5220_v57 = vpop.permute.xlu1 %3411  ;;  %v3705_v63 = vpack.i.bf16 %v4362_v17, %v4361_v41  ;;  %v3273_v46 = vunpack.i.l.bf16 %v5068_v37  ;;  %v3725_v35 = vpack.i.bf16 %v4364_v32, %v4363_v14  ;;  %v1970_v18 = vsel %vm1952_vm0, %v4365_v40, %v3269_v27 }
 0x15d   : > { %7238 = vst [vmem:[#allocation61_spill] sm:$0xff] %v5218_v22  ;;  %7239 = vst [vmem:[#allocation62_spill] sm:$0xff] %v5220_v57  ;;  %v1969_v39 = vsel %vm1952_vm0, %v4366_v47, %v3268_v38  ;;  %v7242_v11 = vunpack.i.h.bf16 %v4762_v10  ;;  %v3279_v37 = vunpack.i.h.bf16 %v5074_v7  ;;  %v7243_v14 = vunpack.i.l.bf16 %v4762_v10 }
 0x15e   : > { %3696 = vrot.lane.b32.xlu0 %v4932_v58, %s4490_s9  ;;  %3701 = vrot.lane.b32.xlu1 %v4930_v59, %s4490_s9  ;;  %v3278_v27 = vunpack.i.l.bf16 %v5074_v7  ;;  %v3284_v38 = vunpack.i.h.bf16 %v5076_v6  ;;  %v3283_v40 = vunpack.i.l.bf16 %v5076_v6  ;;  %v7244_v6 = vunpack.i.h.bf16 %v4760_v9  ;;  %s2629_s9 = sshll.u32 %s187_s8, 4  ;;  %s7007_s9 = int_to_ptr.vmem [resolvable:$true] %s2629_s9 }
 0x15f   : > { %v1972_v44 = vsel %vm1952_vm0, %v7242_v11, %v3274_v12  ;;  %v1971_v32 = vsel %vm1952_vm0, %v7243_v14, %v3273_v46  ;;  %p4414_p1 = scmp.lt.s32.totalorder %s7007_s9, %s4412_s26 }
 0x160   : > { %v5231_v28 = vpop.permute.xlu0 %3416  ;;  %v5233_v45 = vpop.permute.xlu1 %3421  ;;  %v1974_v46 = vsel %vm1952_vm0, %v7244_v6, %v3279_v37  ;;  %v3308_v6 = vunpack.i.l.bf16 %v5098_v23 }
 0x161   : > { %7240 = vst [vmem:[#allocation63_spill] sm:$0xff] %v5231_v28  ;;  %7241 = vst [vmem:[#allocation64_spill] sm:$0xff] %v5233_v45 }
 0x162   : > { %3706 = vrot.lane.b32.xlu0 %v3705_v63, %s4491_s10  ;;  %3711 = vrot.lane.b32.xlu1 %v4862_v52, %s4491_s10 }
 0x164   : > { %v3427_v50 = vpop.permute.xlu0 %3426  ;;  %v3432_v41 = vpop.permute.xlu1 %3431 }
 0x165   : > { %v3429_v17 = vunpack.i.h.bf16 %v3427_v50  ;;  %v3428_v63 = vunpack.i.l.bf16 %v3427_v50  ;;  %v3434_v52 = vunpack.i.h.bf16 %v3432_v41  ;;  %v3433_v45 = vunpack.i.l.bf16 %v3432_v41 }
 0x166   : > { %3716 = vrot.lane.b32.xlu0 %v4860_v53, %s4491_s10  ;;  %3721 = vrot.lane.b32.xlu1 %v4872_v48, %s4491_s10 }
 0x167   : > { %v5260_v12 = vsel %vm2017_vm1, %v1969_v39, %v3428_v63  ;;  %v5263_v47 = vsel %vm2017_vm1, %v1970_v18, %v3429_v17  ;;  %v5266_v10 = vsel %vm2017_vm1, %v1971_v32, %v3433_v45  ;;  %v5269_v7 = vsel %vm2017_vm1, %v1972_v44, %v3434_v52 }
 0x168   : > { %v3437_v53 = vpop.permute.xlu0 %3436  ;;  %v3442_v11 = vpop.permute.xlu1 %3441  ;;  %v7245_v18 = vunpack.i.l.bf16 %v4760_v9  ;;  %v7246_v17 = vunpack.i.h.bf16 %v4772_v19  ;;  %v7247_v63 = vunpack.i.l.bf16 %v4772_v19 }
 0x169   : > { %v3439_v50 = vunpack.i.h.bf16 %v3437_v53  ;;  %v3438_v48 = vunpack.i.l.bf16 %v3437_v53  ;;  %v3444_v39 = vunpack.i.h.bf16 %v3442_v11  ;;  %v3443_v41 = vunpack.i.l.bf16 %v3442_v11 }
 0x16a   : > { %v1973_v45 = vsel %vm1952_vm0, %v7245_v18, %v3278_v27  ;;  %v1976_v44 = vsel %vm1952_vm0, %v7246_v17, %v3284_v38  ;;  %v1975_v37 = vsel %vm1952_vm0, %v7247_v63, %v3283_v40  ;;  %3726 = vrot.lane.b32.xlu0 %v3725_v35, %s4491_s10  ;;  %3731 = vrot.lane.b32.xlu1 %v4870_v49, %s4491_s10  ;;  %v4367_v49 = vld [vmem:[%s4578_s30 + $0xa0] sm:$0xff]  ;;  %v4368_v27 = vld [vmem:[%s4578_s30 + $0xa8] sm:$0xff]  ;;  %v3309_v40 = vunpack.i.h.bf16 %v5098_v23 }
 0x16b   : > { %v5287_v52 = vsel %vm2017_vm1, %v1973_v45, %v3438_v48  ;;  %v5290_v9 = vsel %vm2017_vm1, %v1974_v46, %v3439_v50  ;;  %v5293_v14 = vsel %vm2017_vm1, %v1975_v37, %v3443_v41  ;;  %v5296_v32 = vsel %vm2017_vm1, %v1976_v44, %v3444_v39  ;;  %v4370_v50 = vld [vmem:[%s4578_s30 + $0xb8] sm:$0xff]  ;;  %v4371_v39 = vld [vmem:[%s4578_s30 + $0x48] sm:$0xff]  ;;  %v4372_v41 = vld [vmem:[%s4578_s30 + $0x40] sm:$0xff] }
 0x16c   : > { %v5298_v19 = vpop.permute.xlu0 %3446  ;;  %v5300_v35 = vpop.permute.xlu1 %3451  ;;  %v5308_v38 = vpack.i.bf16 %v4368_v27, %v4367_v49  ;;  %v3314_v11 = vunpack.i.h.bf16 %v5100_v56  ;;  %v1986_v23 = vsel %vm1952_vm0, %v4371_v39, %v3309_v40  ;;  %v1985_v18 = vsel %vm1952_vm0, %v4372_v41, %v3308_v6 }
 0x16d   : > { %7248 = vst [vmem:[#allocation65_spill] sm:$0xff] %v5298_v19  ;;  %7249 = vst [vmem:[#allocation66_spill] sm:$0xff] %v5300_v35  ;;  %v3319_v45 = vunpack.i.h.bf16 %v5106_v60  ;;  %v3324_v6 = vunpack.i.h.bf16 %v5108_v61  ;;  %v3323_v39 = vunpack.i.l.bf16 %v5108_v61  ;;  %v7254_v61 = vunpack.i.h.bf16 %v4794_v34 }
 0x16e   : > { %3736 = vrot.lane.b32.xlu0 %v4884_v31, %s4491_s10  ;;  %3741 = vrot.lane.b32.xlu1 %v4882_v33, %s4491_s10  ;;  %v3313_v31 = vunpack.i.l.bf16 %v5100_v56  ;;  %v4369_v33 = vld [vmem:[%s4578_s30 + $0xb0] sm:$0xff]  ;;  %v3318_v56 = vunpack.i.l.bf16 %v5106_v60 }
 0x16f   : > { %v5324_v48 = vpack.i.bf16 %v4370_v50, %v4369_v33  ;;  %v7253_v50 = vunpack.i.l.bf16 %v4796_v36 }
 0x170   : > { %v5312_v46 = vpop.permute.xlu0 %3456  ;;  %v5314_v53 = vpop.permute.xlu1 %3461 }
 0x171   : > { %7250 = vst [vmem:[#allocation67_spill] sm:$0xff] %v5312_v46  ;;  %7251 = vst [vmem:[#allocation68_spill] sm:$0xff] %v5314_v53  ;;  %v7252_v53 = vunpack.i.h.bf16 %v4796_v36  ;;  %v1987_v40 = vsel %vm1952_vm0, %v7253_v50, %v3313_v31  ;;  %v7255_v31 = vunpack.i.l.bf16 %v4794_v34  ;;  %v3329_v34 = vunpack.i.h.bf16 %v5114_v26 }
 0x172   : > { %3746 = vrot.lane.b32.xlu0 %v5308_v38, %s4491_s10  ;;  %3751 = vrot.lane.b32.xlu1 %v4892_v24, %s4491_s10 }
 0x173   : > { %v1988_v33 = vsel %vm1952_vm0, %v7252_v53, %v3314_v11  ;;  %v1990_v11 = vsel %vm1952_vm0, %v7254_v61, %v3319_v45 }
 0x174   : > { %v3467_v17 = vpop.permute.xlu0 %3466  ;;  %v3472_v44 = vpop.permute.xlu1 %3471 }
 0x175   : > { %v3469_v63 = vunpack.i.h.bf16 %v3467_v17  ;;  %v3468_v37 = vunpack.i.l.bf16 %v3467_v17  ;;  %v3474_v49 = vunpack.i.h.bf16 %v3472_v44  ;;  %v3473_v27 = vunpack.i.l.bf16 %v3472_v44 }
 0x176   : > { %3756 = vrot.lane.b32.xlu0 %v4890_v25, %s4491_s10  ;;  %3761 = vrot.lane.b32.xlu1 %v4900_v55, %s4491_s10  ;;  %v1989_v17 = vsel %vm1952_vm0, %v7255_v31, %v3318_v56  ;;  %v3328_v56 = vunpack.i.l.bf16 %v5114_v26 }
 0x177   : > { %v5345_v60 = vsel %vm2017_vm1, %v1985_v18, %v3468_v37  ;;  %v5348_v41 = vsel %vm2017_vm1, %v1986_v23, %v3469_v63  ;;  %v5351_v36 = vsel %vm2017_vm1, %v1987_v40, %v3473_v27  ;;  %v5354_v53 = vsel %vm2017_vm1, %v1988_v33, %v3474_v49 }
 0x178   : > { %v3477_v44 = vpop.permute.xlu0 %3476  ;;  %v3482_v18 = vpop.permute.xlu1 %3481  ;;  %v7256_v27 = vunpack.i.h.bf16 %v4806_v42  ;;  %v7257_v33 = vunpack.i.l.bf16 %v4806_v42 }
 0x179   : > { %v3479_v37 = vunpack.i.h.bf16 %v3477_v44  ;;  %v3478_v50 = vunpack.i.l.bf16 %v3477_v44  ;;  %v3484_v23 = vunpack.i.h.bf16 %v3482_v18  ;;  %v3483_v63 = vunpack.i.l.bf16 %v3482_v18  ;;  %v4373_v18 = vld [vmem:[%s4578_s30 + $0x58] sm:$0xff] }
 0x17a   : > { %v1992_v49 = vsel %vm1952_vm0, %v7256_v27, %v3324_v6  ;;  %v1991_v45 = vsel %vm1952_vm0, %v7257_v33, %v3323_v39  ;;  %3766 = vrot.lane.b32.xlu0 %v5324_v48, %s4491_s10  ;;  %3771 = vrot.lane.b32.xlu1 %v4898_v54, %s4491_s10  ;;  %v1994_v27 = vsel %vm1952_vm0, %v4373_v18, %v3329_v34  ;;  %v4374_v33 = vld [vmem:[%s4578_s30 + $0x50] sm:$0xff]  ;;  %v3354_v34 = vunpack.i.h.bf16 %v5132_v20 }
 0x17b   : > { %v5375_v40 = vsel %vm2017_vm1, %v1989_v17, %v3478_v50  ;;  %v5378_v42 = vsel %vm2017_vm1, %v1990_v11, %v3479_v37  ;;  %v5381_v6 = vsel %vm2017_vm1, %v1991_v45, %v3483_v63  ;;  %v5384_v39 = vsel %vm2017_vm1, %v1992_v49, %v3484_v23  ;;  %v4375_v11 = vld [vmem:[%s4578_s30 + $0xc0] sm:$0xff]  ;;  %v4376_v37 = vld [vmem:[%s4578_s30 + $0xc8] sm:$0xff] }
 0x17c   : > { %v3487_v26 = vpop.permute.xlu0 %3486  ;;  %v5386_v61 = vpop.permute.xlu1 %3491  ;;  %v1993_v17 = vsel %vm1952_vm0, %v4374_v33, %v3328_v56  ;;  %v5398_v50 = vpack.i.bf16 %v4376_v37, %v4375_v11  ;;  %v3349_v49 = vunpack.i.h.bf16 %v5130_v29  ;;  %v3348_v45 = vunpack.i.l.bf16 %v5130_v29  ;;  %v4379_v33 = vld [vmem:[%s4578_s30 + $0x68] sm:$0xff] }
 0x17d   : > { %7258 = vst [vmem:[#allocation69_spill] sm:$0xff] %v5386_v61  ;;  %v3489_v31 = vunpack.i.h.bf16 %v3487_v26  ;;  %v3488_v44 = vunpack.i.l.bf16 %v3487_v26  ;;  %v3353_v18 = vunpack.i.l.bf16 %v5132_v20  ;;  %v7262_v37 = vunpack.i.h.bf16 %v4828_v51 }
 0x17e   : > { %3776 = vrot.lane.b32.xlu0 %v4908_v8, %s4491_s10  ;;  %3781 = vrot.lane.b32.xlu1 %v4906_v30, %s4491_s10  ;;  %v2002_v29 = vsel %vm1952_vm0, %v4379_v33, %v3349_v49  ;;  %v7265_v33 = vld [vmem:[#allocation56_spill] sm:$0xff] }
 0x17f   : > { %v5401_v23 = vsel %vm2017_vm1, %v1993_v17, %v3488_v44  ;;  %v5404_v63 = vsel %vm2017_vm1, %v1994_v27, %v3489_v31  ;;  %v4377_v31 = vld [vmem:[%s4578_s30 + $0xd0] sm:$0xff]  ;;  %v4378_v44 = vld [vmem:[%s4578_s30 + $0xd8] sm:$0xff]  ;;  %v4380_v17 = vld [vmem:[%s4578_s30 + $0x60] sm:$0xff]  ;;  %v2004_v20 = vsel %vm1952_vm0, %v7262_v37, %v3354_v34 }
 0x180   : > { %7259 = vst [vmem:[#allocation70_spill] sm:$0xff] %v5404_v63  ;;  %v5409_v56 = vpop.permute.xlu0 %3496  ;;  %v5411_v26 = vpop.permute.xlu1 %3501  ;;  %v5420_v27 = vpack.i.bf16 %v4378_v44, %v4377_v31  ;;  %v2001_v11 = vsel %vm1952_vm0, %v4380_v17, %v3348_v45  ;;  %v7264_v31 = vunpack.i.l.bf16 %v4828_v51  ;;  %v3364_v45 = vunpack.i.h.bf16 %v7265_v33 }
 0x181   : > { %7260 = vst [vmem:[#allocation71_spill] sm:$0xff] %v5409_v56  ;;  %7261 = vst [vmem:[#allocation72_spill] sm:$0xff] %v5411_v26  ;;  %v7263_v26 = vld [vmem:[#allocation55_spill] sm:$0xff]  ;;  %v3363_v17 = vunpack.i.l.bf16 %v7265_v33 }
 0x182   : > { %3786 = vrot.lane.b32.xlu0 %v5398_v50, %s4491_s10  ;;  %3791 = vrot.lane.b32.xlu1 %v4916_v2, %s4491_s10  ;;  %v3359_v56 = vunpack.i.h.bf16 %v7263_v26  ;;  %v2003_v44 = vsel %vm1952_vm0, %v7264_v31, %v3353_v18  ;;  %v3358_v49 = vunpack.i.l.bf16 %v7263_v26  ;;  %v7266_v26 = vld [vmem:[#allocation14_spill] sm:$0xff] }
 0x183   : > { %v7267_v18 = vunpack.i.h.bf16 %v7266_v26 }
 0x184   : > { %v3507_v61 = vpop.permute.xlu0 %3506  ;;  %v3512_v46 = vpop.permute.xlu1 %3511 }
 0x185   : > { %v3509_v35 = vunpack.i.h.bf16 %v3507_v61  ;;  %v3508_v19 = vunpack.i.l.bf16 %v3507_v61  ;;  %v3514_v28 = vunpack.i.h.bf16 %v3512_v46  ;;  %v3513_v57 = vunpack.i.l.bf16 %v3512_v46 }
 0x186   : > { %3796 = vrot.lane.b32.xlu0 %v4914_v5, %s4491_s10  ;;  %3801 = vrot.lane.b32.xlu1 %v4924_v0, %s4491_s10  ;;  %v2006_v37 = vsel %vm1952_vm0, %v7267_v18, %v3359_v56 }
 0x187   : > { %v5441_v61 = vsel %vm2017_vm1, %v2001_v11, %v3508_v19  ;;  %v5444_v46 = vsel %vm2017_vm1, %v2002_v29, %v3509_v35  ;;  %v5447_v51 = vsel %vm2017_vm1, %v2003_v44, %v3513_v57  ;;  %v5450_v34 = vsel %vm2017_vm1, %v2004_v20, %v3514_v28  ;;  %v7269_v29 = vld [vmem:[#allocation16_spill] sm:$0xff] }
 0x188   : > { %v3517_v31 = vpop.permute.xlu0 %3516  ;;  %v3522_v33 = vpop.permute.xlu1 %3521  ;;  %v7268_v35 = vunpack.i.l.bf16 %v7266_v26  ;;  %v7270_v44 = vunpack.i.h.bf16 %v7269_v29  ;;  %v7271_v20 = vunpack.i.l.bf16 %v7269_v29 }
 0x189   : > { %v3519_v22 = vunpack.i.h.bf16 %v3517_v31  ;;  %v3518_v63 = vunpack.i.l.bf16 %v3517_v31  ;;  %v3524_v19 = vunpack.i.h.bf16 %v3522_v33  ;;  %v3523_v11 = vunpack.i.l.bf16 %v3522_v33 }
 0x18a   : > { %v2005_v57 = vsel %vm1952_vm0, %v7268_v35, %v3358_v49  ;;  %v2008_v28 = vsel %vm1952_vm0, %v7270_v44, %v3364_v45  ;;  %v2007_v56 = vsel %vm1952_vm0, %v7271_v20, %v3363_v17  ;;  %3806 = vrot.lane.b32.xlu0 %v5420_v27, %s4491_s10  ;;  %3811 = vrot.lane.b32.xlu1 %v4922_v1, %s4491_s10 }
 0x18b   : > { %v5469_v18 = vsel %vm2017_vm1, %v2005_v57, %v3518_v63  ;;  %v5472_v26 = vsel %vm2017_vm1, %v2006_v37, %v3519_v22  ;;  %v5475_v49 = vsel %vm2017_vm1, %v2007_v56, %v3523_v11  ;;  %v5478_v45 = vsel %vm2017_vm1, %v2008_v28, %v3524_v19  ;;  %v4381_v63 = vld [vmem:[%s4578_s30 + $0xe0] sm:$0xff]  ;;  %v4382_v22 = vld [vmem:[%s4578_s30 + $0xe8] sm:$0xff]  ;;  %v7281_v56 = vld [vmem:[#allocation20_spill] sm:$0xff] }
 0x18c   : > { %7272 = vst [vmem:[#allocation55_spill] sm:$0xff] %v5469_v18  ;;  %7273 = vst [vmem:[#allocation56_spill] sm:$0xff] %v5472_v26  ;;  %v5480_v31 = vpop.permute.xlu0 %3526  ;;  %v5482_v17 = vpop.permute.xlu1 %3531  ;;  %v5490_v37 = vpack.i.bf16 %v4382_v22, %v4381_v63  ;;  %v7280_v11 = vld [vmem:[#allocation21_spill] sm:$0xff]  ;;  %v7282_v63 = vld [vmem:[#allocation23_spill] sm:$0xff] }
 0x18d   : > { %7274 = vst [vmem:[#allocation14_spill] sm:$0xff] %v5475_v49  ;;  %7275 = vst [vmem:[#allocation16_spill] sm:$0xff] %v5478_v45  ;;  %v4383_v22 = vld [vmem:[%s4578_s30 + $0xf0] sm:$0xff] }
 0x18e   : > { %7276 = vst [vmem:[#allocation73_spill] sm:$0xff] %v5480_v31  ;;  %7277 = vst [vmem:[#allocation74_spill] sm:$0xff] %v5482_v17  ;;  %3816 = vrot.lane.b32.xlu0 %v4932_v58, %s4491_s10  ;;  %3821 = vrot.lane.b32.xlu1 %v4930_v59, %s4491_s10  ;;  %v4384_v31 = vld [vmem:[%s4578_s30 + $0xf8] sm:$0xff] }
 0x190   : > { %v5492_v33 = vpop.permute.xlu0 %3536  ;;  %v5494_v19 = vpop.permute.xlu1 %3541 }
 0x191   : > { %7278 = vst [vmem:[#allocation75_spill] sm:$0xff] %v5492_v33  ;;  %7279 = vst [vmem:[#allocation76_spill] sm:$0xff] %v5494_v19  ;;  %v5506_v19 = vpack.i.bf16 %v4384_v31, %v4383_v22 }
 0x192   : > { %3826 = vrot.lane.b32.xlu0 %v5490_v37, %s4491_s10  ;;  %3831 = vrot.lane.b32.xlu1 %v7280_v11, %s4491_s10 }
 0x194   : > { %v3547_v35 = vpop.permute.xlu0 %3546  ;;  %v3552_v57 = vpop.permute.xlu1 %3551 }
 0x195   : > { %v3549_v29 = vunpack.i.h.bf16 %v3547_v35  ;;  %v3548_v44 = vunpack.i.l.bf16 %v3547_v35  ;;  %v3554_v28 = vunpack.i.h.bf16 %v3552_v57  ;;  %v3553_v20 = vunpack.i.l.bf16 %v3552_v57 }
 0x196   : > { %3836 = vrot.lane.b32.xlu0 %v7281_v56, %s4491_s10  ;;  %3841 = vrot.lane.b32.xlu1 %v7282_v63, %s4491_s10 }
 0x197   : > { %v5510_v33 = vsel %vm2082_vm2, %v5188_v15, %v3548_v44  ;;  %v5514_v17 = vsel %vm2082_vm2, %v5185_v13, %v3549_v29  ;;  %v5518_v35 = vsel %vm2082_vm2, %v5191_v43, %v3553_v20  ;;  %v5522_v57 = vsel %vm2082_vm2, %v5194_v21, %v3554_v28  ;;  %v7283_v13 = vld [vmem:[#allocation22_spill] sm:$0xff]  ;;  %v7285_v44 = vld [vmem:[#allocation25_spill] sm:$0xff] }
 0x198   : > { %v3557_v45 = vpop.permute.xlu0 %3556  ;;  %v3562_v49 = vpop.permute.xlu1 %3561 }
 0x199   : > { %v3559_v31 = vunpack.i.h.bf16 %v3557_v45  ;;  %v3558_v22 = vunpack.i.l.bf16 %v3557_v45  ;;  %v3564_v26 = vunpack.i.h.bf16 %v3562_v49  ;;  %v3563_v18 = vunpack.i.l.bf16 %v3562_v49 }
 0x19a   : > { %3846 = vrot.lane.b32.xlu0 %v5506_v19, %s4491_s10  ;;  %3851 = vrot.lane.b32.xlu1 %v7283_v13, %s4491_s10 }
 0x19b   : > { %v5530_v15 = vsel %vm2082_vm2, %v5207_v62, %v3558_v22  ;;  %v5534_v43 = vsel %vm2082_vm2, %v5210_v4, %v3559_v31  ;;  %v5538_v21 = vsel %vm2082_vm2, %v5213_v16, %v3563_v18  ;;  %v5542_v49 = vsel %vm2082_vm2, %v5216_v3, %v3564_v26  ;;  %v7286_v62 = vld [vmem:[#allocation24_spill] sm:$0xff] }
 0x19c   : > { %v5544_v45 = vpop.permute.xlu0 %3566  ;;  %v5546_v29 = vpop.permute.xlu1 %3571 }
 0x19d   : > { %7284 = vst [vmem:[#allocation20_spill] sm:$0xff] %v5544_v45 }
 0x19e   : > { %3856 = vrot.lane.b32.xlu0 %v7285_v44, %s4491_s10  ;;  %3861 = vrot.lane.b32.xlu1 %v7286_v62, %s4491_s10  ;;  %s2770_s10 = sshll.u32 %s4475_s15, 9  ;;  %s4407_s15 = scalar_lea.vmem %s7007_s9, 512 }
 0x19f   : > { %p4408_p12 = scmp.ne.s32.totalorder %s7007_s9, %s4407_s15  ;;  %p4415_p2 = scmp.lt.s32.totalorder %s4413_s27, %s4407_s15 }
 0x1a0   : > { %v5552_v4 = vpop.permute.xlu0 %3576  ;;  %v5554_v28 = vpop.permute.xlu1 %3581 }
 0x1a1   : > { %7287 = vst [vmem:[#allocation23_spill] sm:$0xff] %v5552_v4  ;;  %7288 = vst [vmem:[#allocation22_spill] sm:$0xff] %v5554_v28  ;;  %p4409_p13 = pnand %p4408_p12, %p4558_p4  ;;  %p4416_p3 = por %p4415_p2, %p4414_p1 }
 0x1a2   : > { %3866 = vrot.lane.b32.xlu0 %v5308_v38, %s4492_s11  ;;  %3871 = vrot.lane.b32.xlu1 %v4892_v24, %s4492_s11 }
 0x1a3   : > { %p4410_p0 = pneg %p4409_p13 }
 0x1a4   : > { %v3587_v16 = vpop.permute.xlu0 %3586  ;;  %v3592_v3 = vpop.permute.xlu1 %3591 }
 0x1a5   : > { %v3589_v18 = vunpack.i.h.bf16 %v3587_v16  ;;  %v3588_v26 = vunpack.i.l.bf16 %v3587_v16  ;;  %v3594_v20 = vunpack.i.h.bf16 %v3592_v3  ;;  %v3593_v31 = vunpack.i.l.bf16 %v3592_v3  ;;  %p4417_p5 = pnand %p4416_p3, %p4410_p0 }
 0x1a6   : > { %3876 = vrot.lane.b32.xlu0 %v4890_v25, %s4492_s11  ;;  %3881 = vrot.lane.b32.xlu1 %v4900_v55, %s4492_s11 }
 0x1a7   : > { %v5566_v22 = vsel %vm2082_vm2, %v5260_v12, %v3588_v26  ;;  %v5570_v38 = vsel %vm2082_vm2, %v5263_v47, %v3589_v18  ;;  %v5574_v24 = vsel %vm2082_vm2, %v5266_v10, %v3593_v31  ;;  %v5578_v16 = vsel %vm2082_vm2, %v5269_v7, %v3594_v20 }
 0x1a8   : > { %v3597_v25 = vpop.permute.xlu0 %3596  ;;  %v3602_v3 = vpop.permute.xlu1 %3601 }
 0x1a9   : > { %v3599_v45 = vunpack.i.h.bf16 %v3597_v25  ;;  %v3598_v55 = vunpack.i.l.bf16 %v3597_v25  ;;  %v3604_v28 = vunpack.i.h.bf16 %v3602_v3  ;;  %v3603_v4 = vunpack.i.l.bf16 %v3602_v3 }
 0x1aa   : > { %3886 = vrot.lane.b32.xlu0 %v5324_v48, %s4492_s11  ;;  %3891 = vrot.lane.b32.xlu1 %v4898_v54, %s4492_s11 }
 0x1ab   : > { %v5586_v12 = vsel %vm2082_vm2, %v5287_v52, %v3598_v55  ;;  %v5590_v47 = vsel %vm2082_vm2, %v5290_v9, %v3599_v45  ;;  %v5594_v10 = vsel %vm2082_vm2, %v5293_v14, %v3603_v4  ;;  %v5598_v7 = vsel %vm2082_vm2, %v5296_v32, %v3604_v28 }
 0x1ac   : > { %v5600_v48 = vpop.permute.xlu0 %3606  ;;  %v5602_v18 = vpop.permute.xlu1 %3611 }
 0x1ad   : > { %7289 = vst [vmem:[#allocation25_spill] sm:$0xff] %v5600_v48  ;;  %7290 = vst [vmem:[#allocation24_spill] sm:$0xff] %v5602_v18  ;;  %v7414_v18 = vld [vmem:[#allocation35_spill] sm:$0xff] }
 0x1ae   : > { %3896 = vrot.lane.b32.xlu0 %v4908_v8, %s4492_s11  ;;  %3901 = vrot.lane.b32.xlu1 %v4906_v30, %s4492_s11 }
 0x1b0   : > { %v5608_v54 = vpop.permute.xlu0 %3616  ;;  %v5610_v52 = vpop.permute.xlu1 %3621 }
 0x1b1   : > { %7291 = vst [vmem:[#allocation77_spill] sm:$0xff] %v5608_v54  ;;  %7292 = vst [vmem:[#allocation78_spill] sm:$0xff] %v5610_v52  ;;  %v7405_v52 = vld [vmem:[#allocation15_spill] sm:$0xff] }
 0x1b2   : > { %3906 = vrot.lane.b32.xlu0 %v5398_v50, %s4492_s11  ;;  %3911 = vrot.lane.b32.xlu1 %v4916_v2, %s4492_s11 }
 0x1b4   : > { %v3627_v9 = vpop.permute.xlu0 %3626  ;;  %v3632_v14 = vpop.permute.xlu1 %3631 }
 0x1b5   : > { %v3629_v32 = vunpack.i.h.bf16 %v3627_v9  ;;  %v3628_v45 = vunpack.i.l.bf16 %v3627_v9  ;;  %v3634_v4 = vunpack.i.h.bf16 %v3632_v14  ;;  %v3633_v28 = vunpack.i.l.bf16 %v3632_v14 }
 0x1b6   : > { %3916 = vrot.lane.b32.xlu0 %v4914_v5, %s4492_s11  ;;  %3921 = vrot.lane.b32.xlu1 %v4924_v0, %s4492_s11 }
 0x1b7   : > { %v5622_v30 = vsel %vm2082_vm2, %v5345_v60, %v3628_v45  ;;  %v5626_v8 = vsel %vm2082_vm2, %v5348_v41, %v3629_v32  ;;  %v5630_v50 = vsel %vm2082_vm2, %v5351_v36, %v3633_v28  ;;  %v5634_v26 = vsel %vm2082_vm2, %v5354_v53, %v3634_v4 }
 0x1b8   : > { %v3637_v20 = vpop.permute.xlu0 %3636  ;;  %v3642_v31 = vpop.permute.xlu1 %3641 }
 0x1b9   : > { %v3639_v25 = vunpack.i.h.bf16 %v3637_v20  ;;  %v3638_v3 = vunpack.i.l.bf16 %v3637_v20  ;;  %v3644_v55 = vunpack.i.h.bf16 %v3642_v31  ;;  %v3643_v9 = vunpack.i.l.bf16 %v3642_v31 }
 0x1ba   : > { %3926 = vrot.lane.b32.xlu0 %v5420_v27, %s4492_s11  ;;  %3931 = vrot.lane.b32.xlu1 %v4922_v1, %s4492_s11 }
 0x1bb   : > { %v5642_v60 = vsel %vm2082_vm2, %v5375_v40, %v3638_v3  ;;  %v5646_v41 = vsel %vm2082_vm2, %v5378_v42, %v3639_v25  ;;  %v5650_v36 = vsel %vm2082_vm2, %v5381_v6, %v3643_v9  ;;  %v5654_v53 = vsel %vm2082_vm2, %v5384_v39, %v3644_v55  ;;  %v7294_v42 = vld [vmem:[#allocation70_spill] sm:$0xff] }
 0x1bc   : > { %v3647_v14 = vpop.permute.xlu0 %3646  ;;  %v5656_v32 = vpop.permute.xlu1 %3651 }
 0x1bd   : > { %7293 = vst [vmem:[#allocation79_spill] sm:$0xff] %v5656_v32  ;;  %v3649_v45 = vunpack.i.h.bf16 %v3647_v14  ;;  %v3648_v4 = vunpack.i.l.bf16 %v3647_v14 }
 0x1be   : > { %3936 = vrot.lane.b32.xlu0 %v4932_v58, %s4492_s11  ;;  %3941 = vrot.lane.b32.xlu1 %v4930_v59, %s4492_s11 }
 0x1bf   : > { %v5664_v40 = vsel %vm2082_vm2, %v5401_v23, %v3648_v4  ;;  %v5668_v6 = vsel %vm2082_vm2, %v7294_v42, %v3649_v45 }
 0x1c0   : > { %v5670_v39 = vpop.permute.xlu0 %3656  ;;  %v5672_v28 = vpop.permute.xlu1 %3661 }
 0x1c1   : > { %7295 = vst [vmem:[#allocation70_spill] sm:$0xff] %v5670_v39  ;;  %7296 = vst [vmem:[#allocation80_spill] sm:$0xff] %v5672_v28 }
 0x1c2   : > { %3946 = vrot.lane.b32.xlu0 %v5490_v37, %s4492_s11  ;;  %3951 = vrot.lane.b32.xlu1 %v7280_v11, %s4492_s11 }
 0x1c4   : > { %v3667_v20 = vpop.permute.xlu0 %3666  ;;  %v3672_v31 = vpop.permute.xlu1 %3671 }
 0x1c5   : > { %v3669_v25 = vunpack.i.h.bf16 %v3667_v20  ;;  %v3668_v3 = vunpack.i.l.bf16 %v3667_v20  ;;  %v3674_v23 = vunpack.i.h.bf16 %v3672_v31  ;;  %v3673_v55 = vunpack.i.l.bf16 %v3672_v31 }
 0x1c6   : > { %3956 = vrot.lane.b32.xlu0 %v7281_v56, %s4492_s11  ;;  %3961 = vrot.lane.b32.xlu1 %v7282_v63, %s4492_s11 }
 0x1c7   : > { %v5684_v9 = vsel %vm2082_vm2, %v5441_v61, %v3668_v3  ;;  %v5688_v37 = vsel %vm2082_vm2, %v5444_v46, %v3669_v25  ;;  %v5692_v14 = vsel %vm2082_vm2, %v5447_v51, %v3673_v55  ;;  %v5696_v45 = vsel %vm2082_vm2, %v5450_v34, %v3674_v23  ;;  %v7297_v61 = vld [vmem:[#allocation55_spill] sm:$0xff]  ;;  %v7298_v51 = vld [vmem:[#allocation56_spill] sm:$0xff]  ;;  %v7299_v25 = vld [vmem:[#allocation14_spill] sm:$0xff] }
 0x1c8   : > { %v3677_v4 = vpop.permute.xlu0 %3676  ;;  %v3682_v42 = vpop.permute.xlu1 %3681  ;;  %v7300_v23 = vld [vmem:[#allocation16_spill] sm:$0xff] }
 0x1c9   : > { %v3679_v20 = vunpack.i.h.bf16 %v3677_v4  ;;  %v3678_v31 = vunpack.i.l.bf16 %v3677_v4  ;;  %v3684_v48 = vunpack.i.h.bf16 %v3682_v42  ;;  %v3683_v2 = vunpack.i.l.bf16 %v3682_v42 }
 0x1ca   : > { %3966 = vrot.lane.b32.xlu0 %v5506_v19, %s4492_s11  ;;  %3971 = vrot.lane.b32.xlu1 %v7283_v13, %s4492_s11 }
 0x1cb   : > { %v5704_v46 = vsel %vm2082_vm2, %v7297_v61, %v3678_v31  ;;  %v5708_v34 = vsel %vm2082_vm2, %v7298_v51, %v3679_v20  ;;  %v5712_v3 = vsel %vm2082_vm2, %v7299_v25, %v3683_v2  ;;  %v5716_v55 = vsel %vm2082_vm2, %v7300_v23, %v3684_v48  ;;  %v7305_v2 = vld [vmem:[#allocation30_spill] sm:$0xff] }
 0x1cc   : > { %v5718_v4 = vpop.permute.xlu0 %3686  ;;  %v5720_v42 = vpop.permute.xlu1 %3691 }
 0x1cd   : > { %7301 = vst [vmem:[#allocation55_spill] sm:$0xff] %v5718_v4  ;;  %7302 = vst [vmem:[#allocation56_spill] sm:$0xff] %v5720_v42 }
 0x1ce   : > { %3976 = vrot.lane.b32.xlu0 %v7285_v44, %s4492_s11  ;;  %3981 = vrot.lane.b32.xlu1 %v7286_v62, %s4493_s18 }
 0x1d0   : > { %v5726_v20 = vpop.permute.xlu0 %3696  ;;  %v5728_v31 = vpop.permute.xlu1 %3701 }
 0x1d1   : > { %7303 = vst [vmem:[#allocation14_spill] sm:$0xff] %v5726_v20  ;;  %7304 = vst [vmem:[#allocation16_spill] sm:$0xff] %v5728_v31 }
 0x1d2   : > { %3986 = vrot.lane.b32.xlu0 %v7305_v2, %s4492_s11  ;;  %3991 = vrot.lane.b32.xlu1 %v4930_v59, %s4493_s18 }
 0x1d4   : > { %v3707_v48 = vpop.permute.xlu0 %3706  ;;  %v3712_v61 = vpop.permute.xlu1 %3711 }
 0x1d5   : > { %v3709_v51 = vunpack.i.h.bf16 %v3707_v48  ;;  %v3708_v25 = vunpack.i.l.bf16 %v3707_v48  ;;  %v3714_v23 = vunpack.i.h.bf16 %v3712_v61  ;;  %v3713_v4 = vunpack.i.l.bf16 %v3712_v61 }
 0x1d6   : > { %3996 = vrot.lane.b32.xlu0 %v7305_v2, %s4494_s19  ;;  %4001 = vrot.lane.b32.xlu1 %v7286_v62, %s4492_s11 }
 0x1d7   : > { %v5740_v20 = vsel %vm2147_vm3, %v5510_v33, %v3708_v25  ;;  %v5744_v59 = vsel %vm2147_vm3, %v5514_v17, %v3709_v51  ;;  %v5748_v48 = vsel %vm2147_vm3, %v5518_v35, %v3713_v4  ;;  %v5752_v61 = vsel %vm2147_vm3, %v5522_v57, %v3714_v23  ;;  %v7310_v33 = vld [vmem:[#allocation36_spill] sm:$0xff] }
 0x1d8   : > { %7306 = vst [vmem:[#allocation30_spill] sm:$0xff] %v5740_v20  ;;  %7307 = vst [vmem:[#allocation81_spill] sm:$0xff] %v5744_v59  ;;  %v3717_v31 = vpop.permute.xlu0 %3716  ;;  %v3722_v32 = vpop.permute.xlu1 %3721 }
 0x1d9   : > { %7308 = vst [vmem:[#allocation82_spill] sm:$0xff] %v5748_v48  ;;  %7309 = vst [vmem:[#allocation83_spill] sm:$0xff] %v5752_v61  ;;  %v3719_v42 = vunpack.i.h.bf16 %v3717_v31  ;;  %v3718_v28 = vunpack.i.l.bf16 %v3717_v31  ;;  %v3724_v39 = vunpack.i.h.bf16 %v3722_v32  ;;  %v3723_v11 = vunpack.i.l.bf16 %v3722_v32 }
 0x1da   : > { %4006 = vrot.lane.b32.xlu0 %v7310_v33, %s4493_s18  ;;  %4011 = vrot.lane.b32.xlu1 %v7286_v62, %s4494_s19 }
 0x1db   : > { %v5760_v17 = vsel %vm2147_vm3, %v5530_v15, %v3718_v28  ;;  %v5764_v35 = vsel %vm2147_vm3, %v5534_v43, %v3719_v42  ;;  %v5768_v57 = vsel %vm2147_vm3, %v5538_v21, %v3723_v11  ;;  %v5772_v32 = vsel %vm2147_vm3, %v5542_v49, %v3724_v39  ;;  %v7313_v15 = vld [vmem:[#allocation42_spill] sm:$0xff] }
 0x1dc   : > { %v5774_v4 = vpop.permute.xlu0 %3726  ;;  %v5776_v31 = vpop.permute.xlu1 %3731 }
 0x1dd   : > { %7311 = vst [vmem:[#allocation36_spill] sm:$0xff] %v5774_v4  ;;  %7312 = vst [vmem:[#allocation84_spill] sm:$0xff] %v5776_v31 }
 0x1de   : > { %4016 = vrot.lane.b32.xlu0 %v7305_v2, %s4493_s18  ;;  %4021 = vrot.lane.b32.xlu1 %v7313_v15, %s4494_s19  ;;  %v7316_v2 = vld [vmem:[#allocation31_spill] sm:$0xff] }
 0x1e0   : > { %v5782_v43 = vpop.permute.xlu0 %3736  ;;  %v5784_v62 = vpop.permute.xlu1 %3741 }
 0x1e1   : > { %7314 = vst [vmem:[#allocation42_spill] sm:$0xff] %v5782_v43  ;;  %7315 = vst [vmem:[#allocation85_spill] sm:$0xff] %v5784_v62 }
 0x1e2   : > { %4026 = vrot.lane.b32.xlu0 %v7285_v44, %s4493_s18  ;;  %4031 = vrot.lane.b32.xlu1 %v7310_v33, %s4494_s19 }
 0x1e4   : > { %v3747_v11 = vpop.permute.xlu0 %3746  ;;  %v3752_v21 = vpop.permute.xlu1 %3751 }
 0x1e5   : > { %v3749_v49 = vunpack.i.h.bf16 %v3747_v11  ;;  %v3748_v39 = vunpack.i.l.bf16 %v3747_v11  ;;  %v3754_v28 = vunpack.i.h.bf16 %v3752_v21  ;;  %v3753_v42 = vunpack.i.l.bf16 %v3752_v21 }
 0x1e6   : > { %4036 = vrot.lane.b32.xlu0 %v7316_v2, %s4492_s11  ;;  %4041 = vrot.lane.b32.xlu1 %v4932_v58, %s4493_s18 }
 0x1e7   : > { %v5796_v51 = vsel %vm2147_vm3, %v5566_v22, %v3748_v39  ;;  %v5800_v25 = vsel %vm2147_vm3, %v5570_v38, %v3749_v49  ;;  %v5804_v23 = vsel %vm2147_vm3, %v5574_v24, %v3753_v42  ;;  %v5808_v33 = vsel %vm2147_vm3, %v5578_v16, %v3754_v28  ;;  %v7317_v22 = vld [vmem:[#allocation37_spill] sm:$0xff] }
 0x1e8   : > { %v3757_v15 = vpop.permute.xlu0 %3756  ;;  %v3762_v11 = vpop.permute.xlu1 %3761 }
 0x1e9   : > { %v3759_v21 = vunpack.i.h.bf16 %v3757_v15  ;;  %v3758_v58 = vunpack.i.l.bf16 %v3757_v15  ;;  %v3764_v59 = vunpack.i.h.bf16 %v3762_v11  ;;  %v3763_v20 = vunpack.i.l.bf16 %v3762_v11 }
 0x1ea   : > { %4046 = vrot.lane.b32.xlu0 %v7316_v2, %s4494_s19  ;;  %4051 = vrot.lane.b32.xlu1 %v7317_v22, %s4493_s18 }
 0x1eb   : > { %v5816_v38 = vsel %vm2147_vm3, %v5586_v12, %v3758_v58  ;;  %v5820_v24 = vsel %vm2147_vm3, %v5590_v47, %v3759_v21  ;;  %v5824_v16 = vsel %vm2147_vm3, %v5594_v10, %v3763_v20  ;;  %v5828_v49 = vsel %vm2147_vm3, %v5598_v7, %v3764_v59  ;;  %v7322_v10 = vld [vmem:[#allocation43_spill] sm:$0xff] }
 0x1ec   : > { %v5830_v39 = vpop.permute.xlu0 %3766  ;;  %v5832_v28 = vpop.permute.xlu1 %3771 }
 0x1ed   : > { %7318 = vst [vmem:[#allocation31_spill] sm:$0xff] %v5830_v39  ;;  %7319 = vst [vmem:[#allocation37_spill] sm:$0xff] %v5832_v28 }
 0x1ee   : > { %4056 = vrot.lane.b32.xlu0 %v7285_v44, %s4494_s19  ;;  %4061 = vrot.lane.b32.xlu1 %v7316_v2, %s4493_s18  ;;  %v7323_v44 = vld [vmem:[#allocation28_spill] sm:$0xff] }
 0x1f0   : > { %v5838_v12 = vpop.permute.xlu0 %3776  ;;  %v5840_v47 = vpop.permute.xlu1 %3781 }
 0x1f1   : > { %7320 = vst [vmem:[#allocation86_spill] sm:$0xff] %v5838_v12  ;;  %7321 = vst [vmem:[#allocation87_spill] sm:$0xff] %v5840_v47 }
 0x1f2   : > { %4066 = vrot.lane.b32.xlu0 %v7322_v10, %s4494_s19  ;;  %4071 = vrot.lane.b32.xlu1 %v7283_v13, %s4493_s18 }
 0x1f4   : > { %v3787_v7 = vpop.permute.xlu0 %3786  ;;  %v3792_v20 = vpop.permute.xlu1 %3791 }
 0x1f5   : > { %v3789_v59 = vunpack.i.h.bf16 %v3787_v7  ;;  %v3788_v42 = vunpack.i.l.bf16 %v3787_v7  ;;  %v3794_v15 = vunpack.i.h.bf16 %v3792_v20  ;;  %v3793_v11 = vunpack.i.l.bf16 %v3792_v20 }
 0x1f6   : > { %4076 = vrot.lane.b32.xlu0 %v7317_v22, %s4494_s19  ;;  %4081 = vrot.lane.b32.xlu1 %v7323_v44, %s4492_s11 }
 0x1f7   : > { %v5852_v2 = vsel %vm2147_vm3, %v5622_v30, %v3788_v42  ;;  %v5856_v21 = vsel %vm2147_vm3, %v5626_v8, %v3789_v59  ;;  %v5860_v58 = vsel %vm2147_vm3, %v5630_v50, %v3793_v11  ;;  %v5864_v10 = vsel %vm2147_vm3, %v5634_v26, %v3794_v15  ;;  %v7329_v11 = vld [vmem:[#allocation5_spill] sm:$0xff] }
 0x1f8   : > { %v3797_v22 = vpop.permute.xlu0 %3796  ;;  %v3802_v7 = vpop.permute.xlu1 %3801  ;;  %v7359_v12 = vunpack.i.l.bf16 %v7329_v11 }
 0x1f9   : > { %v3799_v20 = vunpack.i.h.bf16 %v3797_v22  ;;  %v3798_v61 = vunpack.i.l.bf16 %v3797_v22  ;;  %v3804_v48 = vunpack.i.h.bf16 %v3802_v7  ;;  %v3803_v39 = vunpack.i.l.bf16 %v3802_v7 }
 0x1fa   : > { %4086 = vrot.lane.b32.xlu0 %v4922_v1, %s4493_s18  ;;  %4091 = vrot.lane.b32.xlu1 %v7323_v44, %s4494_s19 }
 0x1fb   : > { %v5872_v30 = vsel %vm2147_vm3, %v5642_v60, %v3798_v61  ;;  %v5876_v8 = vsel %vm2147_vm3, %v5646_v41, %v3799_v20  ;;  %v5880_v50 = vsel %vm2147_vm3, %v5650_v36, %v3803_v39  ;;  %v5884_v26 = vsel %vm2147_vm3, %v5654_v53, %v3804_v48  ;;  %v7330_v61 = vld [vmem:[#allocation34_spill] sm:$0xff]  ;;  %v7336_v20 = vld [vmem:[#allocation7_spill] sm:$0xff] }
 0x1fc   : > { %7324 = vst [vmem:[#allocation43_spill] sm:$0xff] %v5872_v30  ;;  %7325 = vst [vmem:[#allocation28_spill] sm:$0xff] %v5876_v8  ;;  %v3807_v1 = vpop.permute.xlu0 %3806  ;;  %v5886_v59 = vpop.permute.xlu1 %3811  ;;  %v7333_v48 = vld [vmem:[#allocation6_spill] sm:$0xff] }
 0x1fd   : > { %7326 = vst [vmem:[#allocation88_spill] sm:$0xff] %v5880_v50  ;;  %7327 = vst [vmem:[#allocation89_spill] sm:$0xff] %v5884_v26  ;;  %v3809_v42 = vunpack.i.h.bf16 %v3807_v1  ;;  %v3808_v15 = vunpack.i.l.bf16 %v3807_v1  ;;  %v4386_v1 = vld [vmem:[%s4578_s30 + $0x118] sm:$0xff]  ;;  %v7402_v50 = vld [vmem:[#allocation63_spill] sm:$0xff] }
 0x1fe   : > { %7328 = vst [vmem:[#allocation90_spill] sm:$0xff] %v5886_v59  ;;  %4096 = vrot.lane.b32.xlu0 %v7330_v61, %s4493_s18  ;;  %4101 = vrot.lane.b32.xlu1 %v7283_v13, %s4494_s19  ;;  %v4385_v13 = vld [vmem:[%s4578_s30 + $0x110] sm:$0xff]  ;;  %v3418_v8 = vunpack.i.l.bf16 %v7402_v50 }
 0x1ff   : > { %v5895_v41 = vsel %vm2147_vm3, %v5664_v40, %v3808_v15  ;;  %v5899_v36 = vsel %vm2147_vm3, %v5668_v6, %v3809_v42  ;;  %v7337_v6 = vld [vmem:[#allocation40_spill] sm:$0xff] }
 0x200   : > { %7331 = vst [vmem:[#allocation5_spill] sm:$0xff] %v5895_v41  ;;  %7332 = vst [vmem:[#allocation34_spill] sm:$0xff] %v5899_v36  ;;  %v5903_v22 = vpop.permute.xlu0 %3816  ;;  %v5905_v7 = vpop.permute.xlu1 %3821  ;;  %v7379_v36 = vld [vmem:[#allocation54_spill] sm:$0xff] }
 0x201   : > { %7334 = vst [vmem:[#allocation6_spill] sm:$0xff] %v5903_v22  ;;  %7335 = vst [vmem:[#allocation91_spill] sm:$0xff] %v5905_v7 }
 0x202   : > { %4106 = vrot.lane.b32.xlu0 %v7323_v44, %s4493_s18  ;;  %4111 = vrot.lane.b32.xlu1 %v7337_v6, %s4494_s19  ;;  %v4125_v44 = vpack.i.bf16 %v4386_v1, %v4385_v13 }
 0x204   : > { %v3827_v42 = vpop.permute.xlu0 %3826  ;;  %v3832_v15 = vpop.permute.xlu1 %3831 }
 0x205   : > { %v3829_v39 = vunpack.i.h.bf16 %v3827_v42  ;;  %v3828_v53 = vunpack.i.l.bf16 %v3827_v42  ;;  %v3834_v60 = vunpack.i.h.bf16 %v3832_v15  ;;  %v3833_v4 = vunpack.i.l.bf16 %v3832_v15 }
 0x206   : > { %4116 = vrot.lane.b32.xlu0 %v5506_v19, %s4493_s18  ;;  %4121 = vrot.lane.b32.xlu1 %v7330_v61, %s4494_s19 }
 0x207   : > { %v5922_v6 = vsel %vm2147_vm3, %v5684_v9, %v3828_v53  ;;  %v5926_v42 = vsel %vm2147_vm3, %v5688_v37, %v3829_v39  ;;  %v5930_v15 = vsel %vm2147_vm3, %v5692_v14, %v3833_v4  ;;  %v5934_v61 = vsel %vm2147_vm3, %v5696_v45, %v3834_v60  ;;  %v4387_v9 = vld [vmem:[%s4578_s30 + $0x130] sm:$0xff]  ;;  %v4388_v37 = vld [vmem:[%s4578_s30 + $0x138] sm:$0xff] }
 0x208   : > { %7338 = vst [vmem:[#allocation7_spill] sm:$0xff] %v5922_v6  ;;  %7339 = vst [vmem:[#allocation40_spill] sm:$0xff] %v5926_v42  ;;  %v3837_v40 = vpop.permute.xlu0 %3836  ;;  %v3842_v59 = vpop.permute.xlu1 %3841  ;;  %v5941_v14 = vpack.i.bf16 %v4388_v37, %v4387_v9  ;;  %v7346_v60 = vld [vmem:[#allocation44_spill] sm:$0xff] }
 0x209   : > { %7340 = vst [vmem:[#allocation92_spill] sm:$0xff] %v5930_v15  ;;  %7341 = vst [vmem:[#allocation93_spill] sm:$0xff] %v5934_v61  ;;  %v3839_v22 = vunpack.i.h.bf16 %v3837_v40  ;;  %v3838_v13 = vunpack.i.l.bf16 %v3837_v40  ;;  %v3844_v1 = vunpack.i.h.bf16 %v3842_v59  ;;  %v3843_v28 = vunpack.i.l.bf16 %v3842_v59  ;;  %v7353_v61 = vld [vmem:[#allocation47_spill] sm:$0xff] }
 0x20a   : > { %4126 = vrot.lane.b32.xlu0 %v4125_v44, %s4492_s11  ;;  %4131 = vrot.lane.b32.xlu1 %v5420_v27, %s4493_s18  ;;  %v3249_v53 = vunpack.i.h.bf16 %v7346_v60  ;;  %v3248_v39 = vunpack.i.l.bf16 %v7346_v60  ;;  %v3264_v15 = vunpack.i.h.bf16 %v7353_v61 }
 0x20b   : > { %v5945_v45 = vsel %vm2147_vm3, %v5704_v46, %v3838_v13  ;;  %v5949_v4 = vsel %vm2147_vm3, %v5708_v34, %v3839_v22  ;;  %v5953_v59 = vsel %vm2147_vm3, %v5712_v3, %v3843_v28  ;;  %v5957_v27 = vsel %vm2147_vm3, %v5716_v55, %v3844_v1  ;;  %v7349_v13 = vld [vmem:[#allocation45_spill] sm:$0xff]  ;;  %v4389_v34 = vld [vmem:[%s4578_s30 + $0x18] sm:$0xff]  ;;  %v4390_v55 = vld [vmem:[%s4578_s30 + $0x10] sm:$0xff] }
 0x20c   : > { %7342 = vst [vmem:[#allocation94_spill] sm:$0xff] %v5945_v45  ;;  %7343 = vst [vmem:[#allocation95_spill] sm:$0xff] %v5949_v4  ;;  %v5961_v40 = vpop.permute.xlu0 %3846  ;;  %v5963_v46 = vpop.permute.xlu1 %3851  ;;  %v3254_v9 = vunpack.i.h.bf16 %v7349_v13  ;;  %v5971_v3 = vsel %vm1952_vm0, %v4389_v34, %v3249_v53  ;;  %v5975_v28 = vsel %vm1952_vm0, %v4390_v55, %v3248_v39  ;;  %v3253_v22 = vunpack.i.l.bf16 %v7349_v13  ;;  %v7350_v1 = vld [vmem:[#allocation46_spill] sm:$0xff]  ;;  %v7354_v34 = vld [vmem:[#allocation48_spill] sm:$0xff] }
 0x20d   : > { %7344 = vst [vmem:[#allocation96_spill] sm:$0xff] %v5953_v59  ;;  %7345 = vst [vmem:[#allocation97_spill] sm:$0xff] %v5957_v27  ;;  %v3258_v37 = vunpack.i.l.bf16 %v7350_v1  ;;  %v3259_v6 = vunpack.i.h.bf16 %v7350_v1  ;;  %v3263_v53 = vunpack.i.l.bf16 %v7353_v61  ;;  %v3289_v4 = vunpack.i.h.bf16 %v7354_v34  ;;  %v7356_v55 = vld [vmem:[#allocation49_spill] sm:$0xff]  ;;  %v4391_v1 = vld [vmem:[%s4578_s30 + $0x150] sm:$0xff] }
 0x20e   : > { %7347 = vst [vmem:[#allocation44_spill] sm:$0xff] %v5961_v40  ;;  %7348 = vst [vmem:[#allocation98_spill] sm:$0xff] %v5963_v46  ;;  %4136 = vrot.lane.b32.xlu0 %v4125_v44, %s4494_s19  ;;  %4141 = vrot.lane.b32.xlu1 %v5941_v14, %s4493_s18  ;;  %v7355_v45 = vunpack.i.h.bf16 %v7329_v11  ;;  %v3288_v13 = vunpack.i.l.bf16 %v7354_v34  ;;  %v3294_v27 = vunpack.i.h.bf16 %v7356_v55  ;;  %v4392_v59 = vld [vmem:[%s4578_s30 + $0x158] sm:$0xff]  ;;  %v3293_v40 = vunpack.i.l.bf16 %v7356_v55  ;;  %v7357_v46 = vld [vmem:[#allocation50_spill] sm:$0xff] }
 0x20f   : > { %v4155_v61 = vpack.i.bf16 %v4392_v59, %v4391_v1  ;;  %v6006_v43 = vsel %vm1952_vm0, %v7359_v12, %v3253_v22  ;;  %v7361_v1 = vld [vmem:[#allocation52_spill] sm:$0xff]  ;;  %v7365_v12 = vunpack.i.h.bf16 %v7333_v48 }
 0x210   : > { %v5979_v60 = vpop.permute.xlu0 %3856  ;;  %v5981_v42 = vpop.permute.xlu1 %3861  ;;  %v5990_v39 = vsel %vm1952_vm0, %v7355_v45, %v3254_v9  ;;  %v3298_v45 = vunpack.i.l.bf16 %v7357_v46  ;;  %v7358_v9 = vld [vmem:[#allocation51_spill] sm:$0xff]  ;;  %v3334_v55 = vunpack.i.h.bf16 %v7361_v1 }
 0x211   : > { %7351 = vst [vmem:[#allocation45_spill] sm:$0xff] %v5979_v60  ;;  %7352 = vst [vmem:[#allocation46_spill] sm:$0xff] %v5981_v42  ;;  %v3299_v60 = vunpack.i.h.bf16 %v7357_v46  ;;  %v3304_v34 = vunpack.i.h.bf16 %v7358_v9  ;;  %v3303_v59 = vunpack.i.l.bf16 %v7358_v9  ;;  %v7364_v46 = vunpack.i.h.bf16 %v7336_v20 }
 0x212   : > { %4146 = vrot.lane.b32.xlu0 %v5506_v19, %s4494_s19  ;;  %4151 = vrot.lane.b32.xlu1 %v4125_v44, %s4493_s18  ;;  %v7360_v19 = vunpack.i.l.bf16 %v7336_v20  ;;  %v6027_v22 = vsel %vm1952_vm0, %v7365_v12, %v3264_v15  ;;  %v7373_v12 = vld [vmem:[#allocation9_spill] sm:$0xff] }
 0x213   : > { %v6022_v11 = vsel %vm1952_vm0, %v7364_v46, %v3259_v6  ;;  %v7367_v6 = vld [vmem:[#allocation8_spill] sm:$0xff] }
 0x214   : > { %v6011_v44 = vsel %vm1952_vm0, %v7360_v19, %v3258_v37  ;;  %v6015_v31 = vpop.permute.xlu0 %3866  ;;  %v6017_v7 = vpop.permute.xlu1 %3871  ;;  %v7366_v37 = vunpack.i.l.bf16 %v7333_v48  ;;  %v4393_v19 = vld [vmem:[%s4578_s30 + $0x38] sm:$0xff]  ;;  %v7368_v46 = vunpack.i.h.bf16 %v7367_v6  ;;  %v7369_v48 = vunpack.i.l.bf16 %v7367_v6  ;;  %v7376_v6 = vld [vmem:[#allocation11_spill] sm:$0xff] }
 0x215   : > { %7362 = vst [vmem:[#allocation47_spill] sm:$0xff] %v6015_v31  ;;  %7363 = vst [vmem:[#allocation48_spill] sm:$0xff] %v6017_v7  ;;  %v6036_v31 = vsel %vm1952_vm0, %v4393_v19, %v3289_v4  ;;  %v4394_v7 = vld [vmem:[%s4578_s30 + $0x30] sm:$0xff]  ;;  %v7370_v4 = vld [vmem:[#allocation10_spill] sm:$0xff]  ;;  %v7375_v19 = vunpack.i.l.bf16 %v7373_v12 }
 0x216   : > { %v6032_v9 = vsel %vm1952_vm0, %v7366_v37, %v3263_v53  ;;  %v6040_v20 = vsel %vm1952_vm0, %v4394_v7, %v3288_v13  ;;  %v6045_v42 = vsel %vm1952_vm0, %v7368_v46, %v3294_v27  ;;  %4156 = vrot.lane.b32.xlu0 %v4155_v61, %s4494_s19  ;;  %4161 = vrot.lane.b32.xlu1 %v7282_v63, %s4493_s18  ;;  %v7371_v53 = vunpack.i.h.bf16 %v7370_v4 }
 0x217   : > { %v6053_v15 = vsel %vm1952_vm0, %v7369_v48, %v3293_v40  ;;  %v7372_v13 = vunpack.i.l.bf16 %v7370_v4  ;;  %v7374_v61 = vunpack.i.h.bf16 %v7373_v12  ;;  %v6073_v40 = vsel %vm1952_vm0, %v7375_v19, %v3303_v59  ;;  %v7378_v4 = vld [vmem:[#allocation53_spill] sm:$0xff] }
 0x218   : > { %v6058_v7 = vsel %vm1952_vm0, %v7371_v53, %v3299_v60  ;;  %v7377_v46 = vunpack.i.h.bf16 %v7376_v6  ;;  %v3333_v48 = vunpack.i.l.bf16 %v7361_v1  ;;  %v3877_v53 = vpop.permute.xlu0 %3876  ;;  %v3338_v12 = vunpack.i.l.bf16 %v7378_v4  ;;  %v7380_v1 = vld [vmem:[#allocation29_spill] sm:$0xff] }
 0x219   : > { %v6063_v27 = vsel %vm1952_vm0, %v7372_v13, %v3298_v45  ;;  %v6068_v37 = vsel %vm1952_vm0, %v7374_v61, %v3304_v34  ;;  %v3339_v45 = vunpack.i.h.bf16 %v7378_v4  ;;  %v3882_v13 = vpop.permute.xlu1 %3881  ;;  %v3879_v47 = vunpack.i.h.bf16 %v3877_v53 }
 0x21a   : > { %v6078_v60 = vsel %vm1952_vm0, %v7377_v46, %v3334_v55  ;;  %v3878_v62 = vunpack.i.l.bf16 %v3877_v53  ;;  %v3884_v34 = vunpack.i.h.bf16 %v3882_v13  ;;  %v3883_v61 = vunpack.i.l.bf16 %v3882_v13  ;;  %4166 = vrot.lane.b32.xlu0 %v5941_v14, %s4494_s19  ;;  %4171 = vrot.lane.b32.xlu1 %v7380_v1, %s4492_s11  ;;  %v7386_v13 = vld [vmem:[#allocation13_spill] sm:$0xff] }
 0x21b   : > { %v3344_v59 = vunpack.i.h.bf16 %v7379_v36  ;;  %v3343_v19 = vunpack.i.l.bf16 %v7379_v36  ;;  %v6095_v46 = vsel %vm2212_vm4, %v5764_v35, %v3879_v47  ;;  %v7385_v14 = vunpack.i.l.bf16 %v7376_v6  ;;  %v7388_v35 = vld [vmem:[#allocation57_spill] sm:$0xff] }
 0x21c   : > { %v6091_v55 = vsel %vm2212_vm4, %v5760_v17, %v3878_v62  ;;  %7382 = vst [vmem:[#allocation50_spill] sm:$0xff] %v6095_v46  ;;  %v6099_v4 = vsel %vm2212_vm4, %v5768_v57, %v3883_v61  ;;  %v6103_v36 = vsel %vm2212_vm4, %v5772_v32, %v3884_v34  ;;  %v7387_v17 = vunpack.i.h.bf16 %v7386_v13  ;;  %v6117_v57 = vpop.permute.xlu0 %3886  ;;  %v7391_v32 = vld [vmem:[#allocation58_spill] sm:$0xff] }
 0x21d   : > { %7381 = vst [vmem:[#allocation49_spill] sm:$0xff] %v6091_v55  ;;  %7383 = vst [vmem:[#allocation51_spill] sm:$0xff] %v6099_v4  ;;  %v6108_v53 = vsel %vm1952_vm0, %v7385_v14, %v3333_v48  ;;  %v3369_v47 = vunpack.i.h.bf16 %v7388_v35  ;;  %v3368_v46 = vunpack.i.l.bf16 %v7388_v35  ;;  %v6119_v61 = vpop.permute.xlu1 %3891  ;;  %v3374_v34 = vunpack.i.h.bf16 %v7391_v32  ;;  %v7392_v48 = vld [vmem:[#allocation59_spill] sm:$0xff]  ;;  %v7394_v35 = vld [vmem:[#allocation12_spill] sm:$0xff] }
 0x21e   : > { %7384 = vst [vmem:[#allocation52_spill] sm:$0xff] %v6103_v36  ;;  %v6113_v62 = vsel %vm1952_vm0, %v7387_v17, %v3339_v45  ;;  %7389 = vst [vmem:[#allocation8_spill] sm:$0xff] %v6117_v57  ;;  %v3373_v6 = vunpack.i.l.bf16 %v7391_v32  ;;  %v3379_v14 = vunpack.i.h.bf16 %v7392_v48  ;;  %v3378_v55 = vunpack.i.l.bf16 %v7392_v48  ;;  %v7397_v32 = vld [vmem:[#allocation60_spill] sm:$0xff]  ;;  %4176 = vrot.lane.b32.xlu0 %v4924_v0, %s4493_s18  ;;  %4181 = vrot.lane.b32.xlu1 %v7380_v1, %s4494_s19 }
 0x21f   : > { %7390 = vst [vmem:[#allocation10_spill] sm:$0xff] %v6119_v61  ;;  %v7393_v45 = vunpack.i.l.bf16 %v7386_v13  ;;  %v7395_v36 = vunpack.i.h.bf16 %v7394_v35  ;;  %v7396_v57 = vunpack.i.l.bf16 %v7394_v35  ;;  %v3384_v41 = vunpack.i.h.bf16 %v7397_v32  ;;  %v7398_v13 = vld [vmem:[#allocation61_spill] sm:$0xff]  ;;  %v4395_v35 = vld [vmem:[%s4578_s30 + $0x78] sm:$0xff] }
 0x220   : > { %v3409_v48 = vunpack.i.h.bf16 %v7398_v13  ;;  %v6159_v30 = vpop.permute.xlu0 %3896 }
 0x221   : > { %v6128_v17 = vsel %vm1952_vm0, %v7393_v45, %v3338_v12  ;;  %v6133_v4 = vsel %vm1952_vm0, %v7395_v36, %v3344_v59  ;;  %v6138_v61 = vsel %vm1952_vm0, %v7396_v57, %v3343_v19  ;;  %v3383_v12 = vunpack.i.l.bf16 %v7397_v32  ;;  %v7399_v36 = vld [vmem:[#allocation62_spill] sm:$0xff]  ;;  %v4396_v57 = vld [vmem:[%s4578_s30 + $0x70] sm:$0xff]  ;;  %7403 = vst [vmem:[#allocation53_spill] sm:$0xff] %v6159_v30  ;;  %v6161_v32 = vpop.permute.xlu1 %3901  ;;  %v7411_v30 = vld [vmem:[#allocation17_spill] sm:$0xff] }
 0x222   : > { %v3408_v59 = vunpack.i.l.bf16 %v7398_v13  ;;  %v3413_v45 = vunpack.i.l.bf16 %v7399_v36  ;;  %v6151_v19 = vsel %vm1952_vm0, %v4395_v35, %v3369_v47  ;;  %v6155_v26 = vsel %vm1952_vm0, %v4396_v57, %v3368_v46  ;;  %7404 = vst [vmem:[#allocation54_spill] sm:$0xff] %v6161_v32  ;;  %v7408_v46 = vld [vmem:[#allocation18_spill] sm:$0xff]  ;;  %4186 = vrot.lane.b32.xlu0 %v7414_v18, %s4493_s18  ;;  %4191 = vrot.lane.b32.xlu1 %v7282_v63, %s4494_s19 }
 0x223   : > { %7400 = vst [vmem:[#allocation9_spill] sm:$0xff] %v6151_v19  ;;  %7401 = vst [vmem:[#allocation11_spill] sm:$0xff] %v6155_v26  ;;  %v3414_v0 = vunpack.i.h.bf16 %v7399_v36  ;;  %v7406_v13 = vunpack.i.h.bf16 %v7405_v52  ;;  %v7407_v47 = vunpack.i.l.bf16 %v7405_v52  ;;  %v7409_v57 = vunpack.i.h.bf16 %v7408_v46 }
 0x224   : > { %v7410_v19 = vunpack.i.l.bf16 %v7408_v46  ;;  %v7412_v32 = vunpack.i.h.bf16 %v7411_v30  ;;  %v3419_v52 = vunpack.i.h.bf16 %v7402_v50  ;;  %v6206_v50 = vsel %vm2017_vm1, %v5975_v28, %v3408_v59 }
 0x225   : > { %v6166_v54 = vsel %vm1952_vm0, %v7406_v13, %v3374_v34  ;;  %v6171_v35 = vsel %vm1952_vm0, %v7407_v47, %v3373_v6  ;;  %v6176_v36 = vsel %vm1952_vm0, %v7409_v57, %v3379_v14  ;;  %v7413_v13 = vld [vmem:[#allocation64_spill] sm:$0xff]  ;;  %v6214_v63 = vsel %vm2017_vm1, %v5990_v39, %v3414_v0  ;;  %v3912_v46 = vpop.permute.xlu1 %3911  ;;  %v7419_v0 = vld [vmem:[#allocation41_spill] sm:$0xff] }
 0x226   : > { %v6181_v26 = vsel %vm1952_vm0, %v7410_v19, %v3378_v55  ;;  %v6186_v34 = vsel %vm1952_vm0, %v7412_v32, %v3384_v41  ;;  %v3424_v6 = vunpack.i.h.bf16 %v7413_v13  ;;  %v3423_v47 = vunpack.i.l.bf16 %v7413_v13  ;;  %4196 = vrot.lane.b32.xlu0 %v7380_v1, %s4493_s18  ;;  %4201 = vrot.lane.b32.xlu1 %v7419_v0, %s4494_s19  ;;  %v7433_v0 = vld [vmem:[#allocation71_spill] sm:$0xff] }
 0x227   : > { %v7415_v55 = vunpack.i.l.bf16 %v7411_v30  ;;  %v6202_v41 = vsel %vm2017_vm1, %v5971_v3, %v3409_v48  ;;  %v6210_v19 = vsel %vm2017_vm1, %v6006_v43, %v3413_v45  ;;  %v6218_v30 = vsel %vm2017_vm1, %v6011_v44, %v3418_v8  ;;  %v3907_v48 = vpop.permute.xlu0 %3906  ;;  %v7418_v44 = vld [vmem:[#allocation66_spill] sm:$0xff] }
 0x228   : > { %7416 = vst [vmem:[#allocation29_spill] sm:$0xff] %v6202_v41  ;;  %v3909_v28 = vunpack.i.h.bf16 %v3907_v48  ;;  %v3908_v59 = vunpack.i.l.bf16 %v3907_v48  ;;  %v3914_v57 = vunpack.i.h.bf16 %v3912_v46  ;;  %v3913_v13 = vunpack.i.l.bf16 %v3912_v46 }
 0x229   : > { %v6198_v14 = vsel %vm1952_vm0, %v7415_v55, %v3383_v12  ;;  %v7417_v12 = vld [vmem:[#allocation65_spill] sm:$0xff]  ;;  %v6224_v43 = vsel %vm2017_vm1, %v6022_v11, %v3419_v52  ;;  %v6228_v39 = vsel %vm2017_vm1, %v6032_v9, %v3423_v47  ;;  %v6232_v8 = vsel %vm2017_vm1, %v6027_v22, %v3424_v6 }
 0x22a   : > { %v3449_v32 = vunpack.i.h.bf16 %v7417_v12  ;;  %v3448_v3 = vunpack.i.l.bf16 %v7417_v12  ;;  %v3453_v45 = vunpack.i.l.bf16 %v7418_v44  ;;  %v6241_v11 = vsel %vm2212_vm4, %v5796_v51, %v3908_v59  ;;  %v3922_v12 = vpop.permute.xlu1 %3921  ;;  %4206 = vrot.lane.b32.xlu0 %v7281_v56, %s4493_s18  ;;  %4211 = vrot.lane.b32.xlu1 %v7414_v18, %s4494_s19  ;;  %v7432_v18 = vld [vmem:[#allocation69_spill] sm:$0xff] }
 0x22b   : > { %7420 = vst [vmem:[#allocation13_spill] sm:$0xff] %v6241_v11  ;;  %v6245_v9 = vsel %vm2212_vm4, %v5800_v25, %v3909_v28  ;;  %v6249_v22 = vsel %vm2212_vm4, %v5804_v23, %v3913_v13  ;;  %v6253_v52 = vsel %vm2212_vm4, %v5808_v33, %v3914_v57  ;;  %v3454_v6 = vunpack.i.h.bf16 %v7418_v44  ;;  %v7426_v25 = vld [vmem:[#allocation67_spill] sm:$0xff]  ;;  %v3917_v55 = vpop.permute.xlu0 %3916 }
 0x22c   : > { %7421 = vst [vmem:[#allocation57_spill] sm:$0xff] %v6245_v9  ;;  %7422 = vst [vmem:[#allocation58_spill] sm:$0xff] %v6249_v22  ;;  %v6257_v1 = vsel %vm2017_vm1, %v6040_v20, %v3448_v3  ;;  %v6261_v51 = vsel %vm2017_vm1, %v6036_v31, %v3449_v32  ;;  %v3458_v47 = vunpack.i.l.bf16 %v7426_v25  ;;  %v3919_v23 = vunpack.i.h.bf16 %v3917_v55  ;;  %v7427_v3 = vld [vmem:[#allocation68_spill] sm:$0xff]  ;;  %v7475_v22 = vld [vmem:[#allocation87_spill] sm:$0xff] }
 0x22d   : > { %7423 = vst [vmem:[#allocation59_spill] sm:$0xff] %v6253_v52  ;;  %7424 = vst [vmem:[#allocation12_spill] sm:$0xff] %v6257_v1  ;;  %v3918_v48 = vunpack.i.l.bf16 %v3917_v55  ;;  %v3924_v46 = vunpack.i.h.bf16 %v3922_v12  ;;  %v3923_v28 = vunpack.i.l.bf16 %v3922_v12  ;;  %v6267_v33 = vsel %vm2017_vm1, %v6053_v15, %v3453_v45  ;;  %v7435_v12 = vld [vmem:[#allocation72_spill] sm:$0xff] }
 0x22e   : > { %7425 = vst [vmem:[#allocation60_spill] sm:$0xff] %v6261_v51  ;;  %v3459_v20 = vunpack.i.h.bf16 %v7426_v25  ;;  %v3464_v59 = vunpack.i.h.bf16 %v7427_v3  ;;  %v3463_v31 = vunpack.i.l.bf16 %v7427_v3  ;;  %v6282_v15 = vsel %vm2212_vm4, %v5820_v24, %v3919_v23  ;;  %v6301_v55 = vpop.permute.xlu1 %3931  ;;  %4221 = vrot.lane.b32.xlu1 %v4914_v5, %s4493_s18 }
 0x22f   : > { %v6278_v32 = vsel %vm2212_vm4, %v5816_v38, %v3918_v48  ;;  %7429 = vst [vmem:[#allocation62_spill] sm:$0xff] %v6282_v15  ;;  %v6286_v57 = vsel %vm2212_vm4, %v5824_v16, %v3923_v28  ;;  %v6290_v13 = vsel %vm2212_vm4, %v5828_v49, %v3924_v46  ;;  %v6294_v44 = vsel %vm2017_vm1, %v6045_v42, %v3454_v6  ;;  %v6299_v24 = vpop.permute.xlu0 %3926  ;;  %v7437_v28 = vld [vmem:[#allocation26_spill] sm:$0xff] }
 0x230   : > { %7428 = vst [vmem:[#allocation61_spill] sm:$0xff] %v6278_v32  ;;  %7430 = vst [vmem:[#allocation63_spill] sm:$0xff] %v6286_v57  ;;  %v3494_v45 = vunpack.i.h.bf16 %v7432_v18  ;;  %v3493_v38 = vunpack.i.l.bf16 %v7432_v18  ;;  %v3498_v25 = vunpack.i.l.bf16 %v7433_v0  ;;  %v6305_v16 = vsel %vm2017_vm1, %v6063_v27, %v3458_v47  ;;  %v7436_v27 = vld [vmem:[#allocation74_spill] sm:$0xff]  ;;  %4216 = vrot.lane.b32.xlu0 %v7437_v28, %s4492_s11  ;;  %v7476_v57 = vld [vmem:[#allocation33_spill] sm:$0xff] }
 0x231   : > { %7431 = vst [vmem:[#allocation15_spill] sm:$0xff] %v6290_v13  ;;  %7434 = vst [vmem:[#allocation18_spill] sm:$0xff] %v6299_v24  ;;  %v3499_v49 = vunpack.i.h.bf16 %v7433_v0  ;;  %v3504_v23 = vunpack.i.h.bf16 %v7435_v12  ;;  %v3503_v42 = vunpack.i.l.bf16 %v7435_v12  ;;  %v6312_v6 = vsel %vm2017_vm1, %v6058_v7, %v3459_v20  ;;  %v7438_v7 = vld [vmem:[#allocation75_spill] sm:$0xff] }
 0x232   : > { %v6316_v48 = vsel %vm2017_vm1, %v6073_v40, %v3463_v31  ;;  %v6320_v46 = vsel %vm2017_vm1, %v6068_v37, %v3464_v59  ;;  %v3533_v47 = vunpack.i.l.bf16 %v7436_v27  ;;  %v3534_v3 = vunpack.i.h.bf16 %v7436_v27  ;;  %v7439_v40 = vld [vmem:[#allocation76_spill] sm:$0xff]  ;;  %v6346_v27 = vpop.permute.xlu1 %3941 }
 0x233   : > { %v3539_v20 = vunpack.i.h.bf16 %v7438_v7  ;;  %v3538_v18 = vunpack.i.l.bf16 %v7438_v7  ;;  %v3543_v31 = vunpack.i.l.bf16 %v7439_v40  ;;  %v6333_v37 = vsel %vm2017_vm1, %v6108_v53, %v3493_v38  ;;  %v6344_v12 = vpop.permute.xlu0 %3936 }
 0x234   : > { %v6337_v59 = vsel %vm2017_vm1, %v6078_v60, %v3494_v45  ;;  %v6341_v0 = vsel %vm2017_vm1, %v6128_v17, %v3498_v25  ;;  %v3544_v5 = vunpack.i.h.bf16 %v7439_v40  ;;  %v6350_v7 = vsel %vm2017_vm1, %v6113_v62, %v3499_v49  ;;  %v7440_v17 = vld [vmem:[#allocation73_spill] sm:$0xff]  ;;  %v7441_v62 = vld [vmem:[#allocation23_spill] sm:$0xff]  ;;  %4226 = vrot.lane.b32.xlu0 %v7437_v28, %s4494_s19 }
 0x235   : > { %v6354_v53 = vsel %vm2017_vm1, %v6138_v61, %v3503_v42  ;;  %v6358_v60 = vsel %vm2017_vm1, %v6133_v4, %v3504_v23  ;;  %v6363_v38 = vsel %vm2017_vm1, %v6171_v35, %v3533_v47  ;;  %v3574_v25 = vunpack.i.h.bf16 %v5546_v29  ;;  %v7442_v61 = vld [vmem:[#allocation32_spill] sm:$0xff] }
 0x236   : > { %v3573_v40 = vunpack.i.l.bf16 %v5546_v29  ;;  %v3578_v49 = vunpack.i.l.bf16 %v7441_v62  ;;  %4231 = vrot.lane.b32.xlu1 %v7442_v61, %s4493_s18  ;;  %v6374_v4 = vsel %vm2017_vm1, %v6166_v54, %v3534_v3  ;;  %v6378_v35 = vsel %vm2017_vm1, %v6181_v26, %v3538_v18  ;;  %v7443_v54 = vld [vmem:[#allocation22_spill] sm:$0xff]  ;;  %v3952_v18 = vpop.permute.xlu1 %3951 }
 0x237   : > { %v6382_v23 = vsel %vm2017_vm1, %v6176_v36, %v3539_v20  ;;  %v6386_v29 = vsel %vm2017_vm1, %v6198_v14, %v3543_v31  ;;  %v6390_v42 = vsel %vm2017_vm1, %v6186_v34, %v3544_v5  ;;  %v3579_v47 = vunpack.i.h.bf16 %v7441_v62  ;;  %v3947_v26 = vpop.permute.xlu0 %3946 }
 0x238   : > { %v3584_v3 = vunpack.i.h.bf16 %v7443_v54  ;;  %v3583_v45 = vunpack.i.l.bf16 %v7443_v54  ;;  %v3949_v9 = vunpack.i.h.bf16 %v3947_v26  ;;  %v3948_v11 = vunpack.i.l.bf16 %v3947_v26  ;;  %4236 = vrot.lane.b32.xlu0 %v7281_v56, %s4494_s19  ;;  %v7451_v26 = vld [vmem:[#allocation38_spill] sm:$0xff] }
 0x239   : > { %v3954_v36 = vunpack.i.h.bf16 %v3952_v18  ;;  %v3953_v20 = vunpack.i.l.bf16 %v3952_v18  ;;  %v6398_v14 = vsel %vm2082_vm2, %v6210_v19, %v3573_v40  ;;  %v6402_v34 = vsel %vm2082_vm2, %v6214_v63, %v3574_v25 }
 0x23a   : > { %v6406_v31 = vsel %vm2082_vm2, %v6218_v30, %v3578_v49  ;;  %4241 = vrot.lane.b32.xlu1 %v7437_v28, %s4493_s18  ;;  %v6414_v5 = vsel %vm2212_vm4, %v5852_v2, %v3948_v11  ;;  %v6418_v19 = vsel %vm2212_vm4, %v5856_v21, %v3949_v9  ;;  %v6430_v56 = vsel %vm2082_vm2, %v6224_v43, %v3579_v47  ;;  %v7448_v11 = vld [vmem:[#allocation24_spill] sm:$0xff]  ;;  %v3962_v28 = vpop.permute.xlu1 %3961  ;;  %v7449_v43 = vld [vmem:[#allocation77_spill] sm:$0xff] }
 0x23b   : > { %7444 = vst [vmem:[#allocation17_spill] sm:$0xff] %v6414_v5  ;;  %7445 = vst [vmem:[#allocation64_spill] sm:$0xff] %v6418_v19  ;;  %v6422_v63 = vsel %vm2212_vm4, %v5860_v58, %v3953_v20  ;;  %v6426_v30 = vsel %vm2212_vm4, %v5864_v10, %v3954_v36  ;;  %v6434_v2 = vsel %vm2082_vm2, %v6228_v39, %v3583_v45  ;;  %v3613_v9 = vunpack.i.l.bf16 %v7448_v11  ;;  %v3957_v58 = vpop.permute.xlu0 %3956  ;;  %v7450_v39 = vld [vmem:[#allocation78_spill] sm:$0xff]  ;;  %v7455_v36 = vld [vmem:[#allocation28_spill] sm:$0xff] }
 0x23c   : > { %7446 = vst [vmem:[#allocation35_spill] sm:$0xff] %v6422_v63  ;;  %7447 = vst [vmem:[#allocation65_spill] sm:$0xff] %v6426_v30  ;;  %v6438_v21 = vsel %vm2082_vm2, %v6232_v8, %v3584_v3  ;;  %v3959_v25 = vunpack.i.h.bf16 %v3957_v58  ;;  %v3958_v40 = vunpack.i.l.bf16 %v3957_v58  ;;  %v3964_v10 = vunpack.i.h.bf16 %v3962_v28  ;;  %4246 = vrot.lane.b32.xlu0 %v7451_v26, %s4494_s19  ;;  %v7452_v8 = vld [vmem:[#allocation21_spill] sm:$0xff]  ;;  %v7453_v3 = vld [vmem:[#allocation43_spill] sm:$0xff] }
 0x23d   : > { %v3963_v62 = vunpack.i.l.bf16 %v3962_v28  ;;  %v3614_v49 = vunpack.i.h.bf16 %v7448_v11  ;;  %v3619_v47 = vunpack.i.h.bf16 %v7449_v43  ;;  %v3618_v54 = vunpack.i.l.bf16 %v7449_v43  ;;  %v7457_v11 = vld [vmem:[#allocation88_spill] sm:$0xff]  ;;  %v7459_v28 = vld [vmem:[#allocation89_spill] sm:$0xff] }
 0x23e   : > { %v3623_v45 = vunpack.i.l.bf16 %v7450_v39  ;;  %4251 = vrot.lane.b32.xlu1 %v7452_v8, %s4493_s18  ;;  %v6451_v18 = vsel %vm2212_vm4, %v7453_v3, %v3958_v40  ;;  %v6455_v20 = vsel %vm2212_vm4, %v7455_v36, %v3959_v25  ;;  %v6463_v43 = vsel %vm2212_vm4, %v7459_v28, %v3964_v10  ;;  %v7461_v40 = vld [vmem:[#allocation70_spill] sm:$0xff]  ;;  %v6472_v36 = vpop.permute.xlu1 %3971  ;;  %v7462_v19 = vld [vmem:[#allocation80_spill] sm:$0xff] }
 0x23f   : > { %7454 = vst [vmem:[#allocation66_spill] sm:$0xff] %v6451_v18  ;;  %7456 = vst [vmem:[#allocation41_spill] sm:$0xff] %v6455_v20  ;;  %v6459_v58 = vsel %vm2212_vm4, %v7457_v11, %v3963_v62  ;;  %v6467_v26 = vsel %vm2082_vm2, %v6267_v33, %v3613_v9  ;;  %v3624_v52 = vunpack.i.h.bf16 %v7450_v39  ;;  %v3659_v3 = vunpack.i.h.bf16 %v7461_v40  ;;  %v3967_v25 = vpop.permute.xlu0 %3966  ;;  %v7463_v28 = vld [vmem:[#allocation20_spill] sm:$0xff] }
 0x240   : > { %7458 = vst [vmem:[#allocation67_spill] sm:$0xff] %v6459_v58  ;;  %7460 = vst [vmem:[#allocation68_spill] sm:$0xff] %v6463_v43  ;;  %v3658_v5 = vunpack.i.l.bf16 %v7461_v40  ;;  %v3664_v62 = vunpack.i.h.bf16 %v7462_v19  ;;  %v3663_v11 = vunpack.i.l.bf16 %v7462_v19  ;;  %v3969_v30 = vunpack.i.h.bf16 %v3967_v25  ;;  %4256 = vrot.lane.b32.xlu0 %v7442_v61, %s4494_s19  ;;  %v7464_v19 = vld [vmem:[#allocation27_spill] sm:$0xff] }
 0x241   : > { %v3968_v10 = vunpack.i.l.bf16 %v3967_v25  ;;  %v6479_v33 = vsel %vm2082_vm2, %v6294_v44, %v3614_v49  ;;  %v6483_v9 = vsel %vm2082_vm2, %v6305_v16, %v3618_v54  ;;  %v6487_v39 = vsel %vm2082_vm2, %v6312_v6, %v3619_v47  ;;  %v7465_v25 = vld [vmem:[#allocation56_spill] sm:$0xff]  ;;  %v7466_v49 = vld [vmem:[#allocation5_spill] sm:$0xff]  ;;  %v7468_v16 = vld [vmem:[#allocation34_spill] sm:$0xff] }
 0x242   : > { %4261 = vrot.lane.b32.xlu1 %v7464_v19, %s4492_s11  ;;  %v2113_v40 = vsel %vm2082_vm2, %v6316_v48, %v3623_v45  ;;  %v3693_v44 = vunpack.i.l.bf16 %v7465_v25  ;;  %v6502_v54 = vsel %vm2212_vm4, %v7468_v16, %v3969_v30  ;;  %v2114_v6 = vsel %vm2082_vm2, %v6320_v46, %v3624_v52  ;;  %v7470_v61 = vld [vmem:[#allocation79_spill] sm:$0xff]  ;;  %v3982_v45 = vpop.permute.xlu1 %3981 }
 0x243   : > { %v6498_v63 = vsel %vm2212_vm4, %v7466_v49, %v3968_v10  ;;  %7469 = vst [vmem:[#allocation71_spill] sm:$0xff] %v6502_v54  ;;  %v3694_v18 = vunpack.i.h.bf16 %v7465_v25  ;;  %v6509_v48 = vpop.permute.xlu0 %3976  ;;  %v6513_v10 = vsel %vm2082_vm2, %v6341_v0, %v3658_v5  ;;  %v6517_v30 = vsel %vm2082_vm2, %v6350_v7, %v3659_v3  ;;  %v7471_v25 = vld [vmem:[#allocation16_spill] sm:$0xff]  ;;  %v7472_v47 = vld [vmem:[#allocation19_spill] sm:$0xff]  ;;  %v7473_v7 = vld [vmem:[#allocation85_spill] sm:$0xff] }
 0x244   : > { %7467 = vst [vmem:[#allocation69_spill] sm:$0xff] %v6498_v63  ;;  %v6521_v52 = vsel %vm2082_vm2, %v6354_v53, %v3663_v11  ;;  %v6525_v46 = vsel %vm2082_vm2, %v6358_v60, %v3664_v62  ;;  %v3704_v49 = vunpack.i.h.bf16 %v7471_v25  ;;  %v3703_v16 = vunpack.i.l.bf16 %v7471_v25  ;;  %4266 = vrot.lane.b32.xlu0 %v7472_v47, %s4493_s18  ;;  %v4397_v5 = vld [vmem:[%s4578_s30 + $0xe0] sm:$0xff]  ;;  %v4398_v3 = vld [vmem:[%s4578_s30 + $0xe8] sm:$0xff] }
 0x245   : > { %v6535_v0 = vsel %vm2082_vm2, %v6363_v38, %v3693_v44  ;;  %v3744_v53 = vunpack.i.h.bf16 %v7473_v7  ;;  %v3743_v60 = vunpack.i.l.bf16 %v7473_v7  ;;  %v6541_v62 = vpack.i.bf16 %v4398_v3, %v4397_v5  ;;  %v7474_v47 = vld [vmem:[#allocation14_spill] sm:$0xff]  ;;  %v4399_v5 = vld [vmem:[%s4578_s30 + $0x100] sm:$0xff] }
 0x246   : > { %4271 = vrot.lane.b32.xlu1 %v7464_v19, %s4494_s19  ;;  %v6545_v11 = vsel %vm2082_vm2, %v6374_v4, %v3694_v18  ;;  %v3784_v20 = vunpack.i.h.bf16 %v7475_v22  ;;  %v3783_v38 = vunpack.i.l.bf16 %v7475_v22  ;;  %v3992_v15 = vpop.permute.xlu1 %3991  ;;  %v3944_v7 = vunpack.i.h.bf16 %v6346_v27  ;;  %v4400_v3 = vld [vmem:[%s4578_s30 + $0x108] sm:$0xff]  ;;  %v6559_v4 = vld [vmem:[%s4578_s30 + $0xc0] sm:$0xff] }
 0x247   : > { %v6550_v44 = vpop.permute.xlu0 %3986  ;;  %v3943_v32 = vunpack.i.l.bf16 %v6346_v27  ;;  %v6556_v43 = vpack.i.bf16 %v4400_v3, %v4399_v5  ;;  %v6562_v18 = vld [vmem:[%s4578_s30 + $0xc8] sm:$0xff]  ;;  %v2145_v25 = vsel %vm2082_vm2, %v6386_v29, %v3703_v16  ;;  %v2146_v58 = vsel %vm2082_vm2, %v6390_v42, %v3704_v49  ;;  %v4403_v22 = vld [vmem:[%s4578_s30 + $0x120] sm:$0xff] }
 0x248   : > { %v3984_v13 = vunpack.i.h.bf16 %v3982_v45  ;;  %v3983_v27 = vunpack.i.l.bf16 %v3982_v45  ;;  %4276 = vrot.lane.b32.xlu0 %v7476_v57, %s4493_s18  ;;  %v2162_v5 = vsel %vm2147_vm3, %v6434_v2, %v3743_v60  ;;  %v2163_v3 = vsel %vm2147_vm3, %v6438_v21, %v3744_v53  ;;  %v4404_v63 = vld [vmem:[%s4578_s30 + $0x128] sm:$0xff] }
 0x249   : > { %v6580_v29 = vpack.i.bf16 %v4404_v63, %v4403_v22  ;;  %v7477_v16 = vld [vmem:[#allocation54_spill] sm:$0xff]  ;;  %v2178_v51 = vsel %vm2147_vm3, %v2113_v40, %v3783_v38  ;;  %v3994_v53 = vunpack.i.h.bf16 %v3992_v15  ;;  %v3993_v63 = vunpack.i.l.bf16 %v3992_v15  ;;  %v7478_v22 = vld [vmem:[#allocation39_spill] sm:$0xff] }
 0x24a   : > { %4281 = vrot.lane.b32.xlu1 %v7452_v8, %s4494_s19  ;;  %v3904_v42 = vunpack.i.h.bf16 %v7477_v16  ;;  %v3903_v45 = vunpack.i.l.bf16 %v7477_v16  ;;  %v6584_v54 = vpop.permute.xlu1 %4001  ;;  %v2179_v8 = vsel %vm2147_vm3, %v2114_v6, %v3784_v20  ;;  %v2243_v60 = vsel %vm2212_vm4, %v2178_v51, %v3943_v32  ;;  %v7479_v38 = vld [vmem:[#allocation46_spill] sm:$0xff] }
 0x24b   : > { %v3997_v49 = vpop.permute.xlu0 %3996  ;;  %v2244_v21 = vsel %vm2212_vm4, %v2179_v8, %v3944_v7  ;;  %v2308_v16 = vsel %vm2277_vm5, %v2243_v60, %v3983_v27  ;;  %v3864_v20 = vunpack.i.h.bf16 %v7479_v38  ;;  %v3863_v6 = vunpack.i.l.bf16 %v7479_v38  ;;  %v7480_v7 = vld [vmem:[#allocation91_spill] sm:$0xff] }
 0x24c   : > { %v3999_v1 = vunpack.i.h.bf16 %v3997_v49  ;;  %v3998_v2 = vunpack.i.l.bf16 %v3997_v49  ;;  %4286 = vrot.lane.b32.xlu0 %v7464_v19, %s4493_s18  ;;  %v2309_v40 = vsel %vm2277_vm5, %v2244_v21, %v3984_v13  ;;  %v3824_v15 = vunpack.i.h.bf16 %v7480_v7 }
 0x24d   : > { %v3989_v49 = vunpack.i.h.bf16 %v6550_v44  ;;  %v3988_v19 = vunpack.i.l.bf16 %v6550_v44  ;;  %v2227_v27 = vsel %vm2212_vm4, %v2162_v5, %v3903_v45  ;;  %v2228_v13 = vsel %vm2212_vm4, %v2163_v3, %v3904_v42 }
 0x24e   : > { %4291 = vrot.lane.b32.xlu1 %v7478_v22, %s4494_s19  ;;  %v2373_v51 = vsel %vm2342_vm6, %v2308_v16, %v3998_v2  ;;  %v2374_v32 = vsel %vm2342_vm6, %v2309_v40, %v3999_v1  ;;  %v4012_v22 = vpop.permute.xlu1 %4011  ;;  %v2292_v1 = vsel %vm2277_vm5, %v2227_v27, %v3993_v63  ;;  %v2293_v44 = vsel %vm2277_vm5, %v2228_v13, %v3994_v53 }
 0x24f   : > { %v4007_v8 = vpop.permute.xlu0 %4006  ;;  %v2430_v24 = vpack.c.bf16 %v2374_v32, %v2373_v51  ;;  %v4014_v60 = vunpack.i.h.bf16 %v4012_v22  ;;  %v4013_v21 = vunpack.i.l.bf16 %v4012_v22  ;;  %v2210_v3 = vsel %vm2147_vm3, %v2145_v25, %v3863_v6 }
 0x250   : > { %v4009_v38 = vunpack.i.h.bf16 %v4007_v8  ;;  %v4008_v41 = vunpack.i.l.bf16 %v4007_v8  ;;  %4296 = vrot.lane.b32.xlu0 %v6541_v62, %s4493_s18  ;;  %v2211_v42 = vsel %vm2147_vm3, %v2146_v58, %v3864_v20  ;;  %v3823_v45 = vunpack.i.l.bf16 %v7480_v7 }
 0x251   : > { %2771 = vmatprep.subr.bf16.mxu0 %v2430_v24  ;;  %v2357_v2 = vsel %vm2342_vm6, %v2292_v1, %v4013_v21  ;;  %v2358_v5 = vsel %vm2342_vm6, %v2293_v44, %v4014_v60  ;;  %v2276_v63 = vsel %vm2212_vm4, %v2211_v42, %v3989_v49  ;;  %v4004_v53 = vunpack.i.h.bf16 %v6584_v54  ;;  %v7482_v44 = vld [vmem:[#allocation84_spill] sm:$0xff]  ;;  %v7484_v42 = vld [vmem:[#allocation86_spill] sm:$0xff] }
 0x252   : > { %4301 = vrot.lane.b32.xlu1 %v7476_v57, %s4494_s19  ;;  %v4022_v40 = vpop.permute.xlu1 %4021  ;;  %v2422_v51 = vpack.c.bf16 %v2358_v5, %v2357_v2  ;;  %v2275_v57 = vsel %vm2212_vm4, %v2210_v3, %v3988_v19  ;;  %v4003_v24 = vunpack.i.l.bf16 %v6584_v54  ;;  %v7481_v58 = vpack.i.bf16 %v6562_v18, %v6559_v4  ;;  %v4349_v54 = vld [vmem:[%s7064_s1 + $0x4] ss:$16 sps:$4 sm:$0xff]   ;;  %v7483_v5 = vld [vmem:[#allocation42_spill] sm:$0xff] }
 0x253   : > { %v4017_v16 = vpop.permute.xlu0 %4016  ;;  %v4024_v32 = vunpack.i.h.bf16 %v4022_v40  ;;  %v4023_v8 = vunpack.i.l.bf16 %v4022_v40  ;;  %v2340_v25 = vsel %vm2277_vm5, %v2275_v57, %v4008_v41  ;;  %v2341_v20 = vsel %vm2277_vm5, %v2276_v63, %v4009_v38  ;;  %2543 = vmatprep.mubr.bf16.mxu0 %v4349_v54  ;;  %v4406_v54 = vld [vmem:[%s4578_s30 + $0x148] sm:$0xff] }
 0x254   : > { %v4019_v22 = vunpack.i.h.bf16 %v4017_v16  ;;  %v4018_v27 = vunpack.i.l.bf16 %v4017_v16  ;;  %4306 = vrot.lane.b32.xlu0 %v6556_v43, %s4492_s11  ;;  %v3698_v6 = vunpack.i.l.bf16 %v7474_v47  ;;  %2772 = vmatpush3.bf16.msra.mxu0 %v2422_v51  ;;  %v2194_v19 = vsel %vm2147_vm3, %v6521_v52, %v3823_v45  ;;  %v4352_v51 = vld [vmem:[%s7064_s1 + $0xc] ss:$16 sps:$4 sm:$0xff]  }
 0x255   : > { %v2405_v7 = vsel %vm2342_vm6, %v2340_v25, %v4023_v8  ;;  %v2406_v49 = vsel %vm2342_vm6, %v2341_v20, %v4024_v32  ;;  %v2195_v4 = vsel %vm2147_vm3, %v6525_v46, %v3824_v15  ;;  %v2259_v60 = vsel %vm2212_vm4, %v2194_v19, %v4003_v24  ;;  %v4405_v20 = vld [vmem:[%s4578_s30 + $0x140] sm:$0xff]  ;;  %2592 = vmatprep.mubr.bf16.mxu1 %v4352_v51 }
 0x256   : > { %4311 = vrot.lane.b32.xlu1 %v7481_v58, %s4493_s18  ;;  %v4032_v18 = vpop.permute.xlu1 %4031  ;;  %v2446_v13 = vpack.c.bf16 %v2406_v49, %v2405_v7  ;;  %v2260_v21 = vsel %vm2212_vm4, %v2195_v4, %v4004_v53  ;;  %v3733_v2 = vunpack.i.l.bf16 %v7482_v44  ;;  %v3739_v3 = vunpack.i.h.bf16 %v7483_v5 }
 0x257   : > { %v4027_v41 = vpop.permute.xlu0 %4026  ;;  %v4034_v38 = vunpack.i.h.bf16 %v4032_v18  ;;  %v4033_v1 = vunpack.i.l.bf16 %v4032_v18  ;;  %v2324_v52 = vsel %vm2277_vm5, %v2259_v60, %v4018_v27  ;;  %v2325_v46 = vsel %vm2277_vm5, %v2260_v21, %v4019_v22 }
 0x258   : > { %4316 = vrot.lane.b32.xlu0 %v6556_v43, %s4494_s19  ;;  %v3738_v15 = vunpack.i.l.bf16 %v7483_v5  ;;  %v3778_v45 = vunpack.i.l.bf16 %v7484_v42  ;;  %2799 = vmatprep.subr.bf16.mxu1 %v2446_v13  ;;  %v2143_v57 = vsel %vm2082_vm2, %v6378_v35, %v3698_v6  ;;  %v3779_v63 = vunpack.i.h.bf16 %v7484_v42 }
 0x259   : > { %v2389_v16 = vsel %vm2342_vm6, %v2324_v52, %v4033_v1  ;;  %v2390_v40 = vsel %vm2342_vm6, %v2325_v46, %v4034_v38  ;;  %v3938_v53 = vunpack.i.l.bf16 %v6344_v12  ;;  %v7485_v22 = vunpack.i.h.bf16 %v7474_v47  ;;  %v7486_v47 = vld [vmem:[#allocation37_spill] sm:$0xff]  ;;  %v7488_v1 = vld [vmem:[#allocation6_spill] sm:$0xff] }
 0x25a   : > { %4321 = vrot.lane.b32.xlu1 %v6580_v29, %s4493_s18  ;;  %v4042_v32 = vpop.permute.xlu1 %4041  ;;  %v2438_v8 = vpack.c.bf16 %v2390_v40, %v2389_v16  ;;  %v3734_v58 = vunpack.i.h.bf16 %v7482_v44  ;;  %v3939_v25 = vunpack.i.h.bf16 %v6344_v12  ;;  %v4335_v35 = vpack.i.bf16 %v4406_v54, %v4405_v20 }
 0x25b   : > { %v6659_v24 = vpop.permute.xlu0 %4036  ;;  %v2144_v27 = vsel %vm2082_vm2, %v6382_v23, %v7485_v22  ;;  %v6671_v6 = vsel %vm2147_vm3, %v6398_v14, %v3733_v2  ;;  %v4029_v7 = vunpack.i.h.bf16 %v4027_v41  ;;  %v4028_v49 = vunpack.i.l.bf16 %v4027_v41  ;;  %v7487_v41 = vld [vmem:[#allocation53_spill] sm:$0xff] }
 0x25c   : > { %4326 = vrot.lane.b32.xlu0 %v6541_v62, %s4494_s19  ;;  %v2160_v23 = vsel %vm2147_vm3, %v6406_v31, %v3738_v15  ;;  %v2161_v12 = vsel %vm2147_vm3, %v6430_v56, %v3739_v3  ;;  %v3774_v19 = vunpack.i.h.bf16 %v7486_v47  ;;  %v2176_v14 = vsel %vm2147_vm3, %v6483_v9, %v3778_v45  ;;  %2800 = vmatpush3.bf16.msra.mxu1 %v2438_v8  ;;  %v7489_v3 = vld [vmem:[#allocation45_spill] sm:$0xff] }
 0x25d   : > { %v2177_v4 = vsel %vm2147_vm3, %v6487_v39, %v3779_v63  ;;  %v3899_v62 = vunpack.i.h.bf16 %v7487_v41  ;;  %v3898_v18 = vunpack.i.l.bf16 %v7487_v41  ;;  %v4043_v56 = vunpack.i.l.bf16 %v4042_v32 }
 0x25e   : > { %4331 = vrot.lane.b32.xlu1 %v6556_v43, %s4493_s18  ;;  %v2241_v43 = vsel %vm2212_vm4, %v2176_v14, %v3938_v53  ;;  %v4052_v31 = vpop.permute.xlu1 %4051  ;;  %v2242_v60 = vsel %vm2212_vm4, %v2177_v4, %v3939_v25  ;;  %v3819_v2 = vunpack.i.h.bf16 %v7488_v1  ;;  %v4044_v39 = vunpack.i.h.bf16 %v4042_v32 }
 0x25f   : > { %v4047_v13 = vpop.permute.xlu0 %4046  ;;  %v2306_v9 = vsel %vm2277_vm5, %v2241_v43, %v4028_v49  ;;  %v2307_v5 = vsel %vm2277_vm5, %v2242_v60, %v4029_v7  ;;  %v3859_v52 = vunpack.i.h.bf16 %v7489_v3  ;;  %v3858_v46 = vunpack.i.l.bf16 %v7489_v3  ;;  %v2448_v7 = vld [vmem:[%s7065_s2 + $0x8] sm:$0xff] }
 0x260   : > { %v4049_v21 = vunpack.i.h.bf16 %v4047_v13  ;;  %v4048_v38 = vunpack.i.l.bf16 %v4047_v13  ;;  %4336 = vrot.lane.b32.xlu0 %v4335_v35, %s4494_s19  ;;  %v2225_v45 = vsel %vm2212_vm4, %v2160_v23, %v3898_v18  ;;  %v2226_v16 = vsel %vm2212_vm4, %v2161_v12, %v3899_v62  ;;  %v2447_v35 = vld [vmem:[%s7065_s2] sm:$0xff] }
 0x261   : > { %v4039_v40 = vunpack.i.h.bf16 %v6659_v24  ;;  %v4038_v32 = vunpack.i.l.bf16 %v6659_v24  ;;  %v2291_v25 = vsel %vm2277_vm5, %v2226_v16, %v4044_v39  ;;  %v4054_v20 = vunpack.i.h.bf16 %v4052_v31 }
 0x262   : > { %4341 = vrot.lane.b32.xlu1 %v6580_v29, %s4494_s19  ;;  %v2371_v15 = vsel %vm2342_vm6, %v2306_v9, %v4048_v38  ;;  %v2372_v42 = vsel %vm2342_vm6, %v2307_v5, %v4049_v21  ;;  %v4062_v63 = vpop.permute.xlu1 %4061  ;;  %v2290_v29 = vsel %vm2277_vm5, %v2225_v45, %v4043_v56  ;;  %v4053_v54 = vunpack.i.l.bf16 %v4052_v31  ;;  %v2449_v9 = vld [vmem:[%s7065_s2 + $0x10] sm:$0xff]  ;;  %s7012_s19 = scalar_lea.hbm %s7066_s3, %s2770_s10 }
 0x263   : > { %v4057_v51 = vpop.permute.xlu0 %4056  ;;  %v2429_v53 = vpack.c.bf16 %v2372_v42, %v2371_v15  ;;  %v3818_v49 = vunpack.i.l.bf16 %v7488_v1  ;;  %v2208_v24 = vsel %vm2147_vm3, %v2143_v57, %v3858_v46  ;;  %v4495_v14 = vmov 0  }
 0x264   : > { %v4059_v8 = vunpack.i.h.bf16 %v4057_v51  ;;  %v4058_v22 = vunpack.i.l.bf16 %v4057_v51  ;;  %4345 = vset.pattern.permute.xlu0 %v4495_v14  ;;  %v2209_v4 = vsel %vm2147_vm3, %v2144_v27, %v3859_v52  ;;  %v3979_v41 = vunpack.i.h.bf16 %v6509_v48  ;;  %4346 = vset.pattern.permute.xlu1 %v4495_v14  ;;  %v2450_v27 = vld [vmem:[%s7065_s2 + $0x18] sm:$0xff] }
 0x265   : > { %2773 = vmatprep.subr.bf16.mxu0 %v2429_v53  ;;  %v3978_v62 = vunpack.i.l.bf16 %v6509_v48  ;;  %2453 = vperm.xlu0 %4345, %v2447_v35   ;;  %v2273_v31 = vsel %vm2212_vm4, %v2208_v24, %v4038_v32  ;;  %v2274_v57 = vsel %vm2212_vm4, %v2209_v4, %v4039_v40  ;;  %v4064_v38 = vunpack.i.h.bf16 %v4062_v63 }
 0x266   : > { %v2355_v23 = vsel %vm2342_vm6, %v2290_v29, %v4058_v22  ;;  %v2356_v12 = vsel %vm2342_vm6, %v2291_v25, %v4059_v8  ;;  %v4072_v43 = vpop.permute.xlu1 %4071  ;;  %2458 = vperm.xlu1 %4346, %v2448_v7   ;;  %v2339_v21 = vsel %vm2277_vm5, %v2274_v57, %v4054_v20  ;;  %v2338_v48 = vsel %vm2277_vm5, %v2273_v31, %v4053_v54  ;;  %v7490_v54 = vld [vmem:[#allocation10_spill] sm:$0xff] }
 0x267   : > { %v4067_v18 = vpop.permute.xlu0 %4066  ;;  %v2421_v13 = vpack.c.bf16 %v2356_v12, %v2355_v23  ;;  %v4063_v1 = vunpack.i.l.bf16 %v4062_v63  ;;  %v3773_v5 = vunpack.i.l.bf16 %v7486_v47  ;;  %v2192_v39 = vsel %vm2147_vm3, %v6513_v10, %v3818_v49 }
 0x268   : > { %v4069_v60 = vunpack.i.h.bf16 %v4067_v18  ;;  %v4068_v56 = vunpack.i.l.bf16 %v4067_v18  ;;  %v2193_v46 = vsel %vm2147_vm3, %v6517_v30, %v3819_v2  ;;  %v3934_v15 = vunpack.i.h.bf16 %v6301_v55 }
 0x269   : > { %2774 = vmatpush3.bf16.msra.mxu0 %v2421_v13  ;;  %v3933_v42 = vunpack.i.l.bf16 %v6301_v55  ;;  %2468 = vperm.xlu0 %4345, %v2450_v27   ;;  %v2257_v51 = vsel %vm2212_vm4, %v2192_v39, %v3978_v62  ;;  %v2258_v10 = vsel %vm2212_vm4, %v2193_v46, %v3979_v41  ;;  %v4074_v2 = vunpack.i.h.bf16 %v4072_v43  ;;  %v7492_v41 = vld [vmem:[#allocation98_spill] sm:$0xff] }
 0x26a   : > { %v2403_v3 = vsel %vm2342_vm6, %v2338_v48, %v4068_v56  ;;  %v2404_v52 = vsel %vm2342_vm6, %v2339_v21, %v4069_v60  ;;  %v6738_v16 = vpop.permute.xlu1 %4081  ;;  %2463 = vperm.xlu1 %4346, %v2449_v9   ;;  %v2323_v32 = vsel %vm2277_vm5, %v2258_v10, %v4064_v38  ;;  %v2322_v30 = vsel %vm2277_vm5, %v2257_v51, %v4063_v1 }
 0x26b   : > { %v4077_v45 = vpop.permute.xlu0 %4076  ;;  %v2445_v40 = vpack.c.bf16 %v2404_v52, %v2403_v3  ;;  %v4073_v29 = vunpack.i.l.bf16 %v4072_v43  ;;  %v2159_v55 = vsel %vm2147_vm3, %v6402_v34, %v3734_v58  ;;  %v2174_v8 = vsel %vm2147_vm3, %v6467_v26, %v3773_v5 }
 0x26c   : > { %v4079_v63 = vunpack.i.h.bf16 %v4077_v45  ;;  %v4078_v53 = vunpack.i.l.bf16 %v4077_v45  ;;  %v2175_v20 = vsel %vm2147_vm3, %v6479_v33, %v3774_v19  ;;  %v3894_v35 = vunpack.i.h.bf16 %v7490_v54  ;;  %v7491_v33 = vld [vmem:[#allocation90_spill] sm:$0xff] }
 0x26d   : > { %2801 = vmatprep.subr.bf16.mxu1 %v2445_v40  ;;  %v3893_v7 = vunpack.i.l.bf16 %v7490_v54  ;;  %v2239_v34 = vsel %vm2212_vm4, %v2174_v8, %v3933_v42  ;;  %v2240_v26 = vsel %vm2212_vm4, %v2175_v20, %v3934_v15  ;;  %v3814_v19 = vunpack.i.h.bf16 %v7491_v33 }
 0x26e   : > { %v2387_v22 = vsel %vm2342_vm6, %v2322_v30, %v4078_v53  ;;  %v2388_v25 = vsel %vm2342_vm6, %v2323_v32, %v4079_v63  ;;  %v4092_v49 = vpop.permute.xlu1 %4091  ;;  %v2304_v12 = vsel %vm2277_vm5, %v2239_v34, %v4073_v29  ;;  %v2305_v47 = vsel %vm2277_vm5, %v2240_v26, %v4074_v2 }
 0x26f   : > { %v4087_v44 = vpop.permute.xlu0 %4086  ;;  %v2437_v24 = vpack.c.bf16 %v2388_v25, %v2387_v22  ;;  %v4094_v58 = vunpack.i.h.bf16 %v4092_v49  ;;  %v4093_v23 = vunpack.i.l.bf16 %v4092_v49  ;;  %v3853_v62 = vunpack.i.l.bf16 %v7492_v41 }
 0x270   : > { %v4089_v14 = vunpack.i.h.bf16 %v4087_v44  ;;  %v4088_v4 = vunpack.i.l.bf16 %v4087_v44  ;;  %v3854_v13 = vunpack.i.h.bf16 %v7492_v41  ;;  %v2223_v31 = vsel %vm2212_vm4, %v6671_v6, %v3893_v7 }
 0x271   : > { %2802 = vmatpush3.bf16.msra.mxu1 %v2437_v24  ;;  %v2369_v18 = vsel %vm2342_vm6, %v2304_v12, %v4093_v23  ;;  %v2370_v43 = vsel %vm2342_vm6, %v2305_v47, %v4094_v58  ;;  %v2224_v57 = vsel %vm2212_vm4, %v2159_v55, %v3894_v35  ;;  %v4084_v21 = vunpack.i.h.bf16 %v6738_v16 }
 0x272   : > { %v4102_v56 = vpop.permute.xlu1 %4101  ;;  %v2428_v27 = vpack.c.bf16 %v2370_v43, %v2369_v18  ;;  %v4083_v48 = vunpack.i.l.bf16 %v6738_v16  ;;  %v2288_v9 = vsel %vm2277_vm5, %v2223_v31, %v4088_v4  ;;  %v2289_v5 = vsel %vm2277_vm5, %v2224_v57, %v4089_v14  ;;  %v7497_v4 = vld [vmem:[#allocation11_spill] sm:$0xff] }
 0x273   : > { %v4097_v60 = vpop.permute.xlu0 %4096  ;;  %v4104_v38 = vunpack.i.h.bf16 %v4102_v56  ;;  %v4103_v1 = vunpack.i.l.bf16 %v4102_v56  ;;  %v3813_v6 = vunpack.i.l.bf16 %v7491_v33  ;;  %v2206_v52 = vsel %vm2147_vm3, %v6535_v0, %v3853_v62  ;;  %v7501_v57 = vld [vmem:[#allocation31_spill] sm:$0xff] }
 0x274   : > { %v4099_v39 = vunpack.i.h.bf16 %v4097_v60  ;;  %v4098_v3 = vunpack.i.l.bf16 %v4097_v60  ;;  %2775 = vmatprep.subr.bf16.mxu0 %v2428_v27  ;;  %v2207_v42 = vsel %vm2147_vm3, %v6545_v11, %v3854_v13  ;;  %v3974_v45 = vunpack.i.h.bf16 %v6472_v36  ;;  %v7500_v13 = vld [vmem:[#allocation9_spill] sm:$0xff] }
 0x275   : > { %v2353_v46 = vsel %vm2342_vm6, %v2288_v9, %v4103_v1  ;;  %v2354_v15 = vsel %vm2342_vm6, %v2289_v5, %v4104_v38  ;;  %v3973_v16 = vunpack.i.l.bf16 %v6472_v36  ;;  %v2271_v63 = vsel %vm2212_vm4, %v2206_v52, %v4083_v48  ;;  %v7503_v9 = vld [vmem:[#allocation29_spill] sm:$0xff] }
 0x276   : > { %v4112_v51 = vpop.permute.xlu1 %4111  ;;  %v2420_v10 = vpack.c.bf16 %v2354_v15, %v2353_v46  ;;  %v2272_v53 = vsel %vm2212_vm4, %v2207_v42, %v4084_v21  ;;  %v2336_v30 = vsel %vm2277_vm5, %v2271_v63, %v4098_v3  ;;  %v7493_v11 = vunpack.i.l.bf16 %v7470_v61  ;;  %v7506_v46 = vld [vmem:[#allocation60_spill] sm:$0xff] }
 0x277   : > { %v4107_v40 = vpop.permute.xlu0 %4106  ;;  %v4114_v32 = vunpack.i.h.bf16 %v4112_v51  ;;  %v4113_v0 = vunpack.i.l.bf16 %v4112_v51  ;;  %v2337_v2 = vsel %vm2277_vm5, %v2272_v53, %v4099_v39  ;;  %v7494_v8 = vunpack.i.h.bf16 %v7470_v61  ;;  %v7504_v39 = vld [vmem:[#allocation18_spill] sm:$0xff]  ;;  %v7508_v53 = vld [vmem:[#allocation8_spill] sm:$0xff] }
 0x278   : > { %v4109_v29 = vunpack.i.h.bf16 %v4107_v40  ;;  %v4108_v55 = vunpack.i.l.bf16 %v4107_v40  ;;  %2776 = vmatpush3.bf16.msra.mxu0 %v2420_v10  ;;  %v2125_v36 = vsel %vm2082_vm2, %v6333_v37, %v7493_v11  ;;  %v3568_v54 = vunpack.i.l.bf16 %v7463_v28 }
 0x279   : > { %v2126_v22 = vsel %vm2082_vm2, %v6337_v59, %v7494_v8  ;;  %v2401_v25 = vsel %vm2342_vm6, %v2336_v30, %v4113_v0  ;;  %v2402_v20 = vsel %vm2342_vm6, %v2337_v2, %v4114_v32  ;;  %v2190_v35 = vsel %vm2147_vm3, %v2125_v36, %v3813_v6  ;;  %v7495_v59 = vld [vmem:[#allocation25_spill] sm:$0xff]  ;;  %v7505_v6 = vld [vmem:[#allocation12_spill] sm:$0xff] }
 0x27a   : > { %v2191_v7 = vsel %vm2147_vm3, %v2126_v22, %v3814_v19  ;;  %v4122_v49 = vpop.permute.xlu1 %4121  ;;  %v2444_v24 = vpack.c.bf16 %v2402_v20, %v2401_v25  ;;  %v2255_v37 = vsel %vm2212_vm4, %v2190_v35, %v3973_v16  ;;  %v3609_v58 = vunpack.i.h.bf16 %v7495_v59  ;;  %v7498_v19 = vld [vmem:[#allocation36_spill] sm:$0xff]  ;;  %v7507_v16 = vld [vmem:[#allocation55_spill] sm:$0xff] }
 0x27b   : > { %v4117_v44 = vpop.permute.xlu0 %4116  ;;  %v2256_v61 = vsel %vm2212_vm4, %v2191_v7, %v3974_v45  ;;  %v4124_v34 = vunpack.i.h.bf16 %v4122_v49  ;;  %v4123_v26 = vunpack.i.l.bf16 %v4122_v49  ;;  %v3608_v23 = vunpack.i.l.bf16 %v7495_v59  ;;  %v7509_v35 = vld [vmem:[#allocation44_spill] sm:$0xff] }
 0x27c   : > { %v2320_v12 = vsel %vm2277_vm5, %v2255_v37, %v4108_v55  ;;  %v2321_v47 = vsel %vm2277_vm5, %v2256_v61, %v4109_v29  ;;  %2803 = vmatprep.subr.bf16.mxu1 %v2444_v24  ;;  %v7496_v14 = vunpack.i.l.bf16 %v7440_v17  ;;  %v3728_v41 = vunpack.i.l.bf16 %v7498_v19 }
 0x27d   : > { %v2385_v62 = vsel %vm2342_vm6, %v2320_v12, %v4123_v26  ;;  %v2386_v18 = vsel %vm2342_vm6, %v2321_v47, %v4124_v34  ;;  %v7499_v43 = vunpack.i.h.bf16 %v7440_v17  ;;  %v3769_v60 = vunpack.i.h.bf16 %v7501_v57 }
 0x27e   : > { %v2074_v33 = vsel %vm2017_vm1, %v7497_v4, %v7496_v14  ;;  %v3768_v56 = vunpack.i.l.bf16 %v7501_v57  ;;  %v4132_v21 = vpop.permute.xlu1 %4131  ;;  %v2436_v48 = vpack.c.bf16 %v2386_v18, %v2385_v62  ;;  %v2091_v38 = vsel %vm2082_vm2, %v6206_v50, %v3568_v54 }
 0x27f   : > { %v2075_v31 = vsel %vm2017_vm1, %v7500_v13, %v7499_v43  ;;  %v4127_v27 = vpop.permute.xlu0 %4126  ;;  %v7502_v1 = vunpack.i.h.bf16 %v7463_v28  ;;  %v3929_v17 = vunpack.i.h.bf16 %v7504_v39  ;;  %v3928_v3 = vunpack.i.l.bf16 %v7504_v39 }
 0x280   : > { %v2107_v52 = vsel %vm2082_vm2, %v7505_v6, %v3608_v23  ;;  %v2108_v15 = vsel %vm2082_vm2, %v7506_v46, %v3609_v58  ;;  %v4119_v42 = vunpack.i.h.bf16 %v4117_v44  ;;  %v4118_v45 = vunpack.i.l.bf16 %v4117_v44  ;;  %2804 = vmatpush3.bf16.msra.mxu1 %v2436_v48 }
 0x281   : > { %v2092_v5 = vsel %vm2082_vm2, %v7503_v9, %v7502_v1  ;;  %v3689_v50 = vunpack.i.h.bf16 %v7507_v16  ;;  %v3688_v28 = vunpack.i.l.bf16 %v7507_v16  ;;  %v3729_v40 = vunpack.i.h.bf16 %v7498_v19 }
 0x282   : > { %v2156_v51 = vsel %vm2147_vm3, %v2091_v38, %v3728_v41  ;;  %v2172_v10 = vsel %vm2147_vm3, %v2107_v52, %v3768_v56  ;;  %v2173_v63 = vsel %vm2147_vm3, %v2108_v15, %v3769_v60  ;;  %v3889_v32 = vunpack.i.h.bf16 %v7508_v53  ;;  %v4142_v2 = vpop.permute.xlu1 %4141 }
 0x283   : > { %v3888_v0 = vunpack.i.l.bf16 %v7508_v53  ;;  %v4137_v30 = vpop.permute.xlu0 %4136  ;;  %v2237_v29 = vsel %vm2212_vm4, %v2172_v10, %v3928_v3  ;;  %v2238_v55 = vsel %vm2212_vm4, %v2173_v63, %v3929_v17  ;;  %v4134_v25 = vunpack.i.h.bf16 %v4132_v21 }
 0x284   : > { %v4139_v11 = vunpack.i.h.bf16 %v4137_v30  ;;  %v4138_v36 = vunpack.i.l.bf16 %v4137_v30  ;;  %v2302_v8 = vsel %vm2277_vm5, %v2237_v29, %v4118_v45  ;;  %v2303_v22 = vsel %vm2277_vm5, %v2238_v55, %v4119_v42  ;;  %v7510_v45 = vld [vmem:[#allocation71_spill] sm:$0xff] }
 0x285   : > { %v4133_v20 = vunpack.i.l.bf16 %v4132_v21  ;;  %v2157_v54 = vsel %vm2147_vm3, %v2092_v5, %v3729_v40  ;;  %v3849_v7 = vunpack.i.h.bf16 %v7509_v35  ;;  %v3848_v24 = vunpack.i.l.bf16 %v7509_v35  ;;  %v7512_v29 = vld [vmem:[#allocation63_spill] sm:$0xff] }
 0x286   : > { %v2367_v44 = vsel %vm2342_vm6, %v2302_v8, %v4138_v36  ;;  %v2368_v49 = vsel %vm2342_vm6, %v2303_v22, %v4139_v11  ;;  %v2221_v37 = vsel %vm2212_vm4, %v2156_v51, %v3888_v0  ;;  %v2222_v61 = vsel %vm2212_vm4, %v2157_v54, %v3889_v32  ;;  %v4152_v26 = vpop.permute.xlu1 %4151  ;;  %v7513_v11 = vld [vmem:[#allocation15_spill] sm:$0xff] }
 0x287   : > { %v4147_v34 = vpop.permute.xlu0 %4146  ;;  %v2427_v59 = vpack.c.bf16 %v2368_v49, %v2367_v44  ;;  %v4129_v58 = vunpack.i.h.bf16 %v4127_v27  ;;  %v4128_v23 = vunpack.i.l.bf16 %v4127_v27  ;;  %v2287_v14 = vsel %vm2277_vm5, %v2222_v61, %v4134_v25  ;;  %v7514_v61 = vld [vmem:[#allocation51_spill] sm:$0xff] }
 0x288   : > { %v4149_v12 = vunpack.i.h.bf16 %v4147_v34  ;;  %v4148_v47 = vunpack.i.l.bf16 %v4147_v34  ;;  %v2286_v4 = vsel %vm2277_vm5, %v2221_v37, %v4133_v20  ;;  %v4144_v19 = vunpack.i.h.bf16 %v4142_v2 }
 0x289   : > { %v4143_v41 = vunpack.i.l.bf16 %v4142_v2  ;;  %2777 = vmatprep.subr.bf16.mxu0 %v2427_v59  ;;  %v2139_v62 = vsel %vm2082_vm2, %v2074_v33, %v3688_v28  ;;  %v2140_v18 = vsel %vm2082_vm2, %v2075_v31, %v3689_v50  ;;  %v4154_v5 = vunpack.i.h.bf16 %v4152_v26  ;;  %v7511_v50 = vld [vmem:[#allocation69_spill] sm:$0xff] }
 0x28a   : > { %v2351_v43 = vsel %vm2342_vm6, %v2286_v4, %v4148_v47  ;;  %v2352_v13 = vsel %vm2342_vm6, %v2287_v14, %v4149_v12  ;;  %v2204_v57 = vsel %vm2147_vm3, %v2139_v62, %v3848_v24  ;;  %v2205_v60 = vsel %vm2147_vm3, %v2140_v18, %v3849_v7  ;;  %v4162_v27 = vpop.permute.xlu1 %4161  ;;  %v7517_v18 = vld [vmem:[#allocation97_spill] sm:$0xff] }
 0x28b   : > { %v4157_v56 = vpop.permute.xlu0 %4156  ;;  %v2419_v21 = vpack.c.bf16 %v2352_v13, %v2351_v43  ;;  %v2269_v48 = vsel %vm2212_vm4, %v2204_v57, %v4128_v23  ;;  %v2270_v38 = vsel %vm2212_vm4, %v2205_v60, %v4129_v58  ;;  %v4153_v39 = vunpack.i.l.bf16 %v4152_v26  ;;  %v7515_v26 = vld [vmem:[#allocation52_spill] sm:$0xff] }
 0x28c   : > { %v4159_v1 = vunpack.i.h.bf16 %v4157_v56  ;;  %v4158_v9 = vunpack.i.l.bf16 %v4157_v56  ;;  %v2335_v33 = vsel %vm2277_vm5, %v2270_v38, %v4144_v19  ;;  %v2334_v31 = vsel %vm2277_vm5, %v2269_v48, %v4143_v41  ;;  %v7516_v41 = vld [vmem:[#allocation96_spill] sm:$0xff] }
 0x28d   : > { %2778 = vmatpush3.bf16.msra.mxu0 %v2419_v21  ;;  %v2319_v16 = vsel %vm2277_vm5, %v7510_v45, %v4154_v5  ;;  %v2318_v28 = vsel %vm2277_vm5, %v7511_v50, %v4153_v39  ;;  %v4164_v40 = vunpack.i.h.bf16 %v4162_v27  ;;  %v4163_v51 = vunpack.i.l.bf16 %v4162_v27  ;;  %v7518_v39 = vld [vmem:[#allocation67_spill] sm:$0xff] }
 0x28e   : > { %v2399_v17 = vsel %vm2342_vm6, %v2334_v31, %v4158_v9  ;;  %v2400_v3 = vsel %vm2342_vm6, %v2335_v33, %v4159_v1  ;;  %v4172_v52 = vpop.permute.xlu1 %4171 }
 0x28f   : > { %v4167_v6 = vpop.permute.xlu0 %4166  ;;  %v2443_v46 = vpack.c.bf16 %v2400_v3, %v2399_v17  ;;  %v2300_v55 = vsel %vm2277_vm5, %v7512_v29, %v4163_v51  ;;  %v2301_v36 = vsel %vm2277_vm5, %v7513_v11, %v4164_v40  ;;  %v4174_v44 = vunpack.i.h.bf16 %v4172_v52  ;;  %v7519_v3 = vld [vmem:[#allocation68_spill] sm:$0xff] }
 0x290   : > { %v4169_v15 = vunpack.i.h.bf16 %v4167_v6  ;;  %v4168_v42 = vunpack.i.l.bf16 %v4167_v6  ;;  %v4173_v49 = vunpack.i.l.bf16 %v4172_v52 }
 0x291   : > { %2805 = vmatprep.subr.bf16.mxu1 %v2443_v46  ;;  %v2268_v43 = vsel %vm2212_vm4, %v7517_v18, %v4174_v44  ;;  %v7523_v44 = vld [vmem:[#allocation50_spill] sm:$0xff] }
 0x292   : > { %v2383_v10 = vsel %vm2342_vm6, %v2318_v28, %v4168_v42  ;;  %v2384_v63 = vsel %vm2342_vm6, %v2319_v16, %v4169_v15  ;;  %v4182_v32 = vpop.permute.xlu1 %4181  ;;  %v2267_v62 = vsel %vm2212_vm4, %v7516_v41, %v4173_v49 }
 0x293   : > { %v4177_v53 = vpop.permute.xlu0 %4176  ;;  %v2435_v0 = vpack.c.bf16 %v2384_v63, %v2383_v10  ;;  %v4184_v30 = vunpack.i.h.bf16 %v4182_v32  ;;  %v4183_v2 = vunpack.i.l.bf16 %v4182_v32  ;;  %v7520_v63 = vld [vmem:[#allocation61_spill] sm:$0xff]  ;;  %v7521_v32 = vld [vmem:[#allocation62_spill] sm:$0xff] }
 0x294   : > { %v4179_v8 = vunpack.i.h.bf16 %v4177_v53  ;;  %v4178_v22 = vunpack.i.l.bf16 %v4177_v53 }
 0x295   : > { %2806 = vmatpush3.bf16.msra.mxu1 %v2435_v0  ;;  %v2365_v25 = vsel %vm2342_vm6, %v2300_v55, %v4183_v2  ;;  %v2366_v20 = vsel %vm2342_vm6, %v2301_v36, %v4184_v30 }
 0x296   : > { %v4192_v35 = vpop.permute.xlu1 %4191  ;;  %v2426_v7 = vpack.c.bf16 %v2366_v20, %v2365_v25  ;;  %v2284_v34 = vsel %vm2277_vm5, %v7514_v61, %v4178_v22  ;;  %v2285_v59 = vsel %vm2277_vm5, %v7515_v26, %v4179_v8 }
 0x297   : > { %v4187_v54 = vpop.permute.xlu0 %4186  ;;  %v4194_v24 = vunpack.i.h.bf16 %v4192_v35  ;;  %v4193_v37 = vunpack.i.l.bf16 %v4192_v35  ;;  %v7522_v35 = vld [vmem:[#allocation49_spill] sm:$0xff] }
 0x298   : > { %v4189_v58 = vunpack.i.h.bf16 %v4187_v54  ;;  %v4188_v23 = vunpack.i.l.bf16 %v4187_v54  ;;  %2779 = vmatprep.subr.bf16.mxu0 %v2426_v7 }
 0x299   : > { %v2349_v12 = vsel %vm2342_vm6, %v2284_v34, %v4193_v37  ;;  %v2350_v47 = vsel %vm2342_vm6, %v2285_v59, %v4194_v24 }
 0x29a   : > { %v4202_v4 = vpop.permute.xlu1 %4201  ;;  %v2418_v19 = vpack.c.bf16 %v2350_v47, %v2349_v12  ;;  %v2332_v60 = vsel %vm2277_vm5, %v2267_v62, %v4188_v23  ;;  %v2333_v56 = vsel %vm2277_vm5, %v2268_v43, %v4189_v58  ;;  %v7524_v23 = vld [vmem:[#allocation94_spill] sm:$0xff]  ;;  %v7525_v47 = vld [vmem:[#allocation95_spill] sm:$0xff] }
 0x29b   : > { %v4197_v14 = vpop.permute.xlu0 %4196  ;;  %v4204_v13 = vunpack.i.h.bf16 %v4202_v4  ;;  %v4203_v57 = vunpack.i.l.bf16 %v4202_v4 }
 0x29c   : > { %v4199_v27 = vunpack.i.h.bf16 %v4197_v14  ;;  %v4198_v21 = vunpack.i.l.bf16 %v4197_v14  ;;  %2780 = vmatpush3.bf16.msra.mxu0 %v2418_v19 }
 0x29d   : > { %v2397_v48 = vsel %vm2342_vm6, %v2332_v60, %v4203_v57  ;;  %v2398_v38 = vsel %vm2342_vm6, %v2333_v56, %v4204_v13 }
 0x29e   : > { %v4212_v9 = vpop.permute.xlu1 %4211  ;;  %v2442_v33 = vpack.c.bf16 %v2398_v38, %v2397_v48  ;;  %v2316_v17 = vsel %vm2277_vm5, %v7518_v39, %v4198_v21  ;;  %v2317_v6 = vsel %vm2277_vm5, %v7519_v3, %v4199_v27  ;;  %v7526_v38 = vld [vmem:[#allocation41_spill] sm:$0xff]  ;;  %v7528_v3 = vld [vmem:[#allocation48_spill] sm:$0xff] }
 0x29f   : > { %v4207_v1 = vpop.permute.xlu0 %4206  ;;  %v4214_v31 = vunpack.i.h.bf16 %v4212_v9  ;;  %v4213_v5 = vunpack.i.l.bf16 %v4212_v9  ;;  %v7527_v9 = vld [vmem:[#allocation66_spill] sm:$0xff] }
 0x2a0   : > { %2807 = vmatprep.subr.bf16.mxu1 %v2442_v33  ;;  %v4209_v16 = vunpack.i.h.bf16 %v4207_v1  ;;  %v4208_v50 = vunpack.i.l.bf16 %v4207_v1 }
 0x2a1   : > { %v2381_v52 = vsel %vm2342_vm6, %v2316_v17, %v4213_v5  ;;  %v2382_v46 = vsel %vm2342_vm6, %v2317_v6, %v4214_v31  ;;  %v3874_v6 = vunpack.i.h.bf16 %v7528_v3 }
 0x2a2   : > { %v4222_v42 = vpop.permute.xlu1 %4221  ;;  %v2434_v45 = vpack.c.bf16 %v2382_v46, %v2381_v52  ;;  %v2298_v53 = vsel %vm2277_vm5, %v7520_v63, %v4208_v50  ;;  %v2299_v0 = vsel %vm2277_vm5, %v7521_v32, %v4209_v16  ;;  %v3873_v52 = vunpack.i.l.bf16 %v7528_v3  ;;  %v7529_v50 = vld [vmem:[#allocation58_spill] sm:$0xff]  ;;  %v7537_v3 = vld [vmem:[#allocation47_spill] sm:$0xff] }
 0x2a3   : > { %v4217_v15 = vpop.permute.xlu0 %4216  ;;  %v4224_v30 = vunpack.i.h.bf16 %v4222_v42  ;;  %v4223_v2 = vunpack.i.l.bf16 %v4222_v42 }
 0x2a4   : > { %2808 = vmatpush3.bf16.msra.mxu1 %v2434_v45  ;;  %v4219_v22 = vunpack.i.h.bf16 %v4217_v15  ;;  %v4218_v25 = vunpack.i.l.bf16 %v4217_v15 }
 0x2a5   : > { %v2282_v7 = vsel %vm2277_vm5, %v7522_v35, %v4223_v2  ;;  %v2283_v49 = vsel %vm2277_vm5, %v7523_v44, %v4224_v30  ;;  %v7532_v2 = vld [vmem:[#allocation83_spill] sm:$0xff] }
 0x2a6   : > { %v2265_v12 = vsel %vm2212_vm4, %v7524_v23, %v4218_v25  ;;  %v2266_v14 = vsel %vm2212_vm4, %v7525_v47, %v4219_v22 }
 0x2a7   : > { %v4227_v28 = vpop.permute.xlu0 %4226 }
 0x2a8   : > { %v4232_v40 = vpop.permute.xlu1 %4231  ;;  %v4229_v51 = vunpack.i.h.bf16 %v4227_v28  ;;  %v4228_v10 = vunpack.i.l.bf16 %v4227_v28 }
 0x2a9   : > { %v4234_v24 = vunpack.i.h.bf16 %v4232_v40  ;;  %v4233_v37 = vunpack.i.l.bf16 %v4232_v40  ;;  %v7530_v40 = vld [vmem:[#allocation59_spill] sm:$0xff] }
 0x2aa   : > { %v2363_v29 = vsel %vm2342_vm6, %v2298_v53, %v4228_v10  ;;  %v2364_v55 = vsel %vm2342_vm6, %v2299_v0, %v4229_v51  ;;  %v7531_v0 = vld [vmem:[#allocation82_spill] sm:$0xff] }
 0x2ab   : > { %v4237_v11 = vpop.permute.xlu0 %4236  ;;  %v2425_v8 = vpack.c.bf16 %v2364_v55, %v2363_v29  ;;  %v2331_v41 = vsel %vm2277_vm5, %v2266_v14, %v4234_v24  ;;  %v2330_v62 = vsel %vm2277_vm5, %v2265_v12, %v4233_v37  ;;  %v2215_v30 = vsel %vm2212_vm4, %v7531_v0, %v3873_v52 }
 0x2ac   : > { %v4242_v36 = vpop.permute.xlu1 %4241  ;;  %v4239_v20 = vunpack.i.h.bf16 %v4237_v11  ;;  %v4238_v54 = vunpack.i.l.bf16 %v4237_v11  ;;  %v2216_v29 = vsel %vm2212_vm4, %v7532_v2, %v3874_v6  ;;  %v3868_v6 = vunpack.i.l.bf16 %v7537_v3 }
 0x2ad   : > { %2781 = vmatprep.subr.bf16.mxu0 %v2425_v8  ;;  %v4244_v18 = vunpack.i.h.bf16 %v4242_v36  ;;  %v4243_v43 = vunpack.i.l.bf16 %v4242_v36  ;;  %v3869_v52 = vunpack.i.h.bf16 %v7537_v3 }
 0x2ae   : > { %v2347_v61 = vsel %vm2342_vm6, %v2282_v7, %v4238_v54  ;;  %v2348_v34 = vsel %vm2342_vm6, %v2283_v49, %v4239_v20 }
 0x2af   : > { %v4247_v26 = vpop.permute.xlu0 %4246  ;;  %v2417_v58 = vpack.c.bf16 %v2348_v34, %v2347_v61  ;;  %v2315_v1 = vsel %vm2277_vm5, %v7526_v38, %v4244_v18  ;;  %v2314_v33 = vsel %vm2277_vm5, %v7527_v9, %v4243_v43 }
 0x2b0   : > { %v4252_v59 = vpop.permute.xlu1 %4251  ;;  %v4249_v4 = vunpack.i.h.bf16 %v4247_v26  ;;  %v4248_v19 = vunpack.i.l.bf16 %v4247_v26  ;;  %v7533_v26 = vld [vmem:[#allocation92_spill] sm:$0xff] }
 0x2b1   : > { %2782 = vmatpush3.bf16.msra.mxu0 %v2417_v58  ;;  %v4254_v31 = vunpack.i.h.bf16 %v4252_v59  ;;  %v4253_v5 = vunpack.i.l.bf16 %v4252_v59  ;;  %v7534_v58 = vld [vmem:[#allocation93_spill] sm:$0xff] }
 0x2b2   : > { %v2395_v13 = vsel %vm2342_vm6, %v2330_v62, %v4248_v19  ;;  %v2396_v57 = vsel %vm2342_vm6, %v2331_v41, %v4249_v4 }
 0x2b3   : > { %v4257_v60 = vpop.permute.xlu0 %4256  ;;  %v2441_v27 = vpack.c.bf16 %v2396_v57, %v2395_v13  ;;  %v2296_v28 = vsel %vm2277_vm5, %v7529_v50, %v4253_v5  ;;  %v2297_v51 = vsel %vm2277_vm5, %v7530_v40, %v4254_v31 }
 0x2b4   : > { %v4262_v56 = vpop.permute.xlu1 %4261  ;;  %v4259_v21 = vunpack.i.h.bf16 %v4257_v60  ;;  %v4258_v48 = vunpack.i.l.bf16 %v4257_v60 }
 0x2b5   : > { %2809 = vmatprep.subr.bf16.mxu1 %v2441_v27  ;;  %v4264_v8 = vunpack.i.h.bf16 %v4262_v56  ;;  %v4263_v22 = vunpack.i.l.bf16 %v4262_v56  ;;  %v7535_v27 = vld [vmem:[#allocation35_spill] sm:$0xff] }
 0x2b6   : > { %v2379_v39 = vsel %vm2342_vm6, %v2314_v33, %v4258_v48  ;;  %v2380_v17 = vsel %vm2342_vm6, %v2315_v1, %v4259_v21  ;;  %v7536_v48 = vld [vmem:[#allocation65_spill] sm:$0xff] }
 0x2b7   : > { %v4267_v46 = vpop.permute.xlu0 %4266  ;;  %v2433_v42 = vpack.c.bf16 %v2380_v17, %v2379_v39  ;;  %v2263_v59 = vsel %vm2212_vm4, %v7533_v26, %v4263_v22  ;;  %v2264_v23 = vsel %vm2212_vm4, %v7534_v58, %v4264_v8  ;;  %v7543_v26 = vld [vmem:[#allocation40_spill] sm:$0xff] }
 0x2b8   : > { %v4272_v15 = vpop.permute.xlu1 %4271  ;;  %v4269_v10 = vunpack.i.h.bf16 %v4267_v46  ;;  %v4268_v63 = vunpack.i.l.bf16 %v4267_v46 }
 0x2b9   : > { %v4274_v45 = vunpack.i.h.bf16 %v4272_v15  ;;  %v4273_v16 = vunpack.i.l.bf16 %v4272_v15  ;;  %2810 = vmatpush3.bf16.msra.mxu1 %v2433_v42 }
 0x2ba   : > { %v2280_v54 = vsel %vm2277_vm5, %v2215_v30, %v4268_v63  ;;  %v2281_v35 = vsel %vm2277_vm5, %v2216_v29, %v4269_v10  ;;  %v7540_v63 = vld [vmem:[#allocation30_spill] sm:$0xff]  ;;  %v7541_v30 = vld [vmem:[#allocation81_spill] sm:$0xff] }
 0x2bb   : > { %v2361_v53 = vsel %vm2342_vm6, %v2296_v28, %v4273_v16  ;;  %v2362_v32 = vsel %vm2342_vm6, %v2297_v51, %v4274_v45  ;;  %v4277_v55 = vpop.permute.xlu0 %4276  ;;  %v7538_v28 = vld [vmem:[#allocation13_spill] sm:$0xff]  ;;  %v2214_v2 = vsel %vm2212_vm4, %v7541_v30, %v3869_v52 }
 0x2bc   : > { %v4282_v11 = vpop.permute.xlu1 %4281  ;;  %v2424_v36 = vpack.c.bf16 %v2362_v32, %v2361_v53  ;;  %v4279_v7 = vunpack.i.h.bf16 %v4277_v55  ;;  %v4278_v44 = vunpack.i.l.bf16 %v4277_v55  ;;  %v7539_v51 = vld [vmem:[#allocation57_spill] sm:$0xff]  ;;  %v2213_v53 = vsel %vm2212_vm4, %v7540_v63, %v3868_v6 }
 0x2bd   : > { %v4284_v25 = vunpack.i.h.bf16 %v4282_v11  ;;  %v4283_v20 = vunpack.i.l.bf16 %v4282_v11 }
 0x2be   : > { %2783 = vmatprep.subr.bf16.mxu0 %v2424_v36  ;;  %v2328_v14 = vsel %vm2277_vm5, %v2263_v59, %v4278_v44  ;;  %v2329_v4 = vsel %vm2277_vm5, %v2264_v23, %v4279_v7 }
 0x2bf   : > { %v2345_v49 = vsel %vm2342_vm6, %v2280_v54, %v4283_v20  ;;  %v2346_v24 = vsel %vm2342_vm6, %v2281_v35, %v4284_v25  ;;  %v4287_v37 = vpop.permute.xlu0 %4286 }
 0x2c0   : > { %v4292_v61 = vpop.permute.xlu1 %4291  ;;  %v2416_v34 = vpack.c.bf16 %v2346_v24, %v2345_v49  ;;  %v4289_v19 = vunpack.i.h.bf16 %v4287_v37  ;;  %v4288_v41 = vunpack.i.l.bf16 %v4287_v37 }
 0x2c1   : > { %v4294_v12 = vunpack.i.h.bf16 %v4292_v61  ;;  %v4293_v47 = vunpack.i.l.bf16 %v4292_v61  ;;  %v7542_v61 = vld [vmem:[#allocation7_spill] sm:$0xff] }
 0x2c2   : > { %2784 = vmatpush3.bf16.msra.mxu0 %v2416_v34  ;;  %v2312_v21 = vsel %vm2277_vm5, %v7535_v27, %v4288_v41  ;;  %v2313_v38 = vsel %vm2277_vm5, %v7536_v48, %v4289_v19  ;;  %v4347_v41 = vld [vmem:[%s7064_s1] ss:$16 sps:$4 sm:$0xff]  }
 0x2c3   : > { %v2393_v62 = vsel %vm2342_vm6, %v2328_v14, %v4293_v47  ;;  %v2394_v18 = vsel %vm2342_vm6, %v2329_v4, %v4294_v12  ;;  %v4297_v43 = vpop.permute.xlu0 %4296 }
 0x2c4   : > { %v4302_v13 = vpop.permute.xlu1 %4301  ;;  %v2440_v57 = vpack.c.bf16 %v2394_v18, %v2393_v62  ;;  %v4299_v39 = vunpack.i.h.bf16 %v4297_v43  ;;  %v4298_v17 = vunpack.i.l.bf16 %v4297_v43  ;;  %v7544_v43 = vld [vmem:[#allocation64_spill] sm:$0xff] }
 0x2c5   : > { %v4304_v60 = vunpack.i.h.bf16 %v4302_v13  ;;  %v4303_v56 = vunpack.i.l.bf16 %v4302_v13 }
 0x2c6   : > { %2811 = vmatprep.subr.bf16.mxu1 %v2440_v57  ;;  %v2294_v40 = vsel %vm2277_vm5, %v7538_v28, %v4298_v17  ;;  %v2295_v10 = vsel %vm2277_vm5, %v7539_v51, %v4299_v39  ;;  %v7545_v57 = vld [vmem:[#allocation17_spill] sm:$0xff]  ;;  %v4358_v39 = vld [vmem:[%s7064_s1 + $0x28] ss:$16 sps:$4 sm:$0xff]  }
 0x2c7   : > { %v2377_v1 = vsel %vm2342_vm6, %v2312_v21, %v4303_v56  ;;  %v2378_v9 = vsel %vm2342_vm6, %v2313_v38, %v4304_v60  ;;  %v4307_v33 = vpop.permute.xlu0 %4306  ;;  %v4353_v56 = vld [vmem:[%s7064_s1 + $0x24] ss:$16 sps:$4 sm:$0xff]  }
 0x2c8   : > { %v4312_v31 = vpop.permute.xlu1 %4311  ;;  %v2432_v5 = vpack.c.bf16 %v2378_v9, %v2377_v1  ;;  %v4309_v29 = vunpack.i.h.bf16 %v4307_v33  ;;  %v4308_v55 = vunpack.i.l.bf16 %v4307_v33  ;;  %v4350_v33 = vld [vmem:[%s7064_s1 + $0x8] ss:$16 sps:$4 sm:$0xff]  }
 0x2c9   : > { %v4314_v42 = vunpack.i.h.bf16 %v4312_v31  ;;  %v4313_v45 = vunpack.i.l.bf16 %v4312_v31  ;;  %v4356_v31 = vld [vmem:[%s7064_s1 + $0x2c] ss:$16 sps:$4 sm:$0xff]  }
 0x2ca   : > { %2812 = vmatpush3.bf16.msra.mxu1 %v2432_v5  ;;  %v2261_v34 = vsel %vm2212_vm4, %v7542_v61, %v4308_v55  ;;  %v2262_v59 = vsel %vm2212_vm4, %v7543_v26, %v4309_v29  ;;  %v4355_v5 = vld [vmem:[%s7064_s1 + $0x20] ss:$16 sps:$4 sm:$0xff]  }
 0x2cb   : > { %v4317_v46 = vpop.permute.xlu0 %4316  ;;  %v2279_v22 = vsel %vm2277_vm5, %v2214_v2, %v4314_v42  ;;  %v2278_v25 = vsel %vm2277_vm5, %v2213_v53, %v4313_v45 }
 0x2cc   : > { %v4322_v15 = vpop.permute.xlu1 %4321  ;;  %v4319_v16 = vunpack.i.h.bf16 %v4317_v46  ;;  %v4318_v50 = vunpack.i.l.bf16 %v4317_v46 }
 0x2cd   : > { %v4324_v35 = vunpack.i.h.bf16 %v4322_v15  ;;  %v4323_v7 = vunpack.i.l.bf16 %v4322_v15 }
 0x2ce   : > { %v2359_v32 = vsel %vm2342_vm6, %v2294_v40, %v4318_v50  ;;  %v2360_v0 = vsel %vm2342_vm6, %v2295_v10, %v4319_v16 }
 0x2cf   : > { %v4327_v11 = vpop.permute.xlu0 %4326  ;;  %v2423_v8 = vpack.c.bf16 %v2360_v0, %v2359_v32  ;;  %v2327_v62 = vsel %vm2277_vm5, %v2262_v59, %v4324_v35  ;;  %v2326_v18 = vsel %vm2277_vm5, %v2261_v34, %v4323_v7 }
 0x2d0   : > { %v4332_v36 = vpop.permute.xlu1 %4331  ;;  %v4329_v20 = vunpack.i.h.bf16 %v4327_v11  ;;  %v4328_v54 = vunpack.i.l.bf16 %v4327_v11 }
 0x2d1   : > { %v4334_v44 = vunpack.i.h.bf16 %v4332_v36  ;;  %v4333_v49 = vunpack.i.l.bf16 %v4332_v36  ;;  %2785 = vmatprep.subr.bf16.mxu0 %v2423_v8 }
 0x2d2   : > { %v2343_v24 = vsel %vm2342_vm6, %v2278_v25, %v4328_v54  ;;  %v2344_v37 = vsel %vm2342_vm6, %v2279_v22, %v4329_v20 }
 0x2d3   : > { %v4337_v58 = vpop.permute.xlu0 %4336  ;;  %v2415_v12 = vpack.c.bf16 %v2344_v37, %v2343_v24  ;;  %v2311_v13 = vsel %vm2277_vm5, %v7544_v43, %v4334_v44  ;;  %v2310_v60 = vsel %vm2277_vm5, %v7545_v57, %v4333_v49 }
 0x2d4   : > { %v4342_v23 = vpop.permute.xlu1 %4341  ;;  %v4339_v47 = vunpack.i.h.bf16 %v4337_v58  ;;  %v4338_v14 = vunpack.i.l.bf16 %v4337_v58 }
 0x2d5   : > { %v4344_v4 = vunpack.i.h.bf16 %v4342_v23  ;;  %v4343_v19 = vunpack.i.l.bf16 %v4342_v23  ;;  %2786 = vmatpush3.bf16.msra.mxu0 %v2415_v12 }
 0x2d6   : > { %v2391_v27 = vsel %vm2342_vm6, %v2326_v18, %v4338_v14  ;;  %v2392_v21 = vsel %vm2342_vm6, %v2327_v62, %v4339_v47 }
 0x2d7   : > { %v2375_v48 = vsel %vm2342_vm6, %v2310_v60, %v4343_v19  ;;  %v2376_v38 = vsel %vm2342_vm6, %v2311_v13, %v4344_v4  ;;  %v2439_v1 = vpack.c.bf16 %v2392_v21, %v2391_v27 }
 0x2d8   : > { %v2431_v9 = vpack.c.bf16 %v2376_v38, %v2375_v48  ;;  %2544 = vmatmul.mubr.bf16.vlgmr.msra.gmra.mxu0 %v4347_v41 }
 0x2d9   : > { %2813 = vmatprep.subr.bf16.mxu1 %v2439_v1  ;;  %2551 = vmatprep.mubr.bf16.mxu0 %v4353_v56 }
 0x2da   : > { %2814 = vmatpush3.bf16.msra.mxu1 %v2431_v9 }
 0x2dd   : > { %2593 = vmatmul.mubr.bf16.vlgmr.msra.gmra.mxu1 %v4350_v33 }
 0x2de   : > { %2600 = vmatprep.mubr.bf16.mxu1 %v4356_v31 }
 0x2e0   : > { %2552 = vmatmul.mubr.bf16.gmra.mxu0 %v4355_v5  ;;  %v2454_v46 = vpop.permute.xlu0 %2453 }
 0x2e1   : > { %v2459_v16 = vpop.permute.xlu1 %2458 }
 0x2e4   : > { %v2469_v35 = vpop.permute.xlu0 %2468 }
 0x2e5   : > { %2601 = vmatmul.mubr.bf16.gmra.mxu1 %v4358_v39  ;;  %v2464_v55 = vpop.permute.xlu1 %2463 }
 0x398   : > { %v2787_v17 = vpop.f32.mrf.mxu0 }
 0x39a   : > { %v2788_v3 = vpop.f32.mrf.mxu0 }
 0x39b   : > { %v2789_v6 = vadd.f32 %v2788_v3, %v2787_v17 }
 0x39c   : > { %v2790_v52 = vpop.f32.mrf.mxu0 }
 0x39d   : > { %v2815_v15 = vpop.f32.mrf.mxu1  ;;  %v2546_v50 = vadd.f32 %v2789_v6, %v2454_v46 }
 0x39e   : > { %v2791_v42 = vpop.f32.mrf.mxu0 }
 0x39f   : > { %v2816_v45 = vpop.f32.mrf.mxu1  ;;  %v2792_v28 = vadd.f32 %v2791_v42, %v2790_v52 }
 0x3a0   : > { %v2817_v40 = vadd.f32 %v2816_v45, %v2815_v15  ;;  %v2793_v51 = vpop.f32.mrf.mxu0 }
 0x3a1   : > { %v2818_v10 = vpop.f32.mrf.mxu1  ;;  %v2549_v0 = vadd.f32 %v2792_v28, %v2459_v16 }
 0x3a2   : > { %v2595_v63 = vadd.f32 %v2817_v40, %v2546_v50  ;;  %v2794_v53 = vpop.f32.mrf.mxu0 }
 0x3a3   : > { %v2819_v32 = vpop.f32.mrf.mxu1  ;;  %v2795_v30 = vadd.f32 %v2794_v53, %v2793_v51 }
 0x3a4   : > { %2610 = vst.msk [vmem:[%s187_s8] sm:$0xff] %vm2609_vm7, %v2595_v63  ;;  %v2820_v2 = vadd.f32 %v2819_v32, %v2818_v10  ;;  %v2796_v29 = vpop.f32.mrf.mxu0 }
 0x3a5   : > { %v2821_v11 = vpop.f32.mrf.mxu1  ;;  %v2554_v25 = vadd.f32 %v2795_v30, %v2464_v55 }
 0x3a6   : > { %v2598_v36 = vadd.f32 %v2820_v2, %v2549_v0  ;;  %v2797_v8 = vpop.f32.mrf.mxu0 }
 0x3a7   : > { %v2822_v22 = vpop.f32.mrf.mxu1  ;;  %v2798_v20 = vadd.f32 %v2797_v8, %v2796_v29 }
 0x3a8   : > { %2611 = vst.msk [vmem:[%s187_s8 + $0x8] sm:$0xff] %vm2609_vm7, %v2598_v36  ;;  %v2823_v54 = vadd.f32 %v2822_v22, %v2821_v11 }
 0x3a9   : > { %v2824_v7 = vpop.f32.mrf.mxu1  ;;  %v2557_v24 = vadd.f32 %v2798_v20, %v2469_v35 }
 0x3aa   : > { %v2603_v44 = vadd.f32 %v2823_v54, %v2554_v25 }
 0x3ab   : > { %v2825_v49 = vpop.f32.mrf.mxu1 }
 0x3ac   : > { %2612 = vst.msk [vmem:[%s187_s8 + $0x10] sm:$0xff] %vm2609_vm7, %v2603_v44  ;;  %v2826_v37 = vadd.f32 %v2825_v49, %v2824_v7 }
 0x3ae   : > { %v2606_v61 = vadd.f32 %v2826_v37, %v2557_v24 }
 0x3b0   : > { %2613 = vst.msk [vmem:[%s187_s8 + $0x18] sm:$0xff] %vm2609_vm7, %v2606_v61 }
 0x3b1   : > { %4420 = shalt.err (!%p4417_p5)
}
 0x3b2   : > { %s4421_s28 = scalar_lea.hbm %s7012_s19, 512  ;;  %s4425_s4 = scalar_lea.hbm %s7066_s3, 1024 }
 0x3b3   : > { %p4422_p6 = scmp.ne.s32.totalorder %s7012_s19, %s4421_s28  ;;  %p4426_p10 = scmp.lt.s32.totalorder %s7012_s19, %s7066_s3 }
 0x3b4   : > { %p4427_p11 = scmp.lt.s32.totalorder %s4425_s4, %s4421_s28 }
 0x3b5   : > { %p4423_p7 = pnand %p4422_p6, %p4558_p4 }
 0x3b6   : > { %p4428_p12 = por %p4427_p11, %p4426_p10 }
 0x3b7   : > { %p4424_p9 = pneg %p4423_p7 }
 0x3b9   : > { %p4429_p13 = pnand %p4428_p12, %p4424_p9 }
 0x3bb   : > { %4432 = shalt.err (!%p4429_p13)
}
 0x3bc   : > { %s4497_s8 = smov 128  }
 0x3bd   : > { %2828 = dma.vmem_to_hbm [thread:$0]  (%p4558_p4), %s7007_s9, 512, %s7012_s19, %s7017_s21, %s4497_s8, %s4497_s8, %s4488_s7  }
 0x3be PF: > { %p2834_p0 = scmp.ge.s32.totalorder %s4483_s17, 2  ;;  %s2644_s10 = sand.u32 1, %s4463_s12  }
 0x3bf   : > { %s2645_s11 = scalar_lea.sflag [#allocation3], %s2644_s10 }
 0x3c0   : > { %p2831_p1 = pnand %p2834_p0, %p4565_p8 }
 0x3c2   : > { %p2832_p2 = pneg %p2831_p1 }
 0x3c4   : > { %4458 = dma.done.wait (%p2832_p2), %s2645_s11, 512  }
 0x3c5   : > { %4460 = vsyncadd (%p2832_p2), %s2645_s11, 4294966784  ;;  %s16_s17 = sadd.s32 1, %s4483_s17   ;;  %s7546_s12 = smov %s4467_s13 }
 0x3c6   : > { %p13_p3 = scmp.ge.s32.totalorder %s16_s17, 4   ;;  %s7547_s13 = smov %s4471_s14 }
 0x3c7   : > { %s7548_s14 = smov %s4571_s25  ;;  %s7549_s15 = smov %s4479_s16 }
 0x3c8   : > { %s7550_s16 = smov %s7552_s20  ;;  %15 = sbr.rel (!%p13_p3) target bundleno = 4 (0x4), region = 77 }
 0x3cd   :  { %2650 = vsyncpa [#allocation3], 1 }
 0x3ce   :  { %2652 = vsyncpa [#allocation3 + $0x1], 1 }

</bundles_post_ra>
